<compile_context>
chip_gen: v5e
topology: v5e:2x2
jax: 0.10.0
libtpu: 0.0.40
codegen_flags: <defaults>
</compile_context>

<pallas_src>
import functools

import jax
import jax.numpy as jnp
from jax.experimental import pallas as pl
from jax.experimental.pallas import tpu as pltpu


IN_CH = [3, 96, 128, 192]
OUT_CH = [96, 128, 192, 256]
POOLING_LAYERS = (0, 2)
LATENT_CHANNELS = 4
HEAD_LANES = 128          # lane-dense padded width of the fused mu/logvar head
BN_EPS = 1e-5


def _round_up(x, m):
    return (x + m - 1) // m * m


# ----------------------------- Pallas kernels ------------------------------


def _fused_stage_kernel(slab_ref, scale_ref, shift_ref, dmask_ref,
                        ml_ref, mr_ref, w_ref, b_ref, y_ref, stats_ref,
                        *, H, W, pool):
    """BN(prev) -> 3x3 conv -> bias -> ReLU -> [2x2 maxpool] -> BN stats."""
    cout = w_ref.shape[2]
    HW = H * W

    # Fold the previous stage's BatchNorm into the load; dmask keeps the
    # zero-pad rows of the slab at exactly zero (matches zero padding).
    x = (slab_ref[0] * scale_ref[...] + shift_ref[...]) * dmask_ref[...]
    ml = ml_ref[...]          # zero where output column w == 0
    mr = mr_ref[...]          # zero where output column w == W-1

    acc = jnp.zeros((HW, cout), jnp.float32)
    for i in range(3):                       # kernel row
        for j in range(3):                   # kernel column
            s = i * W + j                    # flat shift of this tap
            lhs = x[s:s + HW, :]
            if j == 0:
                lhs = lhs * ml
            elif j == 2:
                lhs = lhs * mr
            acc = acc + jnp.dot(lhs.astype(jnp.bfloat16), w_ref[i * 3 + j],
                                preferred_element_type=jnp.float32)

    acc = jnp.maximum(acc + b_ref[...], 0.0)          # bias + ReLU (f32)

    if pool:                                          # MaxPool2d(2, 2)
        a = acc.reshape(H // 2, 2 * W, cout)
        a = jnp.maximum(a[:, :W, :], a[:, W:, :])     # pool along H
        a = a.reshape((H // 2) * (W // 2), 2, cout)
        acc = jnp.maximum(a[:, 0, :], a[:, 1, :])     # pool along W

    y_ref[0] = acc
    # per-image partial BatchNorm statistics (kept in f32)
    stats_ref[0, 0:1, :] = jnp.sum(acc, axis=0, keepdims=True)
    stats_ref[0, 1:2, :] = jnp.sum(acc * acc, axis=0, keepdims=True)


def _head_kernel(x_ref, scale_ref, shift_ref, w_ref, b_ref, o_ref):
    """BN(last stage) + combined (lane-padded) mu/logvar 1x1 conv."""
    x = x_ref[0] * scale_ref[...] + shift_ref[...]
    o_ref[0] = jnp.dot(x.astype(jnp.bfloat16), w_ref[...],
                       preferred_element_type=jnp.float32) + b_ref[...]


# ------------------------------ op wrappers --------------------------------


def fused_stage(slab, scale, shift, dmask, mask_l, mask_r, w9, b, *, H, W, pool):
    N, R, cin = slab.shape
    cout = w9.shape[2]
    Ho, Wo = (H // 2, W // 2) if pool else (H, W)
    flops = 2 * N * H * W * 9 * cin * cout
    bytes_accessed = (4 * (N * R * cin + N * Ho * Wo * cout + N * 2 * cout)
                      + 2 * 9 * cin * cout)
    return pl.pallas_call(
        functools.partial(_fused_stage_kernel, H=H, W=W, pool=pool),
        grid=(N,),
        in_specs=[
            pl.BlockSpec((1, R, cin), lambda n: (n, 0, 0)),      # activation slab
            pl.BlockSpec((1, cin), lambda n: (0, 0)),            # BN scale (prev)
            pl.BlockSpec((1, cin), lambda n: (0, 0)),            # BN shift (prev)
            pl.BlockSpec((R, 1), lambda n: (0, 0)),              # data-row mask
            pl.BlockSpec((H * W, 1), lambda n: (0, 0)),          # left-tap mask
            pl.BlockSpec((H * W, 1), lambda n: (0, 0)),          # right-tap mask
            pl.BlockSpec((9, cin, cout), lambda n: (0, 0, 0)),   # conv taps (bf16)
            pl.BlockSpec((1, cout), lambda n: (0, 0)),           # bias
        ],
        out_specs=(
            pl.BlockSpec((1, Ho * Wo, cout), lambda n: (n, 0, 0)),
            pl.BlockSpec((1, 2, cout), lambda n: (n, 0, 0)),
        ),
        out_shape=(
            jax.ShapeDtypeStruct((N, Ho * Wo, cout), jnp.float32),
            jax.ShapeDtypeStruct((N, 2, cout), jnp.float32),
        ),
        compiler_params=pltpu.CompilerParams(
            dimension_semantics=("parallel",),
            vmem_limit_bytes=32 * 1024 * 1024),
        cost_estimate=pl.CostEstimate(flops=flops, transcendentals=0,
                                      bytes_accessed=bytes_accessed),
    )(slab, scale, shift, dmask, mask_l, mask_r, w9, b)


def fused_head(y, scale, shift, w, b):
    N, M, K = y.shape
    NO = w.shape[1]
    return pl.pallas_call(
        _head_kernel,
        grid=(N,),
        in_specs=[
            pl.BlockSpec((1, M, K), lambda n: (n, 0, 0)),
            pl.BlockSpec((1, K), lambda n: (0, 0)),
            pl.BlockSpec((1, K), lambda n: (0, 0)),
            pl.BlockSpec((K, NO), lambda n: (0, 0)),
            pl.BlockSpec((1, NO), lambda n: (0, 0)),
        ],
        out_specs=pl.BlockSpec((1, M, NO), lambda n: (n, 0, 0)),
        out_shape=jax.ShapeDtypeStruct((N, M, NO), jnp.float32),
        compiler_params=pltpu.CompilerParams(
            dimension_semantics=("parallel",),
            vmem_limit_bytes=32 * 1024 * 1024),
        cost_estimate=pl.CostEstimate(
            flops=2 * N * M * K * NO, transcendentals=0,
            bytes_accessed=4 * (N * M * K + N * M * NO) + 2 * K * NO),
    )(y, scale, shift, w, b)


def _stage_masks(H, W, R):
    rows = jnp.arange(R)
    dmask = ((rows >= W + 1) & (rows < W + 1 + H * W)).astype(jnp.float32)[:, None]
    r = jnp.arange(H * W)
    mask_l = (r % W != 0).astype(jnp.float32)[:, None]
    mask_r = (r % W != W - 1).astype(jnp.float32)[:, None]
    return dmask, mask_l, mask_r


def _bn_scale_shift(stats, gamma, beta, count, eps=BN_EPS):
    s = jnp.sum(stats[:, 0, :], axis=0)
    ss = jnp.sum(stats[:, 1, :], axis=0)
    mean = s / count
    var = jnp.maximum(ss / count - mean * mean, 0.0)   # biased variance
    scale = gamma * jax.lax.rsqrt(var + eps)
    shift = beta - mean * scale
    return scale[None, :], shift[None, :]


# --------------------------- VAEncoder forward -----------------------------


def init_params(key):
    params = {}
    keys = jax.random.split(key, 2 * LATENT_CHANNELS + 4)
    ki = 0
    for i in range(LATENT_CHANNELS):
        cin, cout = IN_CH[i], OUT_CH[i]
        fan_in = cin * 9
        w = (jax.random.normal(keys[ki], (3, 3, cin, cout), jnp.float32)
             / jnp.sqrt(fan_in))
        ki += 1
        b = 0.01 * jax.random.normal(keys[ki], (cout,), jnp.float32)
        ki += 1
        params[f"enc_{i}"] = dict(w=w, b=b,
                                  gamma=jnp.ones((cout,), jnp.float32),
                                  beta=jnp.zeros((cout,), jnp.float32))
    for name in ("mu", "logvar"):
        w = (jax.random.normal(keys[ki], (1, 1, OUT_CH[-1], LATENT_CHANNELS),
                               jnp.float32) / jnp.sqrt(OUT_CH[-1]))
        ki += 1
        b = 0.01 * jax.random.normal(keys[ki], (LATENT_CHANNELS,), jnp.float32)
        ki += 1
        params[name] = dict(w=w, b=b)
    return params


@jax.jit
def vae_encoder_forward(x_nchw, params):
    # NCHW (PyTorch) -> NHWC (channels on the 128-lane axis)
    x = jnp.transpose(x_nchw, (0, 2, 3, 1)).astype(jnp.float32)
    N, H, W, C = x.shape
    y = x.reshape(N, H * W, C)
    scale = jnp.ones((1, C), jnp.float32)     # identity "previous BN" for layer 0
    shift = jnp.zeros((1, C), jnp.float32)

    for i in range(LATENT_CHANNELS):
        p = params[f"enc_{i}"]
        cin, cout = IN_CH[i], OUT_CH[i]
        pool = i in POOLING_LAYERS
        hw = H * W
        R = _round_up(hw + 2 * W + 2, 8)
        # flat slab with W+1 zero rows on each end (H padding; W padding is
        # emulated by the left/right tap masks inside the kernel)
        slab = jnp.pad(y, ((0, 0), (W + 1, R - hw - W - 1), (0, 0)))
        dmask, mask_l, mask_r = _stage_masks(H, W, R)
        w9 = p["w"].reshape(9, cin, cout).astype(jnp.bfloat16)
        b = p["b"].reshape(1, cout)
        y, stats = fused_stage(slab, scale, shift, dmask, mask_l, mask_r,
                               w9, b, H=H, W=W, pool=pool)
        if pool:
            H, W = H // 2, W // 2
        # per-channel batch stats -> scale/shift folded into the NEXT kernel
        scale, shift = _bn_scale_shift(stats, p["gamma"], p["beta"], N * H * W)

    # fused, lane-padded mu/logvar head: BN(stage 3) + combined 1x1 conv
    w_mu = params["mu"]["w"].reshape(OUT_CH[-1], LATENT_CHANNELS)
    w_lv = params["logvar"]["w"].reshape(OUT_CH[-1], LATENT_CHANNELS)
    w_head = jnp.concatenate(
        [w_mu, w_lv,
         jnp.zeros((OUT_CH[-1], HEAD_LANES - 2 * LATENT_CHANNELS), jnp.float32)],
        axis=1).astype(jnp.bfloat16)
    b_head = jnp.concatenate(
        [params["mu"]["b"], params["logvar"]["b"],
         jnp.zeros((HEAD_LANES - 2 * LATENT_CHANNELS,), jnp.float32)])[None, :]
    out = fused_head(y, scale, shift, w_head, b_head)          # (N, H*W, 128)

    mu = out[..., :LATENT_CHANNELS].reshape(N, H, W, LATENT_CHANNELS)
    logvar = out[..., LATENT_CHANNELS:2 * LATENT_CHANNELS].reshape(
        N, H, W, LATENT_CHANNELS)
    # TODO(synk): original forward also print()s the mu/logvar shapes; omitted.
    return jnp.transpose(mu, (0, 3, 1, 2)), jnp.transpose(logvar, (0, 3, 1, 2))


# ----------------------- pure-JAX reference (sanity) ------------------------


def _reference_forward(x_nchw, params):
    x = jnp.transpose(x_nchw, (0, 2, 3, 1)).astype(jnp.float32)
    for i in range(LATENT_CHANNELS):
        p = params[f"enc_{i}"]
        x = jax.lax.conv_general_dilated(
            x, p["w"], window_strides=(1, 1), padding="SAME",
            dimension_numbers=("NHWC", "HWIO", "NHWC"))
        x = jnp.maximum(x + p["b"], 0.0)
        if i in POOLING_LAYERS:
            x = jax.lax.reduce_window(x, -jnp.inf, jax.lax.max,
                                      (1, 2, 2, 1), (1, 2, 2, 1), "VALID")
        mean = jnp.mean(x, axis=(0, 1, 2))
        var = jnp.var(x, axis=(0, 1, 2))
        x = (x - mean) * jax.lax.rsqrt(var + BN_EPS) * p["gamma"] + p["beta"]

    def head(name):
        w = params[name]["w"].reshape(OUT_CH[-1], LATENT_CHANNELS)
        return jnp.einsum("nhwc,cl->nhwl", x, w) + params[name]["b"]

    mu, logvar = head("mu"), head("logvar")
    return jnp.transpose(mu, (0, 3, 1, 2)), jnp.transpose(logvar, (0, 3, 1, 2))


if __name__ == "__main__":
    key = jax.random.PRNGKey(0)
    kx, kp = jax.random.split(key)
    x = jax.random.normal(kx, (2, 3, 16, 16), jnp.float32)    # NCHW, like PyTorch
    params = init_params(kp)

    mu, logvar = vae_encoder_forward(x, params)
    jax.block_until_ready((mu, logvar))

    assert mu.shape == (2, LATENT_CHANNELS, 4, 4), mu.shape    # 16 -> 8 -> 4
    assert logvar.shape == (2, LATENT_CHANNELS, 4, 4), logvar.shape

    # numerical sanity check vs. pure-JAX reference (bf16-MXU tolerance)
    mu_ref, logvar_ref = jax.jit(_reference_forward)(x, params)
    assert float(jnp.max(jnp.abs(mu - mu_ref))) < 0.25
    assert float(jnp.max(jnp.abs(logvar - logvar_ref))) < 0.25

    print("KERNEL_OK")
</pallas_src>

<mosaic_0001>
module attributes {stable_mosaic.version = 11 : i64} {
  func.func @_fused_stage_kernel(%arg0: i32, %arg1: memref<1x296x3xf32, #tpu.memory_space<vmem>>, %arg2: memref<1x3xf32, #tpu.memory_space<vmem>>, %arg3: memref<1x3xf32, #tpu.memory_space<vmem>>, %arg4: memref<296x1xf32, #tpu.memory_space<vmem>>, %arg5: memref<256x1xf32, #tpu.memory_space<vmem>>, %arg6: memref<256x1xf32, #tpu.memory_space<vmem>>, %arg7: memref<9x3x96xbf16, #tpu.memory_space<vmem>>, %arg8: memref<1x96xf32, #tpu.memory_space<vmem>>, %arg9: memref<1x64x96xf32, #tpu.memory_space<vmem>>, %arg10: memref<1x2x96xf32, #tpu.memory_space<vmem>>) attributes {dimension_semantics = [#tpu.dimension_semantics<parallel>], iteration_bounds = array<i64: 2>, scalar_prefetch = 0 : i64, scratch_operands = 0 : i64, tpu.core_type = #tpu.core_type<tc>, window_params = [{transform_indices = @transform_0, window_bounds = array<i64: 1, 296, 3>}, {pipeline_mode = #tpu.pipeline_mode<synchronous>, transform_indices = @transform_1, window_bounds = array<i64: 1, 3>}, {pipeline_mode = #tpu.pipeline_mode<synchronous>, transform_indices = @transform_2, window_bounds = array<i64: 1, 3>}, {pipeline_mode = #tpu.pipeline_mode<synchronous>, transform_indices = @transform_3, window_bounds = array<i64: 296, 1>}, {pipeline_mode = #tpu.pipeline_mode<synchronous>, transform_indices = @transform_4, window_bounds = array<i64: 256, 1>}, {pipeline_mode = #tpu.pipeline_mode<synchronous>, transform_indices = @transform_5, window_bounds = array<i64: 256, 1>}, {pipeline_mode = #tpu.pipeline_mode<synchronous>, transform_indices = @transform_6, window_bounds = array<i64: 9, 3, 96>}, {pipeline_mode = #tpu.pipeline_mode<synchronous>, transform_indices = @transform_7, window_bounds = array<i64: 1, 96>}, {transform_indices = @transform_8, window_bounds = array<i64: 1, 64, 96>}, {transform_indices = @transform_9, window_bounds = array<i64: 1, 2, 96>}]} {
    %c0 = arith.constant 0 : index
    %c0_0 = arith.constant 0 : index
    %c0_1 = arith.constant 0 : index
    %0 = vector.load %arg1[%c0, %c0_0, %c0_1] : memref<1x296x3xf32, #tpu.memory_space<vmem>>, vector<1x296x3xf32>
    %1 = vector.shape_cast %0 : vector<1x296x3xf32> to vector<296x3xf32>
    %c0_2 = arith.constant 0 : index
    %c0_3 = arith.constant 0 : index
    %2 = vector.load %arg2[%c0_2, %c0_3] : memref<1x3xf32, #tpu.memory_space<vmem>>, vector<1x3xf32>
    %3 = vector.broadcast %2 : vector<1x3xf32> to vector<296x3xf32>
    %4 = arith.mulf %1, %3 : vector<296x3xf32>
    %c0_4 = arith.constant 0 : index
    %c0_5 = arith.constant 0 : index
    %5 = vector.load %arg3[%c0_4, %c0_5] : memref<1x3xf32, #tpu.memory_space<vmem>>, vector<1x3xf32>
    %6 = vector.broadcast %5 : vector<1x3xf32> to vector<296x3xf32>
    %7 = arith.addf %4, %6 : vector<296x3xf32>
    %c0_6 = arith.constant 0 : index
    %c0_7 = arith.constant 0 : index
    %8 = vector.load %arg4[%c0_6, %c0_7] : memref<296x1xf32, #tpu.memory_space<vmem>>, vector<296x1xf32>
    %9 = vector.broadcast %8 : vector<296x1xf32> to vector<296x3xf32>
    %10 = arith.mulf %7, %9 : vector<296x3xf32>
    %c0_8 = arith.constant 0 : index
    %c0_9 = arith.constant 0 : index
    %11 = vector.load %arg5[%c0_8, %c0_9] : memref<256x1xf32, #tpu.memory_space<vmem>>, vector<256x1xf32>
    %c0_10 = arith.constant 0 : index
    %c0_11 = arith.constant 0 : index
    %12 = vector.load %arg6[%c0_10, %c0_11] : memref<256x1xf32, #tpu.memory_space<vmem>>, vector<256x1xf32>
    %cst = arith.constant 0.000000e+00 : f32
    %13 = vector.broadcast %cst : f32 to vector<256x96xf32>
    %14 = vector.extract_strided_slice %10 {offsets = [0, 0], sizes = [256, 3], strides = [1, 1]} : vector<296x3xf32> to vector<256x3xf32>
    %15 = vector.broadcast %11 : vector<256x1xf32> to vector<256x3xf32>
    %16 = arith.mulf %14, %15 : vector<256x3xf32>
    %17 = arith.truncf %16 : vector<256x3xf32> to vector<256x3xbf16>
    %c0_12 = arith.constant 0 : index
    %c0_13 = arith.constant 0 : index
    %c0_14 = arith.constant 0 : index
    %18 = vector.load %arg7[%c0_12, %c0_13, %c0_14] : memref<9x3x96xbf16, #tpu.memory_space<vmem>>, vector<1x3x96xbf16>
    %19 = vector.shape_cast %18 : vector<1x3x96xbf16> to vector<3x96xbf16>
    %cst_15 = arith.constant dense<0.000000e+00> : vector<256x96xf32>
    %20 = tpu.matmul %17, %19, %cst_15 {dimension_numbers = #tpu.dot_dimension_numbers<[1], [0], [0], [1], [0, 0, 1, 1], [], []>} : vector<256x3xbf16>, vector<3x96xbf16>, vector<256x96xf32> -> vector<256x96xf32>
    %21 = arith.addf %13, %20 : vector<256x96xf32>
    %22 = vector.extract_strided_slice %10 {offsets = [1, 0], sizes = [256, 3], strides = [1, 1]} : vector<296x3xf32> to vector<256x3xf32>
    %23 = arith.truncf %22 : vector<256x3xf32> to vector<256x3xbf16>
    %c1 = arith.constant 1 : index
    %c0_16 = arith.constant 0 : index
    %c0_17 = arith.constant 0 : index
    %24 = vector.load %arg7[%c1, %c0_16, %c0_17] : memref<9x3x96xbf16, #tpu.memory_space<vmem>>, vector<1x3x96xbf16>
    %25 = vector.shape_cast %24 : vector<1x3x96xbf16> to vector<3x96xbf16>
    %cst_18 = arith.constant dense<0.000000e+00> : vector<256x96xf32>
    %26 = tpu.matmul %23, %25, %cst_18 {dimension_numbers = #tpu.dot_dimension_numbers<[1], [0], [0], [1], [0, 0, 1, 1], [], []>} : vector<256x3xbf16>, vector<3x96xbf16>, vector<256x96xf32> -> vector<256x96xf32>
    %27 = arith.addf %21, %26 : vector<256x96xf32>
    %28 = vector.extract_strided_slice %10 {offsets = [2, 0], sizes = [256, 3], strides = [1, 1]} : vector<296x3xf32> to vector<256x3xf32>
    %29 = vector.broadcast %12 : vector<256x1xf32> to vector<256x3xf32>
    %30 = arith.mulf %28, %29 : vector<256x3xf32>
    %31 = arith.truncf %30 : vector<256x3xf32> to vector<256x3xbf16>
    %c2 = arith.constant 2 : index
    %c0_19 = arith.constant 0 : index
    %c0_20 = arith.constant 0 : index
    %32 = vector.load %arg7[%c2, %c0_19, %c0_20] : memref<9x3x96xbf16, #tpu.memory_space<vmem>>, vector<1x3x96xbf16>
    %33 = vector.shape_cast %32 : vector<1x3x96xbf16> to vector<3x96xbf16>
    %cst_21 = arith.constant dense<0.000000e+00> : vector<256x96xf32>
    %34 = tpu.matmul %31, %33, %cst_21 {dimension_numbers = #tpu.dot_dimension_numbers<[1], [0], [0], [1], [0, 0, 1, 1], [], []>} : vector<256x3xbf16>, vector<3x96xbf16>, vector<256x96xf32> -> vector<256x96xf32>
    %35 = arith.addf %27, %34 : vector<256x96xf32>
    %36 = vector.extract_strided_slice %10 {offsets = [16, 0], sizes = [256, 3], strides = [1, 1]} : vector<296x3xf32> to vector<256x3xf32>
    %37 = vector.broadcast %11 : vector<256x1xf32> to vector<256x3xf32>
    %38 = arith.mulf %36, %37 : vector<256x3xf32>
    %39 = arith.truncf %38 : vector<256x3xf32> to vector<256x3xbf16>
    %c3 = arith.constant 3 : index
    %c0_22 = arith.constant 0 : index
    %c0_23 = arith.constant 0 : index
    %40 = vector.load %arg7[%c3, %c0_22, %c0_23] : memref<9x3x96xbf16, #tpu.memory_space<vmem>>, vector<1x3x96xbf16>
    %41 = vector.shape_cast %40 : vector<1x3x96xbf16> to vector<3x96xbf16>
    %cst_24 = arith.constant dense<0.000000e+00> : vector<256x96xf32>
    %42 = tpu.matmul %39, %41, %cst_24 {dimension_numbers = #tpu.dot_dimension_numbers<[1], [0], [0], [1], [0, 0, 1, 1], [], []>} : vector<256x3xbf16>, vector<3x96xbf16>, vector<256x96xf32> -> vector<256x96xf32>
    %43 = arith.addf %35, %42 : vector<256x96xf32>
    %44 = vector.extract_strided_slice %10 {offsets = [17, 0], sizes = [256, 3], strides = [1, 1]} : vector<296x3xf32> to vector<256x3xf32>
    %45 = arith.truncf %44 : vector<256x3xf32> to vector<256x3xbf16>
    %c4 = arith.constant 4 : index
    %c0_25 = arith.constant 0 : index
    %c0_26 = arith.constant 0 : index
    %46 = vector.load %arg7[%c4, %c0_25, %c0_26] : memref<9x3x96xbf16, #tpu.memory_space<vmem>>, vector<1x3x96xbf16>
    %47 = vector.shape_cast %46 : vector<1x3x96xbf16> to vector<3x96xbf16>
    %cst_27 = arith.constant dense<0.000000e+00> : vector<256x96xf32>
    %48 = tpu.matmul %45, %47, %cst_27 {dimension_numbers = #tpu.dot_dimension_numbers<[1], [0], [0], [1], [0, 0, 1, 1], [], []>} : vector<256x3xbf16>, vector<3x96xbf16>, vector<256x96xf32> -> vector<256x96xf32>
    %49 = arith.addf %43, %48 : vector<256x96xf32>
    %50 = vector.extract_strided_slice %10 {offsets = [18, 0], sizes = [256, 3], strides = [1, 1]} : vector<296x3xf32> to vector<256x3xf32>
    %51 = vector.broadcast %12 : vector<256x1xf32> to vector<256x3xf32>
    %52 = arith.mulf %50, %51 : vector<256x3xf32>
    %53 = arith.truncf %52 : vector<256x3xf32> to vector<256x3xbf16>
    %c5 = arith.constant 5 : index
    %c0_28 = arith.constant 0 : index
    %c0_29 = arith.constant 0 : index
    %54 = vector.load %arg7[%c5, %c0_28, %c0_29] : memref<9x3x96xbf16, #tpu.memory_space<vmem>>, vector<1x3x96xbf16>
    %55 = vector.shape_cast %54 : vector<1x3x96xbf16> to vector<3x96xbf16>
    %cst_30 = arith.constant dense<0.000000e+00> : vector<256x96xf32>
    %56 = tpu.matmul %53, %55, %cst_30 {dimension_numbers = #tpu.dot_dimension_numbers<[1], [0], [0], [1], [0, 0, 1, 1], [], []>} : vector<256x3xbf16>, vector<3x96xbf16>, vector<256x96xf32> -> vector<256x96xf32>
    %57 = arith.addf %49, %56 : vector<256x96xf32>
    %58 = vector.extract_strided_slice %10 {offsets = [32, 0], sizes = [256, 3], strides = [1, 1]} : vector<296x3xf32> to vector<256x3xf32>
    %59 = vector.broadcast %11 : vector<256x1xf32> to vector<256x3xf32>
    %60 = arith.mulf %58, %59 : vector<256x3xf32>
    %61 = arith.truncf %60 : vector<256x3xf32> to vector<256x3xbf16>
    %c6 = arith.constant 6 : index
    %c0_31 = arith.constant 0 : index
    %c0_32 = arith.constant 0 : index
    %62 = vector.load %arg7[%c6, %c0_31, %c0_32] : memref<9x3x96xbf16, #tpu.memory_space<vmem>>, vector<1x3x96xbf16>
    %63 = vector.shape_cast %62 : vector<1x3x96xbf16> to vector<3x96xbf16>
    %cst_33 = arith.constant dense<0.000000e+00> : vector<256x96xf32>
    %64 = tpu.matmul %61, %63, %cst_33 {dimension_numbers = #tpu.dot_dimension_numbers<[1], [0], [0], [1], [0, 0, 1, 1], [], []>} : vector<256x3xbf16>, vector<3x96xbf16>, vector<256x96xf32> -> vector<256x96xf32>
    %65 = arith.addf %57, %64 : vector<256x96xf32>
    %66 = vector.extract_strided_slice %10 {offsets = [33, 0], sizes = [256, 3], strides = [1, 1]} : vector<296x3xf32> to vector<256x3xf32>
    %67 = arith.truncf %66 : vector<256x3xf32> to vector<256x3xbf16>
    %c7 = arith.constant 7 : index
    %c0_34 = arith.constant 0 : index
    %c0_35 = arith.constant 0 : index
    %68 = vector.load %arg7[%c7, %c0_34, %c0_35] : memref<9x3x96xbf16, #tpu.memory_space<vmem>>, vector<1x3x96xbf16>
    %69 = vector.shape_cast %68 : vector<1x3x96xbf16> to vector<3x96xbf16>
    %cst_36 = arith.constant dense<0.000000e+00> : vector<256x96xf32>
    %70 = tpu.matmul %67, %69, %cst_36 {dimension_numbers = #tpu.dot_dimension_numbers<[1], [0], [0], [1], [0, 0, 1, 1], [], []>} : vector<256x3xbf16>, vector<3x96xbf16>, vector<256x96xf32> -> vector<256x96xf32>
    %71 = arith.addf %65, %70 : vector<256x96xf32>
    %72 = vector.extract_strided_slice %10 {offsets = [34, 0], sizes = [256, 3], strides = [1, 1]} : vector<296x3xf32> to vector<256x3xf32>
    %73 = vector.broadcast %12 : vector<256x1xf32> to vector<256x3xf32>
    %74 = arith.mulf %72, %73 : vector<256x3xf32>
    %75 = arith.truncf %74 : vector<256x3xf32> to vector<256x3xbf16>
    %c8 = arith.constant 8 : index
    %c0_37 = arith.constant 0 : index
    %c0_38 = arith.constant 0 : index
    %76 = vector.load %arg7[%c8, %c0_37, %c0_38] : memref<9x3x96xbf16, #tpu.memory_space<vmem>>, vector<1x3x96xbf16>
    %77 = vector.shape_cast %76 : vector<1x3x96xbf16> to vector<3x96xbf16>
    %cst_39 = arith.constant dense<0.000000e+00> : vector<256x96xf32>
    %78 = tpu.matmul %75, %77, %cst_39 {dimension_numbers = #tpu.dot_dimension_numbers<[1], [0], [0], [1], [0, 0, 1, 1], [], []>} : vector<256x3xbf16>, vector<3x96xbf16>, vector<256x96xf32> -> vector<256x96xf32>
    %79 = arith.addf %71, %78 : vector<256x96xf32>
    %c0_40 = arith.constant 0 : index
    %c0_41 = arith.constant 0 : index
    %80 = vector.load %arg8[%c0_40, %c0_41] : memref<1x96xf32, #tpu.memory_space<vmem>>, vector<1x96xf32>
    %81 = vector.broadcast %80 : vector<1x96xf32> to vector<256x96xf32>
    %82 = arith.addf %79, %81 : vector<256x96xf32>
    %cst_42 = arith.constant 0.000000e+00 : f32
    %83 = vector.broadcast %cst_42 : f32 to vector<256x96xf32>
    %84 = arith.maximumf %82, %83 : vector<256x96xf32>
    %85 = vector.shape_cast %84 : vector<256x96xf32> to vector<8x32x96xf32>
    %86 = vector.extract_strided_slice %85 {offsets = [0, 0, 0], sizes = [8, 16, 96], strides = [1, 1, 1]} : vector<8x32x96xf32> to vector<8x16x96xf32>
    %87 = vector.extract_strided_slice %85 {offsets = [0, 16, 0], sizes = [8, 16, 96], strides = [1, 1, 1]} : vector<8x32x96xf32> to vector<8x16x96xf32>
    %88 = arith.maximumf %86, %87 : vector<8x16x96xf32>
    %89 = vector.shape_cast %88 : vector<8x16x96xf32> to vector<64x2x96xf32>
    %90 = vector.extract_strided_slice %89 {offsets = [0, 0, 0], sizes = [64, 1, 96], strides = [1, 1, 1]} : vector<64x2x96xf32> to vector<64x1x96xf32>
    %91 = vector.shape_cast %90 : vector<64x1x96xf32> to vector<64x96xf32>
    %92 = vector.extract_strided_slice %89 {offsets = [0, 1, 0], sizes = [64, 1, 96], strides = [1, 1, 1]} : vector<64x2x96xf32> to vector<64x1x96xf32>
    %93 = vector.shape_cast %92 : vector<64x1x96xf32> to vector<64x96xf32>
    %94 = arith.maximumf %91, %93 : vector<64x96xf32>
    %c0_43 = arith.constant 0 : index
    %c0_44 = arith.constant 0 : index
    %c0_45 = arith.constant 0 : index
    %95 = vector.load %arg9[%c0_43, %c0_44, %c0_45] : memref<1x64x96xf32, #tpu.memory_space<vmem>>, vector<1x64x96xf32>
    %96 = vector.shape_cast %95 : vector<1x64x96xf32> to vector<64x96xf32>
    %97 = vector.shape_cast %94 : vector<64x96xf32> to vector<1x64x96xf32>
    tpu.vector_store %arg9[%c0_43, %c0_44, %c0_45], %97 {strides = array<i32>} : memref<1x64x96xf32, #tpu.memory_space<vmem>>, vector<1x64x96xf32>,
    %cst_46 = arith.constant dense<0.000000e+00> : vector<96xf32>
    %98 = vector.multi_reduction <add>, %94, %cst_46 [0] : vector<64x96xf32> to vector<96xf32>
    %99 = vector.shape_cast %98 : vector<96xf32> to vector<1x96xf32>
    %c0_47 = arith.constant 0 : index
    %c0_48 = arith.constant 0 : index
    %c0_49 = arith.constant 0 : index
    %100 = vector.load %arg10[%c0_47, %c0_48, %c0_49] : memref<1x2x96xf32, #tpu.memory_space<vmem>>, vector<1x1x96xf32>
    %101 = vector.shape_cast %100 : vector<1x1x96xf32> to vector<1x96xf32>
    %102 = vector.shape_cast %99 : vector<1x96xf32> to vector<1x1x96xf32>
    tpu.vector_store %arg10[%c0_47, %c0_48, %c0_49], %102 {strides = array<i32>} : memref<1x2x96xf32, #tpu.memory_space<vmem>>, vector<1x1x96xf32>,
    %103 = arith.mulf %94, %94 : vector<64x96xf32>
    %cst_50 = arith.constant dense<0.000000e+00> : vector<96xf32>
    %104 = vector.multi_reduction <add>, %103, %cst_50 [0] : vector<64x96xf32> to vector<96xf32>
    %105 = vector.shape_cast %104 : vector<96xf32> to vector<1x96xf32>
    %c0_51 = arith.constant 0 : index
    %c1_52 = arith.constant 1 : index
    %c0_53 = arith.constant 0 : index
    %106 = vector.load %arg10[%c0_51, %c1_52, %c0_53] : memref<1x2x96xf32, #tpu.memory_space<vmem>>, vector<1x1x96xf32>
    %107 = vector.shape_cast %106 : vector<1x1x96xf32> to vector<1x96xf32>
    %108 = vector.shape_cast %105 : vector<1x96xf32> to vector<1x1x96xf32>
    tpu.vector_store %arg10[%c0_51, %c1_52, %c0_53], %108 {strides = array<i32>} : memref<1x2x96xf32, #tpu.memory_space<vmem>>, vector<1x1x96xf32>,
    return
  }
  func.func @transform_0(%arg0: i32) -> (i32, i32, i32) {
    %c0_i32 = arith.constant 0 : i32
    %c0_i32_0 = arith.constant 0 : i32
    %c0_i32_1 = arith.constant 0 : i32
    return %arg0, %c0_i32, %c0_i32_0 : i32, i32, i32
  }
  func.func @transform_1(%arg0: i32) -> (i32, i32) {
    %c0_i32 = arith.constant 0 : i32
    %c0_i32_0 = arith.constant 0 : i32
    %c0_i32_1 = arith.constant 0 : i32
    return %c0_i32, %c0_i32_0 : i32, i32
  }
  func.func @transform_2(%arg0: i32) -> (i32, i32) {
    %c0_i32 = arith.constant 0 : i32
    %c0_i32_0 = arith.constant 0 : i32
    %c0_i32_1 = arith.constant 0 : i32
    return %c0_i32, %c0_i32_0 : i32, i32
  }
  func.func @transform_3(%arg0: i32) -> (i32, i32) {
    %c0_i32 = arith.constant 0 : i32
    %c0_i32_0 = arith.constant 0 : i32
    %c0_i32_1 = arith.constant 0 : i32
    return %c0_i32, %c0_i32_0 : i32, i32
  }
  func.func @transform_4(%arg0: i32) -> (i32, i32) {
    %c0_i32 = arith.constant 0 : i32
    %c0_i32_0 = arith.constant 0 : i32
    %c0_i32_1 = arith.constant 0 : i32
    return %c0_i32, %c0_i32_0 : i32, i32
  }
  func.func @transform_5(%arg0: i32) -> (i32, i32) {
    %c0_i32 = arith.constant 0 : i32
    %c0_i32_0 = arith.constant 0 : i32
    %c0_i32_1 = arith.constant 0 : i32
    return %c0_i32, %c0_i32_0 : i32, i32
  }
  func.func @transform_6(%arg0: i32) -> (i32, i32, i32) {
    %c0_i32 = arith.constant 0 : i32
    %c0_i32_0 = arith.constant 0 : i32
    %c0_i32_1 = arith.constant 0 : i32
    %c0_i32_2 = arith.constant 0 : i32
    return %c0_i32, %c0_i32_0, %c0_i32_1 : i32, i32, i32
  }
  func.func @transform_7(%arg0: i32) -> (i32, i32) {
    %c0_i32 = arith.constant 0 : i32
    %c0_i32_0 = arith.constant 0 : i32
    %c0_i32_1 = arith.constant 0 : i32
    return %c0_i32, %c0_i32_0 : i32, i32
  }
  func.func @transform_8(%arg0: i32) -> (i32, i32, i32) {
    %c0_i32 = arith.constant 0 : i32
    %c0_i32_0 = arith.constant 0 : i32
    %c0_i32_1 = arith.constant 0 : i32
    return %arg0, %c0_i32, %c0_i32_0 : i32, i32, i32
  }
  func.func @transform_9(%arg0: i32) -> (i32, i32, i32) {
    %c0_i32 = arith.constant 0 : i32
    %c0_i32_0 = arith.constant 0 : i32
    %c0_i32_1 = arith.constant 0 : i32
    return %arg0, %c0_i32, %c0_i32_0 : i32, i32, i32
  }
}

module attributes {stable_mosaic.version = 11 : i64} {
  func.func @_fused_stage_kernel(%arg0: i32, %arg1: memref<1x88x96xf32, #tpu.memory_space<vmem>>, %arg2: memref<1x96xf32, #tpu.memory_space<vmem>>, %arg3: memref<1x96xf32, #tpu.memory_space<vmem>>, %arg4: memref<88x1xf32, #tpu.memory_space<vmem>>, %arg5: memref<64x1xf32, #tpu.memory_space<vmem>>, %arg6: memref<64x1xf32, #tpu.memory_space<vmem>>, %arg7: memref<9x96x128xbf16, #tpu.memory_space<vmem>>, %arg8: memref<1x128xf32, #tpu.memory_space<vmem>>, %arg9: memref<1x64x128xf32, #tpu.memory_space<vmem>>, %arg10: memref<1x2x128xf32, #tpu.memory_space<vmem>>) attributes {dimension_semantics = [#tpu.dimension_semantics<parallel>], iteration_bounds = array<i64: 2>, scalar_prefetch = 0 : i64, scratch_operands = 0 : i64, tpu.core_type = #tpu.core_type<tc>, window_params = [{transform_indices = @transform_0, window_bounds = array<i64: 1, 88, 96>}, {pipeline_mode = #tpu.pipeline_mode<synchronous>, transform_indices = @transform_1, window_bounds = array<i64: 1, 96>}, {pipeline_mode = #tpu.pipeline_mode<synchronous>, transform_indices = @transform_2, window_bounds = array<i64: 1, 96>}, {pipeline_mode = #tpu.pipeline_mode<synchronous>, transform_indices = @transform_3, window_bounds = array<i64: 88, 1>}, {pipeline_mode = #tpu.pipeline_mode<synchronous>, transform_indices = @transform_4, window_bounds = array<i64: 64, 1>}, {pipeline_mode = #tpu.pipeline_mode<synchronous>, transform_indices = @transform_5, window_bounds = array<i64: 64, 1>}, {pipeline_mode = #tpu.pipeline_mode<synchronous>, transform_indices = @transform_6, window_bounds = array<i64: 9, 96, 128>}, {pipeline_mode = #tpu.pipeline_mode<synchronous>, transform_indices = @transform_7, window_bounds = array<i64: 1, 128>}, {transform_indices = @transform_8, window_bounds = array<i64: 1, 64, 128>}, {transform_indices = @transform_9, window_bounds = array<i64: 1, 2, 128>}]} {
    %c0 = arith.constant 0 : index
    %c0_0 = arith.constant 0 : index
    %c0_1 = arith.constant 0 : index
    %0 = vector.load %arg1[%c0, %c0_0, %c0_1] : memref<1x88x96xf32, #tpu.memory_space<vmem>>, vector<1x88x96xf32>
    %1 = vector.shape_cast %0 : vector<1x88x96xf32> to vector<88x96xf32>
    %c0_2 = arith.constant 0 : index
    %c0_3 = arith.constant 0 : index
    %2 = vector.load %arg2[%c0_2, %c0_3] : memref<1x96xf32, #tpu.memory_space<vmem>>, vector<1x96xf32>
    %3 = vector.broadcast %2 : vector<1x96xf32> to vector<88x96xf32>
    %4 = arith.mulf %1, %3 : vector<88x96xf32>
    %c0_4 = arith.constant 0 : index
    %c0_5 = arith.constant 0 : index
    %5 = vector.load %arg3[%c0_4, %c0_5] : memref<1x96xf32, #tpu.memory_space<vmem>>, vector<1x96xf32>
    %6 = vector.broadcast %5 : vector<1x96xf32> to vector<88x96xf32>
    %7 = arith.addf %4, %6 : vector<88x96xf32>
    %c0_6 = arith.constant 0 : index
    %c0_7 = arith.constant 0 : index
    %8 = vector.load %arg4[%c0_6, %c0_7] : memref<88x1xf32, #tpu.memory_space<vmem>>, vector<88x1xf32>
    %9 = vector.broadcast %8 : vector<88x1xf32> to vector<88x96xf32>
    %10 = arith.mulf %7, %9 : vector<88x96xf32>
    %c0_8 = arith.constant 0 : index
    %c0_9 = arith.constant 0 : index
    %11 = vector.load %arg5[%c0_8, %c0_9] : memref<64x1xf32, #tpu.memory_space<vmem>>, vector<64x1xf32>
    %c0_10 = arith.constant 0 : index
    %c0_11 = arith.constant 0 : index
    %12 = vector.load %arg6[%c0_10, %c0_11] : memref<64x1xf32, #tpu.memory_space<vmem>>, vector<64x1xf32>
    %cst = arith.constant 0.000000e+00 : f32
    %13 = vector.broadcast %cst : f32 to vector<64x128xf32>
    %14 = vector.extract_strided_slice %10 {offsets = [0, 0], sizes = [64, 96], strides = [1, 1]} : vector<88x96xf32> to vector<64x96xf32>
    %15 = vector.broadcast %11 : vector<64x1xf32> to vector<64x96xf32>
    %16 = arith.mulf %14, %15 : vector<64x96xf32>
    %17 = arith.truncf %16 : vector<64x96xf32> to vector<64x96xbf16>
    %c0_12 = arith.constant 0 : index
    %c0_13 = arith.constant 0 : index
    %c0_14 = arith.constant 0 : index
    %18 = vector.load %arg7[%c0_12, %c0_13, %c0_14] : memref<9x96x128xbf16, #tpu.memory_space<vmem>>, vector<1x96x128xbf16>
    %19 = vector.shape_cast %18 : vector<1x96x128xbf16> to vector<96x128xbf16>
    %cst_15 = arith.constant dense<0.000000e+00> : vector<64x128xf32>
    %20 = tpu.matmul %17, %19, %cst_15 {dimension_numbers = #tpu.dot_dimension_numbers<[1], [0], [0], [1], [0, 0, 1, 1], [], []>} : vector<64x96xbf16>, vector<96x128xbf16>, vector<64x128xf32> -> vector<64x128xf32>
    %21 = arith.addf %13, %20 : vector<64x128xf32>
    %22 = vector.extract_strided_slice %10 {offsets = [1, 0], sizes = [64, 96], strides = [1, 1]} : vector<88x96xf32> to vector<64x96xf32>
    %23 = arith.truncf %22 : vector<64x96xf32> to vector<64x96xbf16>
    %c1 = arith.constant 1 : index
    %c0_16 = arith.constant 0 : index
    %c0_17 = arith.constant 0 : index
    %24 = vector.load %arg7[%c1, %c0_16, %c0_17] : memref<9x96x128xbf16, #tpu.memory_space<vmem>>, vector<1x96x128xbf16>
    %25 = vector.shape_cast %24 : vector<1x96x128xbf16> to vector<96x128xbf16>
    %cst_18 = arith.constant dense<0.000000e+00> : vector<64x128xf32>
    %26 = tpu.matmul %23, %25, %cst_18 {dimension_numbers = #tpu.dot_dimension_numbers<[1], [0], [0], [1], [0, 0, 1, 1], [], []>} : vector<64x96xbf16>, vector<96x128xbf16>, vector<64x128xf32> -> vector<64x128xf32>
    %27 = arith.addf %21, %26 : vector<64x128xf32>
    %28 = vector.extract_strided_slice %10 {offsets = [2, 0], sizes = [64, 96], strides = [1, 1]} : vector<88x96xf32> to vector<64x96xf32>
    %29 = vector.broadcast %12 : vector<64x1xf32> to vector<64x96xf32>
    %30 = arith.mulf %28, %29 : vector<64x96xf32>
    %31 = arith.truncf %30 : vector<64x96xf32> to vector<64x96xbf16>
    %c2 = arith.constant 2 : index
    %c0_19 = arith.constant 0 : index
    %c0_20 = arith.constant 0 : index
    %32 = vector.load %arg7[%c2, %c0_19, %c0_20] : memref<9x96x128xbf16, #tpu.memory_space<vmem>>, vector<1x96x128xbf16>
    %33 = vector.shape_cast %32 : vector<1x96x128xbf16> to vector<96x128xbf16>
    %cst_21 = arith.constant dense<0.000000e+00> : vector<64x128xf32>
    %34 = tpu.matmul %31, %33, %cst_21 {dimension_numbers = #tpu.dot_dimension_numbers<[1], [0], [0], [1], [0, 0, 1, 1], [], []>} : vector<64x96xbf16>, vector<96x128xbf16>, vector<64x128xf32> -> vector<64x128xf32>
    %35 = arith.addf %27, %34 : vector<64x128xf32>
    %36 = vector.extract_strided_slice %10 {offsets = [8, 0], sizes = [64, 96], strides = [1, 1]} : vector<88x96xf32> to vector<64x96xf32>
    %37 = vector.broadcast %11 : vector<64x1xf32> to vector<64x96xf32>
    %38 = arith.mulf %36, %37 : vector<64x96xf32>
    %39 = arith.truncf %38 : vector<64x96xf32> to vector<64x96xbf16>
    %c3 = arith.constant 3 : index
    %c0_22 = arith.constant 0 : index
    %c0_23 = arith.constant 0 : index
    %40 = vector.load %arg7[%c3, %c0_22, %c0_23] : memref<9x96x128xbf16, #tpu.memory_space<vmem>>, vector<1x96x128xbf16>
    %41 = vector.shape_cast %40 : vector<1x96x128xbf16> to vector<96x128xbf16>
    %cst_24 = arith.constant dense<0.000000e+00> : vector<64x128xf32>
    %42 = tpu.matmul %39, %41, %cst_24 {dimension_numbers = #tpu.dot_dimension_numbers<[1], [0], [0], [1], [0, 0, 1, 1], [], []>} : vector<64x96xbf16>, vector<96x128xbf16>, vector<64x128xf32> -> vector<64x128xf32>
    %43 = arith.addf %35, %42 : vector<64x128xf32>
    %44 = vector.extract_strided_slice %10 {offsets = [9, 0], sizes = [64, 96], strides = [1, 1]} : vector<88x96xf32> to vector<64x96xf32>
    %45 = arith.truncf %44 : vector<64x96xf32> to vector<64x96xbf16>
    %c4 = arith.constant 4 : index
    %c0_25 = arith.constant 0 : index
    %c0_26 = arith.constant 0 : index
    %46 = vector.load %arg7[%c4, %c0_25, %c0_26] : memref<9x96x128xbf16, #tpu.memory_space<vmem>>, vector<1x96x128xbf16>
    %47 = vector.shape_cast %46 : vector<1x96x128xbf16> to vector<96x128xbf16>
    %cst_27 = arith.constant dense<0.000000e+00> : vector<64x128xf32>
    %48 = tpu.matmul %45, %47, %cst_27 {dimension_numbers = #tpu.dot_dimension_numbers<[1], [0], [0], [1], [0, 0, 1, 1], [], []>} : vector<64x96xbf16>, vector<96x128xbf16>, vector<64x128xf32> -> vector<64x128xf32>
    %49 = arith.addf %43, %48 : vector<64x128xf32>
    %50 = vector.extract_strided_slice %10 {offsets = [10, 0], sizes = [64, 96], strides = [1, 1]} : vector<88x96xf32> to vector<64x96xf32>
    %51 = vector.broadcast %12 : vector<64x1xf32> to vector<64x96xf32>
    %52 = arith.mulf %50, %51 : vector<64x96xf32>
    %53 = arith.truncf %52 : vector<64x96xf32> to vector<64x96xbf16>
    %c5 = arith.constant 5 : index
    %c0_28 = arith.constant 0 : index
    %c0_29 = arith.constant 0 : index
    %54 = vector.load %arg7[%c5, %c0_28, %c0_29] : memref<9x96x128xbf16, #tpu.memory_space<vmem>>, vector<1x96x128xbf16>
    %55 = vector.shape_cast %54 : vector<1x96x128xbf16> to vector<96x128xbf16>
    %cst_30 = arith.constant dense<0.000000e+00> : vector<64x128xf32>
    %56 = tpu.matmul %53, %55, %cst_30 {dimension_numbers = #tpu.dot_dimension_numbers<[1], [0], [0], [1], [0, 0, 1, 1], [], []>} : vector<64x96xbf16>, vector<96x128xbf16>, vector<64x128xf32> -> vector<64x128xf32>
    %57 = arith.addf %49, %56 : vector<64x128xf32>
    %58 = vector.extract_strided_slice %10 {offsets = [16, 0], sizes = [64, 96], strides = [1, 1]} : vector<88x96xf32> to vector<64x96xf32>
    %59 = vector.broadcast %11 : vector<64x1xf32> to vector<64x96xf32>
    %60 = arith.mulf %58, %59 : vector<64x96xf32>
    %61 = arith.truncf %60 : vector<64x96xf32> to vector<64x96xbf16>
    %c6 = arith.constant 6 : index
    %c0_31 = arith.constant 0 : index
    %c0_32 = arith.constant 0 : index
    %62 = vector.load %arg7[%c6, %c0_31, %c0_32] : memref<9x96x128xbf16, #tpu.memory_space<vmem>>, vector<1x96x128xbf16>
    %63 = vector.shape_cast %62 : vector<1x96x128xbf16> to vector<96x128xbf16>
    %cst_33 = arith.constant dense<0.000000e+00> : vector<64x128xf32>
    %64 = tpu.matmul %61, %63, %cst_33 {dimension_numbers = #tpu.dot_dimension_numbers<[1], [0], [0], [1], [0, 0, 1, 1], [], []>} : vector<64x96xbf16>, vector<96x128xbf16>, vector<64x128xf32> -> vector<64x128xf32>
    %65 = arith.addf %57, %64 : vector<64x128xf32>
    %66 = vector.extract_strided_slice %10 {offsets = [17, 0], sizes = [64, 96], strides = [1, 1]} : vector<88x96xf32> to vector<64x96xf32>
    %67 = arith.truncf %66 : vector<64x96xf32> to vector<64x96xbf16>
    %c7 = arith.constant 7 : index
    %c0_34 = arith.constant 0 : index
    %c0_35 = arith.constant 0 : index
    %68 = vector.load %arg7[%c7, %c0_34, %c0_35] : memref<9x96x128xbf16, #tpu.memory_space<vmem>>, vector<1x96x128xbf16>
    %69 = vector.shape_cast %68 : vector<1x96x128xbf16> to vector<96x128xbf16>
    %cst_36 = arith.constant dense<0.000000e+00> : vector<64x128xf32>
    %70 = tpu.matmul %67, %69, %cst_36 {dimension_numbers = #tpu.dot_dimension_numbers<[1], [0], [0], [1], [0, 0, 1, 1], [], []>} : vector<64x96xbf16>, vector<96x128xbf16>, vector<64x128xf32> -> vector<64x128xf32>
    %71 = arith.addf %65, %70 : vector<64x128xf32>
    %72 = vector.extract_strided_slice %10 {offsets = [18, 0], sizes = [64, 96], strides = [1, 1]} : vector<88x96xf32> to vector<64x96xf32>
    %73 = vector.broadcast %12 : vector<64x1xf32> to vector<64x96xf32>
    %74 = arith.mulf %72, %73 : vector<64x96xf32>
    %75 = arith.truncf %74 : vector<64x96xf32> to vector<64x96xbf16>
    %c8 = arith.constant 8 : index
    %c0_37 = arith.constant 0 : index
    %c0_38 = arith.constant 0 : index
    %76 = vector.load %arg7[%c8, %c0_37, %c0_38] : memref<9x96x128xbf16, #tpu.memory_space<vmem>>, vector<1x96x128xbf16>
    %77 = vector.shape_cast %76 : vector<1x96x128xbf16> to vector<96x128xbf16>
    %cst_39 = arith.constant dense<0.000000e+00> : vector<64x128xf32>
    %78 = tpu.matmul %75, %77, %cst_39 {dimension_numbers = #tpu.dot_dimension_numbers<[1], [0], [0], [1], [0, 0, 1, 1], [], []>} : vector<64x96xbf16>, vector<96x128xbf16>, vector<64x128xf32> -> vector<64x128xf32>
    %79 = arith.addf %71, %78 : vector<64x128xf32>
    %c0_40 = arith.constant 0 : index
    %c0_41 = arith.constant 0 : index
    %80 = vector.load %arg8[%c0_40, %c0_41] : memref<1x128xf32, #tpu.memory_space<vmem>>, vector<1x128xf32>
    %81 = vector.broadcast %80 : vector<1x128xf32> to vector<64x128xf32>
    %82 = arith.addf %79, %81 : vector<64x128xf32>
    %cst_42 = arith.constant 0.000000e+00 : f32
    %83 = vector.broadcast %cst_42 : f32 to vector<64x128xf32>
    %84 = arith.maximumf %82, %83 : vector<64x128xf32>
    %c0_43 = arith.constant 0 : index
    %c0_44 = arith.constant 0 : index
    %c0_45 = arith.constant 0 : index
    %85 = vector.load %arg9[%c0_43, %c0_44, %c0_45] : memref<1x64x128xf32, #tpu.memory_space<vmem>>, vector<1x64x128xf32>
    %86 = vector.shape_cast %85 : vector<1x64x128xf32> to vector<64x128xf32>
    %87 = vector.shape_cast %84 : vector<64x128xf32> to vector<1x64x128xf32>
    tpu.vector_store %arg9[%c0_43, %c0_44, %c0_45], %87 {strides = array<i32>} : memref<1x64x128xf32, #tpu.memory_space<vmem>>, vector<1x64x128xf32>,
    %cst_46 = arith.constant dense<0.000000e+00> : vector<128xf32>
    %88 = vector.multi_reduction <add>, %84, %cst_46 [0] : vector<64x128xf32> to vector<128xf32>
    %89 = vector.shape_cast %88 : vector<128xf32> to vector<1x128xf32>
    %c0_47 = arith.constant 0 : index
    %c0_48 = arith.constant 0 : index
    %c0_49 = arith.constant 0 : index
    %90 = vector.load %arg10[%c0_47, %c0_48, %c0_49] : memref<1x2x128xf32, #tpu.memory_space<vmem>>, vector<1x1x128xf32>
    %91 = vector.shape_cast %90 : vector<1x1x128xf32> to vector<1x128xf32>
    %92 = vector.shape_cast %89 : vector<1x128xf32> to vector<1x1x128xf32>
    tpu.vector_store %arg10[%c0_47, %c0_48, %c0_49], %92 {strides = array<i32>} : memref<1x2x128xf32, #tpu.memory_space<vmem>>, vector<1x1x128xf32>,
    %93 = arith.mulf %84, %84 : vector<64x128xf32>
    %cst_50 = arith.constant dense<0.000000e+00> : vector<128xf32>
    %94 = vector.multi_reduction <add>, %93, %cst_50 [0] : vector<64x128xf32> to vector<128xf32>
    %95 = vector.shape_cast %94 : vector<128xf32> to vector<1x128xf32>
    %c0_51 = arith.constant 0 : index
    %c1_52 = arith.constant 1 : index
    %c0_53 = arith.constant 0 : index
    %96 = vector.load %arg10[%c0_51, %c1_52, %c0_53] : memref<1x2x128xf32, #tpu.memory_space<vmem>>, vector<1x1x128xf32>
    %97 = vector.shape_cast %96 : vector<1x1x128xf32> to vector<1x128xf32>
    %98 = vector.shape_cast %95 : vector<1x128xf32> to vector<1x1x128xf32>
    tpu.vector_store %arg10[%c0_51, %c1_52, %c0_53], %98 {strides = array<i32>} : memref<1x2x128xf32, #tpu.memory_space<vmem>>, vector<1x1x128xf32>,
    return
  }
  func.func @transform_0(%arg0: i32) -> (i32, i32, i32) {
    %c0_i32 = arith.constant 0 : i32
    %c0_i32_0 = arith.constant 0 : i32
    %c0_i32_1 = arith.constant 0 : i32
    return %arg0, %c0_i32, %c0_i32_0 : i32, i32, i32
  }
  func.func @transform_1(%arg0: i32) -> (i32, i32) {
    %c0_i32 = arith.constant 0 : i32
    %c0_i32_0 = arith.constant 0 : i32
    %c0_i32_1 = arith.constant 0 : i32
    return %c0_i32, %c0_i32_0 : i32, i32
  }
  func.func @transform_2(%arg0: i32) -> (i32, i32) {
    %c0_i32 = arith.constant 0 : i32
    %c0_i32_0 = arith.constant 0 : i32
    %c0_i32_1 = arith.constant 0 : i32
    return %c0_i32, %c0_i32_0 : i32, i32
  }
  func.func @transform_3(%arg0: i32) -> (i32, i32) {
    %c0_i32 = arith.constant 0 : i32
    %c0_i32_0 = arith.constant 0 : i32
    %c0_i32_1 = arith.constant 0 : i32
    return %c0_i32, %c0_i32_0 : i32, i32
  }
  func.func @transform_4(%arg0: i32) -> (i32, i32) {
    %c0_i32 = arith.constant 0 : i32
    %c0_i32_0 = arith.constant 0 : i32
    %c0_i32_1 = arith.constant 0 : i32
    return %c0_i32, %c0_i32_0 : i32, i32
  }
  func.func @transform_5(%arg0: i32) -> (i32, i32) {
    %c0_i32 = arith.constant 0 : i32
    %c0_i32_0 = arith.constant 0 : i32
    %c0_i32_1 = arith.constant 0 : i32
    return %c0_i32, %c0_i32_0 : i32, i32
  }
  func.func @transform_6(%arg0: i32) -> (i32, i32, i32) {
    %c0_i32 = arith.constant 0 : i32
    %c0_i32_0 = arith.constant 0 : i32
    %c0_i32_1 = arith.constant 0 : i32
    %c0_i32_2 = arith.constant 0 : i32
    return %c0_i32, %c0_i32_0, %c0_i32_1 : i32, i32, i32
  }
  func.func @transform_7(%arg0: i32) -> (i32, i32) {
    %c0_i32 = arith.constant 0 : i32
    %c0_i32_0 = arith.constant 0 : i32
    %c0_i32_1 = arith.constant 0 : i32
    return %c0_i32, %c0_i32_0 : i32, i32
  }
  func.func @transform_8(%arg0: i32) -> (i32, i32, i32) {
    %c0_i32 = arith.constant 0 : i32
    %c0_i32_0 = arith.constant 0 : i32
    %c0_i32_1 = arith.constant 0 : i32
    return %arg0, %c0_i32, %c0_i32_0 : i32, i32, i32
  }
  func.func @transform_9(%arg0: i32) -> (i32, i32, i32) {
    %c0_i32 = arith.constant 0 : i32
    %c0_i32_0 = arith.constant 0 : i32
    %c0_i32_1 = arith.constant 0 : i32
    return %arg0, %c0_i32, %c0_i32_0 : i32, i32, i32
  }
}

module attributes {stable_mosaic.version = 11 : i64} {
  func.func @_fused_stage_kernel(%arg0: i32, %arg1: memref<1x88x128xf32, #tpu.memory_space<vmem>>, %arg2: memref<1x128xf32, #tpu.memory_space<vmem>>, %arg3: memref<1x128xf32, #tpu.memory_space<vmem>>, %arg4: memref<88x1xf32, #tpu.memory_space<vmem>>, %arg5: memref<64x1xf32, #tpu.memory_space<vmem>>, %arg6: memref<64x1xf32, #tpu.memory_space<vmem>>, %arg7: memref<9x128x192xbf16, #tpu.memory_space<vmem>>, %arg8: memref<1x192xf32, #tpu.memory_space<vmem>>, %arg9: memref<1x16x192xf32, #tpu.memory_space<vmem>>, %arg10: memref<1x2x192xf32, #tpu.memory_space<vmem>>) attributes {dimension_semantics = [#tpu.dimension_semantics<parallel>], iteration_bounds = array<i64: 2>, scalar_prefetch = 0 : i64, scratch_operands = 0 : i64, tpu.core_type = #tpu.core_type<tc>, window_params = [{transform_indices = @transform_0, window_bounds = array<i64: 1, 88, 128>}, {pipeline_mode = #tpu.pipeline_mode<synchronous>, transform_indices = @transform_1, window_bounds = array<i64: 1, 128>}, {pipeline_mode = #tpu.pipeline_mode<synchronous>, transform_indices = @transform_2, window_bounds = array<i64: 1, 128>}, {pipeline_mode = #tpu.pipeline_mode<synchronous>, transform_indices = @transform_3, window_bounds = array<i64: 88, 1>}, {pipeline_mode = #tpu.pipeline_mode<synchronous>, transform_indices = @transform_4, window_bounds = array<i64: 64, 1>}, {pipeline_mode = #tpu.pipeline_mode<synchronous>, transform_indices = @transform_5, window_bounds = array<i64: 64, 1>}, {pipeline_mode = #tpu.pipeline_mode<synchronous>, transform_indices = @transform_6, window_bounds = array<i64: 9, 128, 192>}, {pipeline_mode = #tpu.pipeline_mode<synchronous>, transform_indices = @transform_7, window_bounds = array<i64: 1, 192>}, {transform_indices = @transform_8, window_bounds = array<i64: 1, 16, 192>}, {transform_indices = @transform_9, window_bounds = array<i64: 1, 2, 192>}]} {
    %c0 = arith.constant 0 : index
    %c0_0 = arith.constant 0 : index
    %c0_1 = arith.constant 0 : index
    %0 = vector.load %arg1[%c0, %c0_0, %c0_1] : memref<1x88x128xf32, #tpu.memory_space<vmem>>, vector<1x88x128xf32>
    %1 = vector.shape_cast %0 : vector<1x88x128xf32> to vector<88x128xf32>
    %c0_2 = arith.constant 0 : index
    %c0_3 = arith.constant 0 : index
    %2 = vector.load %arg2[%c0_2, %c0_3] : memref<1x128xf32, #tpu.memory_space<vmem>>, vector<1x128xf32>
    %3 = vector.broadcast %2 : vector<1x128xf32> to vector<88x128xf32>
    %4 = arith.mulf %1, %3 : vector<88x128xf32>
    %c0_4 = arith.constant 0 : index
    %c0_5 = arith.constant 0 : index
    %5 = vector.load %arg3[%c0_4, %c0_5] : memref<1x128xf32, #tpu.memory_space<vmem>>, vector<1x128xf32>
    %6 = vector.broadcast %5 : vector<1x128xf32> to vector<88x128xf32>
    %7 = arith.addf %4, %6 : vector<88x128xf32>
    %c0_6 = arith.constant 0 : index
    %c0_7 = arith.constant 0 : index
    %8 = vector.load %arg4[%c0_6, %c0_7] : memref<88x1xf32, #tpu.memory_space<vmem>>, vector<88x1xf32>
    %9 = vector.broadcast %8 : vector<88x1xf32> to vector<88x128xf32>
    %10 = arith.mulf %7, %9 : vector<88x128xf32>
    %c0_8 = arith.constant 0 : index
    %c0_9 = arith.constant 0 : index
    %11 = vector.load %arg5[%c0_8, %c0_9] : memref<64x1xf32, #tpu.memory_space<vmem>>, vector<64x1xf32>
    %c0_10 = arith.constant 0 : index
    %c0_11 = arith.constant 0 : index
    %12 = vector.load %arg6[%c0_10, %c0_11] : memref<64x1xf32, #tpu.memory_space<vmem>>, vector<64x1xf32>
    %cst = arith.constant 0.000000e+00 : f32
    %13 = vector.broadcast %cst : f32 to vector<64x192xf32>
    %14 = vector.extract_strided_slice %10 {offsets = [0, 0], sizes = [64, 128], strides = [1, 1]} : vector<88x128xf32> to vector<64x128xf32>
    %15 = vector.broadcast %11 : vector<64x1xf32> to vector<64x128xf32>
    %16 = arith.mulf %14, %15 : vector<64x128xf32>
    %17 = arith.truncf %16 : vector<64x128xf32> to vector<64x128xbf16>
    %c0_12 = arith.constant 0 : index
    %c0_13 = arith.constant 0 : index
    %c0_14 = arith.constant 0 : index
    %18 = vector.load %arg7[%c0_12, %c0_13, %c0_14] : memref<9x128x192xbf16, #tpu.memory_space<vmem>>, vector<1x128x192xbf16>
    %19 = vector.shape_cast %18 : vector<1x128x192xbf16> to vector<128x192xbf16>
    %cst_15 = arith.constant dense<0.000000e+00> : vector<64x192xf32>
    %20 = tpu.matmul %17, %19, %cst_15 {dimension_numbers = #tpu.dot_dimension_numbers<[1], [0], [0], [1], [0, 0, 1, 1], [], []>} : vector<64x128xbf16>, vector<128x192xbf16>, vector<64x192xf32> -> vector<64x192xf32>
    %21 = arith.addf %13, %20 : vector<64x192xf32>
    %22 = vector.extract_strided_slice %10 {offsets = [1, 0], sizes = [64, 128], strides = [1, 1]} : vector<88x128xf32> to vector<64x128xf32>
    %23 = arith.truncf %22 : vector<64x128xf32> to vector<64x128xbf16>
    %c1 = arith.constant 1 : index
    %c0_16 = arith.constant 0 : index
    %c0_17 = arith.constant 0 : index
    %24 = vector.load %arg7[%c1, %c0_16, %c0_17] : memref<9x128x192xbf16, #tpu.memory_space<vmem>>, vector<1x128x192xbf16>
    %25 = vector.shape_cast %24 : vector<1x128x192xbf16> to vector<128x192xbf16>
    %cst_18 = arith.constant dense<0.000000e+00> : vector<64x192xf32>
    %26 = tpu.matmul %23, %25, %cst_18 {dimension_numbers = #tpu.dot_dimension_numbers<[1], [0], [0], [1], [0, 0, 1, 1], [], []>} : vector<64x128xbf16>, vector<128x192xbf16>, vector<64x192xf32> -> vector<64x192xf32>
    %27 = arith.addf %21, %26 : vector<64x192xf32>
    %28 = vector.extract_strided_slice %10 {offsets = [2, 0], sizes = [64, 128], strides = [1, 1]} : vector<88x128xf32> to vector<64x128xf32>
    %29 = vector.broadcast %12 : vector<64x1xf32> to vector<64x128xf32>
    %30 = arith.mulf %28, %29 : vector<64x128xf32>
    %31 = arith.truncf %30 : vector<64x128xf32> to vector<64x128xbf16>
    %c2 = arith.constant 2 : index
    %c0_19 = arith.constant 0 : index
    %c0_20 = arith.constant 0 : index
    %32 = vector.load %arg7[%c2, %c0_19, %c0_20] : memref<9x128x192xbf16, #tpu.memory_space<vmem>>, vector<1x128x192xbf16>
    %33 = vector.shape_cast %32 : vector<1x128x192xbf16> to vector<128x192xbf16>
    %cst_21 = arith.constant dense<0.000000e+00> : vector<64x192xf32>
    %34 = tpu.matmul %31, %33, %cst_21 {dimension_numbers = #tpu.dot_dimension_numbers<[1], [0], [0], [1], [0, 0, 1, 1], [], []>} : vector<64x128xbf16>, vector<128x192xbf16>, vector<64x192xf32> -> vector<64x192xf32>
    %35 = arith.addf %27, %34 : vector<64x192xf32>
    %36 = vector.extract_strided_slice %10 {offsets = [8, 0], sizes = [64, 128], strides = [1, 1]} : vector<88x128xf32> to vector<64x128xf32>
    %37 = vector.broadcast %11 : vector<64x1xf32> to vector<64x128xf32>
    %38 = arith.mulf %36, %37 : vector<64x128xf32>
    %39 = arith.truncf %38 : vector<64x128xf32> to vector<64x128xbf16>
    %c3 = arith.constant 3 : index
    %c0_22 = arith.constant 0 : index
    %c0_23 = arith.constant 0 : index
    %40 = vector.load %arg7[%c3, %c0_22, %c0_23] : memref<9x128x192xbf16, #tpu.memory_space<vmem>>, vector<1x128x192xbf16>
    %41 = vector.shape_cast %40 : vector<1x128x192xbf16> to vector<128x192xbf16>
    %cst_24 = arith.constant dense<0.000000e+00> : vector<64x192xf32>
    %42 = tpu.matmul %39, %41, %cst_24 {dimension_numbers = #tpu.dot_dimension_numbers<[1], [0], [0], [1], [0, 0, 1, 1], [], []>} : vector<64x128xbf16>, vector<128x192xbf16>, vector<64x192xf32> -> vector<64x192xf32>
    %43 = arith.addf %35, %42 : vector<64x192xf32>
    %44 = vector.extract_strided_slice %10 {offsets = [9, 0], sizes = [64, 128], strides = [1, 1]} : vector<88x128xf32> to vector<64x128xf32>
    %45 = arith.truncf %44 : vector<64x128xf32> to vector<64x128xbf16>
    %c4 = arith.constant 4 : index
    %c0_25 = arith.constant 0 : index
    %c0_26 = arith.constant 0 : index
    %46 = vector.load %arg7[%c4, %c0_25, %c0_26] : memref<9x128x192xbf16, #tpu.memory_space<vmem>>, vector<1x128x192xbf16>
    %47 = vector.shape_cast %46 : vector<1x128x192xbf16> to vector<128x192xbf16>
    %cst_27 = arith.constant dense<0.000000e+00> : vector<64x192xf32>
    %48 = tpu.matmul %45, %47, %cst_27 {dimension_numbers = #tpu.dot_dimension_numbers<[1], [0], [0], [1], [0, 0, 1, 1], [], []>} : vector<64x128xbf16>, vector<128x192xbf16>, vector<64x192xf32> -> vector<64x192xf32>
    %49 = arith.addf %43, %48 : vector<64x192xf32>
    %50 = vector.extract_strided_slice %10 {offsets = [10, 0], sizes = [64, 128], strides = [1, 1]} : vector<88x128xf32> to vector<64x128xf32>
    %51 = vector.broadcast %12 : vector<64x1xf32> to vector<64x128xf32>
    %52 = arith.mulf %50, %51 : vector<64x128xf32>
    %53 = arith.truncf %52 : vector<64x128xf32> to vector<64x128xbf16>
    %c5 = arith.constant 5 : index
    %c0_28 = arith.constant 0 : index
    %c0_29 = arith.constant 0 : index
    %54 = vector.load %arg7[%c5, %c0_28, %c0_29] : memref<9x128x192xbf16, #tpu.memory_space<vmem>>, vector<1x128x192xbf16>
    %55 = vector.shape_cast %54 : vector<1x128x192xbf16> to vector<128x192xbf16>
    %cst_30 = arith.constant dense<0.000000e+00> : vector<64x192xf32>
    %56 = tpu.matmul %53, %55, %cst_30 {dimension_numbers = #tpu.dot_dimension_numbers<[1], [0], [0], [1], [0, 0, 1, 1], [], []>} : vector<64x128xbf16>, vector<128x192xbf16>, vector<64x192xf32> -> vector<64x192xf32>
    %57 = arith.addf %49, %56 : vector<64x192xf32>
    %58 = vector.extract_strided_slice %10 {offsets = [16, 0], sizes = [64, 128], strides = [1, 1]} : vector<88x128xf32> to vector<64x128xf32>
    %59 = vector.broadcast %11 : vector<64x1xf32> to vector<64x128xf32>
    %60 = arith.mulf %58, %59 : vector<64x128xf32>
    %61 = arith.truncf %60 : vector<64x128xf32> to vector<64x128xbf16>
    %c6 = arith.constant 6 : index
    %c0_31 = arith.constant 0 : index
    %c0_32 = arith.constant 0 : index
    %62 = vector.load %arg7[%c6, %c0_31, %c0_32] : memref<9x128x192xbf16, #tpu.memory_space<vmem>>, vector<1x128x192xbf16>
    %63 = vector.shape_cast %62 : vector<1x128x192xbf16> to vector<128x192xbf16>
    %cst_33 = arith.constant dense<0.000000e+00> : vector<64x192xf32>
    %64 = tpu.matmul %61, %63, %cst_33 {dimension_numbers = #tpu.dot_dimension_numbers<[1], [0], [0], [1], [0, 0, 1, 1], [], []>} : vector<64x128xbf16>, vector<128x192xbf16>, vector<64x192xf32> -> vector<64x192xf32>
    %65 = arith.addf %57, %64 : vector<64x192xf32>
    %66 = vector.extract_strided_slice %10 {offsets = [17, 0], sizes = [64, 128], strides = [1, 1]} : vector<88x128xf32> to vector<64x128xf32>
    %67 = arith.truncf %66 : vector<64x128xf32> to vector<64x128xbf16>
    %c7 = arith.constant 7 : index
    %c0_34 = arith.constant 0 : index
    %c0_35 = arith.constant 0 : index
    %68 = vector.load %arg7[%c7, %c0_34, %c0_35] : memref<9x128x192xbf16, #tpu.memory_space<vmem>>, vector<1x128x192xbf16>
    %69 = vector.shape_cast %68 : vector<1x128x192xbf16> to vector<128x192xbf16>
    %cst_36 = arith.constant dense<0.000000e+00> : vector<64x192xf32>
    %70 = tpu.matmul %67, %69, %cst_36 {dimension_numbers = #tpu.dot_dimension_numbers<[1], [0], [0], [1], [0, 0, 1, 1], [], []>} : vector<64x128xbf16>, vector<128x192xbf16>, vector<64x192xf32> -> vector<64x192xf32>
    %71 = arith.addf %65, %70 : vector<64x192xf32>
    %72 = vector.extract_strided_slice %10 {offsets = [18, 0], sizes = [64, 128], strides = [1, 1]} : vector<88x128xf32> to vector<64x128xf32>
    %73 = vector.broadcast %12 : vector<64x1xf32> to vector<64x128xf32>
    %74 = arith.mulf %72, %73 : vector<64x128xf32>
    %75 = arith.truncf %74 : vector<64x128xf32> to vector<64x128xbf16>
    %c8 = arith.constant 8 : index
    %c0_37 = arith.constant 0 : index
    %c0_38 = arith.constant 0 : index
    %76 = vector.load %arg7[%c8, %c0_37, %c0_38] : memref<9x128x192xbf16, #tpu.memory_space<vmem>>, vector<1x128x192xbf16>
    %77 = vector.shape_cast %76 : vector<1x128x192xbf16> to vector<128x192xbf16>
    %cst_39 = arith.constant dense<0.000000e+00> : vector<64x192xf32>
    %78 = tpu.matmul %75, %77, %cst_39 {dimension_numbers = #tpu.dot_dimension_numbers<[1], [0], [0], [1], [0, 0, 1, 1], [], []>} : vector<64x128xbf16>, vector<128x192xbf16>, vector<64x192xf32> -> vector<64x192xf32>
    %79 = arith.addf %71, %78 : vector<64x192xf32>
    %c0_40 = arith.constant 0 : index
    %c0_41 = arith.constant 0 : index
    %80 = vector.load %arg8[%c0_40, %c0_41] : memref<1x192xf32, #tpu.memory_space<vmem>>, vector<1x192xf32>
    %81 = vector.broadcast %80 : vector<1x192xf32> to vector<64x192xf32>
    %82 = arith.addf %79, %81 : vector<64x192xf32>
    %cst_42 = arith.constant 0.000000e+00 : f32
    %83 = vector.broadcast %cst_42 : f32 to vector<64x192xf32>
    %84 = arith.maximumf %82, %83 : vector<64x192xf32>
    %85 = vector.shape_cast %84 : vector<64x192xf32> to vector<4x16x192xf32>
    %86 = vector.extract_strided_slice %85 {offsets = [0, 0, 0], sizes = [4, 8, 192], strides = [1, 1, 1]} : vector<4x16x192xf32> to vector<4x8x192xf32>
    %87 = vector.extract_strided_slice %85 {offsets = [0, 8, 0], sizes = [4, 8, 192], strides = [1, 1, 1]} : vector<4x16x192xf32> to vector<4x8x192xf32>
    %88 = arith.maximumf %86, %87 : vector<4x8x192xf32>
    %89 = vector.shape_cast %88 : vector<4x8x192xf32> to vector<16x2x192xf32>
    %90 = vector.extract_strided_slice %89 {offsets = [0, 0, 0], sizes = [16, 1, 192], strides = [1, 1, 1]} : vector<16x2x192xf32> to vector<16x1x192xf32>
    %91 = vector.shape_cast %90 : vector<16x1x192xf32> to vector<16x192xf32>
    %92 = vector.extract_strided_slice %89 {offsets = [0, 1, 0], sizes = [16, 1, 192], strides = [1, 1, 1]} : vector<16x2x192xf32> to vector<16x1x192xf32>
    %93 = vector.shape_cast %92 : vector<16x1x192xf32> to vector<16x192xf32>
    %94 = arith.maximumf %91, %93 : vector<16x192xf32>
    %c0_43 = arith.constant 0 : index
    %c0_44 = arith.constant 0 : index
    %c0_45 = arith.constant 0 : index
    %95 = vector.load %arg9[%c0_43, %c0_44, %c0_45] : memref<1x16x192xf32, #tpu.memory_space<vmem>>, vector<1x16x192xf32>
    %96 = vector.shape_cast %95 : vector<1x16x192xf32> to vector<16x192xf32>
    %97 = vector.shape_cast %94 : vector<16x192xf32> to vector<1x16x192xf32>
    tpu.vector_store %arg9[%c0_43, %c0_44, %c0_45], %97 {strides = array<i32>} : memref<1x16x192xf32, #tpu.memory_space<vmem>>, vector<1x16x192xf32>,
    %cst_46 = arith.constant dense<0.000000e+00> : vector<192xf32>
    %98 = vector.multi_reduction <add>, %94, %cst_46 [0] : vector<16x192xf32> to vector<192xf32>
    %99 = vector.shape_cast %98 : vector<192xf32> to vector<1x192xf32>
    %c0_47 = arith.constant 0 : index
    %c0_48 = arith.constant 0 : index
    %c0_49 = arith.constant 0 : index
    %100 = vector.load %arg10[%c0_47, %c0_48, %c0_49] : memref<1x2x192xf32, #tpu.memory_space<vmem>>, vector<1x1x192xf32>
    %101 = vector.shape_cast %100 : vector<1x1x192xf32> to vector<1x192xf32>
    %102 = vector.shape_cast %99 : vector<1x192xf32> to vector<1x1x192xf32>
    tpu.vector_store %arg10[%c0_47, %c0_48, %c0_49], %102 {strides = array<i32>} : memref<1x2x192xf32, #tpu.memory_space<vmem>>, vector<1x1x192xf32>,
    %103 = arith.mulf %94, %94 : vector<16x192xf32>
    %cst_50 = arith.constant dense<0.000000e+00> : vector<192xf32>
    %104 = vector.multi_reduction <add>, %103, %cst_50 [0] : vector<16x192xf32> to vector<192xf32>
    %105 = vector.shape_cast %104 : vector<192xf32> to vector<1x192xf32>
    %c0_51 = arith.constant 0 : index
    %c1_52 = arith.constant 1 : index
    %c0_53 = arith.constant 0 : index
    %106 = vector.load %arg10[%c0_51, %c1_52, %c0_53] : memref<1x2x192xf32, #tpu.memory_space<vmem>>, vector<1x1x192xf32>
    %107 = vector.shape_cast %106 : vector<1x1x192xf32> to vector<1x192xf32>
    %108 = vector.shape_cast %105 : vector<1x192xf32> to vector<1x1x192xf32>
    tpu.vector_store %arg10[%c0_51, %c1_52, %c0_53], %108 {strides = array<i32>} : memref<1x2x192xf32, #tpu.memory_space<vmem>>, vector<1x1x192xf32>,
    return
  }
  func.func @transform_0(%arg0: i32) -> (i32, i32, i32) {
    %c0_i32 = arith.constant 0 : i32
    %c0_i32_0 = arith.constant 0 : i32
    %c0_i32_1 = arith.constant 0 : i32
    return %arg0, %c0_i32, %c0_i32_0 : i32, i32, i32
  }
  func.func @transform_1(%arg0: i32) -> (i32, i32) {
    %c0_i32 = arith.constant 0 : i32
    %c0_i32_0 = arith.constant 0 : i32
    %c0_i32_1 = arith.constant 0 : i32
    return %c0_i32, %c0_i32_0 : i32, i32
  }
  func.func @transform_2(%arg0: i32) -> (i32, i32) {
    %c0_i32 = arith.constant 0 : i32
    %c0_i32_0 = arith.constant 0 : i32
    %c0_i32_1 = arith.constant 0 : i32
    return %c0_i32, %c0_i32_0 : i32, i32
  }
  func.func @transform_3(%arg0: i32) -> (i32, i32) {
    %c0_i32 = arith.constant 0 : i32
    %c0_i32_0 = arith.constant 0 : i32
    %c0_i32_1 = arith.constant 0 : i32
    return %c0_i32, %c0_i32_0 : i32, i32
  }
  func.func @transform_4(%arg0: i32) -> (i32, i32) {
    %c0_i32 = arith.constant 0 : i32
    %c0_i32_0 = arith.constant 0 : i32
    %c0_i32_1 = arith.constant 0 : i32
    return %c0_i32, %c0_i32_0 : i32, i32
  }
  func.func @transform_5(%arg0: i32) -> (i32, i32) {
    %c0_i32 = arith.constant 0 : i32
    %c0_i32_0 = arith.constant 0 : i32
    %c0_i32_1 = arith.constant 0 : i32
    return %c0_i32, %c0_i32_0 : i32, i32
  }
  func.func @transform_6(%arg0: i32) -> (i32, i32, i32) {
    %c0_i32 = arith.constant 0 : i32
    %c0_i32_0 = arith.constant 0 : i32
    %c0_i32_1 = arith.constant 0 : i32
    %c0_i32_2 = arith.constant 0 : i32
    return %c0_i32, %c0_i32_0, %c0_i32_1 : i32, i32, i32
  }
  func.func @transform_7(%arg0: i32) -> (i32, i32) {
    %c0_i32 = arith.constant 0 : i32
    %c0_i32_0 = arith.constant 0 : i32
    %c0_i32_1 = arith.constant 0 : i32
    return %c0_i32, %c0_i32_0 : i32, i32
  }
  func.func @transform_8(%arg0: i32) -> (i32, i32, i32) {
    %c0_i32 = arith.constant 0 : i32
    %c0_i32_0 = arith.constant 0 : i32
    %c0_i32_1 = arith.constant 0 : i32
    return %arg0, %c0_i32, %c0_i32_0 : i32, i32, i32
  }
  func.func @transform_9(%arg0: i32) -> (i32, i32, i32) {
    %c0_i32 = arith.constant 0 : i32
    %c0_i32_0 = arith.constant 0 : i32
    %c0_i32_1 = arith.constant 0 : i32
    return %arg0, %c0_i32, %c0_i32_0 : i32, i32, i32
  }
}

module attributes {stable_mosaic.version = 11 : i64} {
  func.func @_fused_stage_kernel(%arg0: i32, %arg1: memref<1x32x192xf32, #tpu.memory_space<vmem>>, %arg2: memref<1x192xf32, #tpu.memory_space<vmem>>, %arg3: memref<1x192xf32, #tpu.memory_space<vmem>>, %arg4: memref<32x1xf32, #tpu.memory_space<vmem>>, %arg5: memref<16x1xf32, #tpu.memory_space<vmem>>, %arg6: memref<16x1xf32, #tpu.memory_space<vmem>>, %arg7: memref<9x192x256xbf16, #tpu.memory_space<vmem>>, %arg8: memref<1x256xf32, #tpu.memory_space<vmem>>, %arg9: memref<1x16x256xf32, #tpu.memory_space<vmem>>, %arg10: memref<1x2x256xf32, #tpu.memory_space<vmem>>) attributes {dimension_semantics = [#tpu.dimension_semantics<parallel>], iteration_bounds = array<i64: 2>, scalar_prefetch = 0 : i64, scratch_operands = 0 : i64, tpu.core_type = #tpu.core_type<tc>, window_params = [{transform_indices = @transform_0, window_bounds = array<i64: 1, 32, 192>}, {pipeline_mode = #tpu.pipeline_mode<synchronous>, transform_indices = @transform_1, window_bounds = array<i64: 1, 192>}, {pipeline_mode = #tpu.pipeline_mode<synchronous>, transform_indices = @transform_2, window_bounds = array<i64: 1, 192>}, {pipeline_mode = #tpu.pipeline_mode<synchronous>, transform_indices = @transform_3, window_bounds = array<i64: 32, 1>}, {pipeline_mode = #tpu.pipeline_mode<synchronous>, transform_indices = @transform_4, window_bounds = array<i64: 16, 1>}, {pipeline_mode = #tpu.pipeline_mode<synchronous>, transform_indices = @transform_5, window_bounds = array<i64: 16, 1>}, {pipeline_mode = #tpu.pipeline_mode<synchronous>, transform_indices = @transform_6, window_bounds = array<i64: 9, 192, 256>}, {pipeline_mode = #tpu.pipeline_mode<synchronous>, transform_indices = @transform_7, window_bounds = array<i64: 1, 256>}, {transform_indices = @transform_8, window_bounds = array<i64: 1, 16, 256>}, {transform_indices = @transform_9, window_bounds = array<i64: 1, 2, 256>}]} {
    %c0 = arith.constant 0 : index
    %c0_0 = arith.constant 0 : index
    %c0_1 = arith.constant 0 : index
    %0 = vector.load %arg1[%c0, %c0_0, %c0_1] : memref<1x32x192xf32, #tpu.memory_space<vmem>>, vector<1x32x192xf32>
    %1 = vector.shape_cast %0 : vector<1x32x192xf32> to vector<32x192xf32>
    %c0_2 = arith.constant 0 : index
    %c0_3 = arith.constant 0 : index
    %2 = vector.load %arg2[%c0_2, %c0_3] : memref<1x192xf32, #tpu.memory_space<vmem>>, vector<1x192xf32>
    %3 = vector.broadcast %2 : vector<1x192xf32> to vector<32x192xf32>
    %4 = arith.mulf %1, %3 : vector<32x192xf32>
    %c0_4 = arith.constant 0 : index
    %c0_5 = arith.constant 0 : index
    %5 = vector.load %arg3[%c0_4, %c0_5] : memref<1x192xf32, #tpu.memory_space<vmem>>, vector<1x192xf32>
    %6 = vector.broadcast %5 : vector<1x192xf32> to vector<32x192xf32>
    %7 = arith.addf %4, %6 : vector<32x192xf32>
    %c0_6 = arith.constant 0 : index
    %c0_7 = arith.constant 0 : index
    %8 = vector.load %arg4[%c0_6, %c0_7] : memref<32x1xf32, #tpu.memory_space<vmem>>, vector<32x1xf32>
    %9 = vector.broadcast %8 : vector<32x1xf32> to vector<32x192xf32>
    %10 = arith.mulf %7, %9 : vector<32x192xf32>
    %c0_8 = arith.constant 0 : index
    %c0_9 = arith.constant 0 : index
    %11 = vector.load %arg5[%c0_8, %c0_9] : memref<16x1xf32, #tpu.memory_space<vmem>>, vector<16x1xf32>
    %c0_10 = arith.constant 0 : index
    %c0_11 = arith.constant 0 : index
    %12 = vector.load %arg6[%c0_10, %c0_11] : memref<16x1xf32, #tpu.memory_space<vmem>>, vector<16x1xf32>
    %cst = arith.constant 0.000000e+00 : f32
    %13 = vector.broadcast %cst : f32 to vector<16x256xf32>
    %14 = vector.extract_strided_slice %10 {offsets = [0, 0], sizes = [16, 192], strides = [1, 1]} : vector<32x192xf32> to vector<16x192xf32>
    %15 = vector.broadcast %11 : vector<16x1xf32> to vector<16x192xf32>
    %16 = arith.mulf %14, %15 : vector<16x192xf32>
    %17 = arith.truncf %16 : vector<16x192xf32> to vector<16x192xbf16>
    %c0_12 = arith.constant 0 : index
    %c0_13 = arith.constant 0 : index
    %c0_14 = arith.constant 0 : index
    %18 = vector.load %arg7[%c0_12, %c0_13, %c0_14] : memref<9x192x256xbf16, #tpu.memory_space<vmem>>, vector<1x192x256xbf16>
    %19 = vector.shape_cast %18 : vector<1x192x256xbf16> to vector<192x256xbf16>
    %cst_15 = arith.constant dense<0.000000e+00> : vector<16x256xf32>
    %20 = tpu.matmul %17, %19, %cst_15 {dimension_numbers = #tpu.dot_dimension_numbers<[1], [0], [0], [1], [0, 0, 1, 1], [], []>} : vector<16x192xbf16>, vector<192x256xbf16>, vector<16x256xf32> -> vector<16x256xf32>
    %21 = arith.addf %13, %20 : vector<16x256xf32>
    %22 = vector.extract_strided_slice %10 {offsets = [1, 0], sizes = [16, 192], strides = [1, 1]} : vector<32x192xf32> to vector<16x192xf32>
    %23 = arith.truncf %22 : vector<16x192xf32> to vector<16x192xbf16>
    %c1 = arith.constant 1 : index
    %c0_16 = arith.constant 0 : index
    %c0_17 = arith.constant 0 : index
    %24 = vector.load %arg7[%c1, %c0_16, %c0_17] : memref<9x192x256xbf16, #tpu.memory_space<vmem>>, vector<1x192x256xbf16>
    %25 = vector.shape_cast %24 : vector<1x192x256xbf16> to vector<192x256xbf16>
    %cst_18 = arith.constant dense<0.000000e+00> : vector<16x256xf32>
    %26 = tpu.matmul %23, %25, %cst_18 {dimension_numbers = #tpu.dot_dimension_numbers<[1], [0], [0], [1], [0, 0, 1, 1], [], []>} : vector<16x192xbf16>, vector<192x256xbf16>, vector<16x256xf32> -> vector<16x256xf32>
    %27 = arith.addf %21, %26 : vector<16x256xf32>
    %28 = vector.extract_strided_slice %10 {offsets = [2, 0], sizes = [16, 192], strides = [1, 1]} : vector<32x192xf32> to vector<16x192xf32>
    %29 = vector.broadcast %12 : vector<16x1xf32> to vector<16x192xf32>
    %30 = arith.mulf %28, %29 : vector<16x192xf32>
    %31 = arith.truncf %30 : vector<16x192xf32> to vector<16x192xbf16>
    %c2 = arith.constant 2 : index
    %c0_19 = arith.constant 0 : index
    %c0_20 = arith.constant 0 : index
    %32 = vector.load %arg7[%c2, %c0_19, %c0_20] : memref<9x192x256xbf16, #tpu.memory_space<vmem>>, vector<1x192x256xbf16>
    %33 = vector.shape_cast %32 : vector<1x192x256xbf16> to vector<192x256xbf16>
    %cst_21 = arith.constant dense<0.000000e+00> : vector<16x256xf32>
    %34 = tpu.matmul %31, %33, %cst_21 {dimension_numbers = #tpu.dot_dimension_numbers<[1], [0], [0], [1], [0, 0, 1, 1], [], []>} : vector<16x192xbf16>, vector<192x256xbf16>, vector<16x256xf32> -> vector<16x256xf32>
    %35 = arith.addf %27, %34 : vector<16x256xf32>
    %36 = vector.extract_strided_slice %10 {offsets = [4, 0], sizes = [16, 192], strides = [1, 1]} : vector<32x192xf32> to vector<16x192xf32>
    %37 = vector.broadcast %11 : vector<16x1xf32> to vector<16x192xf32>
    %38 = arith.mulf %36, %37 : vector<16x192xf32>
    %39 = arith.truncf %38 : vector<16x192xf32> to vector<16x192xbf16>
    %c3 = arith.constant 3 : index
    %c0_22 = arith.constant 0 : index
    %c0_23 = arith.constant 0 : index
    %40 = vector.load %arg7[%c3, %c0_22, %c0_23] : memref<9x192x256xbf16, #tpu.memory_space<vmem>>, vector<1x192x256xbf16>
    %41 = vector.shape_cast %40 : vector<1x192x256xbf16> to vector<192x256xbf16>
    %cst_24 = arith.constant dense<0.000000e+00> : vector<16x256xf32>
    %42 = tpu.matmul %39, %41, %cst_24 {dimension_numbers = #tpu.dot_dimension_numbers<[1], [0], [0], [1], [0, 0, 1, 1], [], []>} : vector<16x192xbf16>, vector<192x256xbf16>, vector<16x256xf32> -> vector<16x256xf32>
    %43 = arith.addf %35, %42 : vector<16x256xf32>
    %44 = vector.extract_strided_slice %10 {offsets = [5, 0], sizes = [16, 192], strides = [1, 1]} : vector<32x192xf32> to vector<16x192xf32>
    %45 = arith.truncf %44 : vector<16x192xf32> to vector<16x192xbf16>
    %c4 = arith.constant 4 : index
    %c0_25 = arith.constant 0 : index
    %c0_26 = arith.constant 0 : index
    %46 = vector.load %arg7[%c4, %c0_25, %c0_26] : memref<9x192x256xbf16, #tpu.memory_space<vmem>>, vector<1x192x256xbf16>
    %47 = vector.shape_cast %46 : vector<1x192x256xbf16> to vector<192x256xbf16>
    %cst_27 = arith.constant dense<0.000000e+00> : vector<16x256xf32>
    %48 = tpu.matmul %45, %47, %cst_27 {dimension_numbers = #tpu.dot_dimension_numbers<[1], [0], [0], [1], [0, 0, 1, 1], [], []>} : vector<16x192xbf16>, vector<192x256xbf16>, vector<16x256xf32> -> vector<16x256xf32>
    %49 = arith.addf %43, %48 : vector<16x256xf32>
    %50 = vector.extract_strided_slice %10 {offsets = [6, 0], sizes = [16, 192], strides = [1, 1]} : vector<32x192xf32> to vector<16x192xf32>
    %51 = vector.broadcast %12 : vector<16x1xf32> to vector<16x192xf32>
    %52 = arith.mulf %50, %51 : vector<16x192xf32>
    %53 = arith.truncf %52 : vector<16x192xf32> to vector<16x192xbf16>
    %c5 = arith.constant 5 : index
    %c0_28 = arith.constant 0 : index
    %c0_29 = arith.constant 0 : index
    %54 = vector.load %arg7[%c5, %c0_28, %c0_29] : memref<9x192x256xbf16, #tpu.memory_space<vmem>>, vector<1x192x256xbf16>
    %55 = vector.shape_cast %54 : vector<1x192x256xbf16> to vector<192x256xbf16>
    %cst_30 = arith.constant dense<0.000000e+00> : vector<16x256xf32>
    %56 = tpu.matmul %53, %55, %cst_30 {dimension_numbers = #tpu.dot_dimension_numbers<[1], [0], [0], [1], [0, 0, 1, 1], [], []>} : vector<16x192xbf16>, vector<192x256xbf16>, vector<16x256xf32> -> vector<16x256xf32>
    %57 = arith.addf %49, %56 : vector<16x256xf32>
    %58 = vector.extract_strided_slice %10 {offsets = [8, 0], sizes = [16, 192], strides = [1, 1]} : vector<32x192xf32> to vector<16x192xf32>
    %59 = vector.broadcast %11 : vector<16x1xf32> to vector<16x192xf32>
    %60 = arith.mulf %58, %59 : vector<16x192xf32>
    %61 = arith.truncf %60 : vector<16x192xf32> to vector<16x192xbf16>
    %c6 = arith.constant 6 : index
    %c0_31 = arith.constant 0 : index
    %c0_32 = arith.constant 0 : index
    %62 = vector.load %arg7[%c6, %c0_31, %c0_32] : memref<9x192x256xbf16, #tpu.memory_space<vmem>>, vector<1x192x256xbf16>
    %63 = vector.shape_cast %62 : vector<1x192x256xbf16> to vector<192x256xbf16>
    %cst_33 = arith.constant dense<0.000000e+00> : vector<16x256xf32>
    %64 = tpu.matmul %61, %63, %cst_33 {dimension_numbers = #tpu.dot_dimension_numbers<[1], [0], [0], [1], [0, 0, 1, 1], [], []>} : vector<16x192xbf16>, vector<192x256xbf16>, vector<16x256xf32> -> vector<16x256xf32>
    %65 = arith.addf %57, %64 : vector<16x256xf32>
    %66 = vector.extract_strided_slice %10 {offsets = [9, 0], sizes = [16, 192], strides = [1, 1]} : vector<32x192xf32> to vector<16x192xf32>
    %67 = arith.truncf %66 : vector<16x192xf32> to vector<16x192xbf16>
    %c7 = arith.constant 7 : index
    %c0_34 = arith.constant 0 : index
    %c0_35 = arith.constant 0 : index
    %68 = vector.load %arg7[%c7, %c0_34, %c0_35] : memref<9x192x256xbf16, #tpu.memory_space<vmem>>, vector<1x192x256xbf16>
    %69 = vector.shape_cast %68 : vector<1x192x256xbf16> to vector<192x256xbf16>
    %cst_36 = arith.constant dense<0.000000e+00> : vector<16x256xf32>
    %70 = tpu.matmul %67, %69, %cst_36 {dimension_numbers = #tpu.dot_dimension_numbers<[1], [0], [0], [1], [0, 0, 1, 1], [], []>} : vector<16x192xbf16>, vector<192x256xbf16>, vector<16x256xf32> -> vector<16x256xf32>
    %71 = arith.addf %65, %70 : vector<16x256xf32>
    %72 = vector.extract_strided_slice %10 {offsets = [10, 0], sizes = [16, 192], strides = [1, 1]} : vector<32x192xf32> to vector<16x192xf32>
    %73 = vector.broadcast %12 : vector<16x1xf32> to vector<16x192xf32>
    %74 = arith.mulf %72, %73 : vector<16x192xf32>
    %75 = arith.truncf %74 : vector<16x192xf32> to vector<16x192xbf16>
    %c8 = arith.constant 8 : index
    %c0_37 = arith.constant 0 : index
    %c0_38 = arith.constant 0 : index
    %76 = vector.load %arg7[%c8, %c0_37, %c0_38] : memref<9x192x256xbf16, #tpu.memory_space<vmem>>, vector<1x192x256xbf16>
    %77 = vector.shape_cast %76 : vector<1x192x256xbf16> to vector<192x256xbf16>
    %cst_39 = arith.constant dense<0.000000e+00> : vector<16x256xf32>
    %78 = tpu.matmul %75, %77, %cst_39 {dimension_numbers = #tpu.dot_dimension_numbers<[1], [0], [0], [1], [0, 0, 1, 1], [], []>} : vector<16x192xbf16>, vector<192x256xbf16>, vector<16x256xf32> -> vector<16x256xf32>
    %79 = arith.addf %71, %78 : vector<16x256xf32>
    %c0_40 = arith.constant 0 : index
    %c0_41 = arith.constant 0 : index
    %80 = vector.load %arg8[%c0_40, %c0_41] : memref<1x256xf32, #tpu.memory_space<vmem>>, vector<1x256xf32>
    %81 = vector.broadcast %80 : vector<1x256xf32> to vector<16x256xf32>
    %82 = arith.addf %79, %81 : vector<16x256xf32>
    %cst_42 = arith.constant 0.000000e+00 : f32
    %83 = vector.broadcast %cst_42 : f32 to vector<16x256xf32>
    %84 = arith.maximumf %82, %83 : vector<16x256xf32>
    %c0_43 = arith.constant 0 : index
    %c0_44 = arith.constant 0 : index
    %c0_45 = arith.constant 0 : index
    %85 = vector.load %arg9[%c0_43, %c0_44, %c0_45] : memref<1x16x256xf32, #tpu.memory_space<vmem>>, vector<1x16x256xf32>
    %86 = vector.shape_cast %85 : vector<1x16x256xf32> to vector<16x256xf32>
    %87 = vector.shape_cast %84 : vector<16x256xf32> to vector<1x16x256xf32>
    tpu.vector_store %arg9[%c0_43, %c0_44, %c0_45], %87 {strides = array<i32>} : memref<1x16x256xf32, #tpu.memory_space<vmem>>, vector<1x16x256xf32>,
    %cst_46 = arith.constant dense<0.000000e+00> : vector<256xf32>
    %88 = vector.multi_reduction <add>, %84, %cst_46 [0] : vector<16x256xf32> to vector<256xf32>
    %89 = vector.shape_cast %88 : vector<256xf32> to vector<1x256xf32>
    %c0_47 = arith.constant 0 : index
    %c0_48 = arith.constant 0 : index
    %c0_49 = arith.constant 0 : index
    %90 = vector.load %arg10[%c0_47, %c0_48, %c0_49] : memref<1x2x256xf32, #tpu.memory_space<vmem>>, vector<1x1x256xf32>
    %91 = vector.shape_cast %90 : vector<1x1x256xf32> to vector<1x256xf32>
    %92 = vector.shape_cast %89 : vector<1x256xf32> to vector<1x1x256xf32>
    tpu.vector_store %arg10[%c0_47, %c0_48, %c0_49], %92 {strides = array<i32>} : memref<1x2x256xf32, #tpu.memory_space<vmem>>, vector<1x1x256xf32>,
    %93 = arith.mulf %84, %84 : vector<16x256xf32>
    %cst_50 = arith.constant dense<0.000000e+00> : vector<256xf32>
    %94 = vector.multi_reduction <add>, %93, %cst_50 [0] : vector<16x256xf32> to vector<256xf32>
    %95 = vector.shape_cast %94 : vector<256xf32> to vector<1x256xf32>
    %c0_51 = arith.constant 0 : index
    %c1_52 = arith.constant 1 : index
    %c0_53 = arith.constant 0 : index
    %96 = vector.load %arg10[%c0_51, %c1_52, %c0_53] : memref<1x2x256xf32, #tpu.memory_space<vmem>>, vector<1x1x256xf32>
    %97 = vector.shape_cast %96 : vector<1x1x256xf32> to vector<1x256xf32>
    %98 = vector.shape_cast %95 : vector<1x256xf32> to vector<1x1x256xf32>
    tpu.vector_store %arg10[%c0_51, %c1_52, %c0_53], %98 {strides = array<i32>} : memref<1x2x256xf32, #tpu.memory_space<vmem>>, vector<1x1x256xf32>,
    return
  }
  func.func @transform_0(%arg0: i32) -> (i32, i32, i32) {
    %c0_i32 = arith.constant 0 : i32
    %c0_i32_0 = arith.constant 0 : i32
    %c0_i32_1 = arith.constant 0 : i32
    return %arg0, %c0_i32, %c0_i32_0 : i32, i32, i32
  }
  func.func @transform_1(%arg0: i32) -> (i32, i32) {
    %c0_i32 = arith.constant 0 : i32
    %c0_i32_0 = arith.constant 0 : i32
    %c0_i32_1 = arith.constant 0 : i32
    return %c0_i32, %c0_i32_0 : i32, i32
  }
  func.func @transform_2(%arg0: i32) -> (i32, i32) {
    %c0_i32 = arith.constant 0 : i32
    %c0_i32_0 = arith.constant 0 : i32
    %c0_i32_1 = arith.constant 0 : i32
    return %c0_i32, %c0_i32_0 : i32, i32
  }
  func.func @transform_3(%arg0: i32) -> (i32, i32) {
    %c0_i32 = arith.constant 0 : i32
    %c0_i32_0 = arith.constant 0 : i32
    %c0_i32_1 = arith.constant 0 : i32
    return %c0_i32, %c0_i32_0 : i32, i32
  }
  func.func @transform_4(%arg0: i32) -> (i32, i32) {
    %c0_i32 = arith.constant 0 : i32
    %c0_i32_0 = arith.constant 0 : i32
    %c0_i32_1 = arith.constant 0 : i32
    return %c0_i32, %c0_i32_0 : i32, i32
  }
  func.func @transform_5(%arg0: i32) -> (i32, i32) {
    %c0_i32 = arith.constant 0 : i32
    %c0_i32_0 = arith.constant 0 : i32
    %c0_i32_1 = arith.constant 0 : i32
    return %c0_i32, %c0_i32_0 : i32, i32
  }
  func.func @transform_6(%arg0: i32) -> (i32, i32, i32) {
    %c0_i32 = arith.constant 0 : i32
    %c0_i32_0 = arith.constant 0 : i32
    %c0_i32_1 = arith.constant 0 : i32
    %c0_i32_2 = arith.constant 0 : i32
    return %c0_i32, %c0_i32_0, %c0_i32_1 : i32, i32, i32
  }
  func.func @transform_7(%arg0: i32) -> (i32, i32) {
    %c0_i32 = arith.constant 0 : i32
    %c0_i32_0 = arith.constant 0 : i32
    %c0_i32_1 = arith.constant 0 : i32
    return %c0_i32, %c0_i32_0 : i32, i32
  }
  func.func @transform_8(%arg0: i32) -> (i32, i32, i32) {
    %c0_i32 = arith.constant 0 : i32
    %c0_i32_0 = arith.constant 0 : i32
    %c0_i32_1 = arith.constant 0 : i32
    return %arg0, %c0_i32, %c0_i32_0 : i32, i32, i32
  }
  func.func @transform_9(%arg0: i32) -> (i32, i32, i32) {
    %c0_i32 = arith.constant 0 : i32
    %c0_i32_0 = arith.constant 0 : i32
    %c0_i32_1 = arith.constant 0 : i32
    return %arg0, %c0_i32, %c0_i32_0 : i32, i32, i32
  }
}

module attributes {stable_mosaic.version = 11 : i64} {
  func.func @_head_kernel(%arg0: i32, %arg1: memref<1x16x256xf32, #tpu.memory_space<vmem>>, %arg2: memref<1x256xf32, #tpu.memory_space<vmem>>, %arg3: memref<1x256xf32, #tpu.memory_space<vmem>>, %arg4: memref<256x128xbf16, #tpu.memory_space<vmem>>, %arg5: memref<1x128xf32, #tpu.memory_space<vmem>>, %arg6: memref<1x16x128xf32, #tpu.memory_space<vmem>>) attributes {dimension_semantics = [#tpu.dimension_semantics<parallel>], iteration_bounds = array<i64: 2>, scalar_prefetch = 0 : i64, scratch_operands = 0 : i64, tpu.core_type = #tpu.core_type<tc>, window_params = [{transform_indices = @transform_0, window_bounds = array<i64: 1, 16, 256>}, {pipeline_mode = #tpu.pipeline_mode<synchronous>, transform_indices = @transform_1, window_bounds = array<i64: 1, 256>}, {pipeline_mode = #tpu.pipeline_mode<synchronous>, transform_indices = @transform_2, window_bounds = array<i64: 1, 256>}, {pipeline_mode = #tpu.pipeline_mode<synchronous>, transform_indices = @transform_3, window_bounds = array<i64: 256, 128>}, {pipeline_mode = #tpu.pipeline_mode<synchronous>, transform_indices = @transform_4, window_bounds = array<i64: 1, 128>}, {transform_indices = @transform_5, window_bounds = array<i64: 1, 16, 128>}]} {
    %c0 = arith.constant 0 : index
    %c0_0 = arith.constant 0 : index
    %c0_1 = arith.constant 0 : index
    %0 = vector.load %arg1[%c0, %c0_0, %c0_1] : memref<1x16x256xf32, #tpu.memory_space<vmem>>, vector<1x16x256xf32>
    %1 = vector.shape_cast %0 : vector<1x16x256xf32> to vector<16x256xf32>
    %c0_2 = arith.constant 0 : index
    %c0_3 = arith.constant 0 : index
    %2 = vector.load %arg2[%c0_2, %c0_3] : memref<1x256xf32, #tpu.memory_space<vmem>>, vector<1x256xf32>
    %3 = vector.broadcast %2 : vector<1x256xf32> to vector<16x256xf32>
    %4 = arith.mulf %1, %3 : vector<16x256xf32>
    %c0_4 = arith.constant 0 : index
    %c0_5 = arith.constant 0 : index
    %5 = vector.load %arg3[%c0_4, %c0_5] : memref<1x256xf32, #tpu.memory_space<vmem>>, vector<1x256xf32>
    %6 = vector.broadcast %5 : vector<1x256xf32> to vector<16x256xf32>
    %7 = arith.addf %4, %6 : vector<16x256xf32>
    %8 = arith.truncf %7 : vector<16x256xf32> to vector<16x256xbf16>
    %c0_6 = arith.constant 0 : index
    %c0_7 = arith.constant 0 : index
    %9 = vector.load %arg4[%c0_6, %c0_7] : memref<256x128xbf16, #tpu.memory_space<vmem>>, vector<256x128xbf16>
    %cst = arith.constant dense<0.000000e+00> : vector<16x128xf32>
    %10 = tpu.matmul %8, %9, %cst {dimension_numbers = #tpu.dot_dimension_numbers<[1], [0], [0], [1], [0, 0, 1, 1], [], []>} : vector<16x256xbf16>, vector<256x128xbf16>, vector<16x128xf32> -> vector<16x128xf32>
    %c0_8 = arith.constant 0 : index
    %c0_9 = arith.constant 0 : index
    %11 = vector.load %arg5[%c0_8, %c0_9] : memref<1x128xf32, #tpu.memory_space<vmem>>, vector<1x128xf32>
    %12 = vector.broadcast %11 : vector<1x128xf32> to vector<16x128xf32>
    %13 = arith.addf %10, %12 : vector<16x128xf32>
    %c0_10 = arith.constant 0 : index
    %c0_11 = arith.constant 0 : index
    %c0_12 = arith.constant 0 : index
    %14 = vector.load %arg6[%c0_10, %c0_11, %c0_12] : memref<1x16x128xf32, #tpu.memory_space<vmem>>, vector<1x16x128xf32>
    %15 = vector.shape_cast %14 : vector<1x16x128xf32> to vector<16x128xf32>
    %16 = vector.shape_cast %13 : vector<16x128xf32> to vector<1x16x128xf32>
    tpu.vector_store %arg6[%c0_10, %c0_11, %c0_12], %16 {strides = array<i32>} : memref<1x16x128xf32, #tpu.memory_space<vmem>>, vector<1x16x128xf32>,
    return
  }
  func.func @transform_0(%arg0: i32) -> (i32, i32, i32) {
    %c0_i32 = arith.constant 0 : i32
    %c0_i32_0 = arith.constant 0 : i32
    %c0_i32_1 = arith.constant 0 : i32
    return %arg0, %c0_i32, %c0_i32_0 : i32, i32, i32
  }
  func.func @transform_1(%arg0: i32) -> (i32, i32) {
    %c0_i32 = arith.constant 0 : i32
    %c0_i32_0 = arith.constant 0 : i32
    %c0_i32_1 = arith.constant 0 : i32
    return %c0_i32, %c0_i32_0 : i32, i32
  }
  func.func @transform_2(%arg0: i32) -> (i32, i32) {
    %c0_i32 = arith.constant 0 : i32
    %c0_i32_0 = arith.constant 0 : i32
    %c0_i32_1 = arith.constant 0 : i32
    return %c0_i32, %c0_i32_0 : i32, i32
  }
  func.func @transform_3(%arg0: i32) -> (i32, i32) {
    %c0_i32 = arith.constant 0 : i32
    %c0_i32_0 = arith.constant 0 : i32
    %c0_i32_1 = arith.constant 0 : i32
    return %c0_i32, %c0_i32_0 : i32, i32
  }
  func.func @transform_4(%arg0: i32) -> (i32, i32) {
    %c0_i32 = arith.constant 0 : i32
    %c0_i32_0 = arith.constant 0 : i32
    %c0_i32_1 = arith.constant 0 : i32
    return %c0_i32, %c0_i32_0 : i32, i32
  }
  func.func @transform_5(%arg0: i32) -> (i32, i32, i32) {
    %c0_i32 = arith.constant 0 : i32
    %c0_i32_0 = arith.constant 0 : i32
    %c0_i32_1 = arith.constant 0 : i32
    return %arg0, %c0_i32, %c0_i32_0 : i32, i32, i32
  }
}

</mosaic_0001>

<bundles_post_ra>
// kernel: vae_encoder_forward.6
= control target key start
LH: loop header
LB: loop body
LE: loop exit
PB: predicated region body
PF: predicated region fallthrough
CT: control target
= control target key end

     0   :  { %s2306_s30 = smov 0   ;;  %s3116_s0 = inlined_call_operand.vmem [shape: f32[2,88,96], index: 0, kind: input, shape index: {}]   ;;  %s3117_s1 = inlined_call_operand.vmem [shape: f32[1,96], index: 1, kind: input, shape index: {}]   ;;  %s3118_s2 = inlined_call_operand.vmem [shape: f32[1,96], index: 2, kind: input, shape index: {}]   ;;  %s3119_s3 = inlined_call_operand.vmem [shape: f32[88,1], index: 3, kind: input, shape index: {}]   ;;  %s3120_s4 = inlined_call_operand.vmem [shape: f32[64,1], index: 4, kind: input, shape index: {}]   ;;  %s3121_s5 = inlined_call_operand.vmem [shape: f32[64,1], index: 5, kind: input, shape index: {}]   ;;  %s3122_s6 = inlined_call_operand.vmem [shape: bf16[9,96,128], index: 6, kind: input, shape index: {}]   ;;  %s3123_s7 = inlined_call_operand.vmem [shape: f32[1,128], index: 7, kind: input, shape index: {}]   ;;  %s3124_s8 = inlined_call_operand.vmem [shape: f32[2,64,128], index: 8, kind: output, shape index: {0}]   ;;  %s3125_s9 = inlined_call_operand.vmem [shape: f32[2,2,128], index: 9, kind: output, shape index: {1}]  }
   0x1 LB: > { %s1805_s10 = sadd.s32 4294967295, %s2253_s30   ;;  %p1809_p0 = scmp.ge.s32.totalorder %s2253_s30, 1  ;;  %s2253_s30 = sphi %s2306_s30, %s20_s30  }
   0x2   : > { %p290_p1 = scmp.lt.s32.totalorder %s2253_s30, 3 }
   0x4   : > { %p291_p2 = pnand %p1809_p0, %p290_p1 }
   0x5   : > { %p330_p3 = scmp.lt.s32.totalorder (!%p291_p2), %s1805_s10, 1 }
   0x6   : > { %294 = sbr.rel (%p291_p2) target bundleno = 462 (0x1ce), region = 52 }
   0xb   : > { %v471_v0 = vld [vmem:[%s3121_s5] sm:$0xff]  ;;  %v392_v1 = vld [vmem:[%s3119_s3 + $0x30] sm:$0xff]  ;;  %v2255_v3 = vmov 0   ;;  %v472_v4 = vld [vmem:[%s3121_s5 + $0x8] sm:$0xff]  ;;  %s3129_s10 = smov (!%p330_p3, %s1805_s10), 1  ;;  %vm785_vm0 = vcmask 1041408  }
   0xc   : > { %v390_v2 = vld [vmem:[%s3119_s3 + $0x20] sm:$0xff]  ;;  %2243 = vset.pattern.permute.xlu2 %v2255_v3  ;;  %2242 = vset.pattern.permute.xlu1 %v2255_v3  ;;  %v393_v5 = vld [vmem:[%s3119_s3 + $0x38] sm:$0xff]  ;;  %v391_v6 = vld [vmem:[%s3119_s3 + $0x28] sm:$0xff]  ;;  %s2231_s22 = smul.u32 88, %s3129_s10  ;;  %vm634_vm1 = vcmask 785408   ;;  %vm842_vm3 = vcmask 1046528  }
   0xd   : > { %2241 = vset.pattern.permute.xlu0 %v2255_v3  ;;  %755 = vperm.xlu2 %2243, %v471_v0   ;;  %v386_v7 = vld [vmem:[%s3119_s3] sm:$0xff]  ;;  %v474_v8 = vld [vmem:[%s3121_s5 + $0x18] sm:$0xff]  ;;  %v473_v9 = vld [vmem:[%s3121_s5 + $0x10] sm:$0xff]  ;;  %vm561_vm2 = vsmask.f32 7424  ;;  %s2164_s15 = sshll.u32 %s3129_s10, 6 }
   0xe   : > { %429 = vperm.xlu1 %2242, %v392_v1   ;;  %419 = vperm.xlu0 %2241, %v390_v2   ;;  %v389_v10 = vld [vmem:[%s3119_s3 + $0x18] sm:$0xff]  ;;  %v388_v11 = vld [vmem:[%s3119_s3 + $0x10] sm:$0xff]  ;;  %v387_v12 = vld [vmem:[%s3119_s3 + $0x8] sm:$0xff]  ;;  %s2431_s27 = scalar_lea.vmem %s3116_s0, %s2231_s22  ;;  %s3077_s18 = scalar_lea.vmem %s3124_s8, %s2164_s15 }
   0xf   : > { %v476_v13 = vld [vmem:[%s3121_s5 + $0x28] sm:$0xff]  ;;  %v475_v14 = vld [vmem:[%s3121_s5 + $0x20] sm:$0xff]  ;;  %v477_v16 = vld [vmem:[%s3121_s5 + $0x30] sm:$0xff]  ;;  %s1813_s19 = sshll.u32 %s3129_s10, 1 }
  0x10   : > { %v394_v15 = vld [vmem:[%s3119_s3 + $0x40] sm:$0xff]  ;;  %v464_v17 = vld [vmem:[%s3120_s4 + $0x8] sm:$0xff]  ;;  %v466_v19 = vld [vmem:[%s3120_s4 + $0x18] sm:$0xff]  ;;  %s343_s22 = scalar_lea.vmem %s3125_s9, %s1813_s19 }
  0x11   : > { %v463_v18 = vld [vmem:[%s3120_s4] sm:$0xff]  ;;  %v465_v20 = vld [vmem:[%s3120_s4 + $0x10] sm:$0xff]  ;;  %v478_v21 = vld [vmem:[%s3121_s5 + $0x38] sm:$0xff] }
  0x12   : > { %v469_v22 = vld [vmem:[%s3120_s4 + $0x30] sm:$0xff]  ;;  %v468_v23 = vld [vmem:[%s3120_s4 + $0x28] sm:$0xff]  ;;  %v467_v24 = vld [vmem:[%s3120_s4 + $0x20] sm:$0xff] }
  0x13   : > { %v396_v25 = vld [vmem:[%s3119_s3 + $0x50] sm:$0xff]  ;;  %v395_v26 = vld [vmem:[%s3119_s3 + $0x48] sm:$0xff]  ;;  %v470_v27 = vld [vmem:[%s3120_s4 + $0x38] sm:$0xff] }
  0x14   : > { %v2176_v28 = vld [vmem:[%s3122_s6 + $0x58] sm:$0xff]  ;;  %v2175_v29 = vld [vmem:[%s3122_s6 + $0x50] sm:$0xff]  ;;  %v2174_v30 = vld [vmem:[%s3122_s6 + $0x48] sm:$0xff] }
  0x15   : > { %759 = vperm.xlu2 %2243, %v472_v4   ;;  %2219 = vmatpush.bf16.msra.mxu1 %v2176_v28  ;;  %v2173_v32 = vld [vmem:[%s3122_s6 + $0x40] sm:$0xff]  ;;  %v2182_v33 = vld [vmem:[%s3122_s6 + $0x88] sm:$0xff]  ;;  %v2172_v34 = vld [vmem:[%s3122_s6 + $0x38] sm:$0xff] }
  0x16   : > { %434 = vperm.xlu1 %2242, %v393_v5   ;;  %424 = vperm.xlu0 %2241, %v391_v6   ;;  %v2181_v35 = vld [vmem:[%s3122_s6 + $0x80] sm:$0xff]  ;;  %v2171_v37 = vld [vmem:[%s3122_s6 + $0x30] sm:$0xff]  ;;  %v2180_v38 = vld [vmem:[%s3122_s6 + $0x78] sm:$0xff] }
  0x17   : > { %649 = vmatpush.bf16.msra.mxu0 %v2176_v28  ;;  %902 = vmatpush.bf16.msra.mxu2 %v2182_v33  ;;  %v2439_v39 = vld [vmem:[%s3117_s1] ss:$0 sm:$0xff]  ;;  %v348_v40 = vld [vmem:[%s2431_s27 + $0x18] sm:$0xff]  ;;  %v2179_v43 = vld [vmem:[%s3122_s6 + $0x70] sm:$0xff] }
  0x18   : > { %v2188_v41 = vld [vmem:[%s3122_s6 + $0xb8] sm:$0xff]  ;;  %v2453_v44 = vld [vmem:[%s3118_s2] ss:$0 sm:$0xff]  ;;  %v363_v45 = vmul.f32 %v2439_v39, %v348_v40  ;;  %v2170_v46 = vld [vmem:[%s3122_s6 + $0x28] sm:$0xff] }
  0x19   : > { %2220 = vmatpush.bf16.msra.mxu1 %v2175_v29  ;;  %1012 = vmatpush.bf16.msra.mxu3 %v2188_v41  ;;  %v2187_v47 = vld [vmem:[%s3122_s6 + $0xb0] sm:$0xff]  ;;  %v2178_v48 = vld [vmem:[%s3122_s6 + $0x68] sm:$0xff]  ;;  %v2169_v51 = vld [vmem:[%s3122_s6 + $0x20] sm:$0xff] }
  0x1a   : > { %v351_v52 = vld [vmem:[%s2431_s27 + $0x30] sm:$0xff]  ;;  %v378_v53 = vadd.f32 %v2453_v44, %v363_v45  ;;  %v2186_v54 = vld [vmem:[%s3122_s6 + $0xa8] sm:$0xff]  ;;  %v2177_v55 = vld [vmem:[%s3122_s6 + $0x60] sm:$0xff] }
  0x1b   : > { %650 = vmatpush.bf16.msra.mxu0 %v2175_v29  ;;  %903 = vmatpush.bf16.msra.mxu2 %v2181_v35  ;;  %v349_v56 = vld [vmem:[%s2431_s27 + $0x20] sm:$0xff]  ;;  %v352_v57 = vld [vmem:[%s2431_s27 + $0x38] sm:$0xff]  ;;  %v350_v58 = vld [vmem:[%s2431_s27 + $0x28] sm:$0xff]  ;;  %v366_v60 = vmul.f32 %v2439_v39, %v351_v52 }
  0x1c   : > { %v364_v1 = vmul.f32 %v2439_v39, %v349_v56  ;;  %v367_v2 = vmul.f32 %v2439_v39, %v352_v57  ;;  %v365_v3 = vmul.f32 %v2439_v39, %v350_v58  ;;  %v2185_v4 = vld [vmem:[%s3122_s6 + $0xa0] sm:$0xff]  ;;  %v2206_v28 = vld [vmem:[%s3122_s6 + $0x148] sm:$0xff] }
  0x1d   : > { %399 = vperm.xlu2 %2243, %v386_v7   ;;  %2221 = vmatpush.bf16.msra.mxu1 %v2174_v30  ;;  %v381_v6 = vadd.f32 %v2453_v44, %v366_v60  ;;  %v2194_v29 = vld [vmem:[%s3122_s6 + $0xe8] sm:$0xff]  ;;  %v2193_v52 = vld [vmem:[%s3122_s6 + $0xe0] sm:$0xff] }
  0x1e   : > { %767 = vperm.xlu1 %2242, %v474_v8   ;;  %763 = vperm.xlu0 %2241, %v473_v9   ;;  %v379_v7 = vadd.f32 %v2453_v44, %v364_v1  ;;  %v382_v8 = vadd.f32 %v2453_v44, %v367_v2  ;;  %v380_v9 = vadd.f32 %v2453_v44, %v365_v3  ;;  %v2166_v41 = vld [vmem:[%s3122_s6 + $0x8] sm:$0xff]  ;;  %v353_v2 = vld [vmem:[%s2431_s27 + $0x40] sm:$0xff]  ;;  %v2192_v3 = vld [vmem:[%s3122_s6 + $0xd8] sm:$0xff] }
  0x1f   : > { %651 = vmatpush.bf16.msra.mxu0 %v2174_v30  ;;  %904 = vmatpush.bf16.msra.mxu2 %v2180_v38 }
  0x20   : > { %1013 = vmatpush.bf16.msra.mxu3 %v2187_v47 }
  0x21   : > { %2222 = vmatpush.bf16.msra.mxu1 %v2173_v32 }
  0x23   : > { %652 = vmatpush.bf16.msra.mxu0 %v2173_v32  ;;  %905 = vmatpush.bf16.msra.mxu2 %v2179_v43 }
  0x24   : > { %1014 = vmatpush.bf16.msra.mxu3 %v2186_v54 }
  0x25   : > { %414 = vperm.xlu2 %2243, %v389_v10   ;;  %2223 = vmatpush.bf16.msra.mxu1 %v2172_v34  ;;  %v2168_v10 = vld [vmem:[%s3122_s6 + $0x18] sm:$0xff] }
  0x26   : > { %409 = vperm.xlu1 %2242, %v388_v11   ;;  %404 = vperm.xlu0 %2241, %v387_v12   ;;  %v2184_v11 = vld [vmem:[%s3122_s6 + $0x98] sm:$0xff] }
  0x27   : > { %653 = vmatpush.bf16.msra.mxu0 %v2172_v34  ;;  %906 = vmatpush.bf16.msra.mxu2 %v2178_v48 }
  0x28   : > { %1015 = vmatpush.bf16.msra.mxu3 %v2185_v4 }
  0x29   : > { %2224 = vmatpush.bf16.msra.mxu1 %v2171_v37 }
  0x2b   : > { %654 = vmatpush.bf16.msra.mxu0 %v2171_v37  ;;  %907 = vmatpush.bf16.msra.mxu2 %v2177_v55 }
  0x2c   : > { %1016 = vmatpush.bf16.msra.mxu3 %v2184_v11 }
  0x2d   : > { %775 = vperm.xlu2 %2243, %v476_v13   ;;  %726 = vmatpush.bf16.msrb.mxu1 %v2170_v46 }
  0x2e   : > { %771 = vperm.xlu1 %2242, %v475_v14   ;;  %439 = vperm.xlu0 %2241, %v394_v15  }
  0x2f   : > { %1387 = vmatpush.bf16.msrb.mxu2 %v2206_v28  ;;  %1151 = vmatpush.bf16.msrb.mxu0 %v2194_v29 }
  0x31   : > { %727 = vmatpush.bf16.msrb.mxu1 %v2169_v51 }
  0x33   : > { %1152 = vmatpush.bf16.msrb.mxu0 %v2193_v52 }
  0x35   : > { %779 = vperm.xlu2 %2243, %v477_v16   ;;  %728 = vmatpush.bf16.msrb.mxu1 %v2168_v10 }
  0x36   : > { %486 = vperm.xlu1 %2242, %v464_v17   ;;  %481 = vperm.xlu0 %2241, %v463_v18  }
  0x37   : > { %1153 = vmatpush.bf16.msrb.mxu0 %v2192_v3 }
  0x3d   : > { %496 = vperm.xlu2 %2243, %v466_v19   ;;  %v345_v19 = vld [vmem:[%s2431_s27] sm:$0xff] }
  0x3e   : > { %491 = vperm.xlu1 %2242, %v465_v20   ;;  %783 = vperm.xlu0 %2241, %v478_v21  }
  0x45   : > { %511 = vperm.xlu2 %2243, %v469_v22   ;;  %v2183_v22 = vld [vmem:[%s3122_s6 + $0x90] sm:$0xff] }
  0x46   : > { %506 = vperm.xlu1 %2242, %v468_v23   ;;  %501 = vperm.xlu0 %2241, %v467_v24   ;;  %v347_v24 = vld [vmem:[%s2431_s27 + $0x10] sm:$0xff] }
  0x47   : > { %1017 = vmatpush.bf16.msra.mxu3 %v2183_v22  ;;  %v362_v40 = vmul.f32 %v2439_v39, %v347_v24 }
  0x4d   : > { %449 = vperm.xlu2 %2243, %v396_v25   ;;  %v346_v25 = vld [vmem:[%s2431_s27 + $0x8] sm:$0xff] }
  0x4e   : > { %444 = vperm.xlu1 %2242, %v395_v26   ;;  %516 = vperm.xlu0 %2241, %v470_v27   ;;  %v360_v26 = vmul.f32 %v2439_v39, %v345_v19  ;;  %v2167_v27 = vld [vmem:[%s3122_s6 + $0x10] sm:$0xff]  ;;  %v361_v47 = vmul.f32 %v2439_v39, %v346_v25 }
  0x4f   : > { %729 = vmatpush.bf16.msrb.mxu1 %v2167_v27 }
  0x50   : > { %v375_v48 = vadd.f32 %v2453_v44, %v360_v26 }
  0x53   : > { %730 = vmatpush.bf16.msrb.mxu1 %v2166_v41 }
  0x67   : > { %v756_v31 = vpop.permute.xlu2 %755 }
  0x68   : > { %v2465_v49 = vrot.slane %v756_v31, 6 }
  0x6f   : > { %v2423_v36 = vpop.permute.xlu2 %759 }
  0x70   : > { %v787_v50 = vrot.slane %v2423_v36, 6 }
  0x72   : > { %v2486_v59 = vsel %vm785_vm0, %v2465_v49, %v787_v50 }
  0x77   : > { %v2445_v42 = vpop.permute.xlu2 %399 }
  0x7f   : > { %v415_v61 = vpop.permute.xlu2 %414 }
  0x80   : > { %v430_v62 = vpop.permute.xlu1 %429  ;;  %v420_v63 = vpop.permute.xlu0 %419  ;;  %v2489_v0 = vmul.f32 %v415_v61, %v378_v53  ;;  %v377_v61 = vadd.f32 %v2453_v44, %v362_v40  ;;  %v2200_v40 = vld [vmem:[%s3122_s6 + $0x118] sm:$0xff] }
  0x81   : > { %v2511_v12 = vmul.f32 %v430_v62, %v381_v6  ;;  %v2515_v16 = vmul.f32 %v420_v63, %v379_v7  ;;  %v376_v62 = vadd.f32 %v2453_v44, %v361_v47  ;;  %v2601_v63 = vmul.f32 %v2445_v42, %v375_v48  ;;  %v2165_v6 = vld [vmem:[%s3122_s6] sm:$0xff]  ;;  %v2212_v7 = vld [vmem:[%s3122_s6 + $0x178] sm:$0xff] }
  0x82   : > { %v2499_v5 = vmul.f32 %v2486_v59, %v2489_v0  ;;  %v2205_v42 = vld [vmem:[%s3122_s6 + $0x140] sm:$0xff]  ;;  %731 = vmatpush.bf16.msrb.mxu1 %v2165_v6  ;;  %1494 = vmatpush.bf16.msrb.mxu3 %v2212_v7 }
  0x83   : > { %1388 = vmatpush.bf16.msrb.mxu2 %v2205_v42  ;;  %v2189_v6 = vld [vmem:[%s3122_s6 + $0xc0] sm:$0xff] }
  0x87   : > { %v2513_v13 = vpop.permute.xlu2 %775 }
  0x88   : > { %v435_v14 = vpop.permute.xlu1 %434  ;;  %v425_v15 = vpop.permute.xlu0 %424  ;;  %v795_v34 = vrot.slane %v2513_v13, 6 }
  0x89   : > { %v2517_v17 = vmul.f32 %v435_v14, %v382_v8  ;;  %v2519_v18 = vmul.f32 %v425_v15, %v380_v9  ;;  %v368_v14 = vmul.f32 %v2439_v39, %v353_v2  ;;  %v810_v15 = vmul.f32 %v2465_v49, %v2601_v63 }
  0x8b   : > { %v545_v20 = vpack.c.bf16 %v2519_v18, %v2515_v16  ;;  %v2526_v21 = vpack.c.bf16 %v2517_v17, %v2511_v12  ;;  %v383_v29 = vadd.f32 %v2453_v44, %v368_v14 }
  0x8d   : > { %v578_v23 = vshll.u32 %v545_v20, 16  ;;  %v582_v32 = vshrl.u32 %v545_v20, 16  ;;  %v586_v33 = vshll.u32 %v2526_v21, 16  ;;  %v2191_v20 = vld [vmem:[%s3122_s6 + $0xd0] sm:$0xff] }
  0x8e   : > { %1154 = vmatpush.bf16.msrb.mxu0 %v2191_v20 }
  0x8f   : > { %v2543_v30 = vpop.permute.xlu2 %779  ;;  %v2545_v31 = vrot.slane %v578_v23, 1  ;;  %v2580_v56 = vrot.slane %v586_v33, 1 }
  0x90   : > { %v2549_v35 = vpop.permute.xlu1 %767  ;;  %v764_v37 = vpop.permute.xlu0 %763  ;;  %v797_v38 = vrot.slane %v2543_v30, 6  ;;  %v2823_v30 = vld [vmem:[%s3122_s6 + $0x1a0] sm:$0xff] }
  0x91   : > { %v791_v43 = vrot.slane %v2549_v35, 6  ;;  %v789_v45 = vrot.slane %v764_v37, 6  ;;  %v584_v46 = vor.u32 %v582_v32, %v2545_v31 }
  0x92   : > { %v2565_v51 = vsel %vm785_vm0, %v795_v34, %v797_v38 }
  0x93   : > { %v790_v53 = vsel %vm785_vm0, %v787_v50, %v789_v45  ;;  %v792_v54 = vsel %vm785_vm0, %v789_v45, %v791_v43  ;;  %v2578_v55 = vmul.f32 %v2565_v51, %v2517_v17  ;;  %v2596_v60 = vsel %vm561_vm2, %v584_v46, %v2580_v56 }
  0x94   : > { %v2583_v57 = vmul.f32 %v790_v53, %v2489_v0  ;;  %v2586_v58 = vmul.f32 %v792_v54, %v2515_v16  ;;  %v2589_v36 = vmul.f32 %v790_v53, %v2515_v16  ;;  %v2592_v50 = vmul.f32 %v792_v54, %v2519_v18  ;;  %1852 = vmatmul.msk.bf16.vlgmr.msra.gmra.mxu1 %vm634_vm1, %v2596_v60 }
  0x95   : > { %v813_v19 = vmul.f32 %v792_v54, %v2489_v0  ;;  %v1049_v46 = vpack.c.bf16 %v2511_v12, %v2519_v18  ;;  %1277 = vmatpush.bf16.msra.mxu1 %v2200_v40 }
  0x96   : > { %v1196_v1 = vpack.c.bf16 %v2586_v58, %v2583_v57  ;;  %v1539_v4 = vpack.c.bf16 %v2592_v50, %v2589_v36  ;;  %v2203_v36 = vld [vmem:[%s3122_s6 + $0x130] sm:$0xff]  ;;  %v2752_v50 = vld [vmem:[%s3122_s6 + $0x1a8] sm:$0xff] }
  0x97   : > { %v1081_v42 = vshll.u32 %v1049_v46, 16 }
  0x98   : > { %v410_v8 = vpop.permute.xlu1 %409  ;;  %v405_v9 = vpop.permute.xlu0 %404 }
  0x99   : > { %v2622_v10 = vmul.f32 %v410_v8, %v377_v61  ;;  %v2624_v11 = vmul.f32 %v405_v9, %v376_v62 }
  0x9b   : > { %v811_v22 = vmul.f32 %v2486_v59, %v2624_v11  ;;  %v812_v23 = vmul.f32 %v790_v53, %v2622_v10  ;;  %v543_v24 = vpack.c.bf16 %v2624_v11, %v2601_v63  ;;  %v2640_v25 = vpack.c.bf16 %v2489_v0, %v2622_v10 }
  0x9c   : > { %v1186_v26 = vmul.f32 %v2465_v49, %v2624_v11  ;;  %v1187_v27 = vmul.f32 %v2486_v59, %v2622_v10  ;;  %v2648_v28 = vmul.f32 %v2465_v49, %v2622_v10  ;;  %v2190_v59 = vld [vmem:[%s3122_s6 + $0xc8] sm:$0xff]  ;;  %v2204_v49 = vld [vmem:[%s3122_s6 + $0x138] sm:$0xff] }
  0x9d   : > { %v819_v32 = vpack.c.bf16 %v811_v22, %v810_v15  ;;  %v820_v33 = vpack.c.bf16 %v813_v19, %v812_v23  ;;  %v565_v37 = vshll.u32 %v543_v24, 16  ;;  %v563_v41 = vshrl.u32 %v543_v24, 16  ;;  %1389 = vmatpush.bf16.msrb.mxu2 %v2204_v49  ;;  %1155 = vmatpush.bf16.msrb.mxu0 %v2190_v59  ;;  %v2687_v23 = vpop.permute.xlu2 %496  ;;  %v2199_v24 = vld [vmem:[%s3122_s6 + $0x110] sm:$0xff] }
  0x9e   : > { %v570_v45 = vshll.u32 %v2640_v25, 16  ;;  %v1195_v53 = vpack.c.bf16 %v1187_v27, %v1186_v26  ;;  %v1219_v15 = vrot.slane %v1196_v1, 1  ;;  %v2211_v1 = vld [vmem:[%s3122_s6 + $0x170] sm:$0xff]  ;;  %v2700_v26 = vrot.slane %v1081_v42, 1  ;;  %1278 = vmatpush.bf16.msra.mxu1 %v2199_v24 }
  0x9f   : > { %v843_v47 = vrot.slane %v819_v32, 1  ;;  %v2663_v48 = vrot.slane %v820_v33, 1  ;;  %v567_v52 = vrot.slane %v565_v37, 1  ;;  %1495 = vmatpush.bf16.msrb.mxu3 %v2211_v1  ;;  %v1538_v33 = vpack.c.bf16 %v2499_v5, %v2648_v28 }
  0xa0   : > { %v772_v54 = vpop.permute.xlu1 %771  ;;  %v440_v57 = vpop.permute.xlu0 %439  ;;  %v2665_v58 = vrot.slane %v570_v45, 1  ;;  %v1218_v7 = vrot.slane %v1195_v53, 1  ;;  %v590_v59 = vshrl.u32 %v2526_v21, 16 }
  0xa1   : > { %v793_v61 = vrot.slane %v772_v54, 6  ;;  %v2667_v62 = vmul.f32 %v440_v57, %v383_v29  ;;  %v845_v2 = vsel %vm842_vm3, %v843_v47, %v2663_v48  ;;  %v568_v3 = vor.u32 %v567_v52, %v563_v41  ;;  %1156 = vmatpush.bf16.msrb.mxu0 %v2189_v6  ;;  %1390 = vmatpush.bf16.msrb.mxu2 %v2203_v36 }
  0xa2   : > { %1918 = vmatmul.msk.bf16.vlgmr.msra.gmra.mxu2 %vm634_vm1, %v845_v2  ;;  %v2707_v29 = vsel %vm842_vm3, %v1218_v7, %v1219_v15  ;;  %v1085_v54 = vshrl.u32 %v1049_v46, 16  ;;  %v2730_v21 = vor.u32 %v590_v59, %v2580_v56  ;;  %v574_v7 = vshrl.u32 %v2640_v25, 16  ;;  %v2210_v25 = vld [vmem:[%s3122_s6 + $0x168] sm:$0xff] }
  0xa3   : > { %v794_v8 = vsel %vm785_vm0, %v791_v43, %v793_v61  ;;  %v796_v9 = vsel %vm785_vm0, %v793_v61, %v795_v34  ;;  %v573_v14 = vsel %vm561_vm2, %v568_v3, %v2665_v58  ;;  %v547_v43 = vpack.c.bf16 %v2667_v62, %v2667_v62  ;;  %1496 = vmatpush.bf16.msrb.mxu3 %v2210_v25 }
  0xa4   : > { %v814_v19 = vmul.f32 %v794_v8, %v2515_v16  ;;  %v1190_v20 = vmul.f32 %v794_v8, %v2519_v18  ;;  %v1191_v22 = vmul.f32 %v796_v9, %v2511_v12  ;;  %1850 = vmatmul.msk.bf16.vlgmr.msra.gmra.mxu0 %vm634_vm1, %v573_v14  ;;  %v815_v35 = vmul.f32 %v796_v9, %v2519_v18  ;;  %v2198_v14 = vld [vmem:[%s3122_s6 + $0x108] sm:$0xff] }
  0xa5   : > { %v1533_v13 = vmul.f32 %v794_v8, %v2511_v12  ;;  %v1534_v34 = vmul.f32 %v796_v9, %v2517_v17  ;;  %v2704_v27 = vpack.c.bf16 %v2667_v62, %v2517_v17  ;;  %v594_v32 = vshll.u32 %v547_v43, 16  ;;  %1620 = vmatpush.bf16.msra.mxu0 %v2752_v50  ;;  %1279 = vmatpush.bf16.msra.mxu1 %v2198_v14 }
  0xa6   : > { %v1197_v37 = vpack.c.bf16 %v1191_v22, %v1190_v20  ;;  %v821_v53 = vpack.c.bf16 %v815_v35, %v814_v19  ;;  %v1562_v61 = vrot.slane %v1539_v4, 1  ;;  %v1087_v2 = vor.u32 %v1085_v54, %v2700_v26  ;;  %v2771_v22 = vpop.permute.xlu2 %511  ;;  %v354_v54 = vld [vmem:[%s2431_s27 + $0x48] sm:$0xff] }
  0xa7   : > { %v1540_v40 = vpack.c.bf16 %v1534_v34, %v1533_v13  ;;  %v1089_v49 = vshll.u32 %v2704_v27, 16  ;;  %v596_v57 = vrot.slane %v594_v32, 1  ;;  %v1561_v8 = vrot.slane %v1538_v33, 1  ;;  %v355_v32 = vld [vmem:[%s2431_s27 + $0x50] sm:$0xff] }
  0xa8   : > { %v2711_v41 = vpop.permute.xlu1 %486  ;;  %v2713_v45 = vpop.permute.xlu0 %481  ;;  %v2744_v56 = vrot.slane %v821_v53, 1  ;;  %v1221_v9 = vrot.slane %v1197_v37, 1  ;;  %v2769_v20 = vmul.f32 %v2565_v51, %v2667_v62  ;;  %v576_v35 = vor.u32 %v574_v7, %v2665_v58 }
  0xa9   : > { %v938_v47 = vmul.f32 %v2711_v41, %v2622_v10  ;;  %v2721_v52 = vmul.f32 %v2711_v41, %v2489_v0  ;;  %v937_v5 = vmul.f32 %v2713_v45, %v2624_v11  ;;  %v2727_v28 = vmul.f32 %v2713_v45, %v2622_v10  ;;  %1621 = vmatpush.bf16.msra.mxu0 %v2823_v30 }
  0xaa   : > { %v2736_v3 = vrot.slane %v1089_v49, 1  ;;  %v597_v6 = vsel %vm561_vm2, %v2730_v21, %v596_v57  ;;  %v2765_v19 = vrot.slane %v1540_v40, 1  ;;  %v2776_v13 = vsel %vm842_vm3, %v1561_v8, %v1562_v61 }
  0xab   : > { %v1320_v46 = vpack.c.bf16 %v2721_v52, %v2727_v28  ;;  %v945_v42 = vpack.c.bf16 %v938_v47, %v937_v5  ;;  %1853 = vmatmul.msk.bf16.gmra.mxu1 %vm634_vm1, %v597_v6  ;;  %v2779_v34 = vsel %vm842_vm3, %v1219_v15, %v1221_v9  ;;  %v847_v15 = vsel %vm842_vm3, %v2663_v48, %v2744_v56  ;;  %v2202_v47 = vld [vmem:[%s3122_s6 + $0x128] sm:$0xff] }
  0xac   : > { %v2756_v4 = vsel %vm561_vm2, %v1087_v2, %v2736_v3  ;;  %v2785_v24 = vsel %vm842_vm3, %v1562_v61, %v2765_v19  ;;  %v2799_v37 = vmul.f32 %v2687_v23, %v2519_v18  ;;  %v1047_v40 = vpack.c.bf16 %v2622_v10, %v2624_v11  ;;  %1391 = vmatpush.bf16.msrb.mxu2 %v2202_v47 }
  0xad   : > { %1958 = vmatmul.msk.bf16.vlgmr.msra.gmra.mxu3 %vm634_vm1, %v945_v42  ;;  %v2812_v49 = vsel %vm561_vm2, %v576_v35, %v2545_v31  ;;  %v370_v48 = vmul.f32 %v2439_v39, %v355_v32  ;;  %v816_v2 = vmul.f32 %v2565_v51, %v2511_v12  ;;  %v520_v6 = vmul.f32 %v2711_v41, %v2624_v11 }
  0xae   : > { %v1068_v57 = vshll.u32 %v1047_v40, 16  ;;  %v519_v42 = vmul.f32 %v2713_v45, %v2601_v63  ;;  %v2845_v7 = vpack.c.bf16 %v2515_v16, %v2489_v0  ;;  %v369_v51 = vmul.f32 %v2439_v39, %v354_v54 }
  0xaf   : > { %v385_v36 = vadd.f32 %v2453_v44, %v370_v48  ;;  %v940_v35 = vmul.f32 %v2687_v23, %v2515_v16 }
  0xb0   : > { %v2781_v43 = vpop.permute.xlu1 %491  ;;  %v784_v1 = vpop.permute.xlu0 %783  ;;  %v1070_v32 = vrot.slane %v1068_v57, 1  ;;  %v1073_v54 = vshll.u32 %v2845_v7, 16  ;;  %v384_v57 = vadd.f32 %v2453_v44, %v369_v51 }
  0xb1   : > { %v2790_v58 = vmul.f32 %v2781_v43, %v2515_v16  ;;  %v2792_v33 = vrot.slane %v784_v1, 6  ;;  %v939_v8 = vmul.f32 %v2781_v43, %v2489_v0  ;;  %v450_v1 = vpop.permute.xlu2 %449 }
  0xb2   : > { %1919 = vmatmul.msk.bf16.gmra.mxu2 %vm634_vm1, %v847_v15  ;;  %v527_v15 = vpack.c.bf16 %v520_v6, %v519_v42  ;;  %v2898_v42 = vmul.f32 %v2771_v22, %v2511_v12 }
  0xb3   : > { %v2808_v59 = vsel %vm785_vm0, %v797_v38, %v2792_v33  ;;  %v2209_v38 = vld [vmem:[%s3122_s6 + $0x160] sm:$0xff] }
  0xb4   : > { %1851 = vmatmul.msk.bf16.gmra.mxu0 %vm634_vm1, %v2812_v49  ;;  %v1193_v53 = vmul.f32 %v2808_v59, %v2667_v62  ;;  %v817_v5 = vmul.f32 %v2808_v59, %v2517_v17  ;;  %1497 = vmatpush.bf16.msrb.mxu3 %v2209_v38  ;;  %v946_v38 = vpack.c.bf16 %v940_v35, %v939_v8  ;;  %v2902_v8 = vrot.slane %v1073_v54, 1 }
  0xb6   : > { %v1198_v61 = vpack.c.bf16 %v1193_v53, %v2578_v55  ;;  %v822_v14 = vpack.c.bf16 %v817_v5, %v816_v2  ;;  %v1066_v53 = vshrl.u32 %v1047_v40, 16  ;;  %v462_v5 = vmul.f32 %v450_v1, %v385_v36  ;;  %v2197_v2 = vld [vmem:[%s3122_s6 + $0x100] sm:$0xff] }
  0xb7   : > { %v2201_v40 = vld [vmem:[%s3122_s6 + $0x120] sm:$0xff]  ;;  %1280 = vmatpush.bf16.msra.mxu1 %v2197_v2 }
  0xb8   : > { %v2850_v55 = vpop.permute.xlu1 %506  ;;  %v2852_v25 = vpop.permute.xlu0 %501  ;;  %v2855_v11 = vrot.slane %v1198_v61, 1  ;;  %v2886_v61 = vrot.slane %v822_v14, 1  ;;  %v1537_v6 = vmul.f32 %v2792_v33, %v462_v5  ;;  %1392 = vmatpush.bf16.msrb.mxu2 %v2201_v40  ;;  %v1423_v51 = vpack.c.bf16 %v462_v5, %v462_v5  ;;  %v2196_v5 = vld [vmem:[%s3122_s6 + $0xf8] sm:$0xff] }
  0xb9   : > { %v2859_v63 = vmul.f32 %v2850_v55, %v2519_v18  ;;  %v2863_v41 = vmul.f32 %v2850_v55, %v2517_v17  ;;  %v2867_v45 = vmul.f32 %v2852_v25, %v2515_v16  ;;  %v2873_v39 = vmul.f32 %v2852_v25, %v2511_v12 }
  0xba   : > { %v2879_v47 = vsel %vm842_vm3, %v1221_v9, %v2855_v11  ;;  %v1071_v9 = vor.u32 %v1070_v32, %v1066_v53  ;;  %v849_v1 = vsel %vm842_vm3, %v2744_v56, %v2886_v61  ;;  %v1542_v53 = vpack.c.bf16 %v1537_v6, %v1537_v6 }
  0xbb   : > { %v529_v48 = vpack.c.bf16 %v2859_v63, %v2867_v45  ;;  %1878 = vmatmul.msk.bf16.vlgmr.msrb.gmra.mxu1 %vm634_vm1, %v527_v15  ;;  %v2216_v15 = vld [vmem:[%s3122_s6 + $0x198] sm:$0xff]  ;;  %v1446_v40 = vshll.u32 %v1423_v51, 16  ;;  %v942_v51 = vmul.f32 %v2850_v55, %v2511_v12  ;;  %v3127_v52 = vpack.c.bf16 %v2863_v41, %v2873_v39 }
  0xbc   : > { %2225 = vmatpush.bf16.msra.mxu2 %v2752_v50  ;;  %v1076_v32 = vsel %vm561_vm2, %v1071_v9, %v2902_v8  ;;  %v1093_v50 = vshrl.u32 %v2704_v27, 16  ;;  %v818_v27 = vmul.f32 %v2792_v33, %v2667_v62  ;;  %1622 = vmatpush.bf16.msra.mxu0 %v2216_v15  ;;  %v1568_v16 = vrot.slane %v1542_v53, 1 }
  0xbd   : > { %1959 = vmatmul.msk.bf16.gmra.mxu3 %vm634_vm1, %v946_v38  ;;  %v2208_v38 = vld [vmem:[%s3122_s6 + $0x158] sm:$0xff]  ;;  %1281 = vmatpush.bf16.msra.mxu1 %v2196_v5 }
  0xbe   : > { %1498 = vmatpush.bf16.msrb.mxu3 %v2208_v38  ;;  %v1095_v6 = vor.u32 %v1093_v50, %v2736_v3  ;;  %v823_v5 = vpack.c.bf16 %v818_v27, %v818_v27 }
  0xc0   : > { %v445_v44 = vpop.permute.xlu1 %444  ;;  %v2900_v36 = vpop.permute.xlu0 %516  ;;  %2226 = vmatpush.bf16.msra.mxu2 %v2823_v30 }
  0xc1   : > { %v2904_v14 = vmul.f32 %v445_v44, %v384_v57  ;;  %v2908_v35 = vmul.f32 %v2900_v36, %v2517_v17 }
  0xc2   : > { %1920 = vmatmul.msk.bf16.gmra.mxu2 %vm634_vm1, %v849_v1  ;;  %v521_v1 = vmul.f32 %v2781_v43, %v2622_v10  ;;  %v522_v10 = vmul.f32 %v2687_v23, %v2489_v0  ;;  %v1448_v43 = vrot.slane %v1446_v40, 1  ;;  %v850_v23 = vrot.slane %v823_v5, 1 }
  0xc3   : > { %v530_v54 = vpack.c.bf16 %v2908_v35, %v2898_v42  ;;  %v1051_v56 = vpack.c.bf16 %v2904_v14, %v2904_v14  ;;  %v1422_v57 = vpack.c.bf16 %v2904_v14, %v2667_v62  ;;  %v1536_v2 = vmul.f32 %v2808_v59, %v2904_v14 }
  0xc4   : > { %1998 = vmatmul.msk.bf16.vlgmr.msrb.gmra.mxu0 %vm634_vm1, %v1076_v32  ;;  %v1194_v9 = vmul.f32 %v2792_v33, %v2904_v14  ;;  %v941_v33 = vmul.f32 %v2852_v25, %v2519_v18  ;;  %2227 = vmatpush.bf16.msra.mxu2 %v2216_v15  ;;  %v528_v25 = vpack.c.bf16 %v522_v10, %v521_v1 }
  0xc5   : > { %v1097_v44 = vshll.u32 %v1051_v56, 16  ;;  %v1438_v32 = vshll.u32 %v1422_v57, 16  ;;  %v1541_v59 = vpack.c.bf16 %v1536_v2, %v2769_v20  ;;  %v1442_v56 = vshrl.u32 %v1422_v57, 16 }
  0xc6   : > { %v1199_v38 = vpack.c.bf16 %v1194_v9, %v1194_v9  ;;  %v947_v2 = vpack.c.bf16 %v942_v51, %v941_v33  ;;  %v944_v40 = vmul.f32 %v2900_v36, %v2667_v62  ;;  %v1319_v28 = vmul.f32 %v2900_v36, %v2904_v14 }
  0xc7   : > { %v1099_v31 = vrot.slane %v1097_v44, 1  ;;  %v1440_v3 = vrot.slane %v1438_v32, 1  ;;  %v1566_v50 = vrot.slane %v1541_v59, 1 }
  0xc8   : > { %v1225_v30 = vrot.slane %v1199_v38, 1 }
  0xc9   : > { %v1100_v20 = vsel %vm561_vm2, %v1095_v6, %v1099_v31  ;;  %v1441_v53 = vsel %vm561_vm2, %v2730_v21, %v1440_v3  ;;  %v1444_v12 = vor.u32 %v1442_v56, %v1440_v3  ;;  %v1569_v55 = vsel %vm842_vm3, %v1566_v50, %v1568_v16  ;;  %v2207_v21 = vld [vmem:[%s3122_s6 + $0x150] sm:$0xff] }
  0xca   : > { %v1567_v18 = vsel %vm842_vm3, %v2765_v19, %v1566_v50  ;;  %v1226_v57 = vsel %vm842_vm3, %v2855_v11, %v1225_v30  ;;  %v2215_v31 = vld [vmem:[%s3122_s6 + $0x190] sm:$0xff]  ;;  %v1077_v11 = vshrl.u32 %v2845_v7, 16  ;;  %1499 = vmatpush.bf16.msrb.mxu3 %v2207_v21  ;;  %v851_v16 = vsel %vm842_vm3, %v2886_v61, %v850_v23  ;;  %v2214_v7 = vld [vmem:[%s3122_s6 + $0x188] sm:$0xff] }
  0xcb   : > { %v1449_v0 = vsel %vm561_vm2, %v1444_v12, %v1448_v43  ;;  %1879 = vmatmul.msk.bf16.gmra.mxu1 %vm634_vm1, %v528_v25  ;;  %v2195_v19 = vld [vmem:[%s3122_s6 + $0xf0] sm:$0xff]  ;;  %1623 = vmatpush.bf16.msra.mxu0 %v2215_v31  ;;  %v943_v61 = vmul.f32 %v2771_v22, %v2517_v17  ;;  %v3126_v17 = vpack.c.bf16 %v2799_v37, %v2790_v58 }
  0xcc   : > { %1282 = vmatpush.bf16.msra.mxu1 %v2195_v19  ;;  %2228 = vmatpush.bf16.msra.mxu2 %v2215_v31  ;;  %v1079_v15 = vor.u32 %v1077_v11, %v2902_v8 }
  0xcd   : > { %1960 = vmatmul.msk.bf16.gmra.mxu3 %vm634_vm1, %v947_v2  ;;  %v948_v8 = vpack.c.bf16 %v944_v40, %v943_v61 }
  0xce   : > { %v1084_v9 = vsel %vm561_vm2, %v1079_v15, %v2700_v26  ;;  %v2213_v26 = vld [vmem:[%s3122_s6 + $0x180] sm:$0xff] }
  0xcf   : > { %1624 = vmatpush.bf16.msra.mxu0 %v2214_v7 }
  0xd0   : > { %2229 = vmatpush.bf16.msra.mxu2 %v2214_v7 }
  0xd2   : > { %1921 = vmatmul.msk.bf16.gmra.mxu2 %vm634_vm1, %v851_v16 }
  0xd3   : > { %1625 = vmatpush.bf16.msra.mxu0 %v2213_v26 }
  0xd4   : > { %1999 = vmatmul.msk.bf16.gmra.mxu0 %vm634_vm1, %v1084_v9  ;;  %2230 = vmatpush.bf16.msra.mxu2 %v2213_v26 }
  0xdb   : > { %1880 = vmatmul.msk.bf16.gmra.mxu1 %vm634_vm1, %v529_v48 }
  0xdd   : > { %1961 = vmatmul.msk.bf16.gmra.mxu3 %vm634_vm1, %v948_v8 }
  0xe2   : > { %2078 = vmatmul.msk.bf16.vlgmr.msrb.gmra.mxu2 %vm634_vm1, %v1320_v46 }
  0xe4   : > { %2000 = vmatmul.msk.bf16.gmra.mxu0 %vm634_vm1, %v2756_v4 }
  0xeb   : > { %1881 = vmatmul.msk.bf16.gmra.mxu1 %vm634_vm1, %v530_v54 }
  0xed   : > { %2118 = vmatmul.msk.bf16.vlgmr.msrb.gmra.mxu3 %vm634_vm1, %v2812_v49 }
  0xf2   : > { %2079 = vmatmul.msk.bf16.gmra.mxu2 %vm634_vm1, %v3126_v17 }
  0xf4   : > { %2001 = vmatmul.msk.bf16.gmra.mxu0 %vm634_vm1, %v1100_v20 }
  0xfb   : > { %2038 = vmatmul.msk.bf16.vlgmr.msra.gmra.mxu1 %vm634_vm1, %v2707_v29  ;;  %v1318_v29 = vmul.f32 %v2771_v22, %v2667_v62 }
  0xfd   : > { %2119 = vmatmul.msk.bf16.gmra.mxu3 %vm634_vm1, %v2596_v60  ;;  %v1323_v60 = vpack.c.bf16 %v1319_v28, %v1318_v29 }
 0x102   : > { %2080 = vmatmul.msk.bf16.gmra.mxu2 %vm634_vm1, %v3127_v52 }
 0x104   : > { %2158 = vmatmul.msk.bf16.vlgmr.msra.gmra.mxu0 %vm634_vm1, %v2776_v13 }
 0x10b   : > { %2039 = vmatmul.msk.bf16.gmra.mxu1 %vm634_vm1, %v2779_v34 }
 0x10d   : > { %2120 = vmatmul.msk.bf16.gmra.mxu3 %vm634_vm1, %v1441_v53 }
 0x111   : > { %v666_v46 = vpop.f32.mrf.mxu1 }
 0x112   : > { %2081 = vmatmul.msk.bf16.gmra.mxu2 %vm634_vm1, %v1323_v60 }
 0x114   : > { %2159 = vmatmul.msk.bf16.gmra.mxu0 %vm634_vm1, %v2785_v24 }
 0x119   : > { %v668_v13 = vpop.f32.mrf.mxu1 }
 0x11b   : > { %2040 = vmatmul.msk.bf16.gmra.mxu1 %vm634_vm1, %v2879_v47 }
 0x11d   : > { %2121 = vmatmul.msk.bf16.gmra.mxu3 %vm634_vm1, %v1449_v0 }
 0x121   : > { %v656_v4 = vpop.f32.mrf.mxu0 }
 0x122   : > { %2161 = vmatmul.msk.bf16.vlgmr.msra.gmra.mxu2 %vm634_vm1, %v1569_v55 }
 0x124   : > { %2160 = vmatmul.msk.bf16.gmra.mxu0 %vm634_vm1, %v1567_v18 }
 0x125   : > { %v909_v62 = vpop.f32.mrf.mxu2 }
 0x128   : > { %v671_v34 = vpop.f32.mrf.mxu1 }
 0x129   : > { %v658_v22 = vpop.f32.mrf.mxu0 }
 0x12b   : > { %2041 = vmatmul.msk.bf16.gmra.mxu1 %vm634_vm1, %v1226_v57 }
 0x12d   : > { %v911_v58 = vpop.f32.mrf.mxu2 }
 0x130   : > { %v1019_v37 = vpop.f32.mrf.mxu3  ;;  %v673_v49 = vpop.f32.mrf.mxu1 }
 0x131   : > { %v661_v24 = vpop.f32.mrf.mxu0 }
 0x135   : > { %v914_v63 = vpop.f32.mrf.mxu2 }
 0x138   : > { %v1021_v41 = vpop.f32.mrf.mxu3  ;;  %v733_v39 = vpop.f32.mrf.mxu1 }
 0x139   : > { %v663_v45 = vpop.f32.mrf.mxu0  ;;  %v734_v48 = vadd.f32 %v733_v39, %v656_v4 }
 0x13b   : > { %v929_v47 = vadd.f32 %v909_v62, %v734_v48 }
 0x13d   : > { %v916_v42 = vpop.f32.mrf.mxu2  ;;  %v1039_v17 = vadd.f32 %v1019_v37, %v929_v47 }
 0x140   : > { %v3037_v36 = vpop.f32.mrf.mxu3  ;;  %v735_v35 = vpop.f32.mrf.mxu1 }
 0x141   : > { %v1158_v14 = vpop.f32.mrf.mxu0  ;;  %v736_v54 = vadd.f32 %v735_v35, %v658_v22 }
 0x142   : > { %v1178_v52 = vadd.f32 %v1158_v14, %v1039_v17 }
 0x143   : > { %v930_v27 = vadd.f32 %v911_v58, %v736_v54 }
 0x145   : > { %v919_v6 = vpop.f32.mrf.mxu2  ;;  %v1040_v62 = vadd.f32 %v1021_v41, %v930_v27 }
 0x148   : > { %v3039_v44 = vpop.f32.mrf.mxu3  ;;  %v738_v32 = vpop.f32.mrf.mxu1 }
 0x149   : > { %v1160_v1 = vpop.f32.mrf.mxu0  ;;  %v739_v59 = vadd.f32 %v738_v32, %v661_v24 }
 0x14a   : > { %v1179_v58 = vadd.f32 %v1160_v1, %v1040_v62 }
 0x14b   : > { %v931_v38 = vadd.f32 %v914_v63, %v739_v59 }
 0x14d   : > { %v921_v51 = vpop.f32.mrf.mxu2 }
 0x150   : > { %v3041_v33 = vpop.f32.mrf.mxu3  ;;  %v740_v56 = vpop.f32.mrf.mxu1 }
 0x151   : > { %v1163_v3 = vpop.f32.mrf.mxu0  ;;  %v741_v50 = vadd.f32 %v740_v56, %v663_v45 }
 0x153   : > { %v932_v30 = vadd.f32 %v916_v42, %v741_v50  ;;  %v1041_v42 = vadd.f32 %v3037_v36, %v931_v38 }
 0x155   : > { %v924_v10 = vpop.f32.mrf.mxu2  ;;  %v1180_v35 = vadd.f32 %v1163_v3, %v1041_v42  ;;  %v1042_v50 = vadd.f32 %v3039_v44, %v932_v30 }
 0x158   : > { %v3043_v43 = vpop.f32.mrf.mxu3  ;;  %v743_v20 = vpop.f32.mrf.mxu1 }
 0x159   : > { %v3045_v5 = vpop.f32.mrf.mxu0  ;;  %v744_v53 = vadd.f32 %v743_v20, %v666_v46 }
 0x15a   : > { %v1181_v3 = vadd.f32 %v3045_v5, %v1042_v50 }
 0x15b   : > { %v3047_v12 = vadd.f32 %v919_v6, %v744_v53 }
 0x15d   : > { %v926_v55 = vpop.f32.mrf.mxu2  ;;  %v1043_v44 = vadd.f32 %v3041_v33, %v3047_v12 }
 0x160   : > { %v3049_v18 = vpop.f32.mrf.mxu3  ;;  %v745_v57 = vpop.f32.mrf.mxu1 }
 0x161   : > { %v3051_v25 = vpop.f32.mrf.mxu0  ;;  %v746_v2 = vadd.f32 %v745_v57, %v668_v13 }
 0x162   : > { %v1182_v5 = vadd.f32 %v3051_v25, %v1043_v44 }
 0x163   : > { %v3053_v0 = vadd.f32 %v921_v51, %v746_v2 }
 0x165   : > { %v1394_v23 = vpop.f32.mrf.mxu2  ;;  %v1044_v33 = vadd.f32 %v3043_v43, %v3053_v0 }
 0x168   : > { %v3055_v21 = vpop.f32.mrf.mxu3  ;;  %v748_v19 = vpop.f32.mrf.mxu1 }
 0x169   : > { %v3057_v31 = vpop.f32.mrf.mxu0  ;;  %v749_v11 = vadd.f32 %v748_v19, %v671_v34  ;;  %v3070_v34 = vld [vmem:[%s3123_s7] ss:$0 sm:$0xff] }
 0x16a   : > { %v1183_v25 = vadd.f32 %v3057_v31, %v1044_v33 }
 0x16b   : > { %v3059_v16 = vadd.f32 %v924_v10, %v749_v11 }
 0x16d   : > { %v1396_v15 = vpop.f32.mrf.mxu2  ;;  %v1045_v43 = vadd.f32 %v3049_v18, %v3059_v16 }
 0x170   : > { %v1501_v9 = vpop.f32.mrf.mxu3  ;;  %v750_v40 = vpop.f32.mrf.mxu1 }
 0x171   : > { %v3061_v7 = vpop.f32.mrf.mxu0  ;;  %v751_v61 = vadd.f32 %v750_v40, %v673_v49 }
 0x172   : > { %v1184_v31 = vadd.f32 %v3061_v7, %v1045_v43 }
 0x173   : > { %v3063_v8 = vadd.f32 %v926_v55, %v751_v61 }
 0x175   : > { %v1399_v26 = vpop.f32.mrf.mxu2  ;;  %v1046_v18 = vadd.f32 %v3055_v21, %v3063_v8 }
 0x178   : > { %v1284_v29 = vpop.f32.mrf.mxu1  ;;  %v1503_v60 = vpop.f32.mrf.mxu3 }
 0x179   : > { %v3065_v28 = vpop.f32.mrf.mxu0  ;;  %v1304_v46 = vadd.f32 %v1284_v29, %v1178_v52 }
 0x17a   : > { %v1185_v7 = vadd.f32 %v3065_v28, %v1046_v18 }
 0x17b   : > { %v1414_v4 = vadd.f32 %v1394_v23, %v1304_v46 }
 0x17d   : > { %v1401_v13 = vpop.f32.mrf.mxu2  ;;  %v1521_v22 = vadd.f32 %v1501_v9, %v1414_v4 }
 0x180   : > { %v1286_v49 = vpop.f32.mrf.mxu1  ;;  %v1506_v45 = vpop.f32.mrf.mxu3 }
 0x181   : > { %v1627_v24 = vpop.f32.mrf.mxu0  ;;  %v1305_v63 = vadd.f32 %v1286_v49, %v1179_v58 }
 0x182   : > { %v1647_v37 = vadd.f32 %v1627_v24, %v1521_v22 }
 0x183   : > { %v1415_v48 = vadd.f32 %v1396_v15, %v1305_v63 }
 0x184   : > { %v1659_v39 = vadd.f32 %v3070_v34, %v1647_v37 }
 0x185   : > { %v1404_v47 = vpop.f32.mrf.mxu2  ;;  %v1522_v14 = vadd.f32 %v1503_v60, %v1415_v48 }
 0x186   : > { %v1667_v41 = vmax.f32 %v1659_v39, 0.0 }
 0x188   : > { %1675 = vst [vmem:[%s3077_s18] sm:$0xff] %v1667_v41  ;;  %v1289_v27 = vpop.f32.mrf.mxu1  ;;  %v1508_v51 = vpop.f32.mrf.mxu3  ;;  %v1697_v10 = vmul.f32 %v1667_v41, %v1667_v41 }
 0x189   : > { %v1629_v54 = vpop.f32.mrf.mxu0  ;;  %v1306_v1 = vadd.f32 %v1289_v27, %v1180_v35 }
 0x18a   : > { %v1648_v6 = vadd.f32 %v1629_v54, %v1522_v14 }
 0x18b   : > { %v1416_v59 = vadd.f32 %v1399_v26, %v1306_v1 }
 0x18c   : > { %v1660_v32 = vadd.f32 %v3070_v34, %v1648_v6 }
 0x18d   : > { %v1406_v36 = vpop.f32.mrf.mxu2  ;;  %v1523_v38 = vadd.f32 %v1506_v45, %v1416_v59 }
 0x18e   : > { %v1668_v56 = vmax.f32 %v1660_v32, 0.0 }
 0x190   : > { %1676 = vst [vmem:[%s3077_s18 + $0x8] sm:$0xff] %v1668_v56  ;;  %v1683_v20 = vadd.f32 %v1668_v56, %v1667_v41  ;;  %v1698_v53 = vmul.f32 %v1668_v56, %v1668_v56  ;;  %v1291_v2 = vpop.f32.mrf.mxu1  ;;  %v1511_v30 = vpop.f32.mrf.mxu3 }
 0x191   : > { %v1632_v55 = vpop.f32.mrf.mxu0  ;;  %v1307_v19 = vadd.f32 %v1291_v2, %v1181_v3 }
 0x192   : > { %v1705_v57 = vadd.f32 %v1698_v53, %v1697_v10  ;;  %v1649_v23 = vadd.f32 %v1632_v55, %v1523_v38 }
 0x193   : > { %v1417_v15 = vadd.f32 %v1401_v13, %v1307_v19 }
 0x194   : > { %v1661_v11 = vadd.f32 %v3070_v34, %v1649_v23 }
 0x195   : > { %v1524_v26 = vadd.f32 %v1508_v51, %v1417_v15  ;;  %v1409_v29 = vpop.f32.mrf.mxu2 }
 0x196   : > { %v1669_v9 = vmax.f32 %v1661_v11, 0.0 }
 0x198   : > { %1677 = vst [vmem:[%s3077_s18 + $0x10] sm:$0xff] %v1669_v9  ;;  %v1684_v40 = vadd.f32 %v1683_v20, %v1669_v9  ;;  %v1699_v61 = vmul.f32 %v1669_v9, %v1669_v9  ;;  %v1294_v60 = vpop.f32.mrf.mxu1  ;;  %v1513_v37 = vpop.f32.mrf.mxu3 }
 0x199   : > { %v1634_v17 = vpop.f32.mrf.mxu0  ;;  %v1308_v4 = vadd.f32 %v1294_v60, %v1182_v5 }
 0x19a   : > { %v1706_v52 = vadd.f32 %v1705_v57, %v1699_v61  ;;  %v1650_v46 = vadd.f32 %v1634_v17, %v1524_v26 }
 0x19b   : > { %v1418_v62 = vadd.f32 %v1404_v47, %v1308_v4 }
 0x19c   : > { %v1662_v13 = vadd.f32 %v3070_v34, %v1650_v46 }
 0x19d   : > { %v1525_v24 = vadd.f32 %v1511_v30, %v1418_v62  ;;  %v1411_v41 = vpop.f32.mrf.mxu2 }
 0x19e   : > { %v1670_v22 = vmax.f32 %v1662_v13, 0.0 }
 0x1a0   : > { %1678 = vst [vmem:[%s3077_s18 + $0x18] sm:$0xff] %v1670_v22  ;;  %v1685_v12 = vadd.f32 %v1684_v40, %v1670_v22  ;;  %v1700_v58 = vmul.f32 %v1670_v22, %v1670_v22  ;;  %v1296_v45 = vpop.f32.mrf.mxu1  ;;  %v1516_v51 = vpop.f32.mrf.mxu3 }
 0x1a1   : > { %v1637_v49 = vpop.f32.mrf.mxu0  ;;  %v1309_v48 = vadd.f32 %v1296_v45, %v1183_v25 }
 0x1a2   : > { %v1707_v63 = vadd.f32 %v1706_v52, %v1700_v58  ;;  %v1651_v39 = vadd.f32 %v1637_v49, %v1525_v24 }
 0x1a3   : > { %v1419_v42 = vadd.f32 %v1406_v36, %v1309_v48 }
 0x1a4   : > { %v1663_v47 = vadd.f32 %v3070_v34, %v1651_v39 }
 0x1a5   : > { %v1526_v54 = vadd.f32 %v1513_v37, %v1419_v42  ;;  %v1642_v10 = vpop.f32.mrf.mxu2 }
 0x1a6   : > { %v1671_v14 = vmax.f32 %v1663_v47, 0.0 }
 0x1a8   : > { %1679 = vst [vmem:[%s3077_s18 + $0x20] sm:$0xff] %v1671_v14  ;;  %v1686_v0 = vadd.f32 %v1685_v12, %v1671_v14  ;;  %v1701_v35 = vmul.f32 %v1671_v14, %v1671_v14  ;;  %v1299_v1 = vpop.f32.mrf.mxu1  ;;  %v1518_v11 = vpop.f32.mrf.mxu3 }
 0x1a9   : > { %v1639_v27 = vpop.f32.mrf.mxu0  ;;  %v1310_v59 = vadd.f32 %v1299_v1, %v1184_v31 }
 0x1aa   : > { %v1708_v6 = vadd.f32 %v1707_v63, %v1701_v35  ;;  %v1652_v32 = vadd.f32 %v1639_v27, %v1526_v54 }
 0x1ab   : > { %v1420_v50 = vadd.f32 %v1409_v29, %v1310_v59 }
 0x1ac   : > { %v1664_v56 = vadd.f32 %v3070_v34, %v1652_v32 }
 0x1ad   : > { %v1527_v16 = vadd.f32 %v1516_v51, %v1420_v50  ;;  %v1644_v8 = vpop.f32.mrf.mxu2 }
 0x1ae   : > { %v1672_v20 = vmax.f32 %v1664_v56, 0.0 }
 0x1af   : > { %v1653_v38 = vadd.f32 %v1642_v10, %v1527_v16 }
 0x1b0   : > { %1680 = vst [vmem:[%s3077_s18 + $0x28] sm:$0xff] %v1672_v20  ;;  %v1687_v53 = vadd.f32 %v1686_v0, %v1672_v20  ;;  %v1702_v36 = vmul.f32 %v1672_v20, %v1672_v20  ;;  %v1301_v55 = vpop.f32.mrf.mxu1 }
 0x1b1   : > { %v1665_v57 = vadd.f32 %v3070_v34, %v1653_v38  ;;  %v1311_v2 = vadd.f32 %v1301_v55, %v1185_v7 }
 0x1b2   : > { %v1709_v3 = vadd.f32 %v1708_v6, %v1702_v36 }
 0x1b3   : > { %v1673_v23 = vmax.f32 %v1665_v57, 0.0  ;;  %v1421_v19 = vadd.f32 %v1411_v41, %v1311_v2 }
 0x1b5   : > { %1681 = vst [vmem:[%s3077_s18 + $0x30] sm:$0xff] %v1673_v23  ;;  %v1688_v15 = vadd.f32 %v1687_v53, %v1673_v23  ;;  %v1703_v9 = vmul.f32 %v1673_v23, %v1673_v23  ;;  %v1528_v21 = vadd.f32 %v1518_v11, %v1421_v19 }
 0x1b7   : > { %v1710_v44 = vadd.f32 %v1709_v3, %v1703_v9  ;;  %v1654_v30 = vadd.f32 %v1644_v8, %v1528_v21 }
 0x1b9   : > { %v1666_v28 = vadd.f32 %v3070_v34, %v1654_v30 }
 0x1bb   : > { %v1674_v40 = vmax.f32 %v1666_v28, 0.0 }
 0x1bd   : > { %1682 = vst [vmem:[%s3077_s18 + $0x38] sm:$0xff] %v1674_v40  ;;  %v1689_v61 = vadd.f32 %v1688_v15, %v1674_v40  ;;  %v1704_v26 = vmul.f32 %v1674_v40, %v1674_v40 }
 0x1bf   : > { %v1690_v5 = vrot.slane %v1689_v61, 4  ;;  %v1711_v17 = vadd.f32 %v1710_v44, %v1704_v26 }
 0x1c1   : > { %v1691_v52 = vadd.f32 %v1690_v5, %v1689_v61  ;;  %v1712_v29 = vrot.slane %v1711_v17, 4 }
 0x1c3   : > { %v1692_v60 = vrot.slane %v1691_v52, 2  ;;  %v1713_v46 = vadd.f32 %v1712_v29, %v1711_v17 }
 0x1c5   : > { %v1693_v4 = vadd.f32 %v1692_v60, %v1691_v52  ;;  %v1714_v13 = vrot.slane %v1713_v46, 2 }
 0x1c7   : > { %v1694_v62 = vrot.slane %v1693_v4, 1  ;;  %v1715_v22 = vadd.f32 %v1714_v13, %v1713_v46 }
 0x1c9   : > { %v1695_v34 = vadd.f32 %v1694_v62, %v1693_v4  ;;  %v1716_v33 = vrot.slane %v1715_v22, 1 }
 0x1cb   : > { %1696 = vst [vmem:[%s343_s22] sm:$0x1] %v1695_v34  ;;  %v1717_v12 = vadd.f32 %v1716_v33, %v1715_v22 }
 0x1cd   : > { %1718 = vst [vmem:[%s343_s22 + $0x1] sm:$0x1] %v1717_v12 }
 0x1ce PF: > { %s20_s30 = sadd.s32 1, %s2253_s30  }
 0x1cf   : > { %p17_p4 = scmp.ge.s32.totalorder %s20_s30, 4  }
 0x1d1   :  { %19 = sbr.rel (!%p17_p4) target bundleno = 1 (0x1), region = 102 }

// kernel: vae_encoder_forward.5
= control target key start
LH: loop header
LB: loop body
LE: loop exit
PB: predicated region body
PF: predicated region fallthrough
CT: control target
= control target key end

     0   :  { %15 = vsyncpa [#allocation3], 0  ;;  %s4651_s30 = smov 0   ;;  %s6984_s0 = inlined_call_operand.vmem [shape: f32[2,296,3], index: 0, kind: input, shape index: {}]   ;;  %s6985_s1 = inlined_call_operand.vmem [shape: f32[1,3], index: 1, kind: input, shape index: {}]   ;;  %s6986_s2 = inlined_call_operand.vmem [shape: f32[1,3], index: 2, kind: input, shape index: {}]   ;;  %s6987_s3 = inlined_call_operand.vmem [shape: f32[296,1], index: 3, kind: input, shape index: {}]   ;;  %s6988_s4 = inlined_call_operand.vmem [shape: f32[256,1], index: 4, kind: input, shape index: {}]   ;;  %s6989_s5 = inlined_call_operand.vmem [shape: f32[256,1], index: 5, kind: input, shape index: {}]   ;;  %s6990_s6 = inlined_call_operand.vmem [shape: bf16[9,3,96], index: 6, kind: input, shape index: {}]   ;;  %s6991_s7 = inlined_call_operand.hbm [shape: f32[1,96], index: 7, kind: input, shape index: {}]   ;;  %s6992_s8 = inlined_call_operand.vmem [shape: f32[2,64,96], index: 8, kind: output, shape index: {0}]   ;;  %s6993_s9 = inlined_call_operand.vmem [shape: f32[2,2,96], index: 9, kind: output, shape index: {1}]  }
   0x1 LB: > { %s4657_s10 = sadd.s32 4294967295, %s4596_s30   ;;  %p4294_p0 = scmp.ge.s32.totalorder %s4596_s30, 1  ;;  %s4596_s30 = sphi %s4651_s30, %s21_s30  }
   0x2   : > { %p251_p1 = scmp.lt.s32.totalorder %s4596_s30, 3  ;;  %s281_s13 = sshll.u32 %s6991_s7, 4  ;;  %s282_s13 = int_to_ptr.hbm [resolvable:$true] %s281_s13 }
   0x3   : > { %p4534_p3 = scmp.eq.s32.totalorder %s4657_s10, 0  ;;  %s4598_s14 = smov [#allocation2]  }
   0x4   : > { %p252_p2 = pnand %p4294_p0, %p251_p1  ;;  %s283_s15 = sshll.u32 %s4598_s14, 4  ;;  %s284_s15 = int_to_ptr.vmem [resolvable:$true] %s283_s15 }
   0x6   : > { %p4530_p4 = pneg %p252_p2  ;;  %304 = sbr.rel (%p252_p2) target bundleno = 918 (0x396), region = 52 }
   0x8   : > { %p4531_p5 = pnand %p4534_p3, %p4530_p4 }
   0xa   : > { %4533 = dma.hbm_to_vmem [thread:$0]  (!%p4531_p5), %s282_s13, 16, %s284_s15, [#allocation3]  }
   0xb   : > { %4591 = dma.done.wait (%p4534_p3), [#allocation3], 16  }
   0xc   : > { %4593 = vsyncadd (%p4534_p3), [#allocation3], 4294967280  ;;  %v4599_v0 = vmov 0   ;;  %v503_v1 = vld [vmem:[%s6987_s3 + $0xc0] sm:$0xff]  ;;  %v497_v2 = vld [vmem:[%s6987_s3 + $0x90] sm:$0xff]  ;;  %vm1212_vm0 = vcmask 1040384  }
   0xd   : > { %4549 = vset.pattern.permute.xlu2 %v4599_v0  ;;  %4548 = vset.pattern.permute.xlu1 %v4599_v0  ;;  %v495_v3 = vld [vmem:[%s6987_s3 + $0x80] sm:$0xff]  ;;  %v504_v4 = vld [vmem:[%s6987_s3 + $0xc8] sm:$0xff]  ;;  %v498_v5 = vld [vmem:[%s6987_s3 + $0x98] sm:$0xff]  ;;  %vm1213_vm1 = vcmask 1041408   ;;  %p345_p6 = scmp.lt.s32.totalorder %s4657_s10, 1  ;;  %v4600_v42 = vmov 65535  }
   0xe   : > { %4547 = vset.pattern.permute.xlu0 %v4599_v0  ;;  %638 = vperm.xlu2 %4549, %v503_v1   ;;  %v496_v6 = vld [vmem:[%s6987_s3 + $0x88] sm:$0xff]  ;;  %v505_v7 = vld [vmem:[%s6987_s3 + $0xd0] sm:$0xff]  ;;  %v487_v9 = vld [vmem:[%s6987_s3 + $0x40] sm:$0xff]  ;;  %v1214_v43 = vsel %vm1212_vm0, 4294967295, %v4600_v42  ;;  %vm1030_vm2 = vsmask.f32 7424 }
   0xf   : > { %608 = vperm.xlu1 %4548, %v497_v2   ;;  %598 = vperm.xlu0 %4547, %v495_v3   ;;  %v488_v8 = vld [vmem:[%s6987_s3 + $0x48] sm:$0xff]  ;;  %v490_v10 = vld [vmem:[%s6987_s3 + $0x58] sm:$0xff]  ;;  %v489_v11 = vld [vmem:[%s6987_s3 + $0x50] sm:$0xff]  ;;  %v4791_v45 = vsel %vm1213_vm1, %v1214_v43, 0  ;;  %s7352_s10 = smov (!%p345_p6, %s4657_s10), 1  ;;  %vm1163_vm3 = vcmask 23552  }
  0x10   : > { %v506_v12 = vld [vmem:[%s6987_s3 + $0xd8] sm:$0xff]  ;;  %v481_v13 = vld [vmem:[%s6987_s3 + $0x10] sm:$0xff]  ;;  %v480_v14 = vld [vmem:[%s6987_s3 + $0x8] sm:$0xff]  ;;  %s4525_s26 = smul.u32 296, %s7352_s10  ;;  %vm1741_vm4 = vcmask 1046528   ;;  %vm3813_vm5 = vcmask 1041409  }
  0x11   : > { %v479_v15 = vld [vmem:[%s6987_s3] sm:$0xff]  ;;  %v500_v16 = vld [vmem:[%s6987_s3 + $0xa8] sm:$0xff]  ;;  %v482_v18 = vld [vmem:[%s6987_s3 + $0x18] sm:$0xff]  ;;  %vm3815_vm6 = vcmask 1042434   ;;  %vm3817_vm7 = vcmask 1043459   ;;  %vm3819_vm8 = vcmask 1044484  }
  0x12   : > { %v499_v17 = vld [vmem:[%s6987_s3 + $0xa0] sm:$0xff]  ;;  %v508_v20 = vld [vmem:[%s6987_s3 + $0xe8] sm:$0xff]  ;;  %v509_v25 = vld [vmem:[%s6987_s3 + $0xf0] sm:$0xff]  ;;  %s4812_s29 = scalar_lea.vmem %s6984_s0, %s4525_s26  ;;  %vm3821_vm9 = vcmask 1045509   ;;  %vm3823_vm10 = vcmask 1046534   ;;  %vm3825_vm11 = vcmask 1047559  }
  0x13   : > { %v491_v19 = vld [vmem:[%s6987_s3 + $0x60] sm:$0xff]  ;;  %v484_v22 = vld [vmem:[%s6987_s3 + $0x28] sm:$0xff]  ;;  %v502_v26 = vld [vmem:[%s6987_s3 + $0xb8] sm:$0xff]  ;;  %vm3884_vm12 = vcmask 785408   ;;  %s4302_s12 = sshll.u32 %s7352_s10, 1  ;;  %vm3914_vm13 = vcmask 778240  }
  0x14   : > { %v507_v21 = vld [vmem:[%s6987_s3 + $0xe0] sm:$0xff]  ;;  %v492_v24 = vld [vmem:[%s6987_s3 + $0x68] sm:$0xff]  ;;  %v501_v27 = vld [vmem:[%s6987_s3 + $0xb0] sm:$0xff]  ;;  %s358_s15 = scalar_lea.vmem %s6993_s9, %s4302_s12 }
  0x15   : > { %v483_v23 = vld [vmem:[%s6987_s3 + $0x20] sm:$0xff]  ;;  %v494_v28 = vld [vmem:[%s6987_s3 + $0x78] sm:$0xff]  ;;  %v493_v29 = vld [vmem:[%s6987_s3 + $0x70] sm:$0xff] }
  0x16   : > { %643 = vperm.xlu2 %4549, %v504_v4   ;;  %v510_v30 = vld [vmem:[%s6987_s3 + $0xf8] sm:$0xff]  ;;  %v511_v31 = vld [vmem:[%s6987_s3 + $0x100] sm:$0xff]  ;;  %v485_v33 = vld [vmem:[%s6987_s3 + $0x30] sm:$0xff] }
  0x17   : > { %613 = vperm.xlu1 %4548, %v498_v5   ;;  %603 = vperm.xlu0 %4547, %v496_v6   ;;  %v486_v32 = vld [vmem:[%s6987_s3 + $0x38] sm:$0xff]  ;;  %v772_v34 = vld [vmem:[%s6989_s5 + $0x10] sm:$0xff]  ;;  %v771_v35 = vld [vmem:[%s6989_s5 + $0x8] sm:$0xff] }
  0x18   : > { %v770_v36 = vld [vmem:[%s6989_s5] sm:$0xff]  ;;  %v739_v38 = vld [vmem:[%s6988_s4 + $0x8] sm:$0xff]  ;;  %v773_v40 = vld [vmem:[%s6989_s5 + $0x18] sm:$0xff] }
  0x19   : > { %v738_v39 = vld [vmem:[%s6988_s4] sm:$0xff]  ;;  %v740_v47 = vld [vmem:[%s6988_s4 + $0x10] sm:$0xff]  ;;  %v775_v48 = vld [vmem:[%s6989_s5 + $0x28] sm:$0xff] }
  0x1a   : > { %v4303_v41 = vld [vmem:[%s6990_s6 + $0x2] sm:$0x3]  ;;  %v777_v51 = vld [vmem:[%s6989_s5 + $0x38] sm:$0xff]  ;;  %v776_v52 = vld [vmem:[%s6989_s5 + $0x30] sm:$0xff] }
  0x1b   : > { %v1217_v46 = vand.u32 %v4303_v41, %v4791_v45  ;;  %v774_v49 = vld [vmem:[%s6989_s5 + $0x20] sm:$0xff]  ;;  %v741_v53 = vld [vmem:[%s6988_s4 + $0x18] sm:$0xff]  ;;  %v378_v55 = vld [vmem:[%s4812_s29 + $0x90] sm:$0xff] }
  0x1c   : > { %v4826_v54 = vld [vmem:[%s6985_s1] ss:$0 sm:$0xff]  ;;  %v379_v56 = vld [vmem:[%s4812_s29 + $0x98] sm:$0xff]  ;;  %v377_v58 = vld [vmem:[%s4812_s29 + $0x88] sm:$0xff] }
  0x1d   : > { %4523 = vmatpush.bf16.msra.mxu2 %v1217_v46  ;;  %4522 = vmatpush.bf16.msra.mxu1 %v1217_v46  ;;  %v376_v57 = vld [vmem:[%s4812_s29 + $0x80] sm:$0xff]  ;;  %v419_v62 = vmul.f32 %v4826_v54, %v378_v55  ;;  %v420_v0 = vmul.f32 %v4826_v54, %v379_v56  ;;  %v418_v2 = vmul.f32 %v4826_v54, %v377_v58  ;;  %v743_v4 = vld [vmem:[%s6988_s4 + $0x28] sm:$0xff]  ;;  %v387_v43 = vld [vmem:[%s4812_s29 + $0xd8] sm:$0xff] }
  0x1e   : > { %648 = vperm.xlu2 %4549, %v505_v7   ;;  %4524 = vmatpush.bf16.msra.mxu3 %v1217_v46  ;;  %v4837_v61 = vld [vmem:[%s6986_s2] ss:$0 sm:$0xff]  ;;  %v417_v1 = vmul.f32 %v4826_v54, %v376_v57  ;;  %v385_v6 = vld [vmem:[%s4812_s29 + $0xc8] sm:$0xff] }
  0x1f   : > { %563 = vperm.xlu1 %4548, %v488_v8   ;;  %558 = vperm.xlu0 %4547, %v487_v9   ;;  %v778_v3 = vld [vmem:[%s6989_s5 + $0x40] sm:$0xff]  ;;  %v460_v8 = vadd.f32 %v4837_v61, %v419_v62  ;;  %v461_v9 = vadd.f32 %v4837_v61, %v420_v0  ;;  %v428_v62 = vmul.f32 %v4826_v54, %v387_v43 }
  0x20   : > { %1226 = vmatpush.bf16.msra.mxu0 %v1217_v46  ;;  %v384_v5 = vld [vmem:[%s4812_s29 + $0xc0] sm:$0xff] }
  0x21   : > { %v742_v7 = vld [vmem:[%s6988_s4 + $0x20] sm:$0xff] }
  0x22   : > { %v4336_v46 = vld [vmem:[%s6990_s6 + $0x4] sm:$0x3] }
  0x26   : > { %573 = vperm.xlu2 %4549, %v490_v10   ;;  %v458_v10 = vadd.f32 %v4837_v61, %v417_v1  ;;  %v4353_v1 = vld [vmem:[%s6990_s6 + $0x6] sm:$0x3] }
  0x27   : > { %568 = vperm.xlu1 %4548, %v489_v11   ;;  %653 = vperm.xlu0 %4547, %v506_v12   ;;  %v459_v11 = vadd.f32 %v4837_v61, %v418_v2  ;;  %v369_v12 = vld [vmem:[%s4812_s29 + $0x48] sm:$0xff]  ;;  %v1010_v2 = vld [vmem:[%s6990_s6] sm:$0x3] }
  0x2e   : > { %528 = vperm.xlu2 %4549, %v481_v13   ;;  %v425_v13 = vmul.f32 %v4826_v54, %v384_v5 }
  0x2f   : > { %523 = vperm.xlu1 %4548, %v480_v14   ;;  %518 = vperm.xlu0 %4547, %v479_v15   ;;  %v426_v14 = vmul.f32 %v4826_v54, %v385_v6  ;;  %v368_v15 = vld [vmem:[%s4812_s29 + $0x40] sm:$0xff]  ;;  %v2046_v6 = vand.u32 %v4353_v1, %v4791_v45 }
  0x31   : > { %2055 = vmatpush.bf16.msrb.mxu3 %v2046_v6 }
  0x36   : > { %623 = vperm.xlu2 %4549, %v500_v16  }
  0x37   : > { %618 = vperm.xlu1 %4548, %v499_v17   ;;  %533 = vperm.xlu0 %4547, %v482_v18  }
  0x3e   : > { %578 = vperm.xlu2 %4549, %v491_v19  }
  0x3f   : > { %663 = vperm.xlu1 %4548, %v508_v20   ;;  %658 = vperm.xlu0 %4547, %v507_v21   ;;  %v410_v21 = vmul.f32 %v4826_v54, %v369_v12  ;;  %v361_v12 = vld [vmem:[%s4812_s29 + $0x8] sm:$0xff] }
  0x46   : > { %543 = vperm.xlu2 %4549, %v484_v22  }
  0x47   : > { %538 = vperm.xlu1 %4548, %v483_v23   ;;  %583 = vperm.xlu0 %4547, %v492_v24   ;;  %v409_v24 = vmul.f32 %v4826_v54, %v368_v15 }
  0x4e   : > { %668 = vperm.xlu2 %4549, %v509_v25   ;;  %v466_v25 = vadd.f32 %v4837_v61, %v425_v13  ;;  %v360_v13 = vld [vmem:[%s4812_s29] sm:$0xff] }
  0x4f   : > { %633 = vperm.xlu1 %4548, %v502_v26   ;;  %628 = vperm.xlu0 %4547, %v501_v27   ;;  %v467_v26 = vadd.f32 %v4837_v61, %v426_v14  ;;  %v745_v27 = vld [vmem:[%s6988_s4 + $0x38] sm:$0xff] }
  0x56   : > { %593 = vperm.xlu2 %4549, %v494_v28   ;;  %v744_v28 = vld [vmem:[%s6988_s4 + $0x30] sm:$0xff] }
  0x57   : > { %588 = vperm.xlu1 %4548, %v493_v29   ;;  %673 = vperm.xlu0 %4547, %v510_v30   ;;  %v386_v30 = vld [vmem:[%s4812_s29 + $0xd0] sm:$0xff] }
  0x58   : > { %v427_v42 = vmul.f32 %v4826_v54, %v386_v30  ;;  %v401_v30 = vmul.f32 %v4826_v54, %v360_v13  ;;  %v749_v13 = vld [vmem:[%s6988_s4 + $0x58] sm:$0xff] }
  0x5e   : > { %678 = vperm.xlu2 %4549, %v511_v31   ;;  %v779_v31 = vld [vmem:[%s6989_s5 + $0x48] sm:$0xff] }
  0x5f   : > { %553 = vperm.xlu1 %4548, %v486_v32   ;;  %548 = vperm.xlu0 %4547, %v485_v33   ;;  %v371_v33 = vld [vmem:[%s4812_s29 + $0x58] sm:$0xff] }
  0x66   : > { %1458 = vperm.xlu2 %4549, %v772_v34   ;;  %v451_v34 = vadd.f32 %v4837_v61, %v410_v21 }
  0x67   : > { %1454 = vperm.xlu1 %4548, %v771_v35   ;;  %1450 = vperm.xlu0 %4547, %v770_v36   ;;  %v450_v35 = vadd.f32 %v4837_v61, %v409_v24 }
  0x68   : > { %v4773_v37 = vpop.permute.xlu2 %638 }
  0x6e   : > { %809 = vperm.xlu2 %4549, %v739_v38  }
  0x6f   : > { %804 = vperm.xlu1 %4548, %v738_v39   ;;  %1462 = vperm.xlu0 %4547, %v773_v40   ;;  %v370_v39 = vld [vmem:[%s4812_s29 + $0x50] sm:$0xff]  ;;  %v4898_v40 = vmul.f32 %v4773_v37, %v466_v25 }
  0x70   : > { %v4788_v44 = vpop.permute.xlu2 %643  ;;  %v411_v55 = vmul.f32 %v4826_v54, %v370_v39 }
  0x71   : > { %7078 = vst [vmem:[#allocation5_spill] sm:$0xff] %v4898_v40  ;;  %v4901_v41 = vmul.f32 %v4788_v44, %v467_v26  ;;  %v402_v26 = vmul.f32 %v4826_v54, %v361_v12  ;;  %v784_v12 = vld [vmem:[%s6989_s5 + $0x70] sm:$0xff] }
  0x73   : > { %7079 = vst [vmem:[#allocation6_spill] sm:$0xff] %v4901_v41  ;;  %v1023_v0 = vpack.c.bf16 %v4901_v41, %v4898_v40 }
  0x76   : > { %814 = vperm.xlu2 %4549, %v740_v47   ;;  %v412_v47 = vmul.f32 %v4826_v54, %v371_v33  ;;  %v4370_v33 = vld [vmem:[%s6990_s6 + $0x8] sm:$0x3] }
  0x77   : > { %1470 = vperm.xlu1 %4548, %v775_v48   ;;  %1466 = vperm.xlu0 %4547, %v774_v49   ;;  %v2193_v39 = vand.u32 %v4370_v33, %v4791_v45 }
  0x78   : > { %v4807_v50 = vpop.permute.xlu2 %648 }
  0x79   : > { %2202 = vmatpush.bf16.msrb.mxu0 %v2193_v39 }
  0x7e   : > { %1478 = vperm.xlu2 %4549, %v777_v51  }
  0x7f   : > { %1474 = vperm.xlu1 %4548, %v776_v52   ;;  %819 = vperm.xlu0 %4547, %v741_v53   ;;  %v1824_v52 = vand.u32 %v4336_v46, %v4791_v45 }
  0x80   : > { %v4832_v60 = vpop.permute.xlu2 %573 }
  0x81   : > { %v609_v59 = vpop.permute.xlu1 %608  ;;  %v599_v63 = vpop.permute.xlu0 %598  ;;  %1833 = vmatpush.bf16.msrb.mxu2 %v1824_v52  ;;  %v380_v52 = vld [vmem:[%s4812_s29 + $0xa0] sm:$0xff] }
  0x82   : > { %v4864_v18 = vmul.f32 %v609_v59, %v460_v8  ;;  %v4869_v22 = vmul.f32 %v599_v63, %v458_v10  ;;  %v746_v59 = vld [vmem:[%s6988_s4 + $0x40] sm:$0xff]  ;;  %v781_v63 = vld [vmem:[%s6989_s5 + $0x58] sm:$0xff]  ;;  %v453_v8 = vadd.f32 %v4837_v61, %v412_v47  ;;  %v468_v10 = vadd.f32 %v4837_v61, %v427_v42  ;;  %v381_v47 = vld [vmem:[%s4812_s29 + $0xa8] sm:$0xff] }
  0x83   : > { %v443_v42 = vadd.f32 %v4837_v61, %v402_v26 }
  0x84   : > { %v4959_v21 = vmul.f32 %v4832_v60, %v453_v8  ;;  %v782_v60 = vld [vmem:[%s6989_s5 + $0x60] sm:$0xff] }
  0x86   : > { %1482 = vperm.xlu2 %4549, %v778_v3  }
  0x87   : > { %829 = vperm.xlu1 %4548, %v743_v4   ;;  %824 = vperm.xlu0 %4547, %v742_v7   ;;  %v780_v4 = vld [vmem:[%s6989_s5 + $0x50] sm:$0xff]  ;;  %v1357_v7 = vand.u32 %v4791_v45, %v1010_v2  ;;  %v422_v2 = vmul.f32 %v4826_v54, %v381_v47 }
  0x88   : > { %v4862_v17 = vpop.permute.xlu2 %528 }
  0x89   : > { %v614_v16 = vpop.permute.xlu1 %613  ;;  %v604_v20 = vpop.permute.xlu0 %603  ;;  %1366 = vmatpush.bf16.msrb.mxu1 %v1357_v7  ;;  %v421_v7 = vmul.f32 %v4826_v54, %v380_v52  ;;  %v751_v52 = vld [vmem:[%s6988_s4 + $0x68] sm:$0xff] }
  0x8a   : > { %v4866_v19 = vmul.f32 %v614_v16, %v461_v9  ;;  %v4871_v23 = vmul.f32 %v604_v20, %v459_v11  ;;  %v452_v9 = vadd.f32 %v4837_v61, %v411_v55  ;;  %v469_v11 = vadd.f32 %v4837_v61, %v428_v62 }
  0x8b   : > { %v1127_v20 = vshll.u32 %v1023_v0, 16 }
  0x8c   : > { %v4884_v29 = vpack.c.bf16 %v4866_v19, %v4864_v18  ;;  %v1019_v32 = vpack.c.bf16 %v4871_v23, %v4869_v22 }
  0x8e   : > { %839 = vperm.xlu2 %4549, %v745_v27   ;;  %v1095_v36 = vshll.u32 %v1019_v32, 16  ;;  %v1103_v38 = vshll.u32 %v4884_v29, 16  ;;  %v1099_v37 = vshrl.u32 %v1019_v32, 16  ;;  %v4965_v27 = vmul.f32 %v4807_v50, %v468_v10 }
  0x8f   : > { %834 = vperm.xlu1 %4548, %v744_v28   ;;  %1486 = vperm.xlu0 %4547, %v779_v31   ;;  %v783_v31 = vld [vmem:[%s6989_s5 + $0x68] sm:$0xff] }
  0x90   : > { %v4909_v49 = vpop.permute.xlu2 %623  ;;  %v4911_v51 = vrot.slane %v1095_v36, 1  ;;  %v4920_v58 = vrot.slane %v1103_v38, 1  ;;  %7081 = vst [vmem:[#allocation8_spill] sm:$0xff] %v4965_v27  ;;  %v4992_v36 = vrot.slane %v1127_v20, 1  ;;  %v1131_v38 = vshrl.u32 %v1023_v0, 16 }
  0x91   : > { %v564_v48 = vpop.permute.xlu1 %563  ;;  %v559_v53 = vpop.permute.xlu0 %558  ;;  %v463_v20 = vadd.f32 %v4837_v61, %v422_v2 }
  0x92   : > { %v4914_v44 = vmul.f32 %v564_v48, %v451_v34  ;;  %v4917_v56 = vmul.f32 %v559_v53, %v450_v35  ;;  %v1101_v57 = vor.u32 %v1099_v37, %v4911_v51  ;;  %v747_v34 = vld [vmem:[%s6988_s4 + $0x48] sm:$0xff]  ;;  %v442_v48 = vadd.f32 %v4837_v61, %v401_v30  ;;  %v362_v53 = vld [vmem:[%s4812_s29 + $0x10] sm:$0xff] }
  0x93   : > { %v1133_v0 = vor.u32 %v1131_v38, %v4992_v36  ;;  %v403_v8 = vmul.f32 %v4826_v54, %v362_v53  ;;  %v5051_v39 = vmul.f32 %v4909_v49, %v463_v20  ;;  %v750_v49 = vld [vmem:[%s6988_s4 + $0x60] sm:$0xff] }
  0x94   : > { %v4939_v3 = vsel %vm1030_vm2, %v1101_v57, %v4920_v58  ;;  %v1015_v5 = vpack.c.bf16 %v4914_v44, %v4917_v56 }
  0x95   : > { %7080 = vst [vmem:[#allocation7_spill] sm:$0xff] %v4939_v3  ;;  %4312 = vmatmul.msk.bf16.vlgmr.msra.gmra.mxu2 %vm1163_vm3, %v4939_v3  ;;  %v444_v26 = vadd.f32 %v4837_v61, %v403_v8  ;;  %v392_v3 = vld [vmem:[%s4812_s29 + $0x100] sm:$0xff] }
  0x96   : > { %844 = vperm.xlu2 %4549, %v746_v59   ;;  %v1063_v14 = vshll.u32 %v1015_v5, 16  ;;  %v1067_v43 = vshrl.u32 %v1015_v5, 16  ;;  %v363_v59 = vld [vmem:[%s4812_s29 + $0x18] sm:$0xff] }
  0x97   : > { %1494 = vperm.xlu1 %4548, %v781_v63   ;;  %1490 = vperm.xlu0 %4547, %v780_v4   ;;  %v5057_v47 = vmul.f32 %v4862_v17, %v444_v26 }
  0x98   : > { %v4956_v16 = vpop.permute.xlu2 %578  ;;  %v4980_v50 = vrot.slane %v1063_v14, 1 }
  0x99   : > { %v569_v15 = vpop.permute.xlu1 %568  ;;  %v654_v25 = vpop.permute.xlu0 %653 }
  0x9a   : > { %v4961_v24 = vmul.f32 %v569_v15, %v452_v9  ;;  %v4967_v28 = vmul.f32 %v654_v25, %v469_v11  ;;  %v1069_v55 = vor.u32 %v1067_v43, %v4980_v50  ;;  %v404_v11 = vmul.f32 %v4826_v54, %v363_v59  ;;  %v748_v15 = vld [vmem:[%s6988_s4 + $0x50] sm:$0xff] }
  0x9b   : > { %v462_v25 = vadd.f32 %v4837_v61, %v421_v7 }
  0x9c   : > { %7082 = vst [vmem:[#allocation9_spill] sm:$0xff] %v4967_v28  ;;  %v4978_v32 = vpack.c.bf16 %v4959_v21, %v4961_v24  ;;  %v4990_v35 = vpack.c.bf16 %v4967_v28, %v4965_v27  ;;  %v445_v30 = vadd.f32 %v4837_v61, %v404_v11 }
  0x9e   : > { %v1071_v46 = vshll.u32 %v4978_v32, 16  ;;  %1502 = vperm.xlu2 %4549, %v783_v31   ;;  %v1135_v37 = vshll.u32 %v4990_v35, 16  ;;  %v389_v31 = vld [vmem:[%s4812_s29 + $0xe8] sm:$0xff] }
  0x9f   : > { %1498 = vperm.xlu1 %4548, %v782_v60   ;;  %849 = vperm.xlu0 %4547, %v747_v34   ;;  %v388_v60 = vld [vmem:[%s4812_s29 + $0xe0] sm:$0xff] }
  0xa0   : > { %v5003_v57 = vrot.slane %v1071_v46, 1  ;;  %v5006_v62 = vpop.permute.xlu2 %543  ;;  %v5009_v1 = vrot.slane %v1135_v37, 1  ;;  %v430_v46 = vmul.f32 %v4826_v54, %v389_v31  ;;  %v429_v37 = vmul.f32 %v4826_v54, %v388_v60 }
  0xa1   : > { %v524_v63 = vpop.permute.xlu1 %523  ;;  %v519_v5 = vpop.permute.xlu0 %518 }
  0xa2   : > { %v5012_v4 = vmul.f32 %v524_v63, %v443_v42  ;;  %v5016_v6 = vsel %vm1030_vm2, %v1069_v55, %v5003_v57  ;;  %v5020_v9 = vmul.f32 %v519_v5, %v442_v48  ;;  %v5026_v10 = vsel %vm1030_vm2, %v1133_v0, %v5009_v1  ;;  %v785_v55 = vld [vmem:[%s6989_s5 + $0x78] sm:$0xff]  ;;  %v365_v5 = vld [vmem:[%s4812_s29 + $0x28] sm:$0xff] }
  0xa3   : > { %7083 = vst [vmem:[#allocation10_spill] sm:$0xff] %v5016_v6  ;;  %4308 = vmatmul.msk.bf16.vlgmr.msra.gmra.mxu1 %vm1163_vm3, %v5016_v6  ;;  %4316 = vmatmul.msk.bf16.vlgmr.msra.gmra.mxu3 %vm1163_vm3, %v5026_v10  ;;  %v471_v63 = vadd.f32 %v4837_v61, %v430_v46  ;;  %v1107_v0 = vshrl.u32 %v4884_v29, 16  ;;  %v470_v8 = vadd.f32 %v4837_v61, %v429_v37 }
  0xa4   : > { %7084 = vst [vmem:[#allocation11_spill] sm:$0xff] %v5026_v10  ;;  %v1011_v14 = vpack.c.bf16 %v5012_v4, %v5020_v9 }
  0xa6   : > { %1506 = vperm.xlu2 %4549, %v784_v12   ;;  %v1034_v33 = vshll.u32 %v1011_v14, 16  ;;  %v1032_v7 = vshrl.u32 %v1011_v14, 16  ;;  %v364_v12 = vld [vmem:[%s4812_s29 + $0x20] sm:$0xff]  ;;  %v406_v14 = vmul.f32 %v4826_v54, %v365_v5 }
  0xa7   : > { %859 = vperm.xlu1 %4548, %v749_v13   ;;  %854 = vperm.xlu0 %4547, %v748_v15   ;;  %v372_v13 = vld [vmem:[%s4812_s29 + $0x60] sm:$0xff]  ;;  %v1109_v15 = vor.u32 %v1107_v0, %v4920_v58 }
  0xa8   : > { %v5048_v34 = vpop.permute.xlu2 %668  ;;  %v1036_v17 = vrot.slane %v1034_v33, 1  ;;  %v413_v58 = vmul.f32 %v4826_v54, %v372_v13  ;;  %v447_v0 = vadd.f32 %v4837_v61, %v406_v14  ;;  %v382_v13 = vld [vmem:[%s4812_s29 + $0xb0] sm:$0xff] }
  0xa9   : > { %v619_v38 = vpop.permute.xlu1 %618  ;;  %v534_v43 = vpop.permute.xlu0 %533 }
  0xaa   : > { %v5053_v42 = vmul.f32 %v619_v38, %v462_v25  ;;  %v5059_v48 = vmul.f32 %v534_v43, %v445_v30  ;;  %v373_v25 = vld [vmem:[%s4812_s29 + $0x68] sm:$0xff]  ;;  %v1037_v30 = vor.u32 %v1036_v17, %v1032_v7  ;;  %v405_v43 = vmul.f32 %v4826_v54, %v364_v12  ;;  %v383_v12 = vld [vmem:[%s4812_s29 + $0xb8] sm:$0xff] }
  0xab   : > { %v787_v17 = vld [vmem:[%s6989_s5 + $0x88] sm:$0xff]  ;;  %v454_v5 = vadd.f32 %v4837_v61, %v413_v58  ;;  %v5136_v14 = vmul.f32 %v5006_v62, %v447_v0  ;;  %v789_v62 = vld [vmem:[%s6989_s5 + $0x98] sm:$0xff] }
  0xac   : > { %v5070_v53 = vpack.c.bf16 %v5051_v39, %v5053_v42  ;;  %v5077_v59 = vpack.c.bf16 %v5059_v48, %v5057_v47 }
  0xad   : > { %v5142_v58 = vmul.f32 %v4956_v16, %v454_v5  ;;  %v788_v16 = vld [vmem:[%s6989_s5 + $0x90] sm:$0xff] }
  0xae   : > { %v1111_v2 = vshll.u32 %v5070_v53, 16  ;;  %869 = vperm.xlu2 %4549, %v751_v52   ;;  %v1039_v11 = vshll.u32 %v5077_v59, 16  ;;  %v414_v52 = vmul.f32 %v4826_v54, %v373_v25 }
  0xaf   : > { %864 = vperm.xlu1 %4548, %v750_v49   ;;  %1510 = vperm.xlu0 %4547, %v785_v55   ;;  %v752_v49 = vld [vmem:[%s6988_s4 + $0x70] sm:$0xff]  ;;  %v786_v55 = vld [vmem:[%s6989_s5 + $0x80] sm:$0xff] }
  0xb0   : > { %v5088_v20 = vrot.slane %v1111_v2, 1  ;;  %v5091_v26 = vpop.permute.xlu2 %593  ;;  %v1041_v31 = vrot.slane %v1039_v11, 1  ;;  %v446_v2 = vadd.f32 %v4837_v61, %v405_v43  ;;  %v455_v7 = vadd.f32 %v4837_v61, %v414_v52 }
  0xb1   : > { %v664_v29 = vpop.permute.xlu1 %663  ;;  %v659_v33 = vpop.permute.xlu0 %658 }
  0xb2   : > { %v5094_v60 = vmul.f32 %v664_v29, %v471_v63  ;;  %v5098_v38 = vsel %vm1030_vm2, %v1109_v15, %v5088_v20  ;;  %v5102_v46 = vmul.f32 %v659_v33, %v470_v8  ;;  %v1042_v37 = vsel %vm1030_vm2, %v1037_v30, %v1041_v31 }
  0xb3   : > { %7086 = vst [vmem:[#allocation13_spill] sm:$0xff] %v5098_v38  ;;  %4313 = vmatmul.msk.bf16.gmra.mxu2 %vm1163_vm3, %v5098_v38  ;;  %4304 = vmatmul.msk.bf16.vlgmr.msra.gmra.mxu0 %vm1163_vm3, %v1042_v37  ;;  %v1139_v8 = vshrl.u32 %v4990_v35, 16  ;;  %v424_v35 = vmul.f32 %v4826_v54, %v383_v12 }
  0xb4   : > { %7085 = vst [vmem:[#allocation12_spill] sm:$0xff] %v5094_v60  ;;  %v5120_v63 = vpack.c.bf16 %v5094_v60, %v5102_v46 }
  0xb5   : > { %7087 = vst [vmem:[#allocation14_spill] sm:$0xff] %v5102_v46  ;;  %v1141_v29 = vor.u32 %v1139_v8, %v5009_v1  ;;  %v423_v1 = vmul.f32 %v4826_v54, %v382_v13  ;;  %v465_v0 = vadd.f32 %v4837_v61, %v424_v35  ;;  %v374_v13 = vld [vmem:[%s4812_s29 + $0x70] sm:$0xff]  ;;  %v391_v35 = vld [vmem:[%s4812_s29 + $0xf8] sm:$0xff] }
  0xb6   : > { %874 = vperm.xlu2 %4549, %v752_v49   ;;  %v1143_v11 = vshll.u32 %v5120_v63, 16 }
  0xb7   : > { %1518 = vperm.xlu1 %4548, %v787_v17   ;;  %1514 = vperm.xlu0 %4547, %v786_v55   ;;  %v753_v17 = vld [vmem:[%s6988_s4 + $0x78] sm:$0xff]  ;;  %v464_v8 = vadd.f32 %v4837_v61, %v423_v1 }
  0xb8   : > { %v5130_v15 = vpop.permute.xlu2 %678  ;;  %v5133_v30 = vrot.slane %v1143_v11, 1  ;;  %v1075_v11 = vshrl.u32 %v4978_v32, 16 }
  0xb9   : > { %v539_v25 = vpop.permute.xlu1 %538  ;;  %v584_v43 = vpop.permute.xlu0 %583 }
  0xba   : > { %v5138_v33 = vmul.f32 %v539_v25, %v446_v2  ;;  %v5144_v37 = vmul.f32 %v584_v43, %v455_v7  ;;  %v5148_v52 = vsel %vm1030_vm2, %v1141_v29, %v5133_v30  ;;  %v1043_v2 = vshrl.u32 %v5077_v59, 16  ;;  %v375_v7 = vld [vmem:[%s4812_s29 + $0x78] sm:$0xff]  ;;  %v390_v25 = vld [vmem:[%s4812_s29 + $0xf0] sm:$0xff] }
  0xbb   : > { %7088 = vst [vmem:[#allocation15_spill] sm:$0xff] %v5148_v52  ;;  %4317 = vmatmul.msk.bf16.gmra.mxu3 %vm1163_vm3, %v5148_v52  ;;  %v1077_v10 = vor.u32 %v1075_v11, %v5003_v57  ;;  %v432_v57 = vmul.f32 %v4826_v54, %v391_v35 }
  0xbc   : > { %v5161_v49 = vpack.c.bf16 %v5136_v14, %v5138_v33  ;;  %v5168_v55 = vpack.c.bf16 %v5144_v37, %v5142_v58  ;;  %v1045_v29 = vor.u32 %v1043_v2, %v1041_v31  ;;  %v415_v31 = vmul.f32 %v4826_v54, %v374_v13 }
  0xbe   : > { %v1047_v5 = vshll.u32 %v5161_v49, 16  ;;  %1526 = vperm.xlu2 %4549, %v789_v62   ;;  %v1079_v12 = vshll.u32 %v5168_v55, 16 }
  0xbf   : > { %1522 = vperm.xlu1 %4548, %v788_v16   ;;  %879 = vperm.xlu0 %4547, %v753_v17   ;;  %v416_v16 = vmul.f32 %v4826_v54, %v375_v7  ;;  %v431_v17 = vmul.f32 %v4826_v54, %v390_v25  ;;  %v754_v7 = vld [vmem:[%s6988_s4 + $0x80] sm:$0xff]  ;;  %v473_v25 = vadd.f32 %v4837_v61, %v432_v57 }
  0xc0   : > { %v5179_v43 = vrot.slane %v1047_v5, 1  ;;  %v5182_v52 = vpop.permute.xlu2 %1458  ;;  %v1081_v62 = vrot.slane %v1079_v12, 1  ;;  %v456_v12 = vadd.f32 %v4837_v61, %v415_v31 }
  0xc1   : > { %v634_v59 = vpop.permute.xlu1 %633  ;;  %v629_v32 = vpop.permute.xlu0 %628  ;;  %v457_v11 = vadd.f32 %v4837_v61, %v416_v16  ;;  %v472_v13 = vadd.f32 %v4837_v61, %v431_v17 }
  0xc2   : > { %v5186_v1 = vmul.f32 %v634_v59, %v465_v0  ;;  %v5190_v38 = vsel %vm1030_vm2, %v1045_v29, %v5179_v43  ;;  %v5194_v2 = vmul.f32 %v629_v32, %v464_v8  ;;  %v5197_v5 = vsel %vm1030_vm2, %v1077_v10, %v1081_v62  ;;  %v790_v0 = vld [vmem:[%s6989_s5 + $0xa0] sm:$0xff]  ;;  %v755_v10 = vld [vmem:[%s6988_s4 + $0x88] sm:$0xff]  ;;  %v367_v59 = vld [vmem:[%s4812_s29 + $0x38] sm:$0xff] }
  0xc3   : > { %7090 = vst [vmem:[#allocation17_spill] sm:$0xff] %v5197_v5  ;;  %4305 = vmatmul.msk.bf16.gmra.mxu0 %vm1163_vm3, %v5190_v38  ;;  %4309 = vmatmul.msk.bf16.gmra.mxu1 %vm1163_vm3, %v5197_v5  ;;  %v1115_v29 = vshrl.u32 %v5070_v53, 16  ;;  %v366_v32 = vld [vmem:[%s4812_s29 + $0x30] sm:$0xff]  ;;  %v5230_v17 = vmul.f32 %v5091_v26, %v457_v11  ;;  %v433_v11 = vmul.f32 %v4826_v54, %v392_v3 }
  0xc4   : > { %7089 = vst [vmem:[#allocation16_spill] sm:$0xff] %v5186_v1  ;;  %v5215_v8 = vpack.c.bf16 %v5186_v1, %v5194_v2  ;;  %v407_v26 = vmul.f32 %v4826_v54, %v366_v32 }
  0xc5   : > { %v1117_v16 = vor.u32 %v1115_v29, %v5088_v20 }
  0xc6   : > { %1530 = vperm.xlu2 %4549, %v790_v0   ;;  %v1119_v35 = vshll.u32 %v5215_v8, 16 }
  0xc7   : > { %889 = vperm.xlu1 %4548, %v755_v10   ;;  %884 = vperm.xlu0 %4547, %v754_v7   ;;  %v408_v10 = vmul.f32 %v4826_v54, %v367_v59  ;;  %v5240_v7 = vmul.f32 %v5048_v34, %v472_v13  ;;  %v756_v34 = vld [vmem:[%s6988_s4 + $0x90] sm:$0xff]  ;;  %v791_v13 = vld [vmem:[%s6989_s5 + $0xa8] sm:$0xff]  ;;  %v1147_v59 = vshrl.u32 %v5120_v63, 16 }
  0xc8   : > { %v5226_v60 = vpop.permute.xlu2 %809  ;;  %v1121_v31 = vrot.slane %v1119_v35, 1  ;;  %v448_v35 = vadd.f32 %v4837_v61, %v407_v26 }
  0xc9   : > { %v589_v46 = vpop.permute.xlu1 %588  ;;  %v5234_v57 = vmul.f32 %v5226_v60, %v5136_v14  ;;  %v674_v0 = vpop.permute.xlu0 %673  ;;  %7092 = vst [vmem:[#allocation19_spill] sm:$0xff] %v5240_v7  ;;  %v449_v3 = vadd.f32 %v4837_v61, %v408_v10  ;;  %v5377_v1 = vmul.f32 %v5226_v60, %v5012_v4 }
  0xca   : > { %v5236_v53 = vmul.f32 %v589_v46, %v456_v12  ;;  %v5242_v28 = vmul.f32 %v674_v0, %v473_v25  ;;  %v5245_v20 = vsel %vm1030_vm2, %v1117_v16, %v1121_v31  ;;  %v757_v46 = vld [vmem:[%s6988_s4 + $0x98] sm:$0xff]  ;;  %v1083_v25 = vshrl.u32 %v5168_v55, 16 }
  0xcb   : > { %7091 = vst [vmem:[#allocation18_spill] sm:$0xff] %v5234_v57  ;;  %4314 = vmatmul.msk.bf16.gmra.mxu2 %vm1163_vm3, %v5245_v20  ;;  %v474_v16 = vadd.f32 %v4837_v61, %v433_v11  ;;  %v1149_v55 = vor.u32 %v1147_v59, %v5133_v30  ;;  %v758_v30 = vld [vmem:[%s6988_s4 + $0xa0] sm:$0xff]  ;;  %v793_v11 = vld [vmem:[%s6989_s5 + $0xb8] sm:$0xff]  ;;  %v4421_v59 = vld [vmem:[%s6990_s6 + $0xe] sm:$0x3] }
  0xcc   : > { %7093 = vst [vmem:[#allocation20_spill] sm:$0xff] %v5242_v28  ;;  %v5259_v12 = vpack.c.bf16 %v5230_v17, %v5236_v53  ;;  %v5266_v54 = vpack.c.bf16 %v5242_v28, %v5240_v7  ;;  %v1085_v0 = vor.u32 %v1083_v25, %v1081_v62  ;;  %v1123_v25 = vshrl.u32 %v5215_v8, 16 }
  0xcd   : > { %7094 = vst [vmem:[#allocation21_spill] sm:$0xff] %v5245_v20  ;;  %v5292_v62 = vmul.f32 %v5130_v15, %v474_v16 }
  0xce   : > { %v1087_v29 = vshll.u32 %v5259_v12, 16  ;;  %899 = vperm.xlu2 %4549, %v757_v46   ;;  %v1151_v32 = vshll.u32 %v5266_v54, 16  ;;  %v1125_v8 = vor.u32 %v1123_v25, %v1121_v31  ;;  %v1579_v31 = vrot.slane %v5182_v52, 6  ;;  %v795_v52 = vld [vmem:[%s6989_s5 + $0xc8] sm:$0xff] }
  0xcf   : > { %894 = vperm.xlu1 %4548, %v756_v34   ;;  %1534 = vperm.xlu0 %4547, %v791_v13   ;;  %7097 = vst [vmem:[#allocation24_spill] sm:$0xff] %v5292_v62  ;;  %v792_v13 = vld [vmem:[%s6989_s5 + $0xb0] sm:$0xff] }
  0xd0   : > { %v5275_v20 = vrot.slane %v1087_v29, 1  ;;  %v5277_v28 = vpop.permute.xlu2 %814  ;;  %v1153_v7 = vrot.slane %v1151_v32, 1  ;;  %v4387_v32 = vld [vmem:[%s6990_s6 + $0xa] sm:$0x3] }
  0xd1   : > { %v554_v10 = vpop.permute.xlu1 %553  ;;  %v549_v34 = vpop.permute.xlu0 %548 }
  0xd2   : > { %v5280_v46 = vmul.f32 %v554_v10, %v449_v3  ;;  %v5284_v63 = vsel %vm1030_vm2, %v1085_v0, %v5275_v20  ;;  %v5286_v26 = vmul.f32 %v549_v34, %v448_v35  ;;  %v5289_v61 = vsel %vm1030_vm2, %v1149_v55, %v1153_v7  ;;  %v4404_v35 = vld [vmem:[%s6990_s6 + $0xc] sm:$0x3] }
  0xd3   : > { %7095 = vst [vmem:[#allocation22_spill] sm:$0xff] %v5284_v63  ;;  %4310 = vmatmul.msk.bf16.gmra.mxu1 %vm1163_vm3, %v5284_v63  ;;  %4318 = vmatmul.msk.bf16.gmra.mxu3 %vm1163_vm3, %v5289_v61  ;;  %v1051_v3 = vshrl.u32 %v5161_v49, 16  ;;  %v2689_v16 = vand.u32 %v4404_v35, %v4791_v45  ;;  %v2836_v0 = vand.u32 %v4421_v59, %v4791_v45 }
  0xd4   : > { %7096 = vst [vmem:[#allocation23_spill] sm:$0xff] %v5289_v61  ;;  %v5309_v15 = vpack.c.bf16 %v5280_v46, %v5286_v26  ;;  %v5315_v29 = vmul.f32 %v5277_v28, %v5286_v26  ;;  %v1027_v10 = vpack.c.bf16 %v5292_v62, %v5292_v62  ;;  %v2467_v55 = vand.u32 %v4387_v32, %v4791_v45 }
  0xd5   : > { %v1053_v27 = vor.u32 %v1051_v3, %v5179_v43  ;;  %2698 = vmatpush.bf16.msra.mxu2 %v2689_v16  ;;  %2845 = vmatpush.bf16.msra.mxu3 %v2836_v0  ;;  %v5341_v59 = vsel %vm1030_vm2, %v1125_v8, %v4992_v36  ;;  %v1091_v43 = vshrl.u32 %v5259_v12, 16  ;;  %v759_v8 = vld [vmem:[%s6988_s4 + $0xa8] sm:$0xff]  ;;  %v1155_v16 = vshrl.u32 %v5266_v54, 16  ;;  %v4438_v0 = vld [vmem:[%s6990_s6 + $0x10] sm:$0x3] }
  0xd6   : > { %7098 = vst [vmem:[#allocation25_spill] sm:$0xff] %v5315_v29  ;;  %904 = vperm.xlu2 %4549, %v758_v30   ;;  %v1055_v49 = vshll.u32 %v5309_v15, 16  ;;  %2476 = vmatpush.bf16.msra.mxu1 %v2467_v55  ;;  %v1159_v36 = vshll.u32 %v1027_v10, 16  ;;  %v3110_v54 = vand.u32 %v4438_v0, %v4791_v45 }
  0xd7   : > { %1542 = vperm.xlu1 %4548, %v793_v11   ;;  %1538 = vperm.xlu0 %4547, %v792_v13   ;;  %7100 = vst [vmem:[#allocation27_spill] sm:$0xff] %v5341_v59 }
  0xd8   : > { %v5332_v34 = vpop.permute.xlu2 %1478  ;;  %v1057_v30 = vrot.slane %v1055_v49, 1  ;;  %v1161_v5 = vrot.slane %v1159_v36, 1  ;;  %3119 = vmatpush.bf16.msra.mxu0 %v3110_v54 }
  0xd9   : > { %v1455_v61 = vpop.permute.xlu1 %1454  ;;  %v1451_v25 = vpop.permute.xlu0 %1450 }
  0xda   : > { %v1577_v11 = vrot.slane %v1455_v61, 6  ;;  %v1576_v35 = vrot.slane %v1451_v25, 6  ;;  %v5337_v13 = vsel %vm1030_vm2, %v1053_v27, %v1057_v30  ;;  %v794_v27 = vld [vmem:[%s6989_s5 + $0xc0] sm:$0xff] }
  0xdb   : > { %7099 = vst [vmem:[#allocation26_spill] sm:$0xff] %v5337_v13  ;;  %4306 = vmatmul.msk.bf16.gmra.mxu0 %vm1163_vm3, %v5337_v13  ;;  %4315 = vmatmul.msk.bf16.gmra.mxu2 %vm1163_vm3, %v5341_v59  ;;  %v5370_v59 = vor.u32 %v1155_v16, %v1153_v7 }
  0xdc   : > { %v1580_v32 = vsel %vm1213_vm1, %v1577_v11, %v1579_v31  ;;  %v1578_v49 = vsel %vm1213_vm1, %v1576_v35, %v1577_v11  ;;  %v2316_v55 = vmul.f32 %v1576_v35, %v5057_v47  ;;  %v2959_v10 = vmul.f32 %v1576_v35, %v5138_v33 }
  0xdd   : > { %v2318_v61 = vmul.f32 %v1580_v32, %v5138_v33  ;;  %v2961_v3 = vmul.f32 %v1580_v32, %v5286_v26  ;;  %v2317_v12 = vmul.f32 %v1578_v49, %v5059_v48  ;;  %v2960_v25 = vmul.f32 %v1578_v49, %v5136_v14  ;;  %7101 = vst [vmem:[#allocation28_spill] sm:$0xff] %v5370_v59 }
  0xde   : > { %1550 = vperm.xlu2 %4549, %v795_v52   ;;  %v1093_v11 = vor.u32 %v1091_v43, %v5275_v20  ;;  %v1672_v52 = vmul.f32 %v1576_v35, %v5020_v9  ;;  %v1673_v20 = vmul.f32 %v1578_v49, %v5012_v4  ;;  %v796_v4 = vld [vmem:[%s6989_s5 + $0xd0] sm:$0xff]  ;;  %v1674_v16 = vmul.f32 %v1580_v32, %v5057_v47 }
  0xdf   : > { %1546 = vperm.xlu1 %4548, %v794_v27   ;;  %v2349_v62 = vpack.c.bf16 %v2317_v12, %v2316_v55  ;;  %909 = vperm.xlu0 %4547, %v759_v8   ;;  %v2992_v63 = vpack.c.bf16 %v2960_v25, %v2959_v10  ;;  %v1162_v8 = vsel %vm1030_vm2, %v5370_v59, %v1161_v5  ;;  %v760_v49 = vld [vmem:[%s6988_s4 + $0xb0] sm:$0xff] }
  0xe0   : > { %v5373_v41 = vpop.permute.xlu2 %1482  ;;  %v5389_v36 = vsel %vm1030_vm2, %v1093_v11, %v4911_v51  ;;  %v761_v51 = vld [vmem:[%s6988_s4 + $0xb8] sm:$0xff]  ;;  %v1705_v12 = vpack.c.bf16 %v1673_v20, %v1672_v52 }
  0xe1   : > { %v805_v40 = vpop.permute.xlu1 %804  ;;  %v1463_v7 = vpop.permute.xlu0 %1462  ;;  %7103 = vst [vmem:[#allocation30_spill] sm:$0xff] %v5389_v36  ;;  %v2385_v32 = vrot.slane %v2349_v62, 1  ;;  %v763_v62 = vld [vmem:[%s6988_s4 + $0xc8] sm:$0xff] }
  0xe2   : > { %v5381_v27 = vmul.f32 %v805_v40, %v5020_v9  ;;  %v5385_v45 = vmul.f32 %v805_v40, %v5138_v33  ;;  %v1581_v43 = vrot.slane %v1463_v7, 6  ;;  %v1059_v9 = vshrl.u32 %v5309_v15, 16 }
  0xe3   : > { %4311 = vmatmul.msk.bf16.gmra.mxu1 %vm1163_vm3, %v5389_v36  ;;  %4319 = vmatmul.msk.bf16.gmra.mxu3 %vm1163_vm3, %v1162_v8  ;;  %v1742_v20 = vrot.slane %v1705_v12, 1 }
  0xe4   : > { %7102 = vst [vmem:[#allocation29_spill] sm:$0xff] %v5385_v45  ;;  %v994_v35 = vpack.c.bf16 %v5377_v1, %v5381_v27  ;;  %v1582_v0 = vsel %vm1213_vm1, %v1579_v31, %v1581_v43  ;;  %v1061_v55 = vor.u32 %v1059_v9, %v1057_v30  ;;  %v798_v27 = vld [vmem:[%s6989_s5 + $0xe0] sm:$0xff] }
  0xe5   : > { %v1675_v10 = vmul.f32 %v1582_v0, %v5059_v48  ;;  %v2319_v25 = vmul.f32 %v1582_v0, %v5136_v14  ;;  %v2962_v11 = vmul.f32 %v1582_v0, %v5280_v46 }
  0xe6   : > { %1554 = vperm.xlu2 %4549, %v796_v4   ;;  %v5419_v52 = vsel %vm1030_vm2, %v1061_v55, %v4980_v50  ;;  %v1947_v55 = vmul.f32 %v805_v40, %v5057_v47 }
  0xe7   : > { %919 = vperm.xlu1 %4548, %v761_v51   ;;  %914 = vperm.xlu0 %4547, %v760_v49   ;;  %v2350_v15 = vpack.c.bf16 %v2319_v25, %v2318_v61  ;;  %v2993_v54 = vpack.c.bf16 %v2962_v11, %v2961_v3  ;;  %v1706_v5 = vpack.c.bf16 %v1675_v10, %v1674_v16  ;;  %v3028_v61 = vrot.slane %v2992_v63, 1  ;;  %v762_v3 = vld [vmem:[%s6988_s4 + $0xc0] sm:$0xff]  ;;  %v797_v63 = vld [vmem:[%s6989_s5 + $0xd8] sm:$0xff] }
  0xe8   : > { %v5415_v7 = vpop.permute.xlu2 %839  ;;  %7104 = vst [vmem:[#allocation31_spill] sm:$0xff] %v5419_v52 }
  0xe9   : > { %v1471_v8 = vpop.permute.xlu1 %1470  ;;  %v1467_v30 = vpop.permute.xlu0 %1466  ;;  %v2386_v9 = vrot.slane %v2350_v15, 1  ;;  %v3029_v0 = vrot.slane %v2993_v54, 1  ;;  %v5421_v51 = vrot.slane %v1706_v5, 1  ;;  %v1948_v15 = vmul.f32 %v5226_v60, %v5059_v48 }
  0xea   : > { %v1585_v31 = vrot.slane %v1471_v8, 6  ;;  %v1583_v4 = vrot.slane %v1467_v30, 6 }
  0xeb   : > { %4307 = vmatmul.msk.bf16.gmra.mxu0 %vm1163_vm3, %v5419_v52  ;;  %v1744_v5 = vsel %vm1741_vm4, %v1742_v20, %v5421_v51  ;;  %v5439_v16 = vsel %vm1741_vm4, %v2385_v32, %v2386_v9  ;;  %v5448_v11 = vsel %vm1741_vm4, %v3028_v61, %v3029_v0 }
  0xec   : > { %v1584_v50 = vsel %vm1213_vm1, %v1581_v43, %v1583_v4  ;;  %v1586_v49 = vsel %vm1213_vm1, %v1583_v4, %v1585_v31  ;;  %7105 = vst [vmem:[#allocation32_spill] sm:$0xff] %v5439_v16  ;;  %4337 = vmatmul.msk.bf16.vlgmr.msrb.gmra.mxu2 %vm1163_vm3, %v1744_v5  ;;  %v7032_v4 = vrot.slane %v5332_v34, 6 }
  0xed   : > { %v2320_v12 = vmul.f32 %v1584_v50, %v5286_v26  ;;  %v2321_v10 = vmul.f32 %v1586_v49, %v5280_v46  ;;  %v2963_v43 = vmul.f32 %v1584_v50, %v4917_v56  ;;  %v2964_v25 = vmul.f32 %v1586_v49, %v4914_v44  ;;  %7106 = vst [vmem:[#allocation33_spill] sm:$0xff] %v5448_v11 }
  0xee   : > { %929 = vperm.xlu2 %4549, %v763_v62   ;;  %v1676_v54 = vmul.f32 %v1584_v50, %v5138_v33  ;;  %v1677_v8 = vmul.f32 %v1586_v49, %v5136_v14  ;;  %v1979_v62 = vpack.c.bf16 %v1948_v15, %v1947_v55  ;;  %v764_v49 = vld [vmem:[%s6988_s4 + $0xd0] sm:$0xff]  ;;  %v799_v55 = vld [vmem:[%s6989_s5 + $0xe8] sm:$0xff] }
  0xef   : > { %924 = vperm.xlu1 %4548, %v762_v3   ;;  %1558 = vperm.xlu0 %4547, %v797_v63   ;;  %v2351_v40 = vpack.c.bf16 %v2321_v10, %v2320_v12  ;;  %v2994_v20 = vpack.c.bf16 %v2964_v25, %v2963_v43  ;;  %v1949_v10 = vmul.f32 %v5277_v28, %v5138_v33 }
  0xf0   : > { %v5454_v32 = vpop.permute.xlu2 %844 }
  0xf1   : > { %v1475_v30 = vpop.permute.xlu1 %1474  ;;  %v820_v5 = vpop.permute.xlu0 %819  ;;  %v3031_v12 = vrot.slane %v2994_v20, 1 }
  0xf2   : > { %v1587_v3 = vrot.slane %v1475_v30, 6  ;;  %v5458_v61 = vmul.f32 %v820_v5, %v5136_v14  ;;  %v5461_v60 = vmul.f32 %v820_v5, %v5280_v46 }
  0xf3   : > { %4320 = vmatmul.msk.bf16.vlgmr.msrb.gmra.mxu1 %vm1163_vm3, %v994_v35  ;;  %4354 = vmatmul.msk.bf16.vlgmr.msrb.gmra.mxu3 %vm1163_vm3, %v1979_v62  ;;  %v1707_v35 = vpack.c.bf16 %v1677_v8, %v1676_v54  ;;  %v5494_v62 = vsel %vm1741_vm4, %v3029_v0, %v3031_v12 }
  0xf4   : > { %7107 = vst [vmem:[#allocation34_spill] sm:$0xff] %v5461_v60  ;;  %v1588_v63 = vsel %vm1213_vm1, %v1585_v31, %v1587_v3  ;;  %v1590_v50 = vsel %vm1213_vm1, %v1587_v3, %v7032_v4  ;;  %v2388_v31 = vrot.slane %v2351_v40, 1  ;;  %v1980_v30 = vpack.c.bf16 %v5458_v61, %v1949_v10  ;;  %v800_v10 = vld [vmem:[%s6989_s5 + $0xf0] sm:$0xff]  ;;  %v512_v40 = vld [vmem:[%s6987_s3 + $0x108] sm:$0xff] }
  0xf5   : > { %v2322_v43 = vmul.f32 %v1588_v63, %v4917_v56  ;;  %v2323_v1 = vmul.f32 %v1590_v50, %v4914_v44  ;;  %v2965_v25 = vmul.f32 %v1588_v63, %v4961_v24  ;;  %v2966_v15 = vmul.f32 %v1590_v50, %v4959_v21  ;;  %7109 = vst [vmem:[#allocation36_spill] sm:$0xff] %v5494_v62  ;;  %v7159_v60 = vld [vmem:[#allocation22_spill] sm:$0xff] }
  0xf6   : > { %934 = vperm.xlu2 %4549, %v764_v49   ;;  %v5491_v20 = vsel %vm1741_vm4, %v2386_v9, %v2388_v31  ;;  %v5500_v11 = vrot.slane %v1707_v35, 1 }
  0xf7   : > { %1566 = vperm.xlu1 %4548, %v799_v55   ;;  %1562 = vperm.xlu0 %4547, %v798_v27   ;;  %7108 = vst [vmem:[#allocation35_spill] sm:$0xff] %v5491_v20  ;;  %v2352_v3 = vpack.c.bf16 %v2323_v1, %v2322_v43  ;;  %v2995_v54 = vpack.c.bf16 %v2966_v15, %v2965_v25 }
  0xf8   : > { %v5496_v8 = vpop.permute.xlu2 %1502  ;;  %v1746_v27 = vsel %vm1741_vm4, %v5421_v51, %v5500_v11  ;;  %v965_v25 = vmul.f32 %v820_v5, %v5059_v48  ;;  %v1591_v51 = vrot.slane %v5373_v41, 6  ;;  %v5554_v48 = vmul.f32 %v5415_v7, %v5280_v46 }
  0xf9   : > { %v5498_v4 = vpop.permute.xlu1 %829  ;;  %v5510_v9 = vpop.permute.xlu0 %824  ;;  %v2390_v43 = vrot.slane %v2352_v3, 1  ;;  %v5528_v1 = vrot.slane %v2995_v54, 1  ;;  %v964_v54 = vmul.f32 %v5277_v28, %v5057_v47  ;;  %v1678_v5 = vmul.f32 %v1588_v63, %v5286_v26 }
  0xfa   : > { %v5504_v49 = vmul.f32 %v5498_v4, %v5136_v14  ;;  %v5508_v61 = vmul.f32 %v5498_v4, %v4914_v44  ;;  %v5514_v0 = vmul.f32 %v5510_v9, %v5138_v33  ;;  %v5518_v55 = vmul.f32 %v5510_v9, %v4917_v56  ;;  %v801_v14 = vld [vmem:[%s6989_s5 + $0xf8] sm:$0xff] }
  0xfb   : > { %4371 = vmatmul.msk.bf16.vlgmr.msrb.gmra.mxu0 %vm1163_vm3, %v5190_v38  ;;  %v765_v38 = vld [vmem:[%s6988_s4 + $0xd8] sm:$0xff]  ;;  %v5543_v15 = vsel %vm1741_vm4, %v2388_v31, %v2390_v43  ;;  %v5547_v3 = vsel %vm1741_vm4, %v3031_v12, %v5528_v1  ;;  %v1679_v31 = vmul.f32 %v1590_v50, %v5280_v46  ;;  %v5564_v41 = vmul.f32 %v5415_v7, %v4959_v21 }
  0xfc   : > { %7110 = vst [vmem:[#allocation37_spill] sm:$0xff] %v5508_v61  ;;  %4338 = vmatmul.msk.bf16.gmra.mxu2 %vm1163_vm3, %v1746_v27  ;;  %v995_v63 = vpack.c.bf16 %v965_v25, %v964_v54  ;;  %v7116_v50 = vrot.slane %v5332_v34, 6  ;;  %v767_v25 = vld [vmem:[%s6988_s4 + $0xe8] sm:$0xff] }
  0xfd   : > { %7111 = vst [vmem:[#allocation38_spill] sm:$0xff] %v5518_v55 }
  0xfe   : > { %7112 = vst [vmem:[#allocation39_spill] sm:$0xff] %v5543_v15  ;;  %1574 = vperm.xlu2 %4549, %v801_v14  }
  0xff   : > { %7113 = vst [vmem:[#allocation40_spill] sm:$0xff] %v5547_v3  ;;  %1570 = vperm.xlu1 %4548, %v800_v10   ;;  %939 = vperm.xlu0 %4547, %v765_v38   ;;  %v1592_v10 = vsel %vm1213_vm1, %v7116_v50, %v1591_v51 }
 0x100   : > { %v5558_v27 = vpop.permute.xlu2 %1506  ;;  %7114 = vst [vmem:[#allocation41_spill] sm:$0xff] %v5564_v41  ;;  %v2967_v50 = vmul.f32 %v1592_v10, %v5142_v58 }
 0x101   : > { %v5560_v12 = vpop.permute.xlu1 %834  ;;  %v1487_v14 = vpop.permute.xlu0 %1486 }
 0x102   : > { %v5568_v28 = vmul.f32 %v5560_v12, %v5286_v26  ;;  %v5572_v47 = vmul.f32 %v5560_v12, %v4961_v24  ;;  %v1593_v38 = vrot.slane %v1487_v14, 6  ;;  %v766_v14 = vld [vmem:[%s6988_s4 + $0xe0] sm:$0xff] }
 0x103   : > { %4321 = vmatmul.msk.bf16.gmra.mxu1 %vm1163_vm3, %v995_v63  ;;  %4355 = vmatmul.msk.bf16.gmra.mxu3 %vm1163_vm3, %v1980_v30  ;;  %v1708_v63 = vpack.c.bf16 %v1679_v31, %v1678_v5  ;;  %v2324_v30 = vmul.f32 %v1592_v10, %v4961_v24 }
 0x104   : > { %7115 = vst [vmem:[#allocation42_spill] sm:$0xff] %v5572_v47  ;;  %v1594_v54 = vsel %vm1213_vm1, %v1591_v51, %v1593_v38 }
 0x105   : > { %v2325_v33 = vmul.f32 %v1594_v54, %v4959_v21  ;;  %v2968_v35 = vmul.f32 %v1594_v54, %v5144_v37  ;;  %v5599_v3 = vrot.slane %v1708_v63, 1  ;;  %v1952_v63 = vmul.f32 %v5498_v4, %v5280_v46 }
 0x106   : > { %683 = vperm.xlu2 %4549, %v512_v40   ;;  %v513_v40 = vld [vmem:[%s6987_s3 + $0x110] sm:$0xff]  ;;  %v1681_v4 = vmul.f32 %v1594_v54, %v4914_v44 }
 0x107   : > { %949 = vperm.xlu1 %4548, %v767_v25   ;;  %944 = vperm.xlu0 %4547, %v766_v14   ;;  %v2353_v47 = vpack.c.bf16 %v2325_v33, %v2324_v30  ;;  %v2996_v34 = vpack.c.bf16 %v2968_v35, %v2967_v50  ;;  %v769_v33 = vld [vmem:[%s6988_s4 + $0xf8] sm:$0xff] }
 0x108   : > { %v5597_v41 = vpop.permute.xlu2 %869 }
 0x109   : > { %v1495_v51 = vpop.permute.xlu1 %1494  ;;  %v1491_v5 = vpop.permute.xlu0 %1490  ;;  %v2392_v55 = vrot.slane %v2353_v47, 1  ;;  %v3035_v61 = vrot.slane %v2996_v34, 1  ;;  %v1748_v47 = vsel %vm1741_vm4, %v5500_v11, %v5599_v3  ;;  %v768_v34 = vld [vmem:[%s6988_s4 + $0xf0] sm:$0xff] }
 0x10a   : > { %v1597_v15 = vrot.slane %v1495_v51, 6  ;;  %v1595_v31 = vrot.slane %v1491_v5, 6 }
 0x10b   : > { %4372 = vmatmul.msk.bf16.gmra.mxu0 %vm1163_vm3, %v5337_v13  ;;  %v5622_v14 = vsel %vm1741_vm4, %v2390_v43, %v2392_v55  ;;  %v5639_v46 = vsel %vm1741_vm4, %v5528_v1, %v3035_v61  ;;  %v5650_v1 = vmul.f32 %v5454_v32, %v5142_v58  ;;  %v975_v13 = vmul.f32 %v5597_v41, %v5144_v37 }
 0x10c   : > { %v5610_v35 = vsel %vm1213_vm1, %v1593_v38, %v1595_v31  ;;  %v5613_v25 = vsel %vm1213_vm1, %v1595_v31, %v1597_v15  ;;  %7117 = vst [vmem:[#allocation43_spill] sm:$0xff] %v5622_v14  ;;  %v1951_v38 = vmul.f32 %v5510_v9, %v5286_v26  ;;  %4339 = vmatmul.msk.bf16.gmra.mxu2 %vm1163_vm3, %v1748_v47  ;;  %v1601_v31 = vrot.slane %v5496_v8, 6 }
 0x10d   : > { %v2326_v30 = vmul.f32 %v5610_v35, %v5142_v58  ;;  %v2327_v50 = vmul.f32 %v5613_v25, %v5144_v37  ;;  %v2969_v11 = vmul.f32 %v5610_v35, %v5236_v53  ;;  %v2970_v43 = vmul.f32 %v5613_v25, %v5230_v17  ;;  %7118 = vst [vmem:[#allocation44_spill] sm:$0xff] %v5639_v46 }
 0x10e   : > { %688 = vperm.xlu2 %4549, %v513_v40   ;;  %v1981_v62 = vpack.c.bf16 %v1952_v63, %v1951_v38  ;;  %v1680_v40 = vmul.f32 %v1592_v10, %v4917_v56  ;;  %7119 = vst [vmem:[#allocation45_spill] sm:$0xff] %v5650_v1  ;;  %v7121_v8 = vpack.c.bf16 %v5504_v49, %v5514_v0  ;;  %v515_v10 = vld [vmem:[%s6987_s3 + $0x120] sm:$0xff]  ;;  %v514_v49 = vld [vmem:[%s6987_s3 + $0x118] sm:$0xff] }
 0x10f   : > { %959 = vperm.xlu1 %4548, %v769_v33   ;;  %954 = vperm.xlu0 %4547, %v768_v34   ;;  %v2354_v26 = vpack.c.bf16 %v2327_v50, %v2326_v30  ;;  %v2997_v5 = vpack.c.bf16 %v2970_v43, %v2969_v11 }
 0x110   : > { %v5642_v9 = vpop.permute.xlu2 %874  ;;  %v1709_v0 = vpack.c.bf16 %v1681_v4, %v1680_v40 }
 0x111   : > { %v1499_v51 = vpop.permute.xlu1 %1498  ;;  %v5645_v14 = vpop.permute.xlu0 %849  ;;  %v2394_v63 = vrot.slane %v2354_v26, 1  ;;  %v3037_v38 = vrot.slane %v2997_v5, 1 }
 0x112   : > { %v1599_v47 = vrot.slane %v1499_v51, 6  ;;  %v5654_v33 = vmul.f32 %v5645_v14, %v5144_v37 }
 0x113   : > { %4322 = vmatmul.msk.bf16.gmra.mxu1 %vm1163_vm3, %v7121_v8  ;;  %4356 = vmatmul.msk.bf16.gmra.mxu3 %vm1163_vm3, %v1981_v62  ;;  %v5684_v43 = vsel %vm1741_vm4, %v2392_v55, %v2394_v63  ;;  %v5687_v26 = vsel %vm1741_vm4, %v3035_v61, %v3037_v38 }
 0x114   : > { %7120 = vst [vmem:[#allocation46_spill] sm:$0xff] %v5654_v33  ;;  %v5657_v54 = vsel %vm1213_vm1, %v1597_v15, %v1599_v47  ;;  %v5660_v34 = vsel %vm1213_vm1, %v1599_v47, %v1601_v31  ;;  %v1749_v47 = vrot.slane %v1709_v0, 1 }
 0x115   : > { %v2328_v15 = vmul.f32 %v5657_v54, %v5236_v53  ;;  %v2329_v30 = vmul.f32 %v5660_v34, %v5230_v17  ;;  %v2971_v62 = vmul.f32 %v5657_v54, %v4869_v22  ;;  %v2972_v50 = vmul.f32 %v5660_v34, %v4871_v23  ;;  %7122 = vst [vmem:[#allocation47_spill] sm:$0xff] %v5684_v43 }
 0x116   : > { %7123 = vst [vmem:[#allocation48_spill] sm:$0xff] %v5687_v26 }
 0x117   : > { %698 = vperm.xlu1 %4548, %v515_v10   ;;  %693 = vperm.xlu0 %4547, %v514_v49   ;;  %v2355_v51 = vpack.c.bf16 %v2329_v30, %v2328_v15  ;;  %v2998_v5 = vpack.c.bf16 %v2972_v50, %v2971_v62  ;;  %v1750_v15 = vsel %vm1741_vm4, %v5599_v3, %v1749_v47 }
 0x118   : > { %v5689_v4 = vpop.permute.xlu2 %1526  ;;  %v1953_v49 = vmul.f32 %v5560_v12, %v4917_v56  ;;  %v1954_v62 = vmul.f32 %v5415_v7, %v4914_v44  ;;  %v1682_v50 = vmul.f32 %v5610_v35, %v4961_v24  ;;  %v1683_v3 = vmul.f32 %v5613_v25, %v4959_v21  ;;  %v5762_v11 = vpop.f32.mrf.mxu2 }
 0x119   : > { %v5691_v40 = vpop.permute.xlu1 %859  ;;  %v5693_v8 = vpop.permute.xlu0 %854  ;;  %v2396_v46 = vrot.slane %v2355_v51, 1  ;;  %v3039_v20 = vrot.slane %v2998_v5, 1  ;;  %v7130_v25 = vpack.c.bf16 %v5554_v48, %v5568_v28  ;;  %7131 = vst [vmem:[#allocation55_spill] sm:$0xff] %v5762_v11 }
 0x11a   : > { %v5697_v10 = vmul.f32 %v5691_v40, %v5230_v17  ;;  %v5701_v55 = vmul.f32 %v5693_v8, %v5236_v53  ;;  %v1982_v5 = vpack.c.bf16 %v1954_v62, %v1953_v49  ;;  %v1710_v62 = vpack.c.bf16 %v1683_v3, %v1682_v50 }
 0x11b   : > { %4373 = vmatmul.msk.bf16.gmra.mxu0 %vm1163_vm3, %v5419_v52  ;;  %v5706_v61 = vsel %vm1741_vm4, %v2394_v63, %v2396_v46  ;;  %v5711_v30 = vsel %vm1741_vm4, %v3037_v38, %v3039_v20  ;;  %v1603_v63 = vrot.slane %v5558_v27, 6 }
 0x11c   : > { %7124 = vst [vmem:[#allocation49_spill] sm:$0xff] %v5697_v10  ;;  %4340 = vmatmul.msk.bf16.gmra.mxu2 %vm1163_vm3, %v1750_v15  ;;  %v5731_v15 = vmul.f32 %v5597_v41, %v4871_v23 }
 0x11d   : > { %7125 = vst [vmem:[#allocation50_spill] sm:$0xff] %v5701_v55  ;;  %v5738_v35 = vsel %vm1213_vm1, %v1601_v31, %v1603_v63 }
 0x11e   : > { %7126 = vst [vmem:[#allocation51_spill] sm:$0xff] %v5706_v61  ;;  %v2973_v31 = vmul.f32 %v5738_v35, %v4864_v18 }
 0x11f   : > { %7127 = vst [vmem:[#allocation52_spill] sm:$0xff] %v5711_v30 }
 0x120   : > { %v5725_v38 = vpop.permute.xlu2 %1530  ;;  %7128 = vst [vmem:[#allocation53_spill] sm:$0xff] %v5731_v15 }
 0x121   : > { %v5727_v51 = vpop.permute.xlu1 %864  ;;  %v1511_v12 = vpop.permute.xlu0 %1510 }
 0x122   : > { %v5735_v7 = vmul.f32 %v5727_v51, %v4869_v22  ;;  %v1605_v27 = vrot.slane %v1511_v12, 6  ;;  %v2330_v12 = vmul.f32 %v5738_v35, %v4869_v22  ;;  %v974_v16 = vmul.f32 %v5727_v51, %v5142_v58 }
 0x123   : > { %4323 = vmatmul.msk.bf16.gmra.mxu1 %vm1163_vm3, %v7130_v25  ;;  %4357 = vmatmul.msk.bf16.gmra.mxu3 %vm1163_vm3, %v1982_v5  ;;  %v5760_v25 = vrot.slane %v1710_v62, 1 }
 0x124   : > { %7129 = vst [vmem:[#allocation54_spill] sm:$0xff] %v5735_v7  ;;  %v5748_v0 = vsel %vm1213_vm1, %v1603_v63, %v1605_v27  ;;  %v1000_v11 = vpack.c.bf16 %v975_v13, %v974_v16 }
 0x125   : > { %v2331_v48 = vmul.f32 %v5748_v0, %v4871_v23  ;;  %v2974_v28 = vmul.f32 %v5748_v0, %v4866_v19  ;;  %v1752_v62 = vsel %vm1741_vm4, %v1749_v47, %v5760_v25 }
 0x127   : > { %v2356_v50 = vpack.c.bf16 %v2331_v48, %v2330_v12  ;;  %v2999_v3 = vpack.c.bf16 %v2974_v28, %v2973_v31  ;;  %v1956_v31 = vmul.f32 %v5645_v14, %v4959_v21  ;;  %v1955_v28 = vmul.f32 %v5454_v32, %v4961_v24 }
 0x128   : > { %v5758_v5 = vpop.permute.xlu2 %899 }
 0x129   : > { %v1519_v63 = vpop.permute.xlu1 %1518  ;;  %v1515_v49 = vpop.permute.xlu0 %1514  ;;  %v2398_v30 = vrot.slane %v2356_v50, 1  ;;  %v3041_v61 = vrot.slane %v2999_v3, 1  ;;  %v1684_v3 = vmul.f32 %v5657_v54, %v5142_v58 }
 0x12a   : > { %v1609_v7 = vrot.slane %v1519_v63, 6  ;;  %v1607_v15 = vrot.slane %v1515_v49, 6  ;;  %v971_v49 = vmul.f32 %v5645_v14, %v4914_v44  ;;  %v970_v14 = vmul.f32 %v5454_v32, %v4917_v56 }
 0x12b   : > { %4374 = vmatmul.msk.bf16.gmra.mxu0 %vm1163_vm3, %v5016_v6  ;;  %v5775_v12 = vsel %vm1741_vm4, %v2396_v46, %v2398_v30  ;;  %v5793_v44 = vsel %vm1741_vm4, %v3039_v20, %v3041_v61  ;;  %v1685_v63 = vmul.f32 %v5660_v34, %v5144_v37  ;;  %v1983_v56 = vpack.c.bf16 %v1956_v31, %v1955_v28  ;;  %v5822_v31 = vpop.f32.mrf.mxu2 }
 0x12c   : > { %v5767_v55 = vsel %vm1213_vm1, %v1605_v27, %v1607_v15  ;;  %v5770_v10 = vsel %vm1213_vm1, %v1607_v15, %v1609_v7  ;;  %7132 = vst [vmem:[#allocation56_spill] sm:$0xff] %v5775_v12  ;;  %4341 = vmatmul.msk.bf16.gmra.mxu2 %vm1163_vm3, %v1752_v62  ;;  %v5786_v15 = vpop.f32.mrf.mxu1  ;;  %v5803_v62 = vpop.f32.mrf.mxu3  ;;  %v998_v43 = vpack.c.bf16 %v971_v49, %v970_v14 }
 0x12d   : > { %v2332_v48 = vmul.f32 %v5767_v55, %v4864_v18  ;;  %v2333_v27 = vmul.f32 %v5770_v10, %v4866_v19  ;;  %7133 = vst [vmem:[#allocation57_spill] sm:$0xff] %v5786_v15  ;;  %v2975_v46 = vmul.f32 %v5767_v55, %v5053_v42  ;;  %v2976_v47 = vmul.f32 %v5770_v10, %v5051_v39 }
 0x12e   : > { %7134 = vst [vmem:[#allocation58_spill] sm:$0xff] %v5793_v44  ;;  %v5811_v32 = vmul.f32 %v5642_v9, %v4864_v18  ;;  %v1711_v28 = vpack.c.bf16 %v1685_v63, %v1684_v3 }
 0x12f   : > { %v2357_v50 = vpack.c.bf16 %v2333_v27, %v2332_v48  ;;  %7135 = vst [vmem:[#allocation59_spill] sm:$0xff] %v5803_v62  ;;  %v3000_v26 = vpack.c.bf16 %v2976_v47, %v2975_v46  ;;  %v1613_v48 = vrot.slane %v5689_v4, 6 }
 0x130   : > { %v5805_v12 = vpop.permute.xlu2 %904  ;;  %7136 = vst [vmem:[#allocation60_spill] sm:$0xff] %v5811_v32  ;;  %v5814_v54 = vpop.f32.mrf.mxu0  ;;  %v1753_v32 = vrot.slane %v1711_v28, 1 }
 0x131   : > { %v1523_v20 = vpop.permute.xlu1 %1522  ;;  %v5807_v44 = vpop.permute.xlu0 %879  ;;  %v2400_v46 = vrot.slane %v2357_v50, 1  ;;  %v3043_v49 = vrot.slane %v3000_v26, 1  ;;  %7138 = vst [vmem:[#allocation62_spill] sm:$0xff] %v5822_v31  ;;  %v7139_v50 = vld [vmem:[#allocation16_spill] sm:$0xff] }
 0x132   : > { %v1611_v27 = vrot.slane %v1523_v20, 6  ;;  %v5818_v34 = vmul.f32 %v5807_v44, %v4866_v19 }
 0x133   : > { %4324 = vmatmul.msk.bf16.gmra.mxu1 %vm1163_vm3, %v998_v43  ;;  %4358 = vmatmul.msk.bf16.gmra.mxu3 %vm1163_vm3, %v1983_v56  ;;  %v5841_v56 = vsel %vm1741_vm4, %v2398_v30, %v2400_v46 }
 0x134   : > { %7137 = vst [vmem:[#allocation61_spill] sm:$0xff] %v5818_v34  ;;  %v5825_v47 = vsel %vm1213_vm1, %v1609_v7, %v1611_v27  ;;  %v5828_v4 = vsel %vm1213_vm1, %v1611_v27, %v1613_v48  ;;  %v5844_v27 = vsel %vm1741_vm4, %v3041_v61, %v3043_v49  ;;  %v5846_v3 = vpop.f32.mrf.mxu1  ;;  %v5858_v30 = vpop.f32.mrf.mxu3 }
 0x135   : > { %v2334_v20 = vmul.f32 %v5825_v47, %v5053_v42  ;;  %v2335_v43 = vmul.f32 %v5828_v4, %v5051_v39  ;;  %v2977_v26 = vmul.f32 %v5825_v47, %v5194_v2  ;;  %v2978_v7 = vmul.f32 %v5828_v4, %v7139_v50  ;;  %7140 = vst [vmem:[#allocation16_spill] sm:$0xff] %v5841_v56 }
 0x136   : > { %7141 = vst [vmem:[#allocation63_spill] sm:$0xff] %v5844_v27  ;;  %v1958_v56 = vmul.f32 %v5691_v40, %v5144_v37 }
 0x137   : > { %v2358_v14 = vpack.c.bf16 %v2335_v43, %v2334_v20  ;;  %7142 = vst [vmem:[#allocation64_spill] sm:$0xff] %v5846_v3  ;;  %v3001_v34 = vpack.c.bf16 %v2978_v7, %v2977_v26  ;;  %v7146_v20 = vld [vmem:[#allocation17_spill] sm:$0xff]  ;;  %v973_v43 = vmul.f32 %v5691_v40, %v4959_v21  ;;  %v1754_v7 = vsel %vm1741_vm4, %v5760_v25, %v1753_v32 }
 0x138   : > { %v5848_v63 = vpop.permute.xlu2 %1550  ;;  %7144 = vst [vmem:[#allocation66_spill] sm:$0xff] %v5858_v30  ;;  %v5873_v26 = vpop.f32.mrf.mxu0  ;;  %v972_v30 = vmul.f32 %v5693_v8, %v4961_v24  ;;  %v1615_v25 = vrot.slane %v5725_v38, 6  ;;  %v1686_v21 = vmul.f32 %v5738_v35, %v5236_v53 }
 0x139   : > { %v5850_v62 = vpop.permute.xlu1 %889  ;;  %v5852_v1 = vpop.permute.xlu0 %884  ;;  %v2402_v33 = vrot.slane %v2358_v14, 1  ;;  %v3045_v27 = vrot.slane %v3001_v34, 1  ;;  %v1687_v34 = vmul.f32 %v5748_v0, %v5230_v17  ;;  %v1625_v57 = vrot.slane %v5848_v63, 6 }
 0x13a   : > { %v5856_v6 = vmul.f32 %v5850_v62, %v5051_v39  ;;  %v5862_v61 = vmul.f32 %v5852_v1, %v5053_v42  ;;  %v5871_v14 = vpop.f32.mrf.mxu2 }
 0x13b   : > { %4375 = vmatmul.msk.bf16.gmra.mxu0 %vm1163_vm3, %v7146_v20  ;;  %v5867_v28 = vsel %vm1741_vm4, %v2400_v46, %v2402_v33  ;;  %7148 = vst [vmem:[#allocation69_spill] sm:$0xff] %v5871_v14  ;;  %v1957_v46 = vmul.f32 %v5693_v8, %v5142_v58  ;;  %v999_v8 = vpack.c.bf16 %v973_v43, %v972_v30 }
 0x13c   : > { %7143 = vst [vmem:[#allocation65_spill] sm:$0xff] %v5856_v6  ;;  %4342 = vmatmul.msk.bf16.gmra.mxu2 %vm1163_vm3, %v1754_v7  ;;  %v5909_v7 = vsel %vm1213_vm1, %v1613_v48, %v1615_v25  ;;  %v1712_v30 = vpack.c.bf16 %v1687_v34, %v1686_v21  ;;  %v7156_v6 = vld [vmem:[#allocation6_spill] sm:$0xff]  ;;  %v1960_v58 = vmul.f32 %v5597_v41, %v5230_v17  ;;  %v7164_v41 = vld [vmem:[#allocation9_spill] sm:$0xff] }
 0x13d   : > { %7145 = vst [vmem:[#allocation67_spill] sm:$0xff] %v5862_v61  ;;  %v1984_v52 = vpack.c.bf16 %v1958_v56, %v1957_v46  ;;  %v2336_v46 = vmul.f32 %v5909_v7, %v5194_v2  ;;  %v7154_v61 = vld [vmem:[#allocation5_spill] sm:$0xff] }
 0x13e   : > { %7147 = vst [vmem:[#allocation68_spill] sm:$0xff] %v5867_v28  ;;  %v5887_v28 = vsel %vm1741_vm4, %v3043_v49, %v3045_v27  ;;  %v5902_v49 = vmul.f32 %v5758_v5, %v7139_v50  ;;  %v5913_v56 = vpop.f32.mrf.mxu3  ;;  %v2979_v48 = vmul.f32 %v5909_v7, %v7154_v61 }
 0x13f   : > { %7149 = vst [vmem:[#allocation70_spill] sm:$0xff] %v5887_v28 }
 0x140   : > { %v5892_v40 = vpop.f32.mrf.mxu1  ;;  %v5894_v20 = vpop.permute.xlu2 %1554  ;;  %7151 = vst [vmem:[#allocation72_spill] sm:$0xff] %v5902_v49 }
 0x141   : > { %7150 = vst [vmem:[#allocation71_spill] sm:$0xff] %v5892_v40  ;;  %v5896_v24 = vpop.permute.xlu1 %894  ;;  %v1535_v0 = vpop.permute.xlu0 %1534 }
 0x142   : > { %v5906_v38 = vmul.f32 %v5896_v24, %v5194_v2  ;;  %v1617_v28 = vrot.slane %v1535_v0, 6  ;;  %7153 = vst [vmem:[#allocation74_spill] sm:$0xff] %v5913_v56  ;;  %v5924_v0 = vpop.f32.mrf.mxu2 }
 0x143   : > { %4325 = vmatmul.msk.bf16.gmra.mxu1 %vm1163_vm3, %v999_v8  ;;  %4359 = vmatmul.msk.bf16.gmra.mxu3 %vm1163_vm3, %v1984_v52  ;;  %7155 = vst [vmem:[#allocation5_spill] sm:$0xff] %v5924_v0  ;;  %v5926_v8 = vpop.f32.mrf.mxu0 }
 0x144   : > { %7152 = vst [vmem:[#allocation73_spill] sm:$0xff] %v5906_v38  ;;  %v5918_v43 = vsel %vm1213_vm1, %v1615_v25, %v1617_v28  ;;  %v5934_v25 = vrot.slane %v1712_v30, 1 }
 0x145   : > { %v2337_v52 = vmul.f32 %v5918_v43, %v7139_v50  ;;  %v2980_v35 = vmul.f32 %v5918_v43, %v7156_v6 }
 0x146   : > { %v1756_v30 = vsel %vm1741_vm4, %v1753_v32, %v5934_v25  ;;  %v1688_v32 = vmul.f32 %v5767_v55, %v4869_v22 }
 0x147   : > { %v2359_v34 = vpack.c.bf16 %v2337_v52, %v2336_v46  ;;  %v3002_v38 = vpack.c.bf16 %v2980_v35, %v2979_v48  ;;  %v1959_v46 = vmul.f32 %v5727_v51, %v5236_v53 }
 0x148   : > { %v5932_v21 = vpop.f32.mrf.mxu1  ;;  %v5936_v49 = vpop.permute.xlu2 %929 }
 0x149   : > { %7157 = vst [vmem:[#allocation6_spill] sm:$0xff] %v5932_v21  ;;  %v1543_v56 = vpop.permute.xlu1 %1542  ;;  %v1539_v29 = vpop.permute.xlu0 %1538  ;;  %v2404_v31 = vrot.slane %v2359_v34, 1  ;;  %v3047_v35 = vrot.slane %v3002_v38, 1  ;;  %v1985_v45 = vpack.c.bf16 %v1960_v58, %v1959_v46  ;;  %v6002_v46 = vmul.f32 %v5805_v12, %v7154_v61 }
 0x14a   : > { %7158 = vst [vmem:[#allocation75_spill] sm:$0xff] %v5936_v49  ;;  %v1621_v14 = vrot.slane %v1543_v56, 6  ;;  %v1619_v0 = vrot.slane %v1539_v29, 6  ;;  %v5962_v38 = vpop.f32.mrf.mxu3 }
 0x14b   : > { %4376 = vmatmul.msk.bf16.gmra.mxu0 %vm1163_vm3, %v7159_v60  ;;  %v5956_v37 = vsel %vm1741_vm4, %v2402_v33, %v2404_v31  ;;  %7161 = vst [vmem:[#allocation77_spill] sm:$0xff] %v5962_v38  ;;  %v1689_v33 = vmul.f32 %v5770_v10, %v4871_v23  ;;  %v5977_v55 = vsel %vm1741_vm4, %v3045_v27, %v3047_v35 }
 0x14c   : > { %v5949_v56 = vsel %vm1213_vm1, %v1617_v28, %v1619_v0  ;;  %v5952_v29 = vsel %vm1213_vm1, %v1619_v0, %v1621_v14  ;;  %4343 = vmatmul.msk.bf16.gmra.mxu2 %vm1163_vm3, %v1756_v30  ;;  %7160 = vst [vmem:[#allocation76_spill] sm:$0xff] %v5956_v37  ;;  %v7163_v0 = vld [vmem:[#allocation8_spill] sm:$0xff]  ;;  %v5979_v30 = vpop.f32.mrf.mxu0 }
 0x14d   : > { %v2338_v51 = vmul.f32 %v5949_v56, %v7154_v61  ;;  %v2339_v28 = vmul.f32 %v5952_v29, %v7156_v6  ;;  %v2981_v52 = vmul.f32 %v5949_v56, %v7163_v0  ;;  %v2982_v34 = vmul.f32 %v5952_v29, %v7164_v41  ;;  %7165 = vst [vmem:[#allocation9_spill] sm:$0xff] %v5977_v55 }
 0x14e   : > { %v5968_v48 = vpop.f32.mrf.mxu2  ;;  %7168 = vst [vmem:[#allocation81_spill] sm:$0xff] %v6002_v46 }
 0x14f   : > { %7162 = vst [vmem:[#allocation78_spill] sm:$0xff] %v5968_v48  ;;  %v2360_v38 = vpack.c.bf16 %v2339_v28, %v2338_v51  ;;  %v3003_v10 = vpack.c.bf16 %v2982_v34, %v2981_v52  ;;  %v1713_v51 = vpack.c.bf16 %v1689_v33, %v1688_v32 }
 0x150   : > { %v5981_v37 = vpop.f32.mrf.mxu1  ;;  %v5983_v60 = vpop.permute.xlu2 %934 }
 0x151   : > { %7166 = vst [vmem:[#allocation79_spill] sm:$0xff] %v5981_v37  ;;  %v1547_v48 = vpop.permute.xlu1 %1546  ;;  %v5986_v21 = vpop.permute.xlu0 %909  ;;  %v2406_v16 = vrot.slane %v2360_v38, 1  ;;  %v3049_v63 = vrot.slane %v3003_v10, 1  ;;  %v6025_v55 = vrot.slane %v1713_v51, 1 }
 0x152   : > { %v1623_v59 = vrot.slane %v1547_v48, 6  ;;  %v5990_v27 = vmul.f32 %v5986_v21, %v7156_v6 }
 0x153   : > { %4326 = vmatmul.msk.bf16.gmra.mxu1 %vm1163_vm3, %v1000_v11  ;;  %4360 = vmatmul.msk.bf16.gmra.mxu3 %vm1163_vm3, %v1985_v45  ;;  %v7169_v45 = vld [vmem:[#allocation14_spill] sm:$0xff]  ;;  %v6019_v52 = vsel %vm1741_vm4, %v2404_v31, %v2406_v16  ;;  %v6028_v37 = vsel %vm1741_vm4, %v3047_v35, %v3049_v63  ;;  %v1758_v35 = vsel %vm1741_vm4, %v5934_v25, %v6025_v55 }
 0x154   : > { %7167 = vst [vmem:[#allocation80_spill] sm:$0xff] %v5990_v27  ;;  %v5995_v28 = vsel %vm1213_vm1, %v1621_v14, %v1623_v59  ;;  %v5998_v13 = vsel %vm1213_vm1, %v1623_v59, %v1625_v57  ;;  %v7170_v14 = vld [vmem:[#allocation12_spill] sm:$0xff] }
 0x155   : > { %v2340_v58 = vmul.f32 %v5995_v28, %v7163_v0  ;;  %v2341_v11 = vmul.f32 %v5998_v13, %v7164_v41  ;;  %v2983_v32 = vmul.f32 %v5995_v28, %v7169_v45  ;;  %v2984_v48 = vmul.f32 %v5998_v13, %v7170_v14  ;;  %7173 = vst [vmem:[#allocation84_spill] sm:$0xff] %v6019_v52 }
 0x156   : > { %v6012_v59 = vpop.f32.mrf.mxu2  ;;  %v6014_v38 = vpop.f32.mrf.mxu3  ;;  %7175 = vst [vmem:[#allocation86_spill] sm:$0xff] %v6028_v37  ;;  %v1627_v37 = vrot.slane %v5894_v20, 6  ;;  %v394_v20 = vld [vmem:[%s4812_s29 + $0x110] sm:$0xff] }
 0x157   : > { %7171 = vst [vmem:[#allocation82_spill] sm:$0xff] %v6012_v59  ;;  %v2361_v40 = vpack.c.bf16 %v2341_v11, %v2340_v58  ;;  %v3004_v3 = vpack.c.bf16 %v2984_v48, %v2983_v32  ;;  %v977_v11 = vmul.f32 %v5807_v44, %v5230_v17  ;;  %v1962_v32 = vmul.f32 %v5807_v44, %v4871_v23 }
 0x158   : > { %7172 = vst [vmem:[#allocation83_spill] sm:$0xff] %v6014_v38  ;;  %v6021_v34 = vpop.f32.mrf.mxu0  ;;  %v6023_v10 = vpop.f32.mrf.mxu1  ;;  %v976_v44 = vmul.f32 %v5642_v9, %v5236_v53  ;;  %v1691_v48 = vmul.f32 %v5828_v4, %v4866_v19  ;;  %v6089_v53 = vsel %vm1213_vm1, %v1625_v57, %v1627_v37 }
 0x159   : > { %7174 = vst [vmem:[#allocation85_spill] sm:$0xff] %v6023_v10  ;;  %v6030_v59 = vpop.permute.xlu2 %1574  ;;  %v6032_v38 = vpop.permute.xlu1 %919  ;;  %v6049_v51 = vrot.slane %v2361_v40, 1  ;;  %v6051_v58 = vrot.slane %v3004_v3, 1  ;;  %v1961_v40 = vmul.f32 %v5642_v9, %v4869_v22  ;;  %v6093_v9 = vmul.f32 %v5936_v49, %v7170_v14 }
 0x15a   : > { %v6036_v33 = vmul.f32 %v6032_v38, %v7164_v41  ;;  %v6038_v31 = vpop.permute.xlu0 %914  ;;  %7184 = vst [vmem:[#allocation95_spill] sm:$0xff] %v6089_v53 }
 0x15b   : > { %v6042_v52 = vmul.f32 %v6038_v31, %v7163_v0  ;;  %4377 = vmatmul.msk.bf16.gmra.mxu0 %vm1163_vm3, %v5389_v36  ;;  %v6067_v3 = vsel %vm1741_vm4, %v2406_v16, %v6049_v51  ;;  %v6071_v17 = vsel %vm1741_vm4, %v3049_v63, %v6051_v58  ;;  %7185 = vst [vmem:[#allocation96_spill] sm:$0xff] %v6093_v9 }
 0x15c   : > { %7176 = vst [vmem:[#allocation87_spill] sm:$0xff] %v6036_v33  ;;  %4344 = vmatmul.msk.bf16.gmra.mxu2 %vm1163_vm3, %v1758_v35  ;;  %v1690_v35 = vmul.f32 %v5825_v47, %v4864_v18  ;;  %v1986_v33 = vpack.c.bf16 %v1962_v32, %v1961_v40  ;;  %v393_v47 = vld [vmem:[%s4812_s29 + $0x108] sm:$0xff]  ;;  %v2342_v40 = vmul.f32 %v6089_v53, %v7169_v45 }
 0x15d   : > { %7177 = vst [vmem:[#allocation88_spill] sm:$0xff] %v6042_v52 }
 0x15e   : > { %v6061_v46 = vpop.f32.mrf.mxu2  ;;  %v6063_v25 = vpop.f32.mrf.mxu3  ;;  %7180 = vst [vmem:[#allocation91_spill] sm:$0xff] %v6067_v3 }
 0x15f   : > { %7178 = vst [vmem:[#allocation89_spill] sm:$0xff] %v6061_v46 }
 0x160   : > { %7179 = vst [vmem:[#allocation90_spill] sm:$0xff] %v6063_v25  ;;  %v6082_v52 = vpop.f32.mrf.mxu0  ;;  %v6084_v16 = vpop.f32.mrf.mxu1  ;;  %v6103_v25 = vld [vmem:[%s6985_s1] ss:$0 sm:$0xff] }
 0x161   : > { %7181 = vst [vmem:[#allocation92_spill] sm:$0xff] %v6071_v17  ;;  %v684_v3 = vpop.permute.xlu2 %683  ;;  %v6086_v63 = vpop.permute.xlu1 %924  ;;  %v1001_v17 = vpack.c.bf16 %v977_v11, %v976_v44  ;;  %v435_v11 = vmul.f32 %v6103_v25, %v394_v20  ;;  %v1714_v44 = vpack.c.bf16 %v1691_v48, %v1690_v35  ;;  %v434_v36 = vmul.f32 %v6103_v25, %v393_v47  ;;  %v6129_v35 = vld [vmem:[%s6986_s2] ss:$0 sm:$0xff] }
 0x162   : > { %7182 = vst [vmem:[#allocation93_spill] sm:$0xff] %v6084_v16  ;;  %v6098_v4 = vmul.f32 %v6086_v63, %v7169_v45  ;;  %v1559_v27 = vpop.permute.xlu0 %1558  ;;  %v7187_v16 = vld [vmem:[#allocation19_spill] sm:$0xff] }
 0x163   : > { %7183 = vst [vmem:[#allocation94_spill] sm:$0xff] %v6086_v63  ;;  %v1629_v32 = vrot.slane %v1559_v27, 6  ;;  %4327 = vmatmul.msk.bf16.gmra.mxu1 %vm1163_vm3, %v1001_v17  ;;  %4361 = vmatmul.msk.bf16.gmra.mxu3 %vm1163_vm3, %v1986_v33  ;;  %v2985_v20 = vmul.f32 %v6089_v53, %v7187_v16  ;;  %v7188_v17 = vld [vmem:[#allocation20_spill] sm:$0xff] }
 0x164   : > { %7186 = vst [vmem:[#allocation97_spill] sm:$0xff] %v6098_v4  ;;  %v6136_v4 = vrot.slane %v1714_v44, 1  ;;  %v978_v44 = vmul.f32 %v5852_v1, %v4869_v22 }
 0x165   : > { %v6114_v46 = vsel %vm1213_vm1, %v1627_v37, %v1629_v32  ;;  %v476_v37 = vadd.f32 %v6129_v35, %v435_v11  ;;  %v1964_v11 = vmul.f32 %v5850_v62, %v4866_v19 }
 0x166   : > { %v2343_v27 = vmul.f32 %v6114_v46, %v7170_v14  ;;  %v2986_v33 = vmul.f32 %v6114_v46, %v7188_v17  ;;  %v6122_v10 = vpop.f32.mrf.mxu2  ;;  %v6124_v48 = vpop.f32.mrf.mxu3  ;;  %v475_v14 = vadd.f32 %v6129_v35, %v434_v36  ;;  %v7193_v36 = vld [vmem:[#allocation7_spill] sm:$0xff] }
 0x167   : > { %7189 = vst [vmem:[#allocation19_spill] sm:$0xff] %v6122_v10 }
 0x168   : > { %7190 = vst [vmem:[#allocation20_spill] sm:$0xff] %v6124_v48  ;;  %v6132_v47 = vpop.f32.mrf.mxu0  ;;  %v6134_v57 = vpop.f32.mrf.mxu1  ;;  %v2362_v9 = vpack.c.bf16 %v2343_v27, %v2342_v40  ;;  %v3005_v15 = vpack.c.bf16 %v2986_v33, %v2985_v20  ;;  %v979_v48 = vmul.f32 %v5850_v62, %v4871_v23  ;;  %v6148_v40 = vrot.slane %v6030_v59, 6 }
 0x169   : > { %7191 = vst [vmem:[#allocation98_spill] sm:$0xff] %v6132_v47  ;;  %v689_v10 = vpop.permute.xlu2 %688  ;;  %v1567_v45 = vpop.permute.xlu1 %1566  ;;  %v1963_v23 = vmul.f32 %v5852_v1, %v4864_v18  ;;  %v6157_v62 = vmul.f32 %v684_v3, %v475_v14  ;;  %v1693_v14 = vmul.f32 %v5918_v43, %v5051_v39  ;;  %v7197_v3 = vld [vmem:[#allocation24_spill] sm:$0xff]  ;;  %v1692_v43 = vmul.f32 %v5909_v7, %v5053_v42 }
 0x16a   : > { %7192 = vst [vmem:[#allocation99_spill] sm:$0xff] %v6134_v57  ;;  %v6141_v49 = vmul.f32 %v689_v10, %v476_v37  ;;  %v1633_v63 = vrot.slane %v1567_v45, 6  ;;  %v1563_v53 = vpop.permute.xlu0 %1562  ;;  %v1760_v45 = vsel %vm1741_vm4, %v6025_v55, %v6136_v4  ;;  %v2410_v10 = vrot.slane %v2362_v9, 1 }
 0x16b   : > { %v1631_v20 = vrot.slane %v1563_v53, 6  ;;  %4378 = vmatmul.msk.bf16.gmra.mxu0 %vm1163_vm3, %v7193_v36  ;;  %v3053_v27 = vrot.slane %v3005_v15, 1  ;;  %v1002_v36 = vpack.c.bf16 %v979_v48, %v978_v44  ;;  %v1987_v57 = vpack.c.bf16 %v1964_v11, %v1963_v23 }
 0x16c   : > { %4345 = vmatmul.msk.bf16.gmra.mxu2 %vm1163_vm3, %v1760_v45  ;;  %v2348_v53 = vmul.f32 %v6148_v40, %v6141_v49  ;;  %v6182_v33 = vsel %vm1741_vm4, %v6049_v51, %v2410_v10  ;;  %v1715_v7 = vpack.c.bf16 %v1693_v14, %v1692_v43 }
 0x16d   : > { %v6160_v22 = vsel %vm1213_vm1, %v1629_v32, %v1631_v20  ;;  %v6163_v59 = vsel %vm1213_vm1, %v1631_v20, %v1633_v63  ;;  %7198 = vst [vmem:[#allocation24_spill] sm:$0xff] %v6182_v33  ;;  %v6188_v45 = vsel %vm1741_vm4, %v6051_v58, %v3053_v27 }
 0x16e   : > { %7194 = vst [vmem:[#allocation100_spill] sm:$0xff] %v6160_v22  ;;  %v2344_v1 = vmul.f32 %v6160_v22, %v7187_v16  ;;  %v2345_v55 = vmul.f32 %v6163_v59, %v7188_v17  ;;  %v6172_v15 = vpop.f32.mrf.mxu3  ;;  %v2987_v9 = vmul.f32 %v6160_v22, %v7197_v3  ;;  %v2988_v32 = vmul.f32 %v6163_v59, %v6157_v62 }
 0x16f   : > { %7195 = vst [vmem:[#allocation101_spill] sm:$0xff] %v6163_v59  ;;  %v1835_v37 = vpop.f32.mrf.mxu2 }
 0x170   : > { %7196 = vst [vmem:[#allocation102_spill] sm:$0xff] %v6172_v15  ;;  %v6184_v20 = vpop.f32.mrf.mxu0  ;;  %v2363_v15 = vpack.c.bf16 %v2345_v55, %v2344_v1  ;;  %v1368_v22 = vpop.f32.mrf.mxu1  ;;  %v3006_v59 = vpack.c.bf16 %v2988_v32, %v2987_v9  ;;  %v2365_v32 = vpack.c.bf16 %v2348_v53, %v2348_v53 }
 0x171   : > { %7199 = vst [vmem:[#allocation103_spill] sm:$0xff] %v6184_v20  ;;  %v1571_v47 = vpop.permute.xlu1 %1570  ;;  %v1369_v0 = vadd.f32 %v1368_v22, %v5814_v54  ;;  %v6197_v20 = vmul.f32 %v5983_v60, %v7187_v16 }
 0x172   : > { %v1635_v51 = vrot.slane %v1571_v47, 6  ;;  %v6193_v33 = vpop.permute.xlu0 %939  ;;  %v2412_v48 = vrot.slane %v2363_v15, 1  ;;  %v6212_v44 = vrot.slane %v3006_v59, 1  ;;  %v6227_v15 = vrot.slane %v1715_v7, 1 }
 0x173   : > { %v6201_v58 = vmul.f32 %v6193_v33, %v7188_v17  ;;  %4328 = vmatmul.msk.bf16.gmra.mxu1 %vm1163_vm3, %v1002_v36  ;;  %4362 = vmatmul.msk.bf16.gmra.mxu3 %vm1163_vm3, %v1987_v57  ;;  %v1915_v47 = vadd.f32 %v1835_v37, %v1369_v0 }
 0x174   : > { %v6206_v11 = vsel %vm1213_vm1, %v1633_v63, %v1635_v51  ;;  %v6210_v54 = vsel %vm1213_vm1, %v1635_v51, %v6148_v40  ;;  %v6225_v55 = vsel %vm1741_vm4, %v2410_v10, %v2412_v48  ;;  %v6231_v14 = vsel %vm1741_vm4, %v3053_v27, %v6212_v44  ;;  %v7204_v27 = vld [vmem:[#allocation13_spill] sm:$0xff] }
 0x175   : > { %v2346_v23 = vmul.f32 %v6206_v11, %v7197_v3  ;;  %v2347_v36 = vmul.f32 %v6210_v54, %v6157_v62  ;;  %v6220_v57 = vmul.f32 %v6206_v11, %v6141_v49  ;;  %7200 = vst [vmem:[#allocation104_spill] sm:$0xff] %v6225_v55  ;;  %v1762_v53 = vsel %vm1741_vm4, %v6136_v4, %v6227_v15 }
 0x176   : > { %v2057_v22 = vpop.f32.mrf.mxu3  ;;  %7201 = vst [vmem:[#allocation105_spill] sm:$0xff] %v6231_v14 }
 0x177   : > { %v2137_v1 = vadd.f32 %v2057_v22, %v1915_v47  ;;  %v1837_v0 = vpop.f32.mrf.mxu2  ;;  %v2364_v9 = vpack.c.bf16 %v2347_v36, %v2346_v23  ;;  %v2416_v36 = vrot.slane %v2365_v32, 1  ;;  %v1694_v32 = vmul.f32 %v5949_v56, %v5194_v2 }
 0x178   : > { %v2204_v59 = vpop.f32.mrf.mxu0  ;;  %v1370_v37 = vpop.f32.mrf.mxu1 }
 0x179   : > { %v6233_v43 = vadd.f32 %v2204_v59, %v2137_v1  ;;  %v6235_v51 = vpop.permute.xlu1 %949  ;;  %v1371_v47 = vadd.f32 %v1370_v37, %v5873_v26  ;;  %v2414_v26 = vrot.slane %v2364_v9, 1  ;;  %v980_v1 = vmul.f32 %v5896_v24, %v4864_v18  ;;  %v395_v37 = vld [vmem:[%s4812_s29 + $0x118] sm:$0xff] }
 0x17a   : > { %v6240_v10 = vmul.f32 %v6235_v51, %v6157_v62  ;;  %v6242_v22 = vpop.permute.xlu0 %944  ;;  %v1965_v59 = vmul.f32 %v5896_v24, %v5053_v42  ;;  %v1966_v18 = vmul.f32 %v5758_v5, %v5051_v39  ;;  %v396_v24 = vld [vmem:[%s4812_s29 + $0x120] sm:$0xff]  ;;  %s4521_s29 = sshll.u32 %s7352_s10, 6 }
 0x17b   : > { %v6246_v7 = vmul.f32 %v6242_v22, %v7197_v3  ;;  %4379 = vmatmul.msk.bf16.gmra.mxu0 %vm1163_vm3, %v7204_v27  ;;  %v1916_v23 = vadd.f32 %v1837_v0, %v1371_v47  ;;  %v6261_v14 = vsel %vm1741_vm4, %v2412_v48, %v2414_v26  ;;  %v6264_v4 = vsel %vm1741_vm4, %v2414_v26, %v2416_v36  ;;  %s6674_s11 = scalar_lea.vmem %s6992_s8, %s4521_s29 }
 0x17c   : > { %7202 = vst [vmem:[#allocation106_spill] sm:$0xff] %v6240_v10  ;;  %4346 = vmatmul.msk.bf16.gmra.mxu2 %vm1163_vm3, %v1762_v53  ;;  %v981_v0 = vmul.f32 %v5758_v5, %v4866_v19  ;;  %v1695_v47 = vmul.f32 %v5952_v29, %v7139_v50  ;;  %v1988_v26 = vpack.c.bf16 %v1966_v18, %v1965_v59 }
 0x17d   : > { %7203 = vst [vmem:[#allocation107_spill] sm:$0xff] %v6246_v7  ;;  %v436_v29 = vmul.f32 %v6103_v25, %v395_v37 }
 0x17e   : > { %v2059_v63 = vpop.f32.mrf.mxu3  ;;  %7205 = vst [vmem:[#allocation13_spill] sm:$0xff] %v6261_v14  ;;  %v1003_v14 = vpack.c.bf16 %v981_v0, %v980_v1  ;;  %v1716_v59 = vpack.c.bf16 %v1695_v47, %v1694_v32  ;;  %v2169_v0 = vpack.c.bf16 %v6157_v62, %v7197_v3  ;;  %v983_v47 = vmul.f32 %v5986_v21, %v5051_v39 }
 0x17f   : > { %7206 = vst [vmem:[#allocation108_spill] sm:$0xff] %v6264_v4  ;;  %v2138_v9 = vadd.f32 %v2059_v63, %v1916_v23  ;;  %v1840_v53 = vpop.f32.mrf.mxu2  ;;  %v437_v23 = vmul.f32 %v6103_v25, %v396_v24  ;;  %v477_v24 = vadd.f32 %v6129_v35, %v436_v29 }
 0x180   : > { %v2206_v48 = vpop.f32.mrf.mxu0  ;;  %v1373_v36 = vpop.f32.mrf.mxu1  ;;  %v1763_v7 = vrot.slane %v1716_v59, 1  ;;  %v2174_v55 = vshll.u32 %v2169_v0, 16 }
 0x181   : > { %v6276_v4 = vadd.f32 %v2206_v48, %v2138_v9  ;;  %v6278_v19 = vpop.permute.xlu1 %959  ;;  %v1374_v5 = vadd.f32 %v1373_v36, %v5926_v8  ;;  %v478_v18 = vadd.f32 %v6129_v35, %v437_v23  ;;  %v1968_v35 = vmul.f32 %v5986_v21, %v7139_v50 }
 0x182   : > { %v6281_v63 = vpop.permute.xlu0 %954  ;;  %v1764_v29 = vsel %vm1741_vm4, %v6227_v15, %v1763_v7  ;;  %v6318_v59 = vrot.slane %v2174_v55, 1  ;;  %v982_v21 = vmul.f32 %v5805_v12, %v5053_v42  ;;  %v1696_v15 = vmul.f32 %v5995_v28, %v7154_v61 }
 0x183   : > { %v6286_v56 = vmul.f32 %v6281_v63, %v6141_v49  ;;  %4329 = vmatmul.msk.bf16.gmra.mxu1 %vm1163_vm3, %v1003_v14  ;;  %4363 = vmatmul.msk.bf16.gmra.mxu3 %vm1163_vm3, %v1988_v26  ;;  %v1917_v1 = vadd.f32 %v1840_v53, %v1374_v5  ;;  %v7209_v5 = vld [vmem:[#allocation21_spill] sm:$0xff]  ;;  %v2178_v55 = vshrl.u32 %v2169_v0, 16 }
 0x184   : > { %v1004_v42 = vpack.c.bf16 %v983_v47, %v982_v21 }
 0x185   : > { %7207 = vst [vmem:[#allocation109_spill] sm:$0xff] %v6286_v56 }
 0x186   : > { %v2062_v8 = vpop.f32.mrf.mxu3 }
 0x187   : > { %v2139_v9 = vadd.f32 %v2062_v8, %v1917_v1  ;;  %v1842_v48 = vpop.f32.mrf.mxu2  ;;  %v1967_v8 = vmul.f32 %v5805_v12, %v5194_v2 }
 0x188   : > { %v2209_v36 = vpop.f32.mrf.mxu0  ;;  %v1375_v10 = vpop.f32.mrf.mxu1 }
 0x189   : > { %v6295_v14 = vadd.f32 %v2209_v36, %v2139_v9  ;;  %v699_v26 = vpop.permute.xlu1 %698  ;;  %v1376_v25 = vadd.f32 %v1375_v10, %v5979_v30 }
 0x18a   : > { %v6298_v37 = vmul.f32 %v699_v26, %v478_v18  ;;  %v694_v32 = vpop.permute.xlu0 %693  ;;  %v1697_v26 = vmul.f32 %v5998_v13, %v7156_v6 }
 0x18b   : > { %v736_v53 = vmul.f32 %v694_v32, %v477_v24  ;;  %4380 = vmatmul.msk.bf16.gmra.mxu0 %vm1163_vm3, %v7209_v5  ;;  %v1918_v30 = vadd.f32 %v1842_v48, %v1376_v25  ;;  %v6335_v24 = vor.u32 %v2178_v55, %v6318_v59  ;;  %v1970_v55 = vmul.f32 %v6032_v38, %v7156_v6 }
 0x18c   : > { %7208 = vst [vmem:[#allocation110_spill] sm:$0xff] %v6298_v37  ;;  %v2991_v23 = vmul.f32 %v6148_v40, %v6298_v37  ;;  %4347 = vmatmul.msk.bf16.gmra.mxu2 %vm1163_vm3, %v1764_v29  ;;  %v1989_v29 = vpack.c.bf16 %v1968_v35, %v1967_v8  ;;  %v1717_v35 = vpack.c.bf16 %v1697_v26, %v1696_v15 }
 0x18d   : > { %v6311_v10 = vmul.f32 %v6278_v19, %v736_v53  ;;  %v6314_v1 = vpack.c.bf16 %v736_v53, %v6141_v49  ;;  %v2990_v39 = vmul.f32 %v6210_v54, %v736_v53  ;;  %v985_v15 = vmul.f32 %v6032_v38, %v7139_v50  ;;  %v7212_v38 = vld [vmem:[#allocation8_spill] sm:$0xff] }
 0x18e   : > { %v3008_v18 = vpack.c.bf16 %v2991_v23, %v2991_v23  ;;  %v2064_v9 = vpop.f32.mrf.mxu3  ;;  %v1765_v8 = vrot.slane %v1717_v35, 1  ;;  %v984_v26 = vmul.f32 %v6038_v31, %v5194_v2  ;;  %v7214_v35 = vld [vmem:[#allocation98_spill] sm:$0xff] }
 0x18f   : > { %v2817_v48 = vshll.u32 %v6314_v1, 16  ;;  %v3007_v36 = vpack.c.bf16 %v2990_v39, %v6220_v57  ;;  %v2140_v32 = vadd.f32 %v2064_v9, %v1918_v30  ;;  %v1845_v12 = vpop.f32.mrf.mxu2 }
 0x190   : > { %v3059_v25 = vrot.slane %v3008_v18, 1  ;;  %v2211_v53 = vpop.f32.mrf.mxu0  ;;  %v1378_v37 = vpop.f32.mrf.mxu1 }
 0x191   : > { %v6332_v28 = vrot.slane %v2817_v48, 1  ;;  %v3057_v23 = vrot.slane %v3007_v36, 1  ;;  %v1379_v56 = vadd.f32 %v1378_v37, %v6021_v34  ;;  %v6338_v57 = vadd.f32 %v2211_v53, %v2140_v32  ;;  %v7211_v36 = vld [vmem:[#allocation27_spill] sm:$0xff] }
 0x192   : > { %v1005_v53 = vpack.c.bf16 %v985_v15, %v984_v26  ;;  %v7215_v15 = vld [vmem:[#allocation103_spill] sm:$0xff] }
 0x193   : > { %4330 = vmatmul.msk.bf16.gmra.mxu1 %vm1163_vm3, %v1004_v42  ;;  %4364 = vmatmul.msk.bf16.gmra.mxu3 %vm1163_vm3, %v1989_v29  ;;  %v6345_v13 = vsel %vm1030_vm2, %v6335_v24, %v6332_v28  ;;  %v6349_v0 = vsel %vm1741_vm4, %v6212_v44, %v3057_v23  ;;  %v1919_v47 = vadd.f32 %v1845_v12, %v1379_v56  ;;  %v7216_v26 = vld [vmem:[#allocation11_spill] sm:$0xff] }
 0x194   : > { %v6352_v30 = vsel %vm1741_vm4, %v3057_v23, %v3059_v25  ;;  %v1766_v44 = vsel %vm1741_vm4, %v1763_v7, %v1765_v8  ;;  %v1969_v42 = vmul.f32 %v6038_v31, %v7154_v61  ;;  %v1699_v7 = vmul.f32 %v6114_v46, %v7164_v41 }
 0x195   : > { %7210 = vst [vmem:[#allocation21_spill] sm:$0xff] %v6352_v30 }
 0x196   : > { %v2067_v34 = vpop.f32.mrf.mxu3  ;;  %v1990_v50 = vpack.c.bf16 %v1970_v55, %v1969_v42 }
 0x197   : > { %v2141_v37 = vadd.f32 %v2067_v34, %v1919_v47  ;;  %v1847_v39 = vpop.f32.mrf.mxu2  ;;  %v7213_v47 = vld [vmem:[#allocation95_spill] sm:$0xff] }
 0x198   : > { %v2214_v21 = vpop.f32.mrf.mxu0  ;;  %v1380_v18 = vpop.f32.mrf.mxu1  ;;  %v1698_v2 = vmul.f32 %v7213_v47, %v7212_v38 }
 0x199   : > { %v6354_v9 = vadd.f32 %v2214_v21, %v2141_v37  ;;  %v1381_v48 = vadd.f32 %v1380_v18, %v6082_v52 }
 0x19a   : > { %v1718_v37 = vpack.c.bf16 %v1699_v7, %v1698_v2  ;;  %v7219_v2 = vld [vmem:[#allocation14_spill] sm:$0xff] }
 0x19b   : > { %4381 = vmatmul.msk.bf16.gmra.mxu0 %vm1163_vm3, %v7211_v36  ;;  %v1920_v56 = vadd.f32 %v1847_v39, %v1381_v48 }
 0x19c   : > { %4348 = vmatmul.msk.bf16.gmra.mxu2 %vm1163_vm3, %v1766_v44  ;;  %v1767_v48 = vrot.slane %v1718_v37, 1 }
 0x19e   : > { %v2069_v52 = vpop.f32.mrf.mxu3  ;;  %v1768_v42 = vsel %vm1741_vm4, %v1765_v8, %v1767_v48 }
 0x19f   : > { %v2142_v25 = vadd.f32 %v2069_v52, %v1920_v56  ;;  %v1850_v32 = vpop.f32.mrf.mxu2 }
 0x1a0   : > { %v2216_v12 = vpop.f32.mrf.mxu0  ;;  %v1383_v29 = vpop.f32.mrf.mxu1 }
 0x1a1   : > { %v6371_v23 = vadd.f32 %v2216_v12, %v2142_v25  ;;  %v1384_v34 = vadd.f32 %v1383_v29, %v7214_v35  ;;  %v7217_v25 = vld [vmem:[#allocation94_spill] sm:$0xff]  ;;  %v7220_v35 = vld [vmem:[#allocation100_spill] sm:$0xff] }
 0x1a2   : > { %v1971_v7 = vmul.f32 %v7217_v25, %v7212_v38  ;;  %v1700_v8 = vmul.f32 %v7220_v35, %v7219_v2 }
 0x1a3   : > { %4331 = vmatmul.msk.bf16.gmra.mxu1 %vm1163_vm3, %v1005_v53  ;;  %4365 = vmatmul.msk.bf16.gmra.mxu3 %vm1163_vm3, %v1990_v50  ;;  %v1921_v31 = vadd.f32 %v1850_v32, %v1384_v34  ;;  %v986_v32 = vmul.f32 %v7217_v25, %v7154_v61  ;;  %v7218_v53 = vld [vmem:[#allocation75_spill] sm:$0xff]  ;;  %v7221_v34 = vld [vmem:[#allocation12_spill] sm:$0xff] }
 0x1a4   : > { %v987_v50 = vmul.f32 %v7218_v53, %v7156_v6  ;;  %v1972_v29 = vmul.f32 %v7218_v53, %v7164_v41 }
 0x1a6   : > { %v2072_v39 = vpop.f32.mrf.mxu3 }
 0x1a7   : > { %v2143_v46 = vadd.f32 %v2072_v39, %v1921_v31  ;;  %v1852_v21 = vpop.f32.mrf.mxu2  ;;  %v7222_v31 = vld [vmem:[#allocation101_spill] sm:$0xff] }
 0x1a8   : > { %v2219_v18 = vpop.f32.mrf.mxu0  ;;  %v1385_v44 = vpop.f32.mrf.mxu1  ;;  %v1701_v37 = vmul.f32 %v7222_v31, %v7221_v34 }
 0x1a9   : > { %v6378_v56 = vadd.f32 %v2219_v18, %v2143_v46  ;;  %v1386_v55 = vadd.f32 %v1385_v44, %v7215_v15  ;;  %v1006_v46 = vpack.c.bf16 %v987_v50, %v986_v32  ;;  %v7223_v15 = vld [vmem:[#allocation57_spill] sm:$0xff]  ;;  %v7224_v32 = vld [vmem:[#allocation64_spill] sm:$0xff]  ;;  %v7225_v50 = vld [vmem:[#allocation15_spill] sm:$0xff] }
 0x1ab   : > { %4382 = vmatmul.msk.bf16.gmra.mxu0 %vm1163_vm3, %v7216_v26  ;;  %v1922_v52 = vadd.f32 %v1852_v21, %v1386_v55  ;;  %v1991_v21 = vpack.c.bf16 %v1972_v29, %v1971_v7 }
 0x1ac   : > { %4349 = vmatmul.msk.bf16.gmra.mxu2 %vm1163_vm3, %v1768_v42  ;;  %v1719_v42 = vpack.c.bf16 %v1701_v37, %v1700_v8  ;;  %v1974_v8 = vmul.f32 %v6193_v33, %v7221_v34 }
 0x1ae   : > { %v2074_v12 = vpop.f32.mrf.mxu3  ;;  %v1769_v35 = vrot.slane %v1719_v42, 1 }
 0x1af   : > { %v2144_v47 = vadd.f32 %v2074_v12, %v1922_v52  ;;  %v1855_v61 = vpop.f32.mrf.mxu2 }
 0x1b0   : > { %v2221_v39 = vpop.f32.mrf.mxu0  ;;  %v1388_v18 = vpop.f32.mrf.mxu1  ;;  %v1770_v29 = vsel %vm1741_vm4, %v1767_v48, %v1769_v35  ;;  %v1702_v48 = vmul.f32 %v6206_v11, %v7187_v16 }
 0x1b1   : > { %v6397_v44 = vadd.f32 %v2221_v39, %v2144_v47  ;;  %v1389_v55 = vadd.f32 %v1388_v18, %v7223_v15  ;;  %v988_v39 = vmul.f32 %v5983_v60, %v7212_v38  ;;  %v1703_v18 = vmul.f32 %v6210_v54, %v7188_v17 }
 0x1b3   : > { %4332 = vmatmul.msk.bf16.gmra.mxu1 %vm1163_vm3, %v1006_v46  ;;  %4366 = vmatmul.msk.bf16.gmra.mxu3 %vm1163_vm3, %v1991_v21  ;;  %v1923_v6 = vadd.f32 %v1855_v61, %v1389_v55  ;;  %v989_v61 = vmul.f32 %v6193_v33, %v7164_v41  ;;  %v1973_v46 = vmul.f32 %v5983_v60, %v7219_v2 }
 0x1b4   : > { %v1720_v38 = vpack.c.bf16 %v1703_v18, %v1702_v48  ;;  %v1975_v48 = vmul.f32 %v6242_v22, %v7187_v16 }
 0x1b5   : > { %v1007_v55 = vpack.c.bf16 %v989_v61, %v988_v39  ;;  %v1992_v33 = vpack.c.bf16 %v1974_v8, %v1973_v46  ;;  %v7228_v61 = vld [vmem:[#allocation23_spill] sm:$0xff]  ;;  %v991_v39 = vmul.f32 %v6235_v51, %v7221_v34  ;;  %v1976_v46 = vmul.f32 %v6235_v51, %v7188_v17 }
 0x1b6   : > { %v2077_v52 = vpop.f32.mrf.mxu3  ;;  %v1771_v54 = vrot.slane %v1720_v38, 1  ;;  %v1704_v51 = vmul.f32 %v6148_v40, %v7197_v3  ;;  %v7229_v34 = vld [vmem:[#allocation79_spill] sm:$0xff] }
 0x1b7   : > { %v2145_v25 = vadd.f32 %v2077_v52, %v1923_v6  ;;  %v1857_v12 = vpop.f32.mrf.mxu2  ;;  %v7226_v52 = vld [vmem:[#allocation71_spill] sm:$0xff] }
 0x1b8   : > { %v2224_v53 = vpop.f32.mrf.mxu0  ;;  %v1390_v31 = vpop.f32.mrf.mxu1  ;;  %v1772_v8 = vsel %vm1741_vm4, %v1769_v35, %v1771_v54 }
 0x1b9   : > { %v6402_v30 = vadd.f32 %v2224_v53, %v2145_v25  ;;  %v1391_v7 = vadd.f32 %v1390_v31, %v7224_v32 }
 0x1bb   : > { %4383 = vmatmul.msk.bf16.gmra.mxu0 %vm1163_vm3, %v7225_v50  ;;  %v1924_v47 = vadd.f32 %v1857_v12, %v1391_v7 }
 0x1bc   : > { %4350 = vmatmul.msk.bf16.gmra.mxu2 %vm1163_vm3, %v1770_v29  ;;  %v7227_v29 = vld [vmem:[#allocation6_spill] sm:$0xff] }
 0x1be   : > { %v2079_v37 = vpop.f32.mrf.mxu3 }
 0x1bf   : > { %v2146_v21 = vadd.f32 %v2079_v37, %v1924_v47  ;;  %v1860_v41 = vpop.f32.mrf.mxu2 }
 0x1c0   : > { %v2226_v15 = vpop.f32.mrf.mxu0  ;;  %v1393_v6 = vpop.f32.mrf.mxu1 }
 0x1c1   : > { %v6421_v42 = vadd.f32 %v2226_v15, %v2146_v21  ;;  %v1394_v25 = vadd.f32 %v1393_v6, %v7226_v52  ;;  %v990_v21 = vmul.f32 %v6242_v22, %v7219_v2 }
 0x1c3   : > { %4333 = vmatmul.msk.bf16.gmra.mxu1 %vm1163_vm3, %v1007_v55  ;;  %4367 = vmatmul.msk.bf16.gmra.mxu3 %vm1163_vm3, %v1992_v33  ;;  %v1925_v60 = vadd.f32 %v1860_v41, %v1394_v25  ;;  %v1008_v35 = vpack.c.bf16 %v991_v39, %v990_v21  ;;  %v1993_v33 = vpack.c.bf16 %v1976_v46, %v1975_v48 }
 0x1c4   : > { %v993_v46 = vmul.f32 %v6278_v19, %v7188_v17  ;;  %v1978_v21 = vmul.f32 %v6278_v19, %v6157_v62  ;;  %v992_v48 = vmul.f32 %v6281_v63, %v7187_v16  ;;  %v7232_v62 = vld [vmem:[#allocation93_spill] sm:$0xff] }
 0x1c6   : > { %v2082_v12 = vpop.f32.mrf.mxu3 }
 0x1c7   : > { %v2147_v11 = vadd.f32 %v2082_v12, %v1925_v60  ;;  %v1862_v53 = vpop.f32.mrf.mxu2  ;;  %v1721_v60 = vpack.c.bf16 %v1704_v51, %v1704_v51 }
 0x1c8   : > { %v2229_v31 = vpop.f32.mrf.mxu0  ;;  %v1395_v32 = vpop.f32.mrf.mxu1 }
 0x1c9   : > { %v6426_v7 = vadd.f32 %v2229_v31, %v2147_v11  ;;  %v1396_v47 = vadd.f32 %v1395_v32, %v7227_v29  ;;  %v7230_v32 = vld [vmem:[#allocation85_spill] sm:$0xff] }
 0x1cb   : > { %4384 = vmatmul.msk.bf16.gmra.mxu0 %vm1163_vm3, %v7228_v61  ;;  %v1926_v37 = vadd.f32 %v1862_v53, %v1396_v47  ;;  %v7231_v47 = vld [vmem:[#allocation28_spill] sm:$0xff] }
 0x1cc   : > { %4351 = vmatmul.msk.bf16.gmra.mxu2 %vm1163_vm3, %v1772_v8  ;;  %v6454_v40 = vsel %vm1030_vm2, %v7231_v47, %v6318_v59  ;;  %v1773_v8 = vrot.slane %v1721_v60, 1  ;;  %v1977_v59 = vmul.f32 %v6281_v63, %v7197_v3  ;;  %v7233_v60 = vld [vmem:[#allocation99_spill] sm:$0xff] }
 0x1ce   : > { %v2084_v18 = vpop.f32.mrf.mxu3  ;;  %v1994_v17 = vpack.c.bf16 %v1978_v21, %v1977_v59 }
 0x1cf   : > { %v2148_v41 = vadd.f32 %v2084_v18, %v1926_v37  ;;  %v1865_v15 = vpop.f32.mrf.mxu2  ;;  %v1774_v37 = vsel %vm1741_vm4, %v1771_v54, %v1773_v8 }
 0x1d0   : > { %v2231_v55 = vpop.f32.mrf.mxu0  ;;  %v1398_v6 = vpop.f32.mrf.mxu1 }
 0x1d1   : > { %v6441_v52 = vadd.f32 %v2231_v55, %v2148_v41  ;;  %v1399_v25 = vadd.f32 %v1398_v6, %v7229_v34  ;;  %v2170_v41 = vpack.c.bf16 %v6141_v49, %v6141_v49 }
 0x1d3   : > { %4334 = vmatmul.msk.bf16.gmra.mxu1 %vm1163_vm3, %v1008_v35  ;;  %4368 = vmatmul.msk.bf16.gmra.mxu3 %vm1163_vm3, %v1993_v33  ;;  %v1927_v22 = vadd.f32 %v1865_v15, %v1399_v25  ;;  %v1009_v35 = vpack.c.bf16 %v993_v46, %v992_v48  ;;  %v2182_v16 = vshll.u32 %v2170_v41, 16  ;;  %v7237_v48 = vld [vmem:[#allocation55_spill] sm:$0xff] }
 0x1d5   : > { %v2184_v51 = vrot.slane %v2182_v16, 1  ;;  %v7241_v16 = vld [vmem:[#allocation33_spill] sm:$0xff] }
 0x1d6   : > { %v2087_v2 = vpop.f32.mrf.mxu3 }
 0x1d7   : > { %v2149_v38 = vadd.f32 %v2087_v2, %v1927_v22  ;;  %v1867_v12 = vpop.f32.mrf.mxu2 }
 0x1d8   : > { %v2234_v11 = vpop.f32.mrf.mxu0  ;;  %v1400_v53 = vpop.f32.mrf.mxu1 }
 0x1d9   : > { %v6448_v31 = vadd.f32 %v2234_v11, %v2149_v38  ;;  %v1401_v29 = vadd.f32 %v1400_v53, %v7230_v32  ;;  %v7234_v53 = vld [vmem:[#allocation18_spill] sm:$0xff]  ;;  %v7235_v32 = vld [vmem:[#allocation29_spill] sm:$0xff] }
 0x1db   : > { %4385 = vmatmul.msk.bf16.gmra.mxu0 %vm1163_vm3, %v6454_v40  ;;  %v1928_v39 = vadd.f32 %v1867_v12, %v1401_v29  ;;  %v2185_v12 = vsel %vm1030_vm2, %v6335_v24, %v2184_v51  ;;  %v7236_v29 = vpack.c.bf16 %v7234_v53, %v7235_v32  ;;  %v7239_v24 = vld [vmem:[#allocation26_spill] sm:$0xff]  ;;  %v7243_v51 = vld [vmem:[#allocation25_spill] sm:$0xff]  ;;  %v7246_v32 = vld [vmem:[#allocation35_spill] sm:$0xff] }
 0x1dc   : > { %4352 = vmatmul.msk.bf16.gmra.mxu2 %vm1163_vm3, %v1774_v37 }
 0x1de   : > { %v2089_v18 = vpop.f32.mrf.mxu3 }
 0x1df   : > { %v2150_v54 = vadd.f32 %v2089_v18, %v1928_v39  ;;  %v1870_v15 = vpop.f32.mrf.mxu2  ;;  %v7238_v18 = vld [vmem:[#allocation32_spill] sm:$0xff] }
 0x1e0   : > { %v2236_v55 = vpop.f32.mrf.mxu0  ;;  %v1403_v33 = vpop.f32.mrf.mxu1 }
 0x1e1   : > { %v6470_v6 = vadd.f32 %v2236_v55, %v2150_v54  ;;  %v1404_v19 = vadd.f32 %v1403_v33, %v7232_v62  ;;  %v7240_v62 = vld [vmem:[#allocation62_spill] sm:$0xff] }
 0x1e3   : > { %4335 = vmatmul.msk.bf16.gmra.mxu1 %vm1163_vm3, %v1009_v35  ;;  %4369 = vmatmul.msk.bf16.gmra.mxu3 %vm1163_vm3, %v1994_v17  ;;  %v1929_v3 = vadd.f32 %v1870_v15, %v1404_v19 }
 0x1e6   : > { %v2092_v63 = vpop.f32.mrf.mxu3 }
 0x1e7   : > { %v2151_v34 = vadd.f32 %v2092_v63, %v1929_v3  ;;  %v1872_v49 = vpop.f32.mrf.mxu2  ;;  %v7242_v63 = vld [vmem:[#allocation34_spill] sm:$0xff] }
 0x1e8   : > { %v2239_v25 = vpop.f32.mrf.mxu0  ;;  %v1405_v22 = vpop.f32.mrf.mxu1 }
 0x1e9   : > { %v6475_v2 = vadd.f32 %v2239_v25, %v2151_v34  ;;  %v1406_v38 = vadd.f32 %v1405_v22, %v7233_v60  ;;  %v7244_v34 = vpack.c.bf16 %v7242_v63, %v7243_v51  ;;  %v7253_v51 = vld [vmem:[#allocation78_spill] sm:$0xff] }
 0x1eb   : > { %4386 = vmatmul.msk.bf16.gmra.mxu0 %vm1163_vm3, %v2185_v12  ;;  %v1930_v11 = vadd.f32 %v1872_v49, %v1406_v38 }
 0x1ec   : > { %4405 = vmatmul.msk.bf16.vlgmr.msra.gmra.mxu2 %vm1163_vm3, %v7236_v29  ;;  %v7247_v29 = vld [vmem:[#allocation31_spill] sm:$0xff] }
 0x1ee   : > { %v2094_v47 = vpop.f32.mrf.mxu3 }
 0x1ef   : > { %v2152_v8 = vadd.f32 %v2094_v47, %v1930_v11  ;;  %v1875_v37 = vpop.f32.mrf.mxu2  ;;  %v7245_v11 = vld [vmem:[#allocation69_spill] sm:$0xff] }
 0x1f0   : > { %v2241_v39 = vpop.f32.mrf.mxu0  ;;  %v1408_v46 = vpop.f32.mrf.mxu1 }
 0x1f1   : > { %v6485_v21 = vadd.f32 %v2241_v39, %v2152_v8  ;;  %v1409_v59 = vadd.f32 %v1408_v46, %v7237_v48 }
 0x1f3   : > { %4388 = vmatmul.msk.bf16.vlgmr.msra.gmra.mxu1 %vm1163_vm3, %v7238_v18  ;;  %4422 = vmatmul.msk.bf16.vlgmr.msra.gmra.mxu3 %vm1163_vm3, %v7239_v24  ;;  %v1931_v41 = vadd.f32 %v1875_v37, %v1409_v59  ;;  %v7248_v18 = vld [vmem:[#allocation5_spill] sm:$0xff] }
 0x1f6   : > { %v2097_v54 = vpop.f32.mrf.mxu3 }
 0x1f7   : > { %v2153_v15 = vadd.f32 %v2097_v54, %v1931_v41  ;;  %v1877_v55 = vpop.f32.mrf.mxu2  ;;  %v7249_v41 = vld [vmem:[#allocation36_spill] sm:$0xff] }
 0x1f8   : > { %v2244_v35 = vpop.f32.mrf.mxu0  ;;  %v1410_v17 = vpop.f32.mrf.mxu1 }
 0x1f9   : > { %v6492_v33 = vadd.f32 %v2244_v35, %v2153_v15  ;;  %v1411_v19 = vadd.f32 %v1410_v17, %v7240_v62  ;;  %v7250_v15 = vld [vmem:[#allocation37_spill] sm:$0xff] }
 0x1fb   : > { %4439 = vmatmul.msk.bf16.vlgmr.msra.gmra.mxu0 %vm1163_vm3, %v7241_v16  ;;  %v1932_v3 = vadd.f32 %v1877_v55, %v1411_v19  ;;  %v7251_v55 = vld [vmem:[#allocation38_spill] sm:$0xff] }
 0x1fc   : > { %4406 = vmatmul.msk.bf16.gmra.mxu2 %vm1163_vm3, %v7244_v34  ;;  %v7252_v35 = vpack.c.bf16 %v7250_v15, %v7251_v55 }
 0x1fe   : > { %v2099_v49 = vpop.f32.mrf.mxu3 }
 0x1ff   : > { %v2154_v25 = vadd.f32 %v2099_v49, %v1932_v3  ;;  %v1880_v22 = vpop.f32.mrf.mxu2  ;;  %v7254_v49 = vld [vmem:[#allocation39_spill] sm:$0xff] }
 0x200   : > { %v2246_v60 = vpop.f32.mrf.mxu0  ;;  %v1413_v38 = vpop.f32.mrf.mxu1 }
 0x201   : > { %v6501_v12 = vadd.f32 %v2246_v60, %v2154_v25  ;;  %v1414_v53 = vadd.f32 %v1413_v38, %v7245_v11  ;;  %v7255_v25 = vld [vmem:[#allocation10_spill] sm:$0xff] }
 0x203   : > { %4389 = vmatmul.msk.bf16.gmra.mxu1 %vm1163_vm3, %v7246_v32  ;;  %4423 = vmatmul.msk.bf16.gmra.mxu3 %vm1163_vm3, %v7247_v29  ;;  %v1933_v47 = vadd.f32 %v1880_v22, %v1414_v53 }
 0x206   : > { %v2102_v8 = vpop.f32.mrf.mxu3 }
 0x207   : > { %v2155_v37 = vadd.f32 %v2102_v8, %v1933_v47  ;;  %v1882_v39 = vpop.f32.mrf.mxu2  ;;  %v7256_v47 = vld [vmem:[#allocation82_spill] sm:$0xff] }
 0x208   : > { %v2249_v46 = vpop.f32.mrf.mxu0  ;;  %v1415_v48 = vpop.f32.mrf.mxu1 }
 0x209   : > { %v6508_v59 = vadd.f32 %v2249_v46, %v2155_v37  ;;  %v1416_v24 = vadd.f32 %v1415_v48, %v7248_v18  ;;  %v7257_v37 = vld [vmem:[#allocation40_spill] sm:$0xff]  ;;  %v7258_v46 = vld [vmem:[#allocation41_spill] sm:$0xff]  ;;  %v7259_v48 = vld [vmem:[#allocation42_spill] sm:$0xff] }
 0x20a   : > { %v7260_v18 = vpack.c.bf16 %v7258_v46, %v7259_v48 }
 0x20b   : > { %4440 = vmatmul.msk.bf16.gmra.mxu0 %vm1163_vm3, %v7249_v41  ;;  %v1934_v54 = vadd.f32 %v1882_v39, %v1416_v24 }
 0x20c   : > { %4407 = vmatmul.msk.bf16.gmra.mxu2 %vm1163_vm3, %v7252_v35 }
 0x20e   : > { %v2104_v17 = vpop.f32.mrf.mxu3 }
 0x20f   : > { %v2156_v62 = vadd.f32 %v2104_v17, %v1934_v54  ;;  %v1885_v19 = vpop.f32.mrf.mxu2  ;;  %v7261_v17 = vld [vmem:[#allocation89_spill] sm:$0xff] }
 0x210   : > { %v2251_v16 = vpop.f32.mrf.mxu0  ;;  %v1418_v3 = vpop.f32.mrf.mxu1 }
 0x211   : > { %v6517_v63 = vadd.f32 %v2251_v16, %v2156_v62  ;;  %v1419_v34 = vadd.f32 %v1418_v3, %v7253_v51  ;;  %v7263_v16 = vld [vmem:[#allocation17_spill] sm:$0xff] }
 0x213   : > { %4390 = vmatmul.msk.bf16.gmra.mxu1 %vm1163_vm3, %v7254_v49  ;;  %4424 = vmatmul.msk.bf16.gmra.mxu3 %vm1163_vm3, %v7255_v25  ;;  %v1935_v22 = vadd.f32 %v1885_v19, %v1419_v34  ;;  %v7262_v19 = vld [vmem:[#allocation43_spill] sm:$0xff] }
 0x216   : > { %v2107_v60 = vpop.f32.mrf.mxu3 }
 0x217   : > { %v2157_v38 = vadd.f32 %v2107_v60, %v1935_v22  ;;  %v1887_v11 = vpop.f32.mrf.mxu2 }
 0x218   : > { %v2254_v53 = vpop.f32.mrf.mxu0  ;;  %v1420_v32 = vpop.f32.mrf.mxu1 }
 0x219   : > { %v6524_v29 = vadd.f32 %v2254_v53, %v2157_v38  ;;  %v1421_v8 = vadd.f32 %v1420_v32, %v7256_v47  ;;  %v7264_v38 = vld [vmem:[#allocation19_spill] sm:$0xff]  ;;  %v7265_v53 = vld [vmem:[#allocation44_spill] sm:$0xff]  ;;  %v7266_v47 = vld [vmem:[#allocation46_spill] sm:$0xff] }
 0x21b   : > { %4441 = vmatmul.msk.bf16.gmra.mxu0 %vm1163_vm3, %v7257_v37  ;;  %v1936_v39 = vadd.f32 %v1887_v11, %v1421_v8  ;;  %v7267_v8 = vld [vmem:[#allocation45_spill] sm:$0xff] }
 0x21c   : > { %4408 = vmatmul.msk.bf16.gmra.mxu2 %vm1163_vm3, %v7260_v18  ;;  %v7268_v37 = vpack.c.bf16 %v7266_v47, %v7267_v8 }
 0x21e   : > { %v2109_v24 = vpop.f32.mrf.mxu3 }
 0x21f   : > { %v2158_v41 = vadd.f32 %v2109_v24, %v1936_v39  ;;  %v1890_v54 = vpop.f32.mrf.mxu2 }
 0x220   : > { %v2256_v15 = vpop.f32.mrf.mxu0  ;;  %v1423_v55 = vpop.f32.mrf.mxu1 }
 0x221   : > { %v6533_v35 = vadd.f32 %v2256_v15, %v2158_v41  ;;  %v1424_v62 = vadd.f32 %v1423_v55, %v7261_v17  ;;  %v7271_v55 = vld [vmem:[#allocation47_spill] sm:$0xff]  ;;  %v7272_v17 = vld [vmem:[#allocation22_spill] sm:$0xff] }
 0x223   : > { %4391 = vmatmul.msk.bf16.gmra.mxu1 %vm1163_vm3, %v7262_v19  ;;  %4425 = vmatmul.msk.bf16.gmra.mxu3 %vm1163_vm3, %v7263_v16  ;;  %v1937_v3 = vadd.f32 %v1890_v54, %v1424_v62  ;;  %v7270_v54 = vld [vmem:[#allocation59_spill] sm:$0xff] }
 0x226   : > { %v2112_v51 = vpop.f32.mrf.mxu3 }
 0x227   : > { %v2159_v34 = vadd.f32 %v2112_v51, %v1937_v3  ;;  %v1892_v49 = vpop.f32.mrf.mxu2 }
 0x228   : > { %v2259_v25 = vpop.f32.mrf.mxu0  ;;  %v1425_v22 = vpop.f32.mrf.mxu1 }
 0x229   : > { %v6540_v60 = vadd.f32 %v2259_v25, %v2159_v34  ;;  %v1426_v11 = vadd.f32 %v1425_v22, %v7264_v38  ;;  %v7274_v25 = vld [vmem:[#allocation66_spill] sm:$0xff]  ;;  %v7275_v38 = vld [vmem:[#allocation48_spill] sm:$0xff] }
 0x22b   : > { %4442 = vmatmul.msk.bf16.gmra.mxu0 %vm1163_vm3, %v7265_v53  ;;  %v1938_v32 = vadd.f32 %v1892_v49, %v1426_v11  ;;  %v7276_v53 = vld [vmem:[#allocation49_spill] sm:$0xff] }
 0x22c   : > { %4409 = vmatmul.msk.bf16.gmra.mxu2 %vm1163_vm3, %v7268_v37 }
 0x22e   : > { %v2114_v39 = vpop.f32.mrf.mxu3 }
 0x22f   : > { %v2160_v46 = vadd.f32 %v2114_v39, %v1938_v32  ;;  %v1895_v48 = vpop.f32.mrf.mxu2  ;;  %v7277_v32 = vld [vmem:[#allocation50_spill] sm:$0xff] }
 0x230   : > { %v2261_v18 = vpop.f32.mrf.mxu0  ;;  %v1428_v24 = vpop.f32.mrf.mxu1  ;;  %v7278_v47 = vpack.c.bf16 %v7276_v53, %v7277_v32  ;;  %v7286_v53 = vld [vmem:[#allocation53_spill] sm:$0xff]  ;;  %v7287_v32 = vld [vmem:[#allocation54_spill] sm:$0xff] }
 0x231   : > { %v6549_v41 = vadd.f32 %v2261_v18, %v2160_v46  ;;  %v1429_v15 = vadd.f32 %v1428_v24, %v7270_v54  ;;  %v7280_v24 = vld [vmem:[#allocation74_spill] sm:$0xff] }
 0x233   : > { %7269 = vst [vmem:[#allocation27_spill] sm:$0xff] %v6549_v41  ;;  %4392 = vmatmul.msk.bf16.gmra.mxu1 %vm1163_vm3, %v7271_v55  ;;  %4426 = vmatmul.msk.bf16.gmra.mxu3 %vm1163_vm3, %v7272_v17  ;;  %v1939_v62 = vadd.f32 %v1895_v48, %v1429_v15  ;;  %v7281_v15 = vld [vmem:[#allocation51_spill] sm:$0xff]  ;;  %v7282_v55 = vld [vmem:[#allocation30_spill] sm:$0xff] }
 0x236   : > { %v2117_v19 = vpop.f32.mrf.mxu3 }
 0x237   : > { %v2161_v16 = vadd.f32 %v2117_v19, %v1939_v62  ;;  %v1897_v3 = vpop.f32.mrf.mxu2 }
 0x238   : > { %v2264_v51 = vpop.f32.mrf.mxu0  ;;  %v1430_v34 = vpop.f32.mrf.mxu1 }
 0x239   : > { %v6556_v49 = vadd.f32 %v2264_v51, %v2161_v16  ;;  %v1431_v22 = vadd.f32 %v1430_v34, %v7274_v25  ;;  %v7284_v25 = vld [vmem:[#allocation77_spill] sm:$0xff] }
 0x23b   : > { %7273 = vst [vmem:[#allocation8_spill] sm:$0xff] %v6556_v49  ;;  %4443 = vmatmul.msk.bf16.gmra.mxu0 %vm1163_vm3, %v7275_v38  ;;  %v1940_v11 = vadd.f32 %v1897_v3, %v1431_v22  ;;  %v7285_v38 = vld [vmem:[#allocation52_spill] sm:$0xff] }
 0x23c   : > { %4410 = vmatmul.msk.bf16.gmra.mxu2 %vm1163_vm3, %v7278_v47  ;;  %v7288_v47 = vpack.c.bf16 %v7286_v53, %v7287_v32  ;;  %v7295_v53 = vld [vmem:[#allocation58_spill] sm:$0xff] }
 0x23e   : > { %v2119_v8 = vpop.f32.mrf.mxu3 }
 0x23f   : > { %v2162_v37 = vadd.f32 %v2119_v8, %v1940_v11  ;;  %v1900_v39 = vpop.f32.mrf.mxu2 }
 0x240   : > { %v2266_v46 = vpop.f32.mrf.mxu0  ;;  %v1433_v48 = vpop.f32.mrf.mxu1 }
 0x241   : > { %v6565_v18 = vadd.f32 %v2266_v46, %v2162_v37  ;;  %v1434_v54 = vadd.f32 %v1433_v48, %v7280_v24 }
 0x243   : > { %7279 = vst [vmem:[#allocation95_spill] sm:$0xff] %v6565_v18  ;;  %4393 = vmatmul.msk.bf16.gmra.mxu1 %vm1163_vm3, %v7281_v15  ;;  %4427 = vmatmul.msk.bf16.gmra.mxu3 %vm1163_vm3, %v7282_v55  ;;  %v1941_v17 = vadd.f32 %v1900_v39, %v1434_v54  ;;  %v7290_v54 = vld [vmem:[#allocation83_spill] sm:$0xff]  ;;  %v7291_v55 = vld [vmem:[#allocation56_spill] sm:$0xff] }
 0x246   : > { %v2122_v62 = vpop.f32.mrf.mxu3 }
 0x247   : > { %v2163_v19 = vadd.f32 %v2122_v62, %v1941_v17  ;;  %v1902_v16 = vpop.f32.mrf.mxu2  ;;  %v7292_v17 = vld [vmem:[#allocation7_spill] sm:$0xff] }
 0x248   : > { %v2269_v3 = vpop.f32.mrf.mxu0  ;;  %v1435_v51 = vpop.f32.mrf.mxu1 }
 0x249   : > { %v6572_v34 = vadd.f32 %v2269_v3, %v2163_v19  ;;  %v1436_v22 = vadd.f32 %v1435_v51, %v7284_v25 }
 0x24b   : > { %7283 = vst [vmem:[#allocation98_spill] sm:$0xff] %v6572_v34  ;;  %4444 = vmatmul.msk.bf16.gmra.mxu0 %vm1163_vm3, %v7285_v38  ;;  %v1942_v11 = vadd.f32 %v1902_v16, %v1436_v22  ;;  %v7294_v38 = vld [vmem:[#allocation90_spill] sm:$0xff] }
 0x24c   : > { %4411 = vmatmul.msk.bf16.gmra.mxu2 %vm1163_vm3, %v7288_v47  ;;  %v7296_v47 = vld [vmem:[#allocation61_spill] sm:$0xff] }
 0x24e   : > { %v2124_v8 = vpop.f32.mrf.mxu3 }
 0x24f   : > { %v2164_v37 = vadd.f32 %v2124_v8, %v1942_v11  ;;  %v1905_v39 = vpop.f32.mrf.mxu2  ;;  %v7297_v8 = vld [vmem:[#allocation60_spill] sm:$0xff] }
 0x250   : > { %v2271_v46 = vpop.f32.mrf.mxu0  ;;  %v1438_v48 = vpop.f32.mrf.mxu1 }
 0x251   : > { %v6581_v24 = vadd.f32 %v2271_v46, %v2164_v37  ;;  %v1439_v15 = vadd.f32 %v1438_v48, %v7290_v54  ;;  %v7298_v37 = vpack.c.bf16 %v7296_v47, %v7297_v8  ;;  %v7304_v8 = vld [vmem:[#allocation63_spill] sm:$0xff] }
 0x253   : > { %7289 = vst [vmem:[#allocation103_spill] sm:$0xff] %v6581_v24  ;;  %4394 = vmatmul.msk.bf16.gmra.mxu1 %vm1163_vm3, %v7291_v55  ;;  %4428 = vmatmul.msk.bf16.gmra.mxu3 %vm1163_vm3, %v7292_v17  ;;  %v1943_v62 = vadd.f32 %v1905_v39, %v1439_v15  ;;  %v7300_v17 = vld [vmem:[#allocation20_spill] sm:$0xff] }
 0x256   : > { %v2127_v19 = vpop.f32.mrf.mxu3 }
 0x257   : > { %v2165_v16 = vadd.f32 %v2127_v19, %v1943_v62  ;;  %v1907_v3 = vpop.f32.mrf.mxu2  ;;  %v7301_v19 = vld [vmem:[#allocation16_spill] sm:$0xff] }
 0x258   : > { %v2274_v51 = vpop.f32.mrf.mxu0  ;;  %v1440_v25 = vpop.f32.mrf.mxu1 }
 0x259   : > { %v6588_v22 = vadd.f32 %v2274_v51, %v2165_v16  ;;  %v1441_v11 = vadd.f32 %v1440_v25, %v7294_v38 }
 0x25b   : > { %7293 = vst [vmem:[#allocation11_spill] sm:$0xff] %v6588_v22  ;;  %4445 = vmatmul.msk.bf16.gmra.mxu0 %vm1163_vm3, %v7295_v53  ;;  %v1944_v32 = vadd.f32 %v1907_v3, %v1441_v11 }
 0x25c   : > { %4412 = vmatmul.msk.bf16.gmra.mxu2 %vm1163_vm3, %v7298_v37 }
 0x25e   : > { %v2129_v46 = vpop.f32.mrf.mxu3 }
 0x25f   : > { %v2166_v39 = vadd.f32 %v2129_v46, %v1944_v32  ;;  %v1910_v48 = vpop.f32.mrf.mxu2  ;;  %v7303_v32 = vld [vmem:[#allocation102_spill] sm:$0xff]  ;;  %v7305_v46 = vld [vmem:[#allocation65_spill] sm:$0xff] }
 0x260   : > { %v2276_v54 = vpop.f32.mrf.mxu0  ;;  %v1443_v15 = vpop.f32.mrf.mxu1 }
 0x261   : > { %v6597_v55 = vadd.f32 %v2276_v54, %v2166_v39  ;;  %v1444_v62 = vadd.f32 %v1443_v15, %v7300_v17  ;;  %v7306_v39 = vld [vmem:[#allocation67_spill] sm:$0xff] }
 0x262   : > { %v7307_v54 = vpack.c.bf16 %v7305_v46, %v7306_v39 }
 0x263   : > { %7299 = vst [vmem:[#allocation94_spill] sm:$0xff] %v6597_v55  ;;  %4395 = vmatmul.msk.bf16.gmra.mxu1 %vm1163_vm3, %v7301_v19  ;;  %4429 = vmatmul.msk.bf16.gmra.mxu3 %vm1163_vm3, %v7204_v27  ;;  %v1945_v16 = vadd.f32 %v1910_v48, %v1444_v62 }
 0x266   : > { %v2132_v3 = vpop.f32.mrf.mxu3 }
 0x267   : > { %v2167_v51 = vadd.f32 %v2132_v3, %v1945_v16  ;;  %v1912_v25 = vpop.f32.mrf.mxu2  ;;  %v7309_v16 = vld [vmem:[#allocation68_spill] sm:$0xff] }
 0x268   : > { %v2279_v38 = vpop.f32.mrf.mxu0  ;;  %v1445_v11 = vpop.f32.mrf.mxu1 }
 0x269   : > { %v6604_v53 = vadd.f32 %v2279_v38, %v2167_v51  ;;  %v1446_v47 = vadd.f32 %v1445_v11, %v7303_v32  ;;  %v7310_v32 = vld [vmem:[#allocation70_spill] sm:$0xff] }
 0x26b   : > { %7302 = vst [vmem:[#allocation75_spill] sm:$0xff] %v6604_v53  ;;  %4446 = vmatmul.msk.bf16.gmra.mxu0 %vm1163_vm3, %v7304_v8  ;;  %v1946_v37 = vadd.f32 %v1912_v25, %v1446_v47  ;;  %v7311_v47 = vld [vmem:[#allocation72_spill] sm:$0xff]  ;;  %v7312_v8 = vld [vmem:[#allocation73_spill] sm:$0xff] }
 0x26c   : > { %4413 = vmatmul.msk.bf16.gmra.mxu2 %vm1163_vm3, %v7307_v54  ;;  %v7315_v53 = vld [vmem:[#allocation9_spill] sm:$0xff] }
 0x26e   : > { %v2134_v27 = vpop.f32.mrf.mxu3 }
 0x26f   : > { %v2168_v48 = vadd.f32 %v2134_v27, %v1946_v37  ;;  %v2700_v15 = vpop.f32.mrf.mxu2  ;;  %v7313_v37 = vpack.c.bf16 %v7311_v47, %v7312_v8 }
 0x270   : > { %v2281_v17 = vpop.f32.mrf.mxu0  ;;  %v2478_v19 = vpop.f32.mrf.mxu1 }
 0x271   : > { %v6613_v62 = vadd.f32 %v2281_v17, %v2168_v48  ;;  %v2558_v11 = vadd.f32 %v2478_v19, %v6233_v43 }
 0x273   : > { %7308 = vst [vmem:[#allocation14_spill] sm:$0xff] %v6613_v62  ;;  %4396 = vmatmul.msk.bf16.gmra.mxu1 %vm1163_vm3, %v7309_v16  ;;  %4430 = vmatmul.msk.bf16.gmra.mxu3 %vm1163_vm3, %v7209_v5  ;;  %v2780_v39 = vadd.f32 %v2700_v15, %v2558_v11  ;;  %v7314_v16 = vld [vmem:[#allocation76_spill] sm:$0xff] }
 0x276   : > { %v2847_v3 = vpop.f32.mrf.mxu3 }
 0x277   : > { %v2702_v51 = vpop.f32.mrf.mxu2  ;;  %v2927_v48 = vadd.f32 %v2847_v3, %v2780_v39 }
 0x278   : > { %v3121_v25 = vpop.f32.mrf.mxu0  ;;  %v2480_v38 = vpop.f32.mrf.mxu1 }
 0x279   : > { %v2559_v43 = vadd.f32 %v2480_v38, %v6276_v4  ;;  %v3201_v19 = vadd.f32 %v3121_v25, %v2927_v48  ;;  %v7316_v38 = vld [vmem:[#allocation80_spill] sm:$0xff] }
 0x27b   : > { %4447 = vmatmul.msk.bf16.gmra.mxu0 %vm1163_vm3, %v7310_v32  ;;  %v6632_v32 = vld [vmem:[#allocation2] ss:$0 sm:$0xff]  ;;  %v2781_v11 = vadd.f32 %v2702_v51, %v2559_v43 }
 0x27c   : > { %4414 = vmatmul.msk.bf16.gmra.mxu2 %vm1163_vm3, %v7313_v37  ;;  %v3237_v39 = vadd.f32 %v6632_v32, %v3201_v19 }
 0x27e   : > { %v2849_v46 = vpop.f32.mrf.mxu3  ;;  %v3269_v4 = vmax.f32 %v3237_v39, 0.0 }
 0x27f   : > { %v2705_v54 = vpop.f32.mrf.mxu2  ;;  %v2928_v62 = vadd.f32 %v2849_v46, %v2781_v11 }
 0x280   : > { %v3123_v27 = vpop.f32.mrf.mxu0  ;;  %v2483_v5 = vpop.f32.mrf.mxu1 }
 0x281   : > { %v2560_v17 = vadd.f32 %v2483_v5, %v6295_v14 }
 0x283   : > { %4397 = vmatmul.msk.bf16.gmra.mxu1 %vm1163_vm3, %v7314_v16  ;;  %4431 = vmatmul.msk.bf16.gmra.mxu3 %vm1163_vm3, %v7211_v36  ;;  %v2782_v47 = vadd.f32 %v2705_v54, %v2560_v17  ;;  %v7317_v54 = vld [vmem:[#allocation81_spill] sm:$0xff]  ;;  %v3202_v17 = vadd.f32 %v3123_v27, %v2928_v62 }
 0x284   : > { %v7318_v48 = vpack.c.bf16 %v7316_v38, %v7317_v54 }
 0x285   : > { %v3238_v39 = vadd.f32 %v6632_v32, %v3202_v17 }
 0x286   : > { %v2852_v8 = vpop.f32.mrf.mxu3 }
 0x287   : > { %v2929_v15 = vadd.f32 %v2852_v8, %v2782_v47  ;;  %v2707_v37 = vpop.f32.mrf.mxu2 }
 0x288   : > { %v3126_v3 = vpop.f32.mrf.mxu0  ;;  %v2485_v14 = vpop.f32.mrf.mxu1 }
 0x289   : > { %v3203_v5 = vadd.f32 %v3126_v3, %v2929_v15  ;;  %v2561_v16 = vadd.f32 %v2485_v14, %v6338_v57 }
 0x28b   : > { %v3239_v36 = vadd.f32 %v6632_v32, %v3203_v5  ;;  %4448 = vmatmul.msk.bf16.gmra.mxu0 %vm1163_vm3, %v7315_v53  ;;  %v2783_v51 = vadd.f32 %v2707_v37, %v2561_v16  ;;  %v7319_v37 = vld [vmem:[#allocation84_spill] sm:$0xff] }
 0x28c   : > { %4415 = vmatmul.msk.bf16.gmra.mxu2 %vm1163_vm3, %v7318_v48 }
 0x28d   : > { %v3271_v25 = vmax.f32 %v3239_v36, 0.0 }
 0x28e   : > { %v2854_v43 = vpop.f32.mrf.mxu3 }
 0x28f   : > { %v3301_v19 = vmax.f32 %v3269_v4, %v3271_v25  ;;  %v2930_v47 = vadd.f32 %v2854_v43, %v2783_v51  ;;  %v6643_v46 = vpop.f32.mrf.mxu2  ;;  %v3270_v25 = vmax.f32 %v3238_v39, 0.0 }
 0x290   : > { %v3128_v57 = vpop.f32.mrf.mxu0  ;;  %v2488_v53 = vpop.f32.mrf.mxu1 }
 0x291   : > { %v3333_v8 = vrot.slane %v3301_v19, 2  ;;  %v3334_v15 = vrot.slane %v3301_v19, 4  ;;  %v3335_v11 = vrot.slane %v3301_v19, 6  ;;  %v4455_v3 = vrot.slane %v3301_v19, 9 }
 0x292   : > { %v3204_v14 = vadd.f32 %v3128_v57, %v2930_v47 }
 0x293   : > { %v4456_v5 = vrot.slane %v3333_v8, 9  ;;  %v4457_v36 = vrot.slane %v3334_v15, 9  ;;  %v4458_v38 = vrot.slane %v3335_v11, 9  ;;  %v3621_v54 = vmax.f32 %v3301_v19, %v4455_v3  ;;  %4398 = vmatmul.msk.bf16.gmra.mxu1 %vm1163_vm3, %v7319_v37  ;;  %4432 = vmatmul.msk.bf16.gmra.mxu3 %vm1163_vm3, %v7216_v26 }
 0x294   : > { %v3240_v62 = vadd.f32 %v6632_v32, %v3204_v14 }
 0x295   : > { %v3622_v27 = vmax.f32 %v3333_v8, %v4456_v5  ;;  %v3623_v16 = vmax.f32 %v3334_v15, %v4457_v36  ;;  %v3624_v4 = vmax.f32 %v3335_v11, %v4458_v38  ;;  %v3916_v48 = vmul.f32 %v3621_v54, %v3621_v54 }
 0x296   : > { %v3272_v51 = vmax.f32 %v3240_v62, 0.0  ;;  %v2857_v17 = vpop.f32.mrf.mxu3  ;;  %v3749_v47 = vperm.slane %v3621_v54, 0  ;;  %v2562_v11 = vadd.f32 %v2488_v53, %v6354_v9 }
 0x297   : > { %v3750_v43 = vperm.slane %v3622_v27, 0  ;;  %v3917_v19 = vmul.f32 %v3622_v27, %v3622_v27  ;;  %v3918_v57 = vmul.f32 %v3623_v16, %v3623_v16  ;;  %v3919_v3 = vmul.f32 %v3624_v4, %v3624_v4  ;;  %v6651_v26 = vpop.f32.mrf.mxu2 }
 0x298   : > { %v3302_v37 = vmax.f32 %v3270_v25, %v3272_v51  ;;  %v6653_v14 = vpop.f32.mrf.mxu0  ;;  %v4044_v8 = vperm.slane %v3916_v48, 0  ;;  %v2490_v39 = vpop.f32.mrf.mxu1  ;;  %v3751_v5 = vperm.slane %v3623_v16, 0  ;;  %v7320_v51 = vld [vmem:[#allocation86_spill] sm:$0xff]  ;;  %v2784_v34 = vadd.f32 %v6643_v46, %v2562_v11 }
 0x299   : > { %v4045_v15 = vperm.slane %v3917_v19, 0  ;;  %v3814_v36 = vsel %vm3813_vm5, %v3750_v43, %v3749_v47  ;;  %v4046_v38 = vperm.slane %v3918_v57, 0  ;;  %v4047_v27 = vperm.slane %v3919_v3, 0  ;;  %v7321_v43 = vld [vmem:[#allocation87_spill] sm:$0xff]  ;;  %v7322_v47 = vld [vmem:[#allocation88_spill] sm:$0xff] }
 0x29a   : > { %v3336_v62 = vrot.slane %v3302_v37, 2  ;;  %v3337_v55 = vrot.slane %v3302_v37, 4  ;;  %v3338_v25 = vrot.slane %v3302_v37, 6  ;;  %v4459_v19 = vrot.slane %v3302_v37, 9 }
 0x29b   : > { %v4108_v54 = vsel %vm3813_vm5, %v4045_v15, %v4044_v8  ;;  %4449 = vmatmul.msk.bf16.gmra.mxu0 %vm1163_vm3, %v7320_v51  ;;  %v7323_v57 = vpack.c.bf16 %v7321_v43, %v7322_v47  ;;  %v3816_v3 = vsel %vm3815_vm6, %v3751_v5, %v3814_v36 }
 0x29c   : > { %v4109_v48 = vsel %vm3815_vm6, %v4046_v38, %v4108_v54  ;;  %v4460_v22 = vrot.slane %v3336_v62, 9  ;;  %v4461_v53 = vrot.slane %v3337_v55, 9  ;;  %v4462_v16 = vrot.slane %v3338_v25, 9 }
 0x29d   : > { %v4110_v9 = vsel %vm3817_vm7, %v4047_v27, %v4109_v48  ;;  %4416 = vmatmul.msk.bf16.gmra.mxu2 %vm1163_vm3, %v7323_v57  ;;  %v3625_v8 = vmax.f32 %v3302_v37, %v4459_v19  ;;  %v3752_v54 = vperm.slane %v3624_v4, 0  ;;  %v2563_v19 = vadd.f32 %v2490_v39, %v6371_v23 }
 0x29e   : > { %v3626_v15 = vmax.f32 %v3336_v62, %v4460_v22  ;;  %v2859_v38 = vpop.f32.mrf.mxu3  ;;  %v3627_v51 = vmax.f32 %v3337_v55, %v4461_v53  ;;  %v3628_v24 = vmax.f32 %v3338_v25, %v4462_v16  ;;  %v2931_v62 = vadd.f32 %v2857_v17, %v2784_v34  ;;  %v7324_v53 = vld [vmem:[#allocation91_spill] sm:$0xff] }
 0x29f   : > { %v3753_v27 = vperm.slane %v3625_v8, 0  ;;  %v3920_v18 = vmul.f32 %v3625_v8, %v3625_v8  ;;  %v2715_v41 = vpop.f32.mrf.mxu2  ;;  %v3818_v47 = vsel %vm3817_vm7, %v3752_v54, %v3816_v3 }
 0x2a0   : > { %v3754_v48 = vperm.slane %v3626_v15, 0  ;;  %v3921_v49 = vmul.f32 %v3626_v15, %v3626_v15  ;;  %v3133_v43 = vpop.f32.mrf.mxu0  ;;  %v3755_v57 = vperm.slane %v3627_v51, 0  ;;  %v3922_v5 = vmul.f32 %v3627_v51, %v3627_v51  ;;  %v2493_v22 = vpop.f32.mrf.mxu1 }
 0x2a1   : > { %v3923_v37 = vmul.f32 %v3628_v24, %v3628_v24  ;;  %v3820_v36 = vsel %vm3819_vm8, %v3753_v27, %v3818_v47  ;;  %v4048_v4 = vperm.slane %v3920_v18, 0  ;;  %v3756_v46 = vperm.slane %v3628_v24, 0 }
 0x2a2   : > { %v4049_v55 = vperm.slane %v3921_v49, 0  ;;  %v3822_v11 = vsel %vm3821_vm9, %v3754_v48, %v3820_v36  ;;  %v4050_v25 = vperm.slane %v3922_v5, 0  ;;  %v2564_v34 = vadd.f32 %v2493_v22, %v6378_v56  ;;  %v7325_v5 = vld [vmem:[#allocation92_spill] sm:$0xff]  ;;  %v7327_v22 = vld [vmem:[#allocation97_spill] sm:$0xff] }
 0x2a3   : > { %4399 = vmatmul.msk.bf16.gmra.mxu1 %vm1163_vm3, %v7324_v53  ;;  %4433 = vmatmul.msk.bf16.gmra.mxu3 %vm1163_vm3, %v7225_v50  ;;  %v3824_v49 = vsel %vm3823_vm10, %v3755_v57, %v3822_v11  ;;  %v4111_v18 = vsel %vm3819_vm8, %v4048_v4, %v4110_v9  ;;  %v4051_v24 = vperm.slane %v3923_v37, 0  ;;  %v3205_v39 = vadd.f32 %v6653_v14, %v2931_v62  ;;  %v7326_v37 = vld [vmem:[#allocation96_spill] sm:$0xff] }
 0x2a4   : > { %v6686_v17 = vsel %vm3825_vm11, %v3756_v46, %v3824_v49  ;;  %v4112_v16 = vsel %vm3821_vm9, %v4049_v55, %v4111_v18  ;;  %v2786_v50 = vadd.f32 %v2715_v41, %v2564_v34  ;;  %v2785_v56 = vadd.f32 %v6651_v26, %v2563_v19 }
 0x2a5   : > { %3885 = vst.msk [vmem:[%s6674_s11] sm:$0xff] %vm3884_vm12, %v6686_v17  ;;  %v4113_v23 = vsel %vm3823_vm10, %v4050_v25, %v4112_v16  ;;  %v3241_v48 = vadd.f32 %v6632_v32, %v3205_v39  ;;  %v7328_v36 = vpack.c.bf16 %v7326_v37, %v7327_v22  ;;  %v7329_v16 = vld [vmem:[#allocation24_spill] sm:$0xff] }
 0x2a6   : > { %v2862_v3 = vpop.f32.mrf.mxu3  ;;  %v6695_v8 = vsel %vm3825_vm11, %v4051_v24, %v4113_v23  ;;  %v2932_v51 = vadd.f32 %v2859_v38, %v2785_v56 }
 0x2a7   : > { %v2933_v9 = vadd.f32 %v2862_v3, %v2786_v50  ;;  %v2717_v15 = vpop.f32.mrf.mxu2  ;;  %v3273_v4 = vmax.f32 %v3241_v48, 0.0 }
 0x2a8   : > { %v3136_v54 = vpop.f32.mrf.mxu0  ;;  %v2495_v27 = vpop.f32.mrf.mxu1  ;;  %v3206_v14 = vadd.f32 %v3133_v43, %v2932_v51 }
 0x2a9   : > { %v2565_v47 = vadd.f32 %v2495_v27, %v6397_v44  ;;  %v3207_v57 = vadd.f32 %v3136_v54, %v2933_v9 }
 0x2aa   : > { %v3242_v25 = vadd.f32 %v6632_v32, %v3206_v14 }
 0x2ab   : > { %4450 = vmatmul.msk.bf16.gmra.mxu0 %vm1163_vm3, %v7325_v5  ;;  %v3243_v41 = vadd.f32 %v6632_v32, %v3207_v57  ;;  %v2787_v26 = vadd.f32 %v2717_v15, %v2565_v47 }
 0x2ac   : > { %v3274_v56 = vmax.f32 %v3242_v25, 0.0 }
 0x2ad   : > { %4417 = vmatmul.msk.bf16.gmra.mxu2 %vm1163_vm3, %v7328_v36  ;;  %v3275_v38 = vmax.f32 %v3243_v41, 0.0 }
 0x2ae   : > { %v2864_v55 = vpop.f32.mrf.mxu3 }
 0x2af   : > { %v2934_v62 = vadd.f32 %v2864_v55, %v2787_v26  ;;  %v3303_v46 = vmax.f32 %v3273_v4, %v3275_v38  ;;  %v2720_v11 = vpop.f32.mrf.mxu2 }
 0x2b0   : > { %v3138_v44 = vpop.f32.mrf.mxu0  ;;  %v2498_v19 = vpop.f32.mrf.mxu1 }
 0x2b1   : > { %v3208_v53 = vadd.f32 %v3138_v44, %v2934_v62  ;;  %v3339_v49 = vrot.slane %v3303_v46, 2  ;;  %v3340_v18 = vrot.slane %v3303_v46, 4  ;;  %v3341_v43 = vrot.slane %v3303_v46, 6 }
 0x2b2   : > { %v4463_v34 = vrot.slane %v3303_v46, 9  ;;  %v2566_v47 = vadd.f32 %v2498_v19, %v6402_v30 }
 0x2b3   : > { %v3244_v24 = vadd.f32 %v6632_v32, %v3208_v53  ;;  %4400 = vmatmul.msk.bf16.gmra.mxu1 %vm1163_vm3, %v7329_v16  ;;  %4434 = vmatmul.msk.bf16.gmra.mxu3 %vm1163_vm3, %v7228_v61  ;;  %v4464_v23 = vrot.slane %v3339_v49, 9  ;;  %v4465_v39 = vrot.slane %v3340_v18, 9  ;;  %v4466_v50 = vrot.slane %v3341_v43, 9 }
 0x2b4   : > { %v3629_v3 = vmax.f32 %v3303_v46, %v4463_v34 }
 0x2b5   : > { %v3276_v9 = vmax.f32 %v3244_v24, 0.0  ;;  %v3630_v15 = vmax.f32 %v3339_v49, %v4464_v23  ;;  %v3631_v54 = vmax.f32 %v3340_v18, %v4465_v39  ;;  %v3632_v51 = vmax.f32 %v3341_v43, %v4466_v50 }
 0x2b6   : > { %v2867_v27 = vpop.f32.mrf.mxu3  ;;  %v3924_v48 = vmul.f32 %v3629_v3, %v3629_v3  ;;  %v3757_v5 = vperm.slane %v3629_v3, 0  ;;  %v7330_v50 = vpack.c.bf16 %v6201_v58, %v6197_v20 }
 0x2b7   : > { %v3304_v57 = vmax.f32 %v3274_v56, %v3276_v9  ;;  %v3758_v41 = vperm.slane %v3630_v15, 0  ;;  %v3759_v14 = vperm.slane %v3631_v54, 0  ;;  %v3925_v37 = vmul.f32 %v3630_v15, %v3630_v15  ;;  %v6714_v22 = vpop.f32.mrf.mxu2 }
 0x2b8   : > { %v6716_v61 = vpop.f32.mrf.mxu0  ;;  %v3926_v36 = vmul.f32 %v3631_v54, %v3631_v54  ;;  %v3927_v26 = vmul.f32 %v3632_v51, %v3632_v51  ;;  %v4052_v4 = vperm.slane %v3924_v48, 0  ;;  %v2500_v55 = vpop.f32.mrf.mxu1  ;;  %v3760_v24 = vperm.slane %v3632_v51, 0 }
 0x2b9   : > { %v3342_v38 = vrot.slane %v3304_v57, 2  ;;  %v3827_v62 = vsel %vm3813_vm5, %v3758_v41, %v3757_v5  ;;  %v4053_v46 = vperm.slane %v3925_v37, 0  ;;  %v3343_v44 = vrot.slane %v3304_v57, 4 }
 0x2ba   : > { %v3344_v25 = vrot.slane %v3304_v57, 6  ;;  %v3828_v30 = vsel %vm3815_vm6, %v3759_v14, %v3827_v62  ;;  %v4054_v19 = vperm.slane %v3926_v36, 0  ;;  %v4467_v53 = vrot.slane %v3304_v57, 9 }
 0x2bb   : > { %4451 = vmatmul.msk.bf16.gmra.mxu0 %vm1163_vm3, %v6188_v45  ;;  %v4055_v49 = vperm.slane %v3927_v26, 0  ;;  %v4115_v18 = vsel %vm3813_vm5, %v4053_v46, %v4052_v4  ;;  %v4468_v43 = vrot.slane %v3342_v38, 9  ;;  %v4469_v34 = vrot.slane %v3343_v44, 9 }
 0x2bc   : > { %v4116_v16 = vsel %vm3815_vm6, %v4054_v19, %v4115_v18  ;;  %v4470_v23 = vrot.slane %v3344_v25, 9  ;;  %v3633_v39 = vmax.f32 %v3304_v57, %v4467_v53  ;;  %v2788_v45 = vadd.f32 %v2720_v11, %v2566_v47  ;;  %v7331_v53 = vld [vmem:[#allocation104_spill] sm:$0xff] }
 0x2bd   : > { %4418 = vmatmul.msk.bf16.gmra.mxu2 %vm1163_vm3, %v7330_v50  ;;  %v4117_v3 = vsel %vm3817_vm7, %v4055_v49, %v4116_v16  ;;  %v3634_v56 = vmax.f32 %v3342_v38, %v4468_v43  ;;  %v3635_v9 = vmax.f32 %v3343_v44, %v4469_v34  ;;  %v3829_v54 = vsel %vm3817_vm7, %v3760_v24, %v3828_v30 }
 0x2be   : > { %v2869_v15 = vpop.f32.mrf.mxu3  ;;  %v3636_v48 = vmax.f32 %v3344_v25, %v4470_v23  ;;  %v3761_v5 = vperm.slane %v3633_v39, 0  ;;  %v3928_v51 = vmul.f32 %v3633_v39, %v3633_v39  ;;  %v2935_v62 = vadd.f32 %v2867_v27, %v2788_v45 }
 0x2bf   : > { %v3762_v41 = vperm.slane %v3634_v56, 0  ;;  %v3763_v14 = vperm.slane %v3635_v9, 0  ;;  %v3929_v37 = vmul.f32 %v3634_v56, %v3634_v56  ;;  %v3930_v57 = vmul.f32 %v3635_v9, %v3635_v9  ;;  %v2725_v36 = vpop.f32.mrf.mxu2 }
 0x2c0   : > { %v3143_v26 = vpop.f32.mrf.mxu0  ;;  %v3830_v20 = vsel %vm3819_vm8, %v3761_v5, %v3829_v54  ;;  %v3931_v58 = vmul.f32 %v3636_v48, %v3636_v48  ;;  %v4056_v4 = vperm.slane %v3928_v51, 0  ;;  %v2503_v38 = vpop.f32.mrf.mxu1  ;;  %v3764_v11 = vperm.slane %v3636_v48, 0 }
 0x2c1   : > { %v3831_v47 = vsel %vm3821_vm9, %v3762_v41, %v3830_v20  ;;  %v4057_v46 = vperm.slane %v3929_v37, 0  ;;  %v4058_v44 = vperm.slane %v3930_v57, 0  ;;  %v2567_v19 = vadd.f32 %v2500_v55, %v6421_v42  ;;  %v7332_v41 = vld [vmem:[#allocation105_spill] sm:$0xff]  ;;  %v7334_v57 = vld [vmem:[#allocation106_spill] sm:$0xff] }
 0x2c2   : > { %v3832_v25 = vsel %vm3823_vm10, %v3763_v14, %v3831_v47  ;;  %v4118_v30 = vsel %vm3819_vm8, %v4056_v4, %v4117_v3  ;;  %v4059_v49 = vperm.slane %v3931_v58, 0  ;;  %v2568_v43 = vadd.f32 %v2503_v38, %v6426_v7  ;;  %v7333_v14 = vld [vmem:[#allocation110_spill] sm:$0xff] }
 0x2c3   : > { %4401 = vmatmul.msk.bf16.gmra.mxu1 %vm1163_vm3, %v7331_v53  ;;  %4435 = vmatmul.msk.bf16.gmra.mxu3 %vm1163_vm3, %v6454_v40  ;;  %v3833_v27 = vsel %vm3825_vm11, %v3764_v11, %v3832_v25  ;;  %v4119_v18 = vsel %vm3821_vm9, %v4057_v46, %v4118_v30  ;;  %v3893_v34 = vsel %vm3884_vm12, %v6686_v17, 0.0  ;;  %v3209_v16 = vadd.f32 %v6716_v61, %v2935_v62 }
 0x2c4   : > { %3886 = vst.msk [vmem:[%s6674_s11 + $0x8] sm:$0xff] %vm3884_vm12, %v3833_v27  ;;  %v3894_v42 = vsel %vm3884_vm12, %v3833_v27, 0.0  ;;  %v4120_v55 = vsel %vm3823_vm10, %v4058_v44, %v4119_v18  ;;  %v2790_v23 = vadd.f32 %v2725_v36, %v2568_v43  ;;  %v4172_v7 = vsel %vm3884_vm12, %v6695_v8, 0.0  ;;  %v7335_v36 = vld [vmem:[#allocation107_spill] sm:$0xff]  ;;  %v7337_v18 = vld [vmem:[#allocation13_spill] sm:$0xff] }
 0x2c5   : > { %v6748_v24 = vadd.f32 %v3894_v42, %v3893_v34  ;;  %v4121_v40 = vsel %vm3825_vm11, %v4059_v49, %v4120_v55  ;;  %v2789_v17 = vadd.f32 %v6714_v22, %v2567_v19  ;;  %v3245_v5 = vadd.f32 %v6632_v32, %v3209_v16 }
 0x2c6   : > { %v2872_v39 = vpop.f32.mrf.mxu3  ;;  %v4173_v50 = vsel %vm3884_vm12, %v4121_v40, 0.0  ;;  %v2813_v22 = vpack.c.bf16 %v7333_v14, %v7333_v14  ;;  %v7336_v20 = vpack.c.bf16 %v7334_v57, %v7335_v36  ;;  %v2821_v40 = vshrl.u32 %v6314_v1, 16 }
 0x2c7   : > { %v6756_v3 = vadd.f32 %v4173_v50, %v4172_v7  ;;  %v2937_v56 = vadd.f32 %v2872_v39, %v2790_v23  ;;  %v2727_v9 = vpop.f32.mrf.mxu2  ;;  %v2936_v54 = vadd.f32 %v2869_v15, %v2789_v17  ;;  %v3277_v58 = vmax.f32 %v3245_v5, 0.0 }
 0x2c8   : > { %v3146_v45 = vpop.f32.mrf.mxu0  ;;  %v2505_v48 = vpop.f32.mrf.mxu1  ;;  %v2825_v46 = vshll.u32 %v2813_v22, 16 }
 0x2c9   : > { %v2569_v61 = vadd.f32 %v2505_v48, %v6441_v52  ;;  %v3211_v51 = vadd.f32 %v3146_v45, %v2937_v56  ;;  %v3210_v37 = vadd.f32 %v3143_v26, %v2936_v54  ;;  %v2823_v48 = vor.u32 %v2821_v40, %v6332_v28 }
 0x2ca   : > { %v2827_v39 = vrot.slane %v2825_v46, 1 }
 0x2cb   : > { %4452 = vmatmul.msk.bf16.gmra.mxu0 %vm1163_vm3, %v7332_v41  ;;  %v3247_v8 = vadd.f32 %v6632_v32, %v3211_v51  ;;  %v2791_v15 = vadd.f32 %v2727_v9, %v2569_v61  ;;  %v3246_v44 = vadd.f32 %v6632_v32, %v3210_v37 }
 0x2cd   : > { %4419 = vmatmul.msk.bf16.gmra.mxu2 %vm1163_vm3, %v7336_v20  ;;  %v3279_v4 = vmax.f32 %v3247_v8, 0.0  ;;  %v3278_v16 = vmax.f32 %v3246_v44, 0.0 }
 0x2ce   : > { %v2874_v62 = vpop.f32.mrf.mxu3 }
 0x2cf   : > { %v2938_v52 = vadd.f32 %v2874_v62, %v2791_v15  ;;  %v3305_v38 = vmax.f32 %v3277_v58, %v3279_v4  ;;  %v2730_v11 = vpop.f32.mrf.mxu2  ;;  %v2828_v62 = vsel %vm1030_vm2, %v2823_v48, %v2827_v39 }
 0x2d0   : > { %v3148_v47 = vpop.f32.mrf.mxu0  ;;  %v2508_v25 = vpop.f32.mrf.mxu1 }
 0x2d1   : > { %v3212_v30 = vadd.f32 %v3148_v47, %v2938_v52  ;;  %v3345_v19 = vrot.slane %v3305_v38, 2  ;;  %v3346_v26 = vrot.slane %v3305_v38, 4  ;;  %v3347_v53 = vrot.slane %v3305_v38, 6 }
 0x2d2   : > { %v4471_v27 = vrot.slane %v3305_v38, 9  ;;  %v2570_v45 = vadd.f32 %v2508_v25, %v6448_v31 }
 0x2d3   : > { %v3248_v49 = vadd.f32 %v6632_v32, %v3212_v30  ;;  %4402 = vmatmul.msk.bf16.gmra.mxu1 %vm1163_vm3, %v7337_v18  ;;  %4436 = vmatmul.msk.bf16.gmra.mxu3 %vm1163_vm3, %v6345_v13  ;;  %v4472_v43 = vrot.slane %v3345_v19, 9  ;;  %v4473_v34 = vrot.slane %v3346_v26, 9  ;;  %v4474_v42 = vrot.slane %v3347_v53, 9 }
 0x2d4   : > { %v3637_v55 = vmax.f32 %v3305_v38, %v4471_v27  ;;  %v2792_v18 = vadd.f32 %v2730_v11, %v2570_v45 }
 0x2d5   : > { %v3280_v23 = vmax.f32 %v3248_v49, 0.0  ;;  %v3638_v7 = vmax.f32 %v3345_v19, %v4472_v43  ;;  %v3639_v50 = vmax.f32 %v3346_v26, %v4473_v34  ;;  %v3640_v17 = vmax.f32 %v3347_v53, %v4474_v42  ;;  %v7338_v26 = vld [vmem:[#allocation109_spill] sm:$0xff] }
 0x2d6   : > { %v2877_v56 = vpop.f32.mrf.mxu3  ;;  %v3932_v9 = vmul.f32 %v3637_v55, %v3637_v55  ;;  %v3765_v13 = vperm.slane %v3637_v55, 0  ;;  %v7339_v53 = vpack.c.bf16 %v6311_v10, %v7338_v26 }
 0x2d7   : > { %v3306_v54 = vmax.f32 %v3278_v16, %v3280_v23  ;;  %v3766_v5 = vperm.slane %v3638_v7, 0  ;;  %v3767_v61 = vperm.slane %v3639_v50, 0  ;;  %v3933_v51 = vmul.f32 %v3638_v7, %v3638_v7  ;;  %v6778_v41 = vpop.f32.mrf.mxu2 }
 0x2d8   : > { %v6780_v1 = vpop.f32.mrf.mxu0  ;;  %v3934_v8 = vmul.f32 %v3639_v50, %v3639_v50  ;;  %v3935_v14 = vmul.f32 %v3640_v17, %v3640_v17  ;;  %v4060_v22 = vperm.slane %v3932_v9, 0  ;;  %v2510_v57 = vpop.f32.mrf.mxu1  ;;  %v3768_v44 = vperm.slane %v3640_v17, 0 }
 0x2d9   : > { %v3348_v37 = vrot.slane %v3306_v54, 2  ;;  %v3834_v36 = vsel %vm3813_vm5, %v3766_v5, %v3765_v13  ;;  %v4061_v20 = vperm.slane %v3933_v51, 0  ;;  %v3349_v31 = vrot.slane %v3306_v54, 4 }
 0x2da   : > { %v3350_v15 = vrot.slane %v3306_v54, 6  ;;  %v3835_v28 = vsel %vm3815_vm6, %v3767_v61, %v3834_v36  ;;  %v4062_v58 = vperm.slane %v3934_v8, 0  ;;  %v4475_v4 = vrot.slane %v3306_v54, 9 }
 0x2db   : > { %4453 = vmatmul.msk.bf16.gmra.mxu0 %vm1163_vm3, %v6349_v0  ;;  %v4063_v52 = vperm.slane %v3935_v14, 0  ;;  %v4122_v38 = vsel %vm3813_vm5, %v4061_v20, %v4060_v22  ;;  %v4476_v47 = vrot.slane %v3348_v37, 9  ;;  %v4477_v46 = vrot.slane %v3349_v31, 9  ;;  %v7340_v22 = vld [vmem:[#allocation108_spill] sm:$0xff] }
 0x2dc   : > { %v4123_v25 = vsel %vm3815_vm6, %v4062_v58, %v4122_v38  ;;  %v4478_v30 = vrot.slane %v3350_v15, 9  ;;  %v3641_v19 = vmax.f32 %v3306_v54, %v4475_v4  ;;  %v3836_v34 = vsel %vm3817_vm7, %v3768_v44, %v3835_v28 }
 0x2dd   : > { %4420 = vmatmul.msk.bf16.gmra.mxu2 %vm1163_vm3, %v7339_v53  ;;  %v4124_v27 = vsel %vm3817_vm7, %v4063_v52, %v4123_v25  ;;  %v3642_v0 = vmax.f32 %v3348_v37, %v4476_v47  ;;  %v3643_v49 = vmax.f32 %v3349_v31, %v4477_v46  ;;  %v2939_v48 = vadd.f32 %v2877_v56, %v2792_v18 }
 0x2de   : > { %v2879_v43 = vpop.f32.mrf.mxu3  ;;  %v3644_v42 = vmax.f32 %v3350_v15, %v4478_v30  ;;  %v3769_v55 = vperm.slane %v3641_v19, 0  ;;  %v3936_v40 = vmul.f32 %v3641_v19, %v3641_v19  ;;  %v2571_v14 = vadd.f32 %v2510_v57, %v6470_v6 }
 0x2df   : > { %v3770_v16 = vperm.slane %v3642_v0, 0  ;;  %v3771_v23 = vperm.slane %v3643_v49, 0  ;;  %v3937_v39 = vmul.f32 %v3642_v0, %v3642_v0  ;;  %v3938_v7 = vmul.f32 %v3643_v49, %v3643_v49  ;;  %v2735_v50 = vpop.f32.mrf.mxu2 }
 0x2e0   : > { %v3153_v17 = vpop.f32.mrf.mxu0  ;;  %v3837_v10 = vsel %vm3819_vm8, %v3769_v55, %v3836_v34  ;;  %v3939_v9 = vmul.f32 %v3644_v42, %v3644_v42  ;;  %v4064_v54 = vperm.slane %v3936_v40, 0  ;;  %v2513_v13 = vpop.f32.mrf.mxu1  ;;  %v3772_v11 = vperm.slane %v3644_v42, 0 }
 0x2e1   : > { %v3838_v45 = vsel %vm3821_vm9, %v3770_v16, %v3837_v10  ;;  %v4065_v5 = vperm.slane %v3937_v39, 0  ;;  %v4066_v61 = vperm.slane %v3938_v7, 0  ;;  %v2572_v20 = vadd.f32 %v2513_v13, %v6475_v2 }
 0x2e2   : > { %v3839_v51 = vsel %vm3823_vm10, %v3771_v23, %v3838_v45  ;;  %v4125_v8 = vsel %vm3819_vm8, %v4064_v54, %v4124_v27  ;;  %v4067_v56 = vperm.slane %v3939_v9, 0  ;;  %v3213_v28 = vadd.f32 %v6780_v1, %v2939_v48  ;;  %v7341_v1 = vld [vmem:[#allocation21_spill] sm:$0xff] }
 0x2e3   : > { %4403 = vmatmul.msk.bf16.gmra.mxu1 %vm1163_vm3, %v7340_v22  ;;  %4437 = vmatmul.msk.bf16.gmra.mxu3 %vm1163_vm3, %v2828_v62  ;;  %v3840_v37 = vsel %vm3825_vm11, %v3772_v11, %v3839_v51  ;;  %v4126_v36 = vsel %vm3821_vm9, %v4065_v5, %v4125_v8  ;;  %v2794_v58 = vadd.f32 %v2735_v50, %v2572_v20 }
 0x2e4   : > { %3887 = vst.msk [vmem:[%s6674_s11 + $0x10] sm:$0xff] %vm3884_vm12, %v3840_v37  ;;  %v3896_v31 = vsel %vm3884_vm12, %v3840_v37, 0.0  ;;  %v4127_v15 = vsel %vm3823_vm10, %v4066_v61, %v4126_v36  ;;  %v2793_v52 = vadd.f32 %v6778_v41, %v2571_v14 }
 0x2e5   : > { %v6811_v6 = vadd.f32 %v3896_v31, %v6748_v24  ;;  %v4128_v57 = vsel %vm3825_vm11, %v4067_v56, %v4127_v15  ;;  %v3249_v24 = vadd.f32 %v6632_v32, %v3213_v28 }
 0x2e6   : > { %v2882_v4 = vpop.f32.mrf.mxu3  ;;  %v4175_v62 = vsel %vm3884_vm12, %v4128_v57, 0.0  ;;  %v2940_v44 = vadd.f32 %v2879_v43, %v2793_v52 }
 0x2e7   : > { %v6818_v2 = vadd.f32 %v4175_v62, %v6756_v3  ;;  %v2941_v38 = vadd.f32 %v2882_v4, %v2794_v58  ;;  %v2737_v47 = vpop.f32.mrf.mxu2  ;;  %v3281_v27 = vmax.f32 %v3249_v24, 0.0 }
 0x2e8   : > { %v3156_v46 = vpop.f32.mrf.mxu0  ;;  %v2515_v25 = vpop.f32.mrf.mxu1  ;;  %v3214_v53 = vadd.f32 %v3153_v17, %v2940_v44 }
 0x2e9   : > { %v2573_v30 = vadd.f32 %v2515_v25, %v6485_v21  ;;  %v3215_v19 = vadd.f32 %v3156_v46, %v2941_v38 }
 0x2ea   : > { %v3250_v42 = vadd.f32 %v6632_v32, %v3214_v53 }
 0x2eb   : > { %4454 = vmatmul.msk.bf16.gmra.mxu0 %vm1163_vm3, %v7341_v1  ;;  %v3251_v26 = vadd.f32 %v6632_v32, %v3215_v19  ;;  %v2795_v41 = vadd.f32 %v2737_v47, %v2573_v30 }
 0x2ec   : > { %v3282_v54 = vmax.f32 %v3250_v42, 0.0 }
 0x2ed   : > { %v3283_v3 = vmax.f32 %v3251_v26, 0.0 }
 0x2ee   : > { %v2884_v0 = vpop.f32.mrf.mxu3 }
 0x2ef   : > { %v2942_v49 = vadd.f32 %v2884_v0, %v2795_v41  ;;  %v3307_v18 = vmax.f32 %v3281_v27, %v3283_v3  ;;  %v2740_v34 = vpop.f32.mrf.mxu2 }
 0x2f0   : > { %v3158_v43 = vpop.f32.mrf.mxu0  ;;  %v2518_v55 = vpop.f32.mrf.mxu1 }
 0x2f1   : > { %v3216_v40 = vadd.f32 %v3158_v43, %v2942_v49  ;;  %v3351_v21 = vrot.slane %v3307_v18, 2  ;;  %v3352_v16 = vrot.slane %v3307_v18, 4  ;;  %v3353_v23 = vrot.slane %v3307_v18, 6 }
 0x2f2   : > { %v4479_v39 = vrot.slane %v3307_v18, 9  ;;  %v2574_v51 = vadd.f32 %v2518_v55, %v6492_v33 }
 0x2f3   : > { %v3252_v7 = vadd.f32 %v6632_v32, %v3216_v40  ;;  %v4480_v50 = vrot.slane %v3351_v21, 9  ;;  %v4481_v17 = vrot.slane %v3352_v16, 9  ;;  %v4482_v10 = vrot.slane %v3353_v23, 9 }
 0x2f4   : > { %v3645_v9 = vmax.f32 %v3307_v18, %v4479_v39  ;;  %v2796_v0 = vadd.f32 %v2740_v34, %v2574_v51 }
 0x2f5   : > { %v3284_v48 = vmax.f32 %v3252_v7, 0.0  ;;  %v3646_v13 = vmax.f32 %v3351_v21, %v4480_v50  ;;  %v3647_v11 = vmax.f32 %v3352_v16, %v4481_v17  ;;  %v3648_v45 = vmax.f32 %v3353_v23, %v4482_v10 }
 0x2f6   : > { %v2887_v5 = vpop.f32.mrf.mxu3  ;;  %v3940_v61 = vmul.f32 %v3645_v9, %v3645_v9  ;;  %v3773_v14 = vperm.slane %v3645_v9, 0 }
 0x2f7   : > { %v3308_v8 = vmax.f32 %v3282_v54, %v3284_v48  ;;  %v3774_v22 = vperm.slane %v3646_v13, 0  ;;  %v3775_v37 = vperm.slane %v3647_v11, 0  ;;  %v3941_v56 = vmul.f32 %v3646_v13, %v3646_v13  ;;  %v2742_v36 = vpop.f32.mrf.mxu2 }
 0x2f8   : > { %v3161_v20 = vpop.f32.mrf.mxu0  ;;  %v3942_v31 = vmul.f32 %v3647_v11, %v3647_v11  ;;  %v3943_v15 = vmul.f32 %v3648_v45, %v3648_v45  ;;  %v4068_v57 = vperm.slane %v3940_v61, 0  ;;  %v2520_v58 = vpop.f32.mrf.mxu1  ;;  %v3776_v19 = vperm.slane %v3648_v45, 0 }
 0x2f9   : > { %v3354_v28 = vrot.slane %v3308_v8, 2  ;;  %v3841_v4 = vsel %vm3813_vm5, %v3774_v22, %v3773_v14  ;;  %v4069_v62 = vperm.slane %v3941_v56, 0  ;;  %v3355_v52 = vrot.slane %v3308_v8, 4 }
 0x2fa   : > { %v3356_v38 = vrot.slane %v3308_v8, 6  ;;  %v3842_v47 = vsel %vm3815_vm6, %v3775_v37, %v3841_v4  ;;  %v4070_v33 = vperm.slane %v3942_v31, 0  ;;  %v4483_v46 = vrot.slane %v3308_v8, 9 }
 0x2fb   : > { %v4071_v44 = vperm.slane %v3943_v15, 0  ;;  %v4129_v25 = vsel %vm3813_vm5, %v4069_v62, %v4068_v57  ;;  %v4484_v24 = vrot.slane %v3354_v28, 9  ;;  %v4485_v30 = vrot.slane %v3355_v52, 9 }
 0x2fc   : > { %v4130_v1 = vsel %vm3815_vm6, %v4070_v33, %v4129_v25  ;;  %v4486_v26 = vrot.slane %v3356_v38, 9  ;;  %v3649_v53 = vmax.f32 %v3308_v8, %v4483_v46  ;;  %v3843_v18 = vsel %vm3817_vm7, %v3776_v19, %v3842_v47 }
 0x2fd   : > { %v4131_v41 = vsel %vm3817_vm7, %v4071_v44, %v4130_v1  ;;  %v3650_v27 = vmax.f32 %v3354_v28, %v4484_v24  ;;  %v3651_v3 = vmax.f32 %v3355_v52, %v4485_v30  ;;  %v2943_v9 = vadd.f32 %v2887_v5, %v2796_v0 }
 0x2fe   : > { %v2889_v49 = vpop.f32.mrf.mxu3  ;;  %v3652_v43 = vmax.f32 %v3356_v38, %v4486_v26  ;;  %v3777_v42 = vperm.slane %v3649_v53, 0  ;;  %v3944_v55 = vmul.f32 %v3649_v53, %v3649_v53  ;;  %v2575_v51 = vadd.f32 %v2520_v58, %v6501_v12 }
 0x2ff   : > { %v3778_v40 = vperm.slane %v3650_v27, 0  ;;  %v3779_v21 = vperm.slane %v3651_v3, 0  ;;  %v3945_v16 = vmul.f32 %v3650_v27, %v3650_v27  ;;  %v3946_v23 = vmul.f32 %v3651_v3, %v3651_v3  ;;  %v2745_v39 = vpop.f32.mrf.mxu2 }
 0x300   : > { %v3163_v7 = vpop.f32.mrf.mxu0  ;;  %v3844_v50 = vsel %vm3819_vm8, %v3777_v42, %v3843_v18  ;;  %v3947_v17 = vmul.f32 %v3652_v43, %v3652_v43  ;;  %v4072_v10 = vperm.slane %v3944_v55, 0  ;;  %v2523_v54 = vpop.f32.mrf.mxu1  ;;  %v3780_v34 = vperm.slane %v3652_v43, 0 }
 0x301   : > { %v3845_v48 = vsel %vm3821_vm9, %v3778_v40, %v3844_v50  ;;  %v4073_v13 = vperm.slane %v3945_v16, 0  ;;  %v4074_v11 = vperm.slane %v3946_v23, 0  ;;  %v2576_v37 = vadd.f32 %v2523_v54, %v6508_v59 }
 0x302   : > { %v3846_v45 = vsel %vm3823_vm10, %v3779_v21, %v3845_v48  ;;  %v4132_v61 = vsel %vm3819_vm8, %v4072_v10, %v4131_v41  ;;  %v4075_v14 = vperm.slane %v3947_v17, 0  ;;  %v3217_v57 = vadd.f32 %v3161_v20, %v2943_v9 }
 0x303   : > { %v3847_v8 = vsel %vm3825_vm11, %v3780_v34, %v3846_v45  ;;  %v4133_v22 = vsel %vm3821_vm9, %v4073_v13, %v4132_v61  ;;  %v2798_v12 = vadd.f32 %v2745_v39, %v2576_v37  ;;  %v2797_v4 = vadd.f32 %v2742_v36, %v2575_v51 }
 0x304   : > { %3888 = vst.msk [vmem:[%s6674_s11 + $0x18] sm:$0xff] %vm3884_vm12, %v3847_v8  ;;  %v3898_v5 = vsel %vm3884_vm12, %v3847_v8, 0.0  ;;  %v4134_v56 = vsel %vm3823_vm10, %v4074_v11, %v4133_v22  ;;  %v3253_v46 = vadd.f32 %v6632_v32, %v3217_v57 }
 0x305   : > { %v6847_v31 = vadd.f32 %v3898_v5, %v6811_v6  ;;  %v4135_v15 = vsel %vm3825_vm11, %v4075_v14, %v4134_v56  ;;  %v2944_v47 = vadd.f32 %v2889_v49, %v2797_v4 }
 0x306   : > { %v2892_v28 = vpop.f32.mrf.mxu3  ;;  %v4177_v58 = vsel %vm3884_vm12, %v4135_v15, 0.0  ;;  %v3285_v30 = vmax.f32 %v3253_v46, 0.0 }
 0x307   : > { %v6852_v62 = vadd.f32 %v4177_v58, %v6818_v2  ;;  %v2945_v59 = vadd.f32 %v2892_v28, %v2798_v12  ;;  %v2747_v52 = vpop.f32.mrf.mxu2  ;;  %v3218_v25 = vadd.f32 %v3163_v7, %v2944_v47 }
 0x308   : > { %v3166_v38 = vpop.f32.mrf.mxu0  ;;  %v2525_v33 = vpop.f32.mrf.mxu1 }
 0x309   : > { %v2577_v6 = vadd.f32 %v2525_v33, %v6517_v63  ;;  %v3219_v44 = vadd.f32 %v3166_v38, %v2945_v59  ;;  %v3254_v41 = vadd.f32 %v6632_v32, %v3218_v25 }
 0x30b   : > { %v3255_v20 = vadd.f32 %v6632_v32, %v3219_v44  ;;  %v2799_v24 = vadd.f32 %v2747_v52, %v2577_v6  ;;  %v3286_v16 = vmax.f32 %v3254_v41, 0.0 }
 0x30d   : > { %v3287_v19 = vmax.f32 %v3255_v20, 0.0 }
 0x30e   : > { %v2894_v36 = vpop.f32.mrf.mxu3 }
 0x30f   : > { %v2946_v1 = vadd.f32 %v2894_v36, %v2799_v24  ;;  %v3309_v2 = vmax.f32 %v3285_v30, %v3287_v19  ;;  %v2750_v26 = vpop.f32.mrf.mxu2 }
 0x310   : > { %v3168_v53 = vpop.f32.mrf.mxu0  ;;  %v2528_v27 = vpop.f32.mrf.mxu1 }
 0x311   : > { %v3220_v3 = vadd.f32 %v3168_v53, %v2946_v1  ;;  %v3357_v0 = vrot.slane %v3309_v2, 2  ;;  %v3358_v49 = vrot.slane %v3309_v2, 4  ;;  %v3359_v18 = vrot.slane %v3309_v2, 6 }
 0x312   : > { %v4487_v63 = vrot.slane %v3309_v2, 9  ;;  %v2578_v9 = vadd.f32 %v2528_v27, %v6524_v29 }
 0x313   : > { %v3256_v43 = vadd.f32 %v6632_v32, %v3220_v3  ;;  %v4488_v42 = vrot.slane %v3357_v0, 9  ;;  %v4489_v55 = vrot.slane %v3358_v49, 9  ;;  %v4490_v40 = vrot.slane %v3359_v18, 9 }
 0x314   : > { %v3653_v21 = vmax.f32 %v3309_v2, %v4487_v63  ;;  %v2800_v20 = vadd.f32 %v2750_v26, %v2578_v9 }
 0x315   : > { %v3288_v23 = vmax.f32 %v3256_v43, 0.0  ;;  %v3654_v39 = vmax.f32 %v3357_v0, %v4488_v42  ;;  %v3655_v7 = vmax.f32 %v3358_v49, %v4489_v55  ;;  %v3656_v50 = vmax.f32 %v3359_v18, %v4490_v40 }
 0x316   : > { %v2897_v17 = vpop.f32.mrf.mxu3  ;;  %v3948_v10 = vmul.f32 %v3653_v21, %v3653_v21  ;;  %v3781_v34 = vperm.slane %v3653_v21, 0 }
 0x317   : > { %v3310_v54 = vmax.f32 %v3286_v16, %v3288_v23  ;;  %v3782_v48 = vperm.slane %v3654_v39, 0  ;;  %v3783_v13 = vperm.slane %v3655_v7, 0  ;;  %v3949_v11 = vmul.f32 %v3654_v39, %v3654_v39  ;;  %v2752_v45 = vpop.f32.mrf.mxu2 }
 0x318   : > { %v3171_v32 = vpop.f32.mrf.mxu0  ;;  %v3950_v61 = vmul.f32 %v3655_v7, %v3655_v7  ;;  %v3951_v51 = vmul.f32 %v3656_v50, %v3656_v50  ;;  %v4076_v8 = vperm.slane %v3948_v10, 0  ;;  %v2530_v22 = vpop.f32.mrf.mxu1  ;;  %v3784_v52 = vperm.slane %v3656_v50, 0 }
 0x319   : > { %v3360_v14 = vrot.slane %v3310_v54, 2  ;;  %v3848_v37 = vsel %vm3813_vm5, %v3782_v48, %v3781_v34  ;;  %v4077_v5 = vperm.slane %v3949_v11, 0  ;;  %v3361_v56 = vrot.slane %v3310_v54, 4 }
 0x31a   : > { %v3362_v15 = vrot.slane %v3310_v54, 6  ;;  %v3849_v57 = vsel %vm3815_vm6, %v3783_v13, %v3848_v37  ;;  %v4078_v29 = vperm.slane %v3950_v61, 0  ;;  %v4491_v12 = vrot.slane %v3310_v54, 9 }
 0x31b   : > { %v4079_v28 = vperm.slane %v3951_v51, 0  ;;  %v4136_v58 = vsel %vm3813_vm5, %v4077_v5, %v4076_v8  ;;  %v4492_v4 = vrot.slane %v3360_v14, 9  ;;  %v4493_v59 = vrot.slane %v3361_v56, 9  ;;  %v6886_v5 = vld [vmem:[#allocation2] ss:$0 sm:$0xff] }
 0x31c   : > { %v4137_v38 = vsel %vm3815_vm6, %v4078_v29, %v4136_v58  ;;  %v4494_v47 = vrot.slane %v3362_v15, 9  ;;  %v3657_v33 = vmax.f32 %v3310_v54, %v4491_v12  ;;  %v3850_v24 = vsel %vm3817_vm7, %v3784_v52, %v3849_v57 }
 0x31d   : > { %v4138_v46 = vsel %vm3817_vm7, %v4079_v28, %v4137_v38  ;;  %v3658_v6 = vmax.f32 %v3360_v14, %v4492_v4  ;;  %v3659_v44 = vmax.f32 %v3361_v56, %v4493_v59  ;;  %v2947_v63 = vadd.f32 %v2897_v17, %v2800_v20  ;;  %v7342_v56 = vld [vmem:[#allocation27_spill] sm:$0xff] }
 0x31e   : > { %v2899_v25 = vpop.f32.mrf.mxu3  ;;  %v3660_v30 = vmax.f32 %v3362_v15, %v4494_v47  ;;  %v3785_v19 = vperm.slane %v3657_v33, 0  ;;  %v3952_v36 = vmul.f32 %v3657_v33, %v3657_v33  ;;  %v2579_v23 = vadd.f32 %v2530_v22, %v6533_v35 }
 0x31f   : > { %v3786_v1 = vperm.slane %v3658_v6, 0  ;;  %v3787_v2 = vperm.slane %v3659_v44, 0  ;;  %v3953_v53 = vmul.f32 %v3658_v6, %v3658_v6  ;;  %v3954_v41 = vmul.f32 %v3659_v44, %v3659_v44 }
 0x320   : > { %v2755_v27 = vpop.f32.mrf.mxu2  ;;  %v3173_v3 = vpop.f32.mrf.mxu0  ;;  %v3851_v0 = vsel %vm3819_vm8, %v3785_v19, %v3850_v24  ;;  %v3955_v49 = vmul.f32 %v3660_v30, %v3660_v30  ;;  %v4080_v18 = vperm.slane %v3952_v36, 0  ;;  %v3788_v26 = vperm.slane %v3660_v30, 0 }
 0x321   : > { %v2533_v43 = vpop.f32.mrf.mxu1  ;;  %v3852_v42 = vsel %vm3821_vm9, %v3786_v1, %v3851_v0  ;;  %v4081_v55 = vperm.slane %v3953_v53, 0  ;;  %v4082_v40 = vperm.slane %v3954_v41, 0  ;;  %v3221_v48 = vadd.f32 %v3171_v32, %v2947_v63 }
 0x322   : > { %v3853_v21 = vsel %vm3823_vm10, %v3787_v2, %v3852_v42  ;;  %v4139_v16 = vsel %vm3819_vm8, %v4080_v18, %v4138_v46  ;;  %v4083_v7 = vperm.slane %v3955_v49, 0  ;;  %v2580_v10 = vadd.f32 %v2533_v43, %v6540_v60  ;;  %v7343_v49 = vld [vmem:[#allocation8_spill] sm:$0xff] }
 0x323   : > { %v3854_v39 = vsel %vm3825_vm11, %v3788_v26, %v3853_v21  ;;  %v4140_v50 = vsel %vm3821_vm9, %v4081_v55, %v4139_v16  ;;  %v2801_v61 = vadd.f32 %v2752_v45, %v2579_v23 }
 0x324   : > { %3889 = vst.msk [vmem:[%s6674_s11 + $0x20] sm:$0xff] %vm3884_vm12, %v3854_v39  ;;  %v3900_v17 = vsel %vm3884_vm12, %v3854_v39, 0.0  ;;  %v4141_v9 = vsel %vm3823_vm10, %v4082_v40, %v4140_v50  ;;  %v2802_v35 = vadd.f32 %v2755_v27, %v2580_v10 }
 0x325   : > { %v6879_v54 = vadd.f32 %v3900_v17, %v6847_v31  ;;  %v4142_v34 = vsel %vm3825_vm11, %v4083_v7, %v4141_v9  ;;  %v2948_v22 = vadd.f32 %v2899_v25, %v2801_v61  ;;  %v3257_v31 = vadd.f32 %v6886_v5, %v3221_v48 }
 0x326   : > { %v2902_v13 = vpop.f32.mrf.mxu3  ;;  %v4179_v11 = vsel %vm3884_vm12, %v4142_v34, 0.0 }
 0x327   : > { %v6884_v51 = vadd.f32 %v4179_v11, %v6852_v62  ;;  %v2949_v60 = vadd.f32 %v2902_v13, %v2802_v35  ;;  %v3222_v29 = vadd.f32 %v3173_v3, %v2948_v22  ;;  %v3289_v45 = vmax.f32 %v3257_v31, 0.0 }
 0x328   : > { %v2757_v8 = vpop.f32.mrf.mxu2  ;;  %v3176_v14 = vpop.f32.mrf.mxu0 }
 0x329   : > { %v2535_v37 = vpop.f32.mrf.mxu1  ;;  %v3223_v32 = vadd.f32 %v3176_v14, %v2949_v60  ;;  %v3258_v38 = vadd.f32 %v6886_v5, %v3222_v29 }
 0x32a   : > { %v2581_v15 = vadd.f32 %v2535_v37, %v7342_v56 }
 0x32b   : > { %v3259_v57 = vadd.f32 %v6886_v5, %v3223_v32  ;;  %v3290_v1 = vmax.f32 %v3258_v38, 0.0 }
 0x32c   : > { %v2803_v12 = vadd.f32 %v2757_v8, %v2581_v15 }
 0x32d   : > { %v3291_v28 = vmax.f32 %v3259_v57, 0.0 }
 0x32e   : > { %v2904_v62 = vpop.f32.mrf.mxu3 }
 0x32f   : > { %v2950_v58 = vadd.f32 %v2904_v62, %v2803_v12  ;;  %v3311_v4 = vmax.f32 %v3289_v45, %v3291_v28 }
 0x330   : > { %v2760_v59 = vpop.f32.mrf.mxu2  ;;  %v3178_v52 = vpop.f32.mrf.mxu0 }
 0x331   : > { %v2538_v47 = vpop.f32.mrf.mxu1  ;;  %v3224_v33 = vadd.f32 %v3178_v52, %v2950_v58  ;;  %v3363_v46 = vrot.slane %v3311_v4, 2  ;;  %v3364_v6 = vrot.slane %v3311_v4, 4  ;;  %v3365_v44 = vrot.slane %v3311_v4, 6 }
 0x332   : > { %v4495_v20 = vrot.slane %v3311_v4, 9  ;;  %v2582_v18 = vadd.f32 %v2538_v47, %v7343_v49 }
 0x333   : > { %v3260_v25 = vadd.f32 %v6886_v5, %v3224_v33  ;;  %v4496_v24 = vrot.slane %v3363_v46, 9  ;;  %v4497_v30 = vrot.slane %v3364_v6, 9  ;;  %v4498_v19 = vrot.slane %v3365_v44, 9 }
 0x334   : > { %v3661_v36 = vmax.f32 %v3311_v4, %v4495_v20  ;;  %v2804_v13 = vadd.f32 %v2760_v59, %v2582_v18 }
 0x335   : > { %v3292_v2 = vmax.f32 %v3260_v25, 0.0  ;;  %v3662_v53 = vmax.f32 %v3363_v46, %v4496_v24  ;;  %v3663_v41 = vmax.f32 %v3364_v6, %v4497_v30  ;;  %v3664_v27 = vmax.f32 %v3365_v44, %v4498_v19 }
 0x336   : > { %v2907_v3 = vpop.f32.mrf.mxu3  ;;  %v3956_v0 = vmul.f32 %v3661_v36, %v3661_v36  ;;  %v3789_v43 = vperm.slane %v3661_v36, 0 }
 0x337   : > { %v3312_v63 = vmax.f32 %v3290_v1, %v3292_v2  ;;  %v3790_v26 = vperm.slane %v3662_v53, 0  ;;  %v3791_v42 = vperm.slane %v3663_v41, 0  ;;  %v3957_v55 = vmul.f32 %v3662_v53, %v3662_v53  ;;  %v7344_v2 = vld [vmem:[#allocation95_spill] sm:$0xff] }
 0x338   : > { %v2762_v40 = vpop.f32.mrf.mxu2  ;;  %v3181_v21 = vpop.f32.mrf.mxu0  ;;  %v3958_v16 = vmul.f32 %v3663_v41, %v3663_v41  ;;  %v3959_v23 = vmul.f32 %v3664_v27, %v3664_v27  ;;  %v4084_v39 = vperm.slane %v3956_v0, 0  ;;  %v3792_v14 = vperm.slane %v3664_v27, 0  ;;  %v7345_v0 = vld [vmem:[#allocation98_spill] sm:$0xff] }
 0x339   : > { %v3366_v7 = vrot.slane %v3312_v63, 2  ;;  %v2540_v50 = vpop.f32.mrf.mxu1  ;;  %v3855_v10 = vsel %vm3813_vm5, %v3790_v26, %v3789_v43  ;;  %v4085_v17 = vperm.slane %v3957_v55, 0  ;;  %v3367_v9 = vrot.slane %v3312_v63, 4 }
 0x33a   : > { %v3368_v34 = vrot.slane %v3312_v63, 6  ;;  %v4086_v48 = vperm.slane %v3958_v16, 0  ;;  %v4499_v35 = vrot.slane %v3312_v63, 9  ;;  %v3856_v11 = vsel %vm3815_vm6, %v3791_v42, %v3855_v10 }
 0x33b   : > { %v4143_v61 = vsel %vm3813_vm5, %v4085_v17, %v4084_v39  ;;  %v4500_v60 = vrot.slane %v3366_v7, 9  ;;  %v4501_v8 = vrot.slane %v3367_v9, 9  ;;  %v2951_v31 = vadd.f32 %v2907_v3, %v2804_v13 }
 0x33c   : > { %v4502_v22 = vrot.slane %v3368_v34, 9  ;;  %v3665_v37 = vmax.f32 %v3312_v63, %v4499_v35  ;;  %v4087_v56 = vperm.slane %v3959_v23, 0  ;;  %v4144_v15 = vsel %vm3815_vm6, %v4086_v48, %v4143_v61 }
 0x33d   : > { %v3666_v32 = vmax.f32 %v3366_v7, %v4500_v60  ;;  %v3667_v57 = vmax.f32 %v3367_v9, %v4501_v8  ;;  %v3857_v12 = vsel %vm3817_vm7, %v3792_v14, %v3856_v11  ;;  %v2583_v53 = vadd.f32 %v2540_v50, %v7344_v2 }
 0x33e   : > { %v2909_v29 = vpop.f32.mrf.mxu3  ;;  %v3668_v45 = vmax.f32 %v3368_v34, %v4502_v22  ;;  %v3793_v28 = vperm.slane %v3665_v37, 0  ;;  %v3960_v62 = vmul.f32 %v3665_v37, %v3665_v37  ;;  %v4145_v33 = vsel %vm3817_vm7, %v4087_v56, %v4144_v15 }
 0x33f   : > { %v3794_v58 = vperm.slane %v3666_v32, 0  ;;  %v3795_v4 = vperm.slane %v3667_v57, 0  ;;  %v3961_v59 = vmul.f32 %v3666_v32, %v3666_v32  ;;  %v3962_v52 = vmul.f32 %v3667_v57, %v3667_v57 }
 0x340   : > { %v2765_v38 = vpop.f32.mrf.mxu2  ;;  %v3183_v47 = vpop.f32.mrf.mxu0  ;;  %v3858_v46 = vsel %vm3819_vm8, %v3793_v28, %v3857_v12  ;;  %v3963_v6 = vmul.f32 %v3668_v45, %v3668_v45  ;;  %v4088_v44 = vperm.slane %v3960_v62, 0  ;;  %v3796_v25 = vperm.slane %v3668_v45, 0 }
 0x341   : > { %v2543_v20 = vpop.f32.mrf.mxu1  ;;  %v3859_v24 = vsel %vm3821_vm9, %v3794_v58, %v3858_v46  ;;  %v4089_v30 = vperm.slane %v3961_v59, 0  ;;  %v4090_v19 = vperm.slane %v3962_v52, 0  ;;  %v3225_v42 = vadd.f32 %v3181_v21, %v2951_v31 }
 0x342   : > { %v3860_v36 = vsel %vm3823_vm10, %v3795_v4, %v3859_v24  ;;  %v4146_v1 = vsel %vm3819_vm8, %v4088_v44, %v4145_v33  ;;  %v4091_v27 = vperm.slane %v3963_v6, 0  ;;  %v2584_v49 = vadd.f32 %v2543_v20, %v7345_v0  ;;  %v7347_v44 = vld [vmem:[#allocation11_spill] sm:$0xff] }
 0x343   : > { %v3861_v41 = vsel %vm3825_vm11, %v3796_v25, %v3860_v36  ;;  %v4147_v3 = vsel %vm3821_vm9, %v4089_v30, %v4146_v1  ;;  %v2805_v39 = vadd.f32 %v2762_v40, %v2583_v53  ;;  %v3261_v48 = vadd.f32 %v6886_v5, %v3225_v42 }
 0x344   : > { %3890 = vst.msk [vmem:[%s6674_s11 + $0x28] sm:$0xff] %vm3884_vm12, %v3861_v41  ;;  %v3902_v18 = vsel %vm3884_vm12, %v3861_v41, 0.0  ;;  %v4148_v63 = vsel %vm3823_vm10, %v4090_v19, %v4147_v3  ;;  %v2806_v55 = vadd.f32 %v2765_v38, %v2584_v49 }
 0x345   : > { %v6913_v43 = vadd.f32 %v3902_v18, %v6879_v54  ;;  %v4149_v26 = vsel %vm3825_vm11, %v4091_v27, %v4148_v63  ;;  %v2952_v9 = vadd.f32 %v2909_v29, %v2805_v39  ;;  %v7346_v54 = vld [vmem:[#allocation103_spill] sm:$0xff]  ;;  %v3293_v60 = vmax.f32 %v3261_v48, 0.0 }
 0x346   : > { %v2912_v16 = vpop.f32.mrf.mxu3  ;;  %v4181_v23 = vsel %vm3884_vm12, %v4149_v26, 0.0 }
 0x347   : > { %v6918_v7 = vadd.f32 %v4181_v23, %v6884_v51  ;;  %v2953_v50 = vadd.f32 %v2912_v16, %v2806_v55  ;;  %v3226_v11 = vadd.f32 %v3183_v47, %v2952_v9 }
 0x348   : > { %v2767_v10 = vpop.f32.mrf.mxu2  ;;  %v3186_v17 = vpop.f32.mrf.mxu0 }
 0x349   : > { %v2545_v34 = vpop.f32.mrf.mxu1  ;;  %v3227_v13 = vadd.f32 %v3186_v17, %v2953_v50  ;;  %v3262_v31 = vadd.f32 %v6886_v5, %v3226_v11 }
 0x34a   : > { %v2585_v35 = vadd.f32 %v2545_v34, %v7346_v54 }
 0x34b   : > { %v3263_v21 = vadd.f32 %v6886_v5, %v3227_v13  ;;  %v3294_v59 = vmax.f32 %v3262_v31, 0.0 }
 0x34c   : > { %v2807_v61 = vadd.f32 %v2767_v10, %v2585_v35 }
 0x34d   : > { %v3295_v8 = vmax.f32 %v3263_v21, 0.0 }
 0x34e   : > { %v2914_v40 = vpop.f32.mrf.mxu3 }
 0x34f   : > { %v2954_v14 = vadd.f32 %v2914_v40, %v2807_v61  ;;  %v3313_v51 = vmax.f32 %v3293_v60, %v3295_v8 }
 0x350   : > { %v2770_v22 = vpop.f32.mrf.mxu2  ;;  %v3188_v37 = vpop.f32.mrf.mxu0 }
 0x351   : > { %v2548_v56 = vpop.f32.mrf.mxu1  ;;  %v3228_v15 = vadd.f32 %v3188_v37, %v2954_v14  ;;  %v3369_v32 = vrot.slane %v3313_v51, 2  ;;  %v3370_v57 = vrot.slane %v3313_v51, 4  ;;  %v3371_v29 = vrot.slane %v3313_v51, 6 }
 0x352   : > { %v4503_v12 = vrot.slane %v3313_v51, 9  ;;  %v2586_v20 = vadd.f32 %v2548_v56, %v7347_v44 }
 0x353   : > { %v3264_v45 = vadd.f32 %v6886_v5, %v3228_v15  ;;  %v4504_v28 = vrot.slane %v3369_v32, 9  ;;  %v4505_v62 = vrot.slane %v3370_v57, 9  ;;  %v4506_v58 = vrot.slane %v3371_v29, 9 }
 0x354   : > { %v3669_v4 = vmax.f32 %v3313_v51, %v4503_v12  ;;  %v2808_v16 = vadd.f32 %v2770_v22, %v2586_v20 }
 0x355   : > { %v3296_v52 = vmax.f32 %v3264_v45, 0.0  ;;  %v3670_v38 = vmax.f32 %v3369_v32, %v4504_v28  ;;  %v3671_v47 = vmax.f32 %v3370_v57, %v4505_v62  ;;  %v3672_v33 = vmax.f32 %v3371_v29, %v4506_v58 }
 0x356   : > { %v2917_v46 = vpop.f32.mrf.mxu3  ;;  %v3964_v6 = vmul.f32 %v3669_v4, %v3669_v4  ;;  %v3797_v24 = vperm.slane %v3669_v4, 0 }
 0x357   : > { %v3314_v25 = vmax.f32 %v3294_v59, %v3296_v52  ;;  %v3798_v30 = vperm.slane %v3670_v38, 0  ;;  %v3799_v19 = vperm.slane %v3671_v47, 0  ;;  %v3965_v36 = vmul.f32 %v3670_v38, %v3670_v38  ;;  %v7348_v52 = vld [vmem:[#allocation94_spill] sm:$0xff] }
 0x358   : > { %v2772_v1 = vpop.f32.mrf.mxu2  ;;  %v3191_v2 = vpop.f32.mrf.mxu0  ;;  %v3966_v53 = vmul.f32 %v3671_v47, %v3671_v47  ;;  %v3967_v41 = vmul.f32 %v3672_v33, %v3672_v33  ;;  %v4092_v27 = vperm.slane %v3964_v6, 0  ;;  %v3800_v17 = vperm.slane %v3672_v33, 0  ;;  %v7349_v6 = vld [vmem:[#allocation75_spill] sm:$0xff] }
 0x359   : > { %v3372_v3 = vrot.slane %v3314_v25, 2  ;;  %v2550_v0 = vpop.f32.mrf.mxu1  ;;  %v3862_v49 = vsel %vm3813_vm5, %v3798_v30, %v3797_v24  ;;  %v4093_v18 = vperm.slane %v3965_v36, 0  ;;  %v3373_v63 = vrot.slane %v3314_v25, 4 }
 0x35a   : > { %v3374_v26 = vrot.slane %v3314_v25, 6  ;;  %v4094_v42 = vperm.slane %v3966_v53, 0  ;;  %v4507_v55 = vrot.slane %v3314_v25, 9  ;;  %v3863_v23 = vsel %vm3815_vm6, %v3799_v19, %v3862_v49 }
 0x35b   : > { %v4150_v39 = vsel %vm3813_vm5, %v4093_v18, %v4092_v27  ;;  %v4508_v50 = vrot.slane %v3372_v3, 9  ;;  %v4509_v10 = vrot.slane %v3373_v63, 9  ;;  %v2955_v48 = vadd.f32 %v2917_v46, %v2808_v16 }
 0x35c   : > { %v4510_v9 = vrot.slane %v3374_v26, 9  ;;  %v3673_v34 = vmax.f32 %v3314_v25, %v4507_v55  ;;  %v4095_v54 = vperm.slane %v3967_v41, 0  ;;  %v4151_v35 = vsel %vm3815_vm6, %v4094_v42, %v4150_v39  ;;  %v7350_v42 = vld [vmem:[#allocation14_spill] sm:$0xff] }
 0x35d   : > { %v3674_v13 = vmax.f32 %v3372_v3, %v4508_v50  ;;  %v3675_v21 = vmax.f32 %v3373_v63, %v4509_v10  ;;  %v3864_v61 = vsel %vm3817_vm7, %v3800_v17, %v3863_v23  ;;  %v2587_v38 = vadd.f32 %v2550_v0, %v7348_v52 }
 0x35e   : > { %v2919_v11 = vpop.f32.mrf.mxu3  ;;  %v3676_v60 = vmax.f32 %v3374_v26, %v4510_v9  ;;  %v3801_v8 = vperm.slane %v3673_v34, 0  ;;  %v3968_v40 = vmul.f32 %v3673_v34, %v3673_v34  ;;  %v4152_v56 = vsel %vm3817_vm7, %v4095_v54, %v4151_v35 }
 0x35f   : > { %v3802_v14 = vperm.slane %v3674_v13, 0  ;;  %v3803_v51 = vperm.slane %v3675_v21, 0  ;;  %v3969_v22 = vmul.f32 %v3674_v13, %v3674_v13  ;;  %v3970_v37 = vmul.f32 %v3675_v21, %v3675_v21 }
 0x360   : > { %v3193_v31 = vpop.f32.mrf.mxu0  ;;  %v3865_v15 = vsel %vm3819_vm8, %v3801_v8, %v3864_v61  ;;  %v3971_v32 = vmul.f32 %v3676_v60, %v3676_v60  ;;  %v4096_v57 = vperm.slane %v3968_v40, 0  ;;  %v3804_v12 = vperm.slane %v3676_v60, 0  ;;  %v2775_v58 = vpop.f32.mrf.mxu2 }
 0x361   : > { %v2553_v29 = vpop.f32.mrf.mxu1  ;;  %v3866_v45 = vsel %vm3821_vm9, %v3802_v14, %v3865_v15  ;;  %v4097_v28 = vperm.slane %v3969_v22, 0  ;;  %v4098_v62 = vperm.slane %v3970_v37, 0  ;;  %v3229_v19 = vadd.f32 %v3191_v2, %v2955_v48 }
 0x362   : > { %v3867_v4 = vsel %vm3823_vm10, %v3803_v51, %v3866_v45  ;;  %v4153_v59 = vsel %vm3819_vm8, %v4096_v57, %v4152_v56  ;;  %v4099_v33 = vperm.slane %v3971_v32, 0  ;;  %v2588_v44 = vadd.f32 %v2553_v29, %v7349_v6 }
 0x363   : > { %v3868_v47 = vsel %vm3825_vm11, %v3804_v12, %v3867_v4  ;;  %v4154_v46 = vsel %vm3821_vm9, %v4097_v28, %v4153_v59  ;;  %v2809_v27 = vadd.f32 %v2772_v1, %v2587_v38  ;;  %v3265_v26 = vadd.f32 %v6886_v5, %v3229_v19 }
 0x364   : > { %3891 = vst.msk [vmem:[%s6674_s11 + $0x30] sm:$0xff] %vm3884_vm12, %v3868_v47  ;;  %v3904_v20 = vsel %vm3884_vm12, %v3868_v47, 0.0  ;;  %v4155_v25 = vsel %vm3823_vm10, %v4098_v62, %v4154_v46  ;;  %v2810_v36 = vadd.f32 %v2775_v58, %v2588_v44 }
 0x365   : > { %v6945_v24 = vadd.f32 %v3904_v20, %v6913_v43  ;;  %v4156_v30 = vsel %vm3825_vm11, %v4099_v33, %v4155_v25  ;;  %v2956_v18 = vadd.f32 %v2919_v11, %v2809_v27  ;;  %v3297_v50 = vmax.f32 %v3265_v26, 0.0 }
 0x366   : > { %v2922_v53 = vpop.f32.mrf.mxu3  ;;  %v4183_v41 = vsel %vm3884_vm12, %v4156_v30, 0.0 }
 0x367   : > { %v6950_v3 = vadd.f32 %v4183_v41, %v6918_v7  ;;  %v2957_v0 = vadd.f32 %v2922_v53, %v2810_v36  ;;  %v3230_v23 = vadd.f32 %v3193_v31, %v2956_v18 }
 0x368   : > { %v3196_v49 = vpop.f32.mrf.mxu0  ;;  %v2777_v16 = vpop.f32.mrf.mxu2 }
 0x369   : > { %v2555_v63 = vpop.f32.mrf.mxu1  ;;  %v3231_v55 = vadd.f32 %v3196_v49, %v2957_v0  ;;  %v3266_v34 = vadd.f32 %v6886_v5, %v3230_v23 }
 0x36a   : > { %v2589_v43 = vadd.f32 %v2555_v63, %v7350_v42 }
 0x36b   : > { %v3267_v2 = vadd.f32 %v6886_v5, %v3231_v55  ;;  %v3298_v14 = vmax.f32 %v3266_v34, 0.0 }
 0x36c   : > { %v2811_v39 = vadd.f32 %v2777_v16, %v2589_v43 }
 0x36d   : > { %v3299_v10 = vmax.f32 %v3267_v2, 0.0 }
 0x36e   : > { %v2924_v1 = vpop.f32.mrf.mxu3 }
 0x36f   : > { %v2958_v17 = vadd.f32 %v2924_v1, %v2811_v39  ;;  %v3315_v7 = vmax.f32 %v3297_v50, %v3299_v10 }
 0x370   : > { %v3198_v9 = vpop.f32.mrf.mxu0 }
 0x371   : > { %v3232_v48 = vadd.f32 %v3198_v9, %v2958_v17  ;;  %v3375_v54 = vrot.slane %v3315_v7, 2  ;;  %v3376_v35 = vrot.slane %v3315_v7, 4  ;;  %v3377_v13 = vrot.slane %v3315_v7, 6 }
 0x372   : > { %v4511_v21 = vrot.slane %v3315_v7, 9 }
 0x373   : > { %v3268_v11 = vadd.f32 %v6886_v5, %v3232_v48  ;;  %v4512_v61 = vrot.slane %v3375_v54, 9  ;;  %v4513_v60 = vrot.slane %v3376_v35, 9  ;;  %v4514_v8 = vrot.slane %v3377_v13, 9 }
 0x374   : > { %v3677_v40 = vmax.f32 %v3315_v7, %v4511_v21 }
 0x375   : > { %v3300_v51 = vmax.f32 %v3268_v11, 0.0  ;;  %v3678_v22 = vmax.f32 %v3375_v54, %v4512_v61  ;;  %v3679_v37 = vmax.f32 %v3376_v35, %v4513_v60  ;;  %v3680_v31 = vmax.f32 %v3377_v13, %v4514_v8 }
 0x376   : > { %v3972_v56 = vmul.f32 %v3677_v40, %v3677_v40  ;;  %v3805_v32 = vperm.slane %v3677_v40, 0 }
 0x377   : > { %v3316_v15 = vmax.f32 %v3298_v14, %v3300_v51  ;;  %v3806_v57 = vperm.slane %v3678_v22, 0  ;;  %v3807_v29 = vperm.slane %v3679_v37, 0  ;;  %v3973_v12 = vmul.f32 %v3678_v22, %v3678_v22 }
 0x378   : > { %v3974_v45 = vmul.f32 %v3679_v37, %v3679_v37  ;;  %v3975_v28 = vmul.f32 %v3680_v31, %v3680_v31  ;;  %v4100_v62 = vperm.slane %v3972_v56, 0  ;;  %v3808_v20 = vperm.slane %v3680_v31, 0 }
 0x379   : > { %v3378_v58 = vrot.slane %v3316_v15, 2  ;;  %v3869_v5 = vsel %vm3813_vm5, %v3806_v57, %v3805_v32  ;;  %v4101_v4 = vperm.slane %v3973_v12, 0  ;;  %v3379_v59 = vrot.slane %v3316_v15, 4 }
 0x37a   : > { %v3380_v52 = vrot.slane %v3316_v15, 6  ;;  %v4102_v38 = vperm.slane %v3974_v45, 0  ;;  %v4515_v47 = vrot.slane %v3316_v15, 9  ;;  %v3870_v33 = vsel %vm3815_vm6, %v3807_v29, %v3869_v5 }
 0x37b   : > { %v4157_v46 = vsel %vm3813_vm5, %v4101_v4, %v4100_v62  ;;  %v4516_v6 = vrot.slane %v3378_v58, 9  ;;  %v4517_v44 = vrot.slane %v3379_v59, 9  ;;  %v4103_v19 = vperm.slane %v3975_v28, 0 }
 0x37c   : > { %v4518_v25 = vrot.slane %v3380_v52, 9  ;;  %v3681_v30 = vmax.f32 %v3316_v15, %v4515_v47  ;;  %v4158_v36 = vsel %vm3815_vm6, %v4102_v38, %v4157_v46  ;;  %v3871_v27 = vsel %vm3817_vm7, %v3808_v20, %v3870_v33 }
 0x37d   : > { %v3682_v53 = vmax.f32 %v3378_v58, %v4516_v6  ;;  %v3683_v41 = vmax.f32 %v3379_v59, %v4517_v44  ;;  %v4159_v55 = vsel %vm3817_vm7, %v4103_v19, %v4158_v36 }
 0x37e   : > { %v3684_v0 = vmax.f32 %v3380_v52, %v4518_v25  ;;  %v3809_v49 = vperm.slane %v3681_v30, 0  ;;  %v3976_v18 = vmul.f32 %v3681_v30, %v3681_v30 }
 0x37f   : > { %v3810_v63 = vperm.slane %v3682_v53, 0  ;;  %v3811_v26 = vperm.slane %v3683_v41, 0  ;;  %v3977_v42 = vmul.f32 %v3682_v53, %v3682_v53  ;;  %v3978_v43 = vmul.f32 %v3683_v41, %v3683_v41 }
 0x380   : > { %v3872_v16 = vsel %vm3819_vm8, %v3809_v49, %v3871_v27  ;;  %v3979_v2 = vmul.f32 %v3684_v0, %v3684_v0  ;;  %v4104_v23 = vperm.slane %v3976_v18, 0  ;;  %v3812_v39 = vperm.slane %v3684_v0, 0 }
 0x381   : > { %v3873_v50 = vsel %vm3821_vm9, %v3810_v63, %v3872_v16  ;;  %v4105_v10 = vperm.slane %v3977_v42, 0  ;;  %v4106_v1 = vperm.slane %v3978_v43, 0 }
 0x382   : > { %v3874_v17 = vsel %vm3823_vm10, %v3811_v26, %v3873_v50  ;;  %v4160_v7 = vsel %vm3819_vm8, %v4104_v23, %v4159_v55  ;;  %v4107_v34 = vperm.slane %v3979_v2, 0 }
 0x383   : > { %v3875_v9 = vsel %vm3825_vm11, %v3812_v39, %v3874_v17  ;;  %v4161_v48 = vsel %vm3821_vm9, %v4105_v10, %v4160_v7 }
 0x384   : > { %3892 = vst.msk [vmem:[%s6674_s11 + $0x38] sm:$0xff] %vm3884_vm12, %v3875_v9  ;;  %v3906_v54 = vsel %vm3884_vm12, %v3875_v9, 0.0  ;;  %v4162_v35 = vsel %vm3823_vm10, %v4106_v1, %v4161_v48 }
 0x385   : > { %v3907_v13 = vadd.f32 %v3906_v54, %v6945_v24  ;;  %v4163_v21 = vsel %vm3825_vm11, %v4107_v34, %v4162_v35 }
 0x386   : > { %v4185_v11 = vsel %vm3884_vm12, %v4163_v21, 0.0 }
 0x387   : > { %v3908_v61 = vrot.slane %v3907_v13, 4  ;;  %v4186_v60 = vadd.f32 %v4185_v11, %v6950_v3 }
 0x389   : > { %v3909_v8 = vadd.f32 %v3908_v61, %v3907_v13  ;;  %v4187_v40 = vrot.slane %v4186_v60, 4 }
 0x38b   : > { %v3910_v14 = vrot.slane %v3909_v8, 2  ;;  %v4188_v51 = vadd.f32 %v4187_v40, %v4186_v60 }
 0x38d   : > { %v3911_v22 = vadd.f32 %v3910_v14, %v3909_v8  ;;  %v4189_v37 = vrot.slane %v4188_v51, 2 }
 0x38f   : > { %v3912_v31 = vrot.slane %v3911_v22, 1  ;;  %v4190_v56 = vadd.f32 %v4189_v37, %v4188_v51 }
 0x391   : > { %v3913_v24 = vadd.f32 %v3912_v31, %v3911_v22  ;;  %v4191_v15 = vrot.slane %v4190_v56, 1 }
 0x393   : > { %3915 = vst.msk [vmem:[%s358_s15] sm:$0x1] %vm3914_vm13, %v3913_v24  ;;  %v4192_v32 = vadd.f32 %v4191_v15, %v4190_v56 }
 0x395   : > { %4193 = vst.msk [vmem:[%s358_s15 + $0x1] sm:$0x1] %vm3914_vm13, %v4192_v32 }
 0x396 PF: > { %s21_s30 = sadd.s32 1, %s4596_s30  }
 0x397   : > { %p18_p7 = scmp.ge.s32.totalorder %s21_s30, 4  }
 0x399   :  { %20 = sbr.rel (!%p18_p7) target bundleno = 1 (0x1), region = 107 }
 0x39e   :  { %4229 = vsyncpa [#allocation3], 1 }
 0x39f   :  { %4231 = vsyncpa [#allocation3 + $0x1], 1 }

// kernel: vae_encoder_forward.7
= control target key start
LH: loop header
LB: loop body
LE: loop exit
PB: predicated region body
PF: predicated region fallthrough
CT: control target
= control target key end

     0   :  { %s3788_s30 = smov 0   ;;  %s5526_s0 = inlined_call_operand.vmem [shape: f32[2,88,128], index: 0, kind: input, shape index: {}]   ;;  %s5527_s1 = inlined_call_operand.vmem [shape: f32[1,128], index: 1, kind: input, shape index: {}]   ;;  %s5528_s2 = inlined_call_operand.vmem [shape: f32[1,128], index: 2, kind: input, shape index: {}]   ;;  %s5529_s3 = inlined_call_operand.vmem [shape: f32[88,1], index: 3, kind: input, shape index: {}]   ;;  %s5530_s4 = inlined_call_operand.vmem [shape: f32[64,1], index: 4, kind: input, shape index: {}]   ;;  %s5531_s5 = inlined_call_operand.vmem [shape: f32[64,1], index: 5, kind: input, shape index: {}]   ;;  %s5532_s6 = inlined_call_operand.vmem [shape: bf16[9,128,192], index: 6, kind: input, shape index: {}]   ;;  %s5533_s7 = inlined_call_operand.vmem [shape: f32[1,192], index: 7, kind: input, shape index: {}]   ;;  %s5534_s8 = inlined_call_operand.vmem [shape: f32[2,16,192], index: 8, kind: output, shape index: {0}]   ;;  %s5535_s9 = inlined_call_operand.vmem [shape: f32[2,2,192], index: 9, kind: output, shape index: {1}]  }
   0x1 LB: > { %s2819_s10 = sadd.s32 4294967295, %s3735_s30   ;;  %p2823_p0 = scmp.ge.s32.totalorder %s3735_s30, 1  ;;  %s3735_s30 = sphi %s3788_s30, %s20_s30  }
   0x2   : > { %p290_p1 = scmp.lt.s32.totalorder %s3735_s30, 3 }
   0x4   : > { %p291_p2 = pnand %p2823_p0, %p290_p1 }
   0x5   : > { %p331_p3 = scmp.lt.s32.totalorder (!%p291_p2), %s2819_s10, 1 }
   0x6   : > { %294 = sbr.rel (%p291_p2) target bundleno = 618 (0x26a), region = 52 }
   0xb   : > { %v393_v0 = vld [vmem:[%s5529_s3 + $0x30] sm:$0xff]  ;;  %v391_v1 = vld [vmem:[%s5529_s3 + $0x20] sm:$0xff]  ;;  %v3737_v3 = vmov 0   ;;  %v394_v4 = vld [vmem:[%s5529_s3 + $0x38] sm:$0xff]  ;;  %s5537_s10 = smov (!%p331_p3, %s2819_s10), 1  ;;  %vm919_vm1 = vcmask 1041408  }
   0xc   : > { %v387_v2 = vld [vmem:[%s5529_s3] sm:$0xff]  ;;  %3726 = vset.pattern.permute.xlu2 %v3737_v3  ;;  %3725 = vset.pattern.permute.xlu1 %v3737_v3  ;;  %v392_v5 = vld [vmem:[%s5529_s3 + $0x28] sm:$0xff]  ;;  %v390_v7 = vld [vmem:[%s5529_s3 + $0x18] sm:$0xff]  ;;  %s3714_s15 = smul.u32 88, %s5537_s10  ;;  %vm570_vm0 = vsmask.f32 7424 }
   0xd   : > { %3724 = vset.pattern.permute.xlu0 %v3737_v3  ;;  %430 = vperm.xlu1 %3725, %v393_v0   ;;  %v388_v6 = vld [vmem:[%s5529_s3 + $0x8] sm:$0xff]  ;;  %v389_v8 = vld [vmem:[%s5529_s3 + $0x10] sm:$0xff]  ;;  %v395_v9 = vld [vmem:[%s5529_s3 + $0x40] sm:$0xff]  ;;  %vm980_vm2 = vcmask 1046528   ;;  %vm2383_vm3 = vcmask 1043458   ;;  %vm2386_vm4 = vcmask 1045508  }
   0xe   : > { %420 = vperm.xlu0 %3724, %v391_v1   ;;  %400 = vperm.xlu2 %3726, %v387_v2   ;;  %v465_v10 = vld [vmem:[%s5530_s4 + $0x8] sm:$0xff]  ;;  %v464_v11 = vld [vmem:[%s5530_s4] sm:$0xff]  ;;  %v474_v13 = vld [vmem:[%s5531_s5 + $0x10] sm:$0xff]  ;;  %s4005_s11 = scalar_lea.vmem %s5526_s0, %s3714_s15  ;;  %vm2389_vm5 = vcmask 1045504   ;;  %vm2541_vm6 = vcmask 1041409   ;;  %vm2543_vm7 = vcmask 1042434  }
   0xf   : > { %v472_v12 = vld [vmem:[%s5531_s5] sm:$0xff]  ;;  %v473_v14 = vld [vmem:[%s5531_s5 + $0x8] sm:$0xff]  ;;  %v475_v15 = vld [vmem:[%s5531_s5 + $0x18] sm:$0xff]  ;;  %vm2545_vm8 = vcmask 1043459   ;;  %vm2547_vm9 = vcmask 1044484   ;;  %vm2549_vm10 = vcmask 1045509  }
  0x10   : > { %v467_v16 = vld [vmem:[%s5530_s4 + $0x18] sm:$0xff]  ;;  %v466_v17 = vld [vmem:[%s5530_s4 + $0x10] sm:$0xff]  ;;  %v476_v18 = vld [vmem:[%s5531_s5 + $0x20] sm:$0xff]  ;;  %vm2551_vm11 = vcmask 1046534   ;;  %vm2553_vm12 = vcmask 1047559   ;;  %vm2581_vm13 = vcmask 523264  }
  0x11   : > { %v468_v19 = vld [vmem:[%s5530_s4 + $0x20] sm:$0xff]  ;;  %v477_v20 = vld [vmem:[%s5531_s5 + $0x28] sm:$0xff]  ;;  %v479_v22 = vld [vmem:[%s5531_s5 + $0x38] sm:$0xff]  ;;  %s3552_s14 = sshll.u32 %s5537_s10, 5  ;;  %s3553_s15 = sshll.u32 %s5537_s10, 2  ;;  %vm2604_vm14 = vcmask 1040384  }
  0x12   : > { %v469_v21 = vld [vmem:[%s5530_s4 + $0x28] sm:$0xff]  ;;  %v478_v23 = vld [vmem:[%s5531_s5 + $0x30] sm:$0xff]  ;;  %v471_v26 = vld [vmem:[%s5530_s4 + $0x38] sm:$0xff]  ;;  %s5433_s18 = scalar_lea.vmem %s5534_s8, %s3552_s14  ;;  %s345_s21 = scalar_lea.vmem %s5535_s9, %s3553_s15 }
  0x13   : > { %v470_v24 = vld [vmem:[%s5530_s4 + $0x30] sm:$0xff]  ;;  %v396_v25 = vld [vmem:[%s5529_s3 + $0x48] sm:$0xff]  ;;  %v3585_v29 = vld [vmem:[%s5532_s6 + $0xf4] sm:$0xf0] }
  0x14   : > { %v397_v27 = vld [vmem:[%s5529_s3 + $0x50] sm:$0xff]  ;;  %v2905_v32 = vld [vmem:[%s5532_s6 + $0xf8] sm:$0xf0]  ;;  %v2895_v34 = vld [vmem:[%s5532_s6 + $0xe0] sm:$0xf] }
  0x15   : > { %435 = vperm.xlu1 %3725, %v394_v4   ;;  %v2903_v28 = vld [vmem:[%s5532_s6 + $0xf0] sm:$0xf]  ;;  %v3584_v30 = vld [vmem:[%s5532_s6 + $0xf4] sm:$0xf]  ;;  %v3583_v35 = vld [vmem:[%s5532_s6 + $0xe4] sm:$0xf0] }
  0x16   : > { %425 = vperm.xlu0 %3724, %v392_v5   ;;  %405 = vperm.xlu2 %3726, %v388_v6   ;;  %v2904_v31 = vor.u32 %v3585_v29, %v2903_v28  ;;  %v2908_v33 = vor.u32 %v3584_v30, %v2905_v32  ;;  %v3582_v36 = vld [vmem:[%s5532_s6 + $0xe4] sm:$0xf]  ;;  %v2896_v37 = vor.u32 %v3583_v35, %v2895_v34  ;;  %v2897_v38 = vld [vmem:[%s5532_s6 + $0xe8] sm:$0xf0]  ;;  %v2887_v40 = vld [vmem:[%s5532_s6 + $0xd0] sm:$0xf] }
  0x17   : > { %v2900_v39 = vor.u32 %v3582_v36, %v2897_v38  ;;  %v3581_v41 = vld [vmem:[%s5532_s6 + $0xd4] sm:$0xf0]  ;;  %v3580_v42 = vld [vmem:[%s5532_s6 + $0xd4] sm:$0xf]  ;;  %v2889_v44 = vld [vmem:[%s5532_s6 + $0xd8] sm:$0xf0] }
  0x18   : > { %3698 = vmatpush.bf16.msra.mxu2 %v2904_v31  ;;  %691 = vmatpush.bf16.msra.mxu0 %v2904_v31  ;;  %v2888_v43 = vor.u32 %v3581_v41, %v2887_v40  ;;  %v2892_v45 = vor.u32 %v3580_v42, %v2889_v44  ;;  %v2879_v46 = vld [vmem:[%s5532_s6 + $0xc0] sm:$0xf]  ;;  %v3579_v47 = vld [vmem:[%s5532_s6 + $0xc4] sm:$0xf0]  ;;  %v3578_v49 = vld [vmem:[%s5532_s6 + $0xc4] sm:$0xf] }
  0x19   : > { %3706 = vmatpush.bf16.msra.mxu3 %v2908_v33  ;;  %720 = vmatpush.bf16.msra.mxu1 %v2908_v33  ;;  %v2880_v48 = vor.u32 %v3579_v47, %v2879_v46  ;;  %v2881_v50 = vld [vmem:[%s5532_s6 + $0xc8] sm:$0xf0]  ;;  %v2871_v52 = vld [vmem:[%s5532_s6 + $0xb0] sm:$0xf]  ;;  %v3577_v53 = vld [vmem:[%s5532_s6 + $0xb4] sm:$0xf0] }
  0x1a   : > { %v2884_v51 = vor.u32 %v3578_v49, %v2881_v50  ;;  %v3576_v54 = vld [vmem:[%s5532_s6 + $0xb4] sm:$0xf]  ;;  %v2872_v55 = vor.u32 %v3577_v53, %v2871_v52  ;;  %v2873_v56 = vld [vmem:[%s5532_s6 + $0xb8] sm:$0xf0]  ;;  %v2863_v58 = vld [vmem:[%s5532_s6 + $0xa0] sm:$0xf] }
  0x1b   : > { %v2876_v57 = vor.u32 %v3576_v54, %v2873_v56  ;;  %v3575_v59 = vld [vmem:[%s5532_s6 + $0xa4] sm:$0xf0]  ;;  %v3574_v60 = vld [vmem:[%s5532_s6 + $0xa4] sm:$0xf]  ;;  %v2865_v62 = vld [vmem:[%s5532_s6 + $0xa8] sm:$0xf0] }
  0x1c   : > { %3699 = vmatpush.bf16.msra.mxu2 %v2896_v37  ;;  %692 = vmatpush.bf16.msra.mxu0 %v2896_v37  ;;  %v2864_v61 = vor.u32 %v3575_v59, %v2863_v58  ;;  %v2868_v0 = vor.u32 %v3574_v60, %v2865_v62  ;;  %v2855_v1 = vld [vmem:[%s5532_s6 + $0x90] sm:$0xf]  ;;  %v3573_v2 = vld [vmem:[%s5532_s6 + $0x94] sm:$0xf0]  ;;  %v3572_v3 = vld [vmem:[%s5532_s6 + $0x94] sm:$0xf] }
  0x1d   : > { %415 = vperm.xlu1 %3725, %v390_v7   ;;  %3707 = vmatpush.bf16.msra.mxu3 %v2900_v39  ;;  %v2856_v4 = vor.u32 %v3573_v2, %v2855_v1  ;;  %v2857_v5 = vld [vmem:[%s5532_s6 + $0x98] sm:$0xf0]  ;;  %v2847_v7 = vld [vmem:[%s5532_s6 + $0x80] sm:$0xf]  ;;  %v3047_v30 = vld [vmem:[%s5532_s6 + $0x170] sm:$0xf] }
  0x1e   : > { %410 = vperm.xlu0 %3724, %v389_v8   ;;  %440 = vperm.xlu2 %3726, %v395_v9   ;;  %v2860_v6 = vor.u32 %v3572_v3, %v2857_v5  ;;  %v3571_v8 = vld [vmem:[%s5532_s6 + $0x84] sm:$0xf0]  ;;  %v3570_v9 = vld [vmem:[%s5532_s6 + $0x84] sm:$0xf]  ;;  %v3601_v31 = vld [vmem:[%s5532_s6 + $0x174] sm:$0xf0] }
  0x1f   : > { %721 = vmatpush.bf16.msra.mxu1 %v2900_v39  ;;  %v3600_v32 = vld [vmem:[%s5532_s6 + $0x174] sm:$0xf]  ;;  %v346_v33 = vld [vmem:[%s4005_s11] sm:$0xff]  ;;  %v3048_v35 = vor.u32 %v3601_v31, %v3047_v30  ;;  %v3049_v36 = vld [vmem:[%s5532_s6 + $0x178] sm:$0xf0] }
  0x20   : > { %3700 = vmatpush.bf16.msra.mxu2 %v2888_v43  ;;  %693 = vmatpush.bf16.msra.mxu0 %v2888_v43  ;;  %v4035_v34 = vld [vmem:[%s5528_s2] ss:$0 sm:$0xff]  ;;  %v352_v37 = vld [vmem:[%s4005_s11 + $0x30] sm:$0xff]  ;;  %v353_v38 = vld [vmem:[%s4005_s11 + $0x38] sm:$0xff]  ;;  %v3052_v39 = vor.u32 %v3600_v32, %v3049_v36 }
  0x21   : > { %3708 = vmatpush.bf16.msra.mxu3 %v2892_v45  ;;  %v3564_v40 = vld [vmem:[%s5532_s6 + $0x54] sm:$0xf]  ;;  %v2953_v41 = vld [vmem:[%s5532_s6 + $0x58] sm:$0xf0]  ;;  %v2951_v42 = vld [vmem:[%s5532_s6 + $0x50] sm:$0xf] }
  0x22   : > { %v2956_v43 = vor.u32 %v3564_v40, %v2953_v41  ;;  %v3565_v44 = vld [vmem:[%s5532_s6 + $0x54] sm:$0xf0]  ;;  %v3599_v46 = vld [vmem:[%s5532_s6 + $0x164] sm:$0xf0]  ;;  %v3598_v50 = vld [vmem:[%s5532_s6 + $0x164] sm:$0xf] }
  0x23   : > { %722 = vmatpush.bf16.msra.mxu1 %v2892_v45  ;;  %v3039_v45 = vld [vmem:[%s5532_s6 + $0x160] sm:$0xf]  ;;  %v3562_v52 = vld [vmem:[%s5532_s6 + $0x44] sm:$0xf]  ;;  %v3595_v32 = vld [vmem:[%s5532_s6 + $0x144] sm:$0xf0] }
  0x24   : > { %3701 = vmatpush.bf16.msra.mxu2 %v2880_v48  ;;  %694 = vmatpush.bf16.msra.mxu0 %v2880_v48  ;;  %v2952_v48 = vor.u32 %v3565_v44, %v2951_v42  ;;  %v3040_v49 = vor.u32 %v3599_v46, %v3039_v45  ;;  %v350_v54 = vld [vmem:[%s4005_s11 + $0x20] sm:$0xff]  ;;  %v348_v36 = vld [vmem:[%s4005_s11 + $0x10] sm:$0xff] }
  0x25   : > { %487 = vperm.xlu1 %3725, %v465_v10   ;;  %3709 = vmatpush.bf16.msra.mxu3 %v2884_v51  ;;  %v2848_v10 = vor.u32 %v3571_v8, %v2847_v7  ;;  %v2943_v60 = vld [vmem:[%s5532_s6 + $0x40] sm:$0xf]  ;;  %v3558_v42 = vld [vmem:[%s5532_s6 + $0x24] sm:$0xf] }
  0x26   : > { %482 = vperm.xlu0 %3724, %v464_v11   ;;  %889 = vperm.xlu2 %3726, %v472_v12   ;;  %v2849_v11 = vld [vmem:[%s5532_s6 + $0x88] sm:$0xf0]  ;;  %v354_v62 = vld [vmem:[%s4005_s11 + $0x40] sm:$0xff] }
  0x27   : > { %723 = vmatpush.bf16.msra.mxu1 %v2884_v51  ;;  %v3041_v51 = vld [vmem:[%s5532_s6 + $0x168] sm:$0xf0]  ;;  %v3023_v31 = vld [vmem:[%s5532_s6 + $0x140] sm:$0xf] }
  0x28   : > { %3702 = vmatpush.bf16.msra.mxu2 %v2872_v55  ;;  %695 = vmatpush.bf16.msra.mxu0 %v2872_v55  ;;  %v351_v55 = vld [vmem:[%s4005_s11 + $0x28] sm:$0xff]  ;;  %v3044_v56 = vor.u32 %v3598_v50, %v3041_v51 }
  0x29   : > { %3710 = vmatpush.bf16.msra.mxu3 %v2876_v57  ;;  %v3559_v50 = vld [vmem:[%s5532_s6 + $0x24] sm:$0xf0] }
  0x2b   : > { %724 = vmatpush.bf16.msra.mxu1 %v2876_v57  ;;  %v2945_v57 = vld [vmem:[%s5532_s6 + $0x48] sm:$0xf0] }
  0x2c   : > { %3703 = vmatpush.bf16.msra.mxu2 %v2864_v61  ;;  %696 = vmatpush.bf16.msra.mxu0 %v2864_v61  ;;  %v2948_v59 = vor.u32 %v3562_v52, %v2945_v57  ;;  %v3563_v61 = vld [vmem:[%s5532_s6 + $0x44] sm:$0xf0] }
  0x2d   : > { %897 = vperm.xlu1 %3725, %v474_v13   ;;  %3711 = vmatpush.bf16.msra.mxu3 %v2868_v0  ;;  %v2852_v13 = vor.u32 %v3570_v9, %v2849_v11  ;;  %v3031_v9 = vld [vmem:[%s5532_s6 + $0x150] sm:$0xf] }
  0x2e   : > { %893 = vperm.xlu0 %3724, %v473_v14   ;;  %901 = vperm.xlu2 %3726, %v475_v15   ;;  %v3568_v14 = vld [vmem:[%s5532_s6 + $0x74] sm:$0xf]  ;;  %v2969_v15 = vld [vmem:[%s5532_s6 + $0x78] sm:$0xf0] }
  0x2f   : > { %725 = vmatpush.bf16.msra.mxu1 %v2868_v0 }
  0x30   : > { %3704 = vmatpush.bf16.msra.mxu2 %v2856_v4  ;;  %697 = vmatpush.bf16.msra.mxu0 %v2856_v4  ;;  %v2944_v4 = vor.u32 %v3563_v61, %v2943_v60  ;;  %v3592_v60 = vld [vmem:[%s5532_s6 + $0x134] sm:$0xf]  ;;  %v3017_v61 = vld [vmem:[%s5532_s6 + $0x138] sm:$0xf0] }
  0x31   : > { %3712 = vmatpush.bf16.msra.mxu3 %v2860_v6 }
  0x33   : > { %726 = vmatpush.bf16.msra.mxu1 %v2860_v6 }
  0x34   : > { %3705 = vmatpush.bf16.msra.mxu2 %v2848_v10  ;;  %698 = vmatpush.bf16.msra.mxu0 %v2848_v10  ;;  %v3597_v10 = vld [vmem:[%s5532_s6 + $0x154] sm:$0xf0] }
  0x35   : > { %497 = vperm.xlu1 %3725, %v467_v16   ;;  %3713 = vmatpush.bf16.msra.mxu3 %v2852_v13  ;;  %v2972_v16 = vor.u32 %v3568_v14, %v2969_v15  ;;  %v3033_v14 = vld [vmem:[%s5532_s6 + $0x158] sm:$0xf0] }
  0x36   : > { %492 = vperm.xlu0 %3724, %v466_v17   ;;  %905 = vperm.xlu2 %3726, %v476_v18   ;;  %v2967_v17 = vld [vmem:[%s5532_s6 + $0x70] sm:$0xf]  ;;  %v3569_v18 = vld [vmem:[%s5532_s6 + $0x74] sm:$0xf0] }
  0x37   : > { %727 = vmatpush.bf16.msra.mxu1 %v2852_v13  ;;  %v3596_v13 = vld [vmem:[%s5532_s6 + $0x154] sm:$0xf] }
  0x38   : > { %1074 = vmatpush.bf16.msrb.mxu0 %v3048_v35 }
  0x39   : > { %858 = vmatpush.bf16.msrb.mxu3 %v2972_v16 }
  0x3b   : > { %1103 = vmatpush.bf16.msrb.mxu1 %v3052_v39 }
  0x3c   : > { %1075 = vmatpush.bf16.msrb.mxu0 %v3040_v49 }
  0x3d   : > { %502 = vperm.xlu1 %3725, %v468_v19   ;;  %v2968_v19 = vor.u32 %v3569_v18, %v2967_v17  ;;  %v3036_v17 = vor.u32 %v3596_v13, %v3033_v14  ;;  %v3560_v18 = vld [vmem:[%s5532_s6 + $0x34] sm:$0xf]  ;;  %v3007_v14 = vld [vmem:[%s5532_s6 + $0x120] sm:$0xf] }
  0x3e   : > { %909 = vperm.xlu0 %3724, %v477_v20   ;;  %507 = vperm.xlu2 %3726, %v469_v21   ;;  %v3566_v20 = vld [vmem:[%s5532_s6 + $0x64] sm:$0xf]  ;;  %v2961_v21 = vld [vmem:[%s5532_s6 + $0x68] sm:$0xf0] }
  0x3f   : > { %829 = vmatpush.bf16.msrb.mxu2 %v2968_v19  ;;  %1104 = vmatpush.bf16.msrb.mxu1 %v3044_v56  ;;  %v2937_v19 = vld [vmem:[%s5532_s6 + $0x38] sm:$0xf0]  ;;  %v3593_v56 = vld [vmem:[%s5532_s6 + $0x134] sm:$0xf0] }
  0x43   : > { %1105 = vmatpush.bf16.msrb.mxu1 %v3036_v17 }
  0x45   : > { %917 = vperm.xlu1 %3725, %v479_v22   ;;  %v2964_v22 = vor.u32 %v3566_v20, %v2961_v21  ;;  %v2935_v20 = vld [vmem:[%s5532_s6 + $0x30] sm:$0xf] }
  0x46   : > { %913 = vperm.xlu0 %3724, %v478_v23   ;;  %512 = vperm.xlu2 %3726, %v470_v24   ;;  %v347_v23 = vld [vmem:[%s4005_s11 + $0x8] sm:$0xff]  ;;  %v2959_v24 = vld [vmem:[%s5532_s6 + $0x60] sm:$0xf] }
  0x47   : > { %859 = vmatpush.bf16.msrb.mxu3 %v2964_v22 }
  0x4b   : > { %860 = vmatpush.bf16.msrb.mxu3 %v2956_v43  ;;  %v2927_v43 = vld [vmem:[%s5532_s6 + $0x20] sm:$0xf] }
  0x4d   : > { %445 = vperm.xlu1 %3725, %v396_v25   ;;  %v3567_v25 = vld [vmem:[%s5532_s6 + $0x64] sm:$0xf0] }
  0x4e   : > { %517 = vperm.xlu0 %3724, %v471_v26   ;;  %450 = vperm.xlu2 %3726, %v397_v27   ;;  %v4017_v26 = vld [vmem:[%s5527_s1] ss:$0 sm:$0xff]  ;;  %v2960_v27 = vor.u32 %v3567_v25, %v2959_v24  ;;  %v2940_v24 = vor.u32 %v3560_v18, %v2937_v19  ;;  %v3561_v25 = vld [vmem:[%s5532_s6 + $0x34] sm:$0xf0]  ;;  %v3590_v19 = vld [vmem:[%s5532_s6 + $0x124] sm:$0xf] }
  0x4f   : > { %v362_v29 = vmul.f32 %v4017_v26, %v347_v23  ;;  %v361_v53 = vmul.f32 %v4017_v26, %v346_v33  ;;  %v367_v0 = vmul.f32 %v4017_v26, %v352_v37  ;;  %v368_v3 = vmul.f32 %v4017_v26, %v353_v38  ;;  %861 = vmatpush.bf16.msrb.mxu3 %v2948_v59  ;;  %v349_v23 = vld [vmem:[%s4005_s11 + $0x18] sm:$0xff]  ;;  %v3594_v33 = vld [vmem:[%s5532_s6 + $0x144] sm:$0xf]  ;;  %v3025_v38 = vld [vmem:[%s5532_s6 + $0x148] sm:$0xf0] }
  0x50   : > { %830 = vmatpush.bf16.msrb.mxu2 %v2960_v27  ;;  %v365_v6 = vmul.f32 %v4017_v26, %v350_v54  ;;  %v366_v8 = vmul.f32 %v4017_v26, %v351_v55  ;;  %v369_v15 = vmul.f32 %v4017_v26, %v354_v62  ;;  %v2936_v30 = vor.u32 %v3561_v25, %v2935_v20  ;;  %v3015_v55 = vld [vmem:[%s5532_s6 + $0x130] sm:$0xf]  ;;  %v3009_v20 = vld [vmem:[%s5532_s6 + $0x128] sm:$0xf0] }
  0x51   : > { %v377_v47 = vadd.f32 %v4035_v34, %v362_v29  ;;  %v376_v11 = vadd.f32 %v4035_v34, %v361_v53  ;;  %v382_v21 = vadd.f32 %v4035_v34, %v367_v0  ;;  %v383_v22 = vadd.f32 %v4035_v34, %v368_v3  ;;  %v2921_v3 = vld [vmem:[%s5532_s6 + $0x18] sm:$0xf0] }
  0x52   : > { %v380_v27 = vadd.f32 %v4035_v34, %v365_v6  ;;  %v381_v29 = vadd.f32 %v4035_v34, %v366_v8  ;;  %v3024_v37 = vor.u32 %v3595_v32, %v3023_v31  ;;  %v384_v39 = vadd.f32 %v4035_v34, %v369_v15  ;;  %v3591_v15 = vld [vmem:[%s5532_s6 + $0x124] sm:$0xf0] }
  0x53   : > { %862 = vmatpush.bf16.msrb.mxu3 %v2940_v24  ;;  %v3028_v41 = vor.u32 %v3594_v33, %v3025_v38  ;;  %v363_v53 = vmul.f32 %v4017_v26, %v348_v36  ;;  %v2928_v54 = vor.u32 %v3559_v50, %v2927_v43  ;;  %v3016_v59 = vor.u32 %v3593_v56, %v3015_v55  ;;  %v2911_v38 = vld [vmem:[%s5532_s6] sm:$0xf]  ;;  %v2999_v43 = vld [vmem:[%s5532_s6 + $0x110] sm:$0xf] }
  0x54   : > { %831 = vmatpush.bf16.msrb.mxu2 %v2952_v48  ;;  %v364_v48 = vmul.f32 %v4017_v26, %v349_v23  ;;  %v3008_v18 = vor.u32 %v3591_v15, %v3007_v14  ;;  %v3012_v25 = vor.u32 %v3590_v19, %v3009_v20  ;;  %v3586_v19 = vld [vmem:[%s5532_s6 + $0x104] sm:$0xf] }
  0x55   : > { %1106 = vmatpush.bf16.msrb.mxu1 %v3028_v41 }
  0x56   : > { %v379_v6 = vadd.f32 %v4035_v34, %v364_v48 }
  0x58   : > { %832 = vmatpush.bf16.msrb.mxu2 %v2944_v4  ;;  %v2919_v4 = vld [vmem:[%s5532_s6 + $0x10] sm:$0xf] }
  0x5c   : > { %833 = vmatpush.bf16.msrb.mxu2 %v2936_v30 }
  0x60   : > { %834 = vmatpush.bf16.msrb.mxu2 %v2928_v54  ;;  %v3001_v54 = vld [vmem:[%s5532_s6 + $0x118] sm:$0xf0] }
  0x68   : > { %v3949_v63 = vpop.permute.xlu2 %400 }
  0x69   : > { %v4137_v35 = vmul.f32 %v3949_v63, %v376_v11  ;;  %v2929_v63 = vld [vmem:[%s5532_s6 + $0x28] sm:$0xf0]  ;;  %v378_v11 = vadd.f32 %v4035_v34, %v363_v53  ;;  %v3588_v53 = vld [vmem:[%s5532_s6 + $0x114] sm:$0xf] }
  0x6a   : > { %v2932_v49 = vor.u32 %v3558_v42, %v2929_v63 }
  0x6c   : > { %863 = vmatpush.bf16.msrb.mxu3 %v2932_v49 }
  0x70   : > { %v3981_v12 = vpop.permute.xlu2 %405 }
  0x71   : > { %v4086_v5 = vmul.f32 %v3981_v12, %v377_v47  ;;  %v3032_v12 = vor.u32 %v3597_v10, %v3031_v9  ;;  %v3557_v10 = vld [vmem:[%s5532_s6 + $0x14] sm:$0xf0] }
  0x72   : > { %v2920_v13 = vor.u32 %v3557_v10, %v2919_v4  ;;  %v3616_v4 = vld [vmem:[%s5532_s6 + $0x1f4] sm:$0xf] }
  0x73   : > { %1076 = vmatpush.bf16.msrb.mxu0 %v3032_v12 }
  0x74   : > { %835 = vmatpush.bf16.msrb.mxu2 %v2920_v13  ;;  %v2991_v13 = vld [vmem:[%s5532_s6 + $0x100] sm:$0xf] }
  0x77   : > { %1077 = vmatpush.bf16.msrb.mxu0 %v3024_v37 }
  0x78   : > { %v4019_v28 = vpop.permute.xlu2 %440 }
  0x79   : > { %v4189_v62 = vmul.f32 %v4019_v28, %v384_v39  ;;  %v3555_v39 = vld [vmem:[%s5532_s6 + $0x4] sm:$0xf0] }
  0x7a   : > { %v2912_v63 = vor.u32 %v3555_v39, %v2911_v38 }
  0x7b   : > { %1078 = vmatpush.bf16.msrb.mxu0 %v3016_v59  ;;  %v552_v24 = vpack.c.bf16 %v4189_v62, %v4189_v62 }
  0x7c   : > { %836 = vmatpush.bf16.msrb.mxu2 %v2912_v63 }
  0x7f   : > { %v431_v58 = vpop.permute.xlu1 %430  ;;  %1079 = vmatpush.bf16.msrb.mxu0 %v3008_v18  ;;  %v3587_v18 = vld [vmem:[%s5532_s6 + $0x104] sm:$0xf0] }
  0x80   : > { %v421_v1 = vpop.permute.xlu0 %420  ;;  %v890_v2 = vpop.permute.xlu2 %889  ;;  %v4153_v44 = vmul.f32 %v431_v58, %v382_v21  ;;  %v4180_v58 = vpack.c.bf16 %v4086_v5, %v4137_v35 }
  0x81   : > { %v4089_v7 = vrot.slane %v890_v2, 6  ;;  %v4163_v51 = vmul.f32 %v421_v1, %v380_v27  ;;  %v3020_v1 = vor.u32 %v3592_v60, %v3017_v61  ;;  %v3556_v2 = vld [vmem:[%s5532_s6 + $0x14] sm:$0xf]  ;;  %v3554_v27 = vld [vmem:[%s5532_s6 + $0x4] sm:$0xf] }
  0x82   : > { %v2924_v9 = vor.u32 %v3556_v2, %v2921_v3  ;;  %v574_v17 = vshll.u32 %v4180_v58, 16  ;;  %v572_v48 = vshrl.u32 %v4180_v58, 16  ;;  %v4299_v2 = vshll.u32 %v552_v24, 16 }
  0x83   : > { %v4108_v16 = vmul.f32 %v4089_v7, %v4086_v5  ;;  %1107 = vmatpush.bf16.msrb.mxu1 %v3020_v1  ;;  %v3004_v3 = vor.u32 %v3588_v53, %v3001_v54 }
  0x84   : > { %864 = vmatpush.bf16.msrb.mxu3 %v2924_v9  ;;  %v576_v49 = vrot.slane %v574_v17, 1 }
  0x86   : > { %v577_v9 = vor.u32 %v576_v49, %v572_v48 }
  0x87   : > { %v436_v40 = vpop.permute.xlu1 %435  ;;  %1108 = vmatpush.bf16.msrb.mxu1 %v3012_v25 }
  0x88   : > { %v4155_v45 = vmul.f32 %v436_v40, %v383_v22  ;;  %v426_v46 = vpop.permute.xlu0 %425  ;;  %v4157_v47 = vpop.permute.xlu2 %901 }
  0x89   : > { %v4165_v52 = vmul.f32 %v426_v46, %v381_v29  ;;  %v2913_v29 = vld [vmem:[%s5532_s6 + $0x8] sm:$0xf0]  ;;  %v925_v30 = vrot.slane %v4157_v47, 6  ;;  %v3589_v46 = vld [vmem:[%s5532_s6 + $0x114] sm:$0xf0] }
  0x8a   : > { %v4176_v57 = vpack.c.bf16 %v4155_v45, %v4153_v44  ;;  %v2916_v37 = vor.u32 %v3554_v27, %v2913_v29  ;;  %v3000_v50 = vor.u32 %v3589_v46, %v2999_v43  ;;  %v2992_v29 = vor.u32 %v3587_v18, %v2991_v13  ;;  %v3615_v13 = vld [vmem:[%s5532_s6 + $0x1e4] sm:$0xf0] }
  0x8b   : > { %v550_v0 = vpack.c.bf16 %v4165_v52, %v4163_v51  ;;  %v4204_v28 = vpack.c.bf16 %v4153_v44, %v4165_v52  ;;  %1109 = vmatpush.bf16.msrb.mxu1 %v3004_v3  ;;  %v605_v46 = vrot.slane %v4299_v2, 1  ;;  %v3614_v2 = vld [vmem:[%s5532_s6 + $0x1e4] sm:$0xf] }
  0x8c   : > { %v595_v8 = vshll.u32 %v4176_v57, 16  ;;  %865 = vmatpush.bf16.msrb.mxu3 %v2916_v37  ;;  %1080 = vmatpush.bf16.msrb.mxu0 %v3000_v50  ;;  %v599_v43 = vshrl.u32 %v4176_v57, 16 }
  0x8d   : > { %v587_v12 = vshll.u32 %v550_v0, 16  ;;  %v591_v23 = vshrl.u32 %v550_v0, 16  ;;  %v1369_v20 = vshll.u32 %v4204_v28, 16 }
  0x8e   : > { %v4240_v36 = vrot.slane %v595_v8, 1 }
  0x8f   : > { %v416_v21 = vpop.permute.xlu1 %415  ;;  %v4225_v22 = vrot.slane %v587_v12, 1  ;;  %v3617_v12 = vld [vmem:[%s5532_s6 + $0x1f4] sm:$0xf0] }
  0x90   : > { %v4236_v31 = vmul.f32 %v416_v21, %v379_v6  ;;  %v411_v32 = vpop.permute.xlu0 %410  ;;  %v4238_v33 = vpop.permute.xlu2 %905  ;;  %v3129_v6 = vld [vmem:[%s5532_s6 + $0x1f8] sm:$0xf0]  ;;  %v4333_v21 = vpack.c.bf16 %v4189_v62, %v4155_v45  ;;  %1081 = vmatpush.bf16.msrb.mxu0 %v2992_v29 }
  0x91   : > { %v4248_v40 = vmul.f32 %v411_v32, %v378_v11  ;;  %v927_v41 = vrot.slane %v4238_v33, 6  ;;  %v593_v42 = vor.u32 %v591_v23, %v4225_v22  ;;  %v3132_v10 = vor.u32 %v3616_v4, %v3129_v6  ;;  %v3127_v11 = vld [vmem:[%s5532_s6 + $0x1f0] sm:$0xf]  ;;  %v2993_v32 = vld [vmem:[%s5532_s6 + $0x108] sm:$0xf0] }
  0x92   : > { %v4267_v55 = vpack.c.bf16 %v4163_v51, %v4236_v31  ;;  %v3128_v17 = vor.u32 %v3617_v12, %v3127_v11  ;;  %v2996_v48 = vor.u32 %v3586_v19, %v2993_v32  ;;  %v1377_v54 = vshll.u32 %v4333_v21, 16  ;;  %v3121_v6 = vld [vmem:[%s5532_s6 + $0x1e8] sm:$0xf0]  ;;  %v3209_v11 = vld [vmem:[%s5532_s6 + $0x278] sm:$0xf0] }
  0x93   : > { %v4274_v56 = vsel %vm919_vm1, %v925_v30, %v927_v41  ;;  %v4278_v58 = vsel %vm570_vm0, %v593_v42, %v4240_v36  ;;  %v4282_v59 = vpack.c.bf16 %v4236_v31, %v4248_v40  ;;  %v4286_v60 = vmul.f32 %v4089_v7, %v4248_v40  ;;  %v3119_v12 = vld [vmem:[%s5532_s6 + $0x1e0] sm:$0xf]  ;;  %v3097_v33 = vld [vmem:[%s5532_s6 + $0x1b8] sm:$0xf0] }
  0x94   : > { %v4290_v61 = vmul.f32 %v4274_v56, %v4165_v52  ;;  %v4294_v0 = vmul.f32 %v4274_v56, %v4153_v44  ;;  %709 = vmatmul.bf16.vlgmr.msra.gmra.mxu2 %v4278_v58  ;;  %738 = vmatmul.bf16.vlgmr.msra.gmra.mxu3 %v4278_v58  ;;  %v4309_v8 = vpack.c.bf16 %v4248_v40, %v4086_v5  ;;  %v1361_v37 = vshll.u32 %v4267_v55, 16 }
  0x95   : > { %v579_v1 = vshll.u32 %v4282_v59, 16  ;;  %1286 = vmatpush.bf16.msra.mxu3 %v3132_v10  ;;  %1257 = vmatpush.bf16.msra.mxu2 %v3128_v17  ;;  %v1365_v3 = vshrl.u32 %v4267_v55, 16  ;;  %v1371_v4 = vrot.slane %v1369_v20, 1  ;;  %v4380_v10 = vor.u32 %v599_v43, %v4240_v36  ;;  %v3207_v36 = vld [vmem:[%s5532_s6 + $0x270] sm:$0xf] }
  0x96   : > { %v1356_v53 = vshll.u32 %v4309_v8, 16  ;;  %1110 = vmatpush.bf16.msrb.mxu1 %v2996_v48  ;;  %v3124_v55 = vor.u32 %v3614_v2, %v3121_v6  ;;  %v3120_v20 = vor.u32 %v3615_v13, %v3119_v12  ;;  %v1373_v43 = vshrl.u32 %v4204_v28, 16 }
  0x97   : > { %v4320_v14 = vpop.permute.xlu1 %487  ;;  %v4322_v15 = vrot.slane %v579_v1, 1  ;;  %v1363_v1 = vrot.slane %v1361_v37, 1  ;;  %v583_v28 = vshrl.u32 %v4282_v59, 16  ;;  %v4424_v12 = vrot.slane %v1377_v54, 1  ;;  %v3630_v54 = vld [vmem:[%s5532_s6 + $0x264] sm:$0xf] }
  0x98   : > { %v1149_v23 = vmul.f32 %v4320_v14, %v4248_v40  ;;  %v1751_v24 = vmul.f32 %v4320_v14, %v4236_v31  ;;  %v4339_v25 = vpop.permute.xlu0 %482  ;;  %v4341_v27 = vpop.permute.xlu2 %507  ;;  %v1358_v29 = vrot.slane %v1356_v53, 1  ;;  %v606_v53 = vsel %vm570_vm0, %v4380_v10, %v605_v46 }
  0x99   : > { %v1148_v38 = vmul.f32 %v4339_v25, %v4086_v5  ;;  %v1750_v39 = vmul.f32 %v4339_v25, %v4248_v40  ;;  %v4353_v42 = vmul.f32 %v4341_v27, %v4155_v45  ;;  %v582_v63 = vsel %vm570_vm0, %v577_v9, %v4322_v15  ;;  %v3632_v9 = vld [vmem:[%s5532_s6 + $0x274] sm:$0xf]  ;;  %1287 = vmatpush.bf16.msra.mxu3 %v3124_v55 }
  0x9a   : > { %699 = vmatmul.bf16.vlgmr.msra.gmra.mxu0 %v582_v63  ;;  %728 = vmatmul.bf16.vlgmr.msra.gmra.mxu1 %v582_v63  ;;  %v4368_v57 = vmul.f32 %v4341_v27, %v4153_v44  ;;  %v1367_v17 = vor.u32 %v1365_v3, %v1363_v1  ;;  %v3212_v19 = vor.u32 %v3632_v9, %v3209_v11  ;;  %v356_v11 = vld [vmem:[%s4005_s11 + $0x50] sm:$0xff] }
  0x9b   : > { %v4359_v49 = vpack.c.bf16 %v1149_v23, %v1148_v38  ;;  %v4361_v50 = vpack.c.bf16 %v1751_v24, %v1750_v39  ;;  %v3633_v23 = vld [vmem:[%s5532_s6 + $0x274] sm:$0xf0]  ;;  %v1354_v24 = vshrl.u32 %v4309_v8, 16  ;;  %1258 = vmatpush.bf16.msra.mxu2 %v3120_v20  ;;  %v1375_v2 = vor.u32 %v1373_v43, %v1371_v4  ;;  %v3199_v43 = vld [vmem:[%s5532_s6 + $0x260] sm:$0xf] }
  0x9c   : > { %v3208_v39 = vor.u32 %v3633_v23, %v3207_v36  ;;  %v4401_v63 = vsel %vm570_vm0, %v1367_v17, %v1371_v4  ;;  %1502 = vmatpush.bf16.msra.mxu1 %v3212_v19  ;;  %v585_v59 = vor.u32 %v583_v28, %v4322_v15  ;;  %v3113_v19 = vld [vmem:[%s5532_s6 + $0x1d8] sm:$0xf0]  ;;  %v3201_v23 = vld [vmem:[%s5532_s6 + $0x268] sm:$0xf0] }
  0x9d   : > { %v1359_v3 = vor.u32 %v1358_v29, %v1354_v24  ;;  %v3111_v24 = vld [vmem:[%s5532_s6 + $0x1d0] sm:$0xf]  ;;  %v3613_v29 = vld [vmem:[%s5532_s6 + $0x1d4] sm:$0xf0] }
  0x9e   : > { %1473 = vmatpush.bf16.msra.mxu0 %v3208_v39  ;;  %v3112_v39 = vor.u32 %v3613_v29, %v3111_v24 }
  0x9f   : > { %v898_v18 = vpop.permute.xlu1 %897  ;;  %v4439_v20 = vsel %vm570_vm0, %v1359_v3, %v1363_v1  ;;  %v4465_v3 = vmul.f32 %v4089_v7, %v4137_v35 }
  0xa0   : > { %v923_v32 = vrot.slane %v898_v18, 6  ;;  %v894_v37 = vpop.permute.xlu0 %893  ;;  %v4398_v38 = vpop.permute.xlu2 %512  ;;  %v3612_v18 = vld [vmem:[%s5532_s6 + $0x1d4] sm:$0xf]  ;;  %1259 = vmatpush.bf16.msra.mxu2 %v3112_v39 }
  0xa1   : > { %v921_v48 = vrot.slane %v894_v37, 6  ;;  %v4411_v6 = vmul.f32 %v4398_v38, %v4155_v45  ;;  %v3116_v36 = vor.u32 %v3612_v18, %v3113_v19 }
  0xa2   : > { %v926_v8 = vsel %vm919_vm1, %v923_v32, %v925_v30 }
  0xa3   : > { %v4415_v9 = vmul.f32 %v926_v8, %v4163_v51  ;;  %v2124_v55 = vmul.f32 %v926_v8, %v4165_v52  ;;  %v922_v47 = vsel %vm919_vm1, %v4089_v7, %v921_v48  ;;  %v924_v30 = vsel %vm919_vm1, %v921_v48, %v923_v32  ;;  %v3631_v48 = vld [vmem:[%s5532_s6 + $0x264] sm:$0xf0]  ;;  %1288 = vmatpush.bf16.msra.mxu3 %v3116_v36 }
  0xa4   : > { %v1548_v46 = vmul.f32 %v922_v47, %v4248_v40  ;;  %v2122_v4 = vmul.f32 %v922_v47, %v4236_v31  ;;  %714 = vmatmul.bf16.gmra.mxu2 %v606_v53  ;;  %v1549_v13 = vmul.f32 %v924_v30, %v4236_v31  ;;  %v2123_v17 = vmul.f32 %v924_v30, %v4163_v51 }
  0xa5   : > { %743 = vmatmul.bf16.gmra.mxu3 %v606_v53  ;;  %v4453_v32 = vsel %vm570_vm0, %v1375_v2, %v4424_v12  ;;  %v371_v2 = vmul.f32 %v4017_v26, %v356_v11  ;;  %v3200_v28 = vor.u32 %v3631_v48, %v3199_v43 }
  0xa6   : > { %v2130_v15 = vpack.c.bf16 %v2122_v4, %v4286_v60  ;;  %v2131_v1 = vpack.c.bf16 %v2124_v55, %v2123_v17  ;;  %v3204_v60 = vor.u32 %v3630_v54, %v3201_v23  ;;  %v521_v55 = vmul.f32 %v4320_v14, %v4086_v5 }
  0xa7   : > { %v4455_v37 = vpop.permute.xlu1 %497  ;;  %v4474_v17 = vsel %vm570_vm0, %v585_v59, %v4225_v22  ;;  %1474 = vmatpush.bf16.msra.mxu0 %v3200_v28  ;;  %v1556_v19 = vpack.c.bf16 %v1548_v46, %v4108_v16  ;;  %v947_v14 = vmul.f32 %v926_v8, %v4236_v31  ;;  %v945_v54 = vmul.f32 %v922_v47, %v4086_v5  ;;  %v3610_v59 = vld [vmem:[%s5532_s6 + $0x1c4] sm:$0xf]  ;;  %v3628_v16 = vld [vmem:[%s5532_s6 + $0x254] sm:$0xf]  ;;  %v3193_v47 = vld [vmem:[%s5532_s6 + $0x258] sm:$0xf0] }
  0xa8   : > { %v4467_v53 = vpop.permute.xlu0 %492  ;;  %v2157_v4 = vrot.slane %v2130_v15, 1  ;;  %1503 = vmatpush.bf16.msra.mxu1 %v3204_v60  ;;  %v4476_v18 = vrot.slane %v2131_v1, 1  ;;  %v1151_v11 = vmul.f32 %v4455_v37, %v4163_v51  ;;  %v946_v22 = vmul.f32 %v924_v30, %v4248_v40  ;;  %v3105_v15 = vld [vmem:[%s5532_s6 + $0x1c8] sm:$0xf0]  ;;  %v3103_v30 = vld [vmem:[%s5532_s6 + $0x1c0] sm:$0xf] }
  0xa9   : > { %v1150_v7 = vmul.f32 %v4467_v53, %v4236_v31  ;;  %v520_v5 = vmul.f32 %v4339_v25, %v4137_v35  ;;  %v3108_v8 = vor.u32 %v3610_v59, %v3105_v15  ;;  %v3611_v46 = vld [vmem:[%s5532_s6 + $0x1c4] sm:$0xf0]  ;;  %v1557_v23 = vpack.c.bf16 %v4415_v9, %v1549_v13  ;;  %v3191_v35 = vld [vmem:[%s5532_s6 + $0x250] sm:$0xf]  ;;  %v3629_v25 = vld [vmem:[%s5532_s6 + $0x254] sm:$0xf0] }
  0xaa   : > { %704 = vmatmul.bf16.gmra.mxu0 %v4474_v17  ;;  %733 = vmatmul.bf16.gmra.mxu1 %v4474_v17  ;;  %v3196_v24 = vor.u32 %v3628_v16, %v3193_v47  ;;  %v3104_v29 = vor.u32 %v3611_v46, %v3103_v30  ;;  %v525_v1 = vmul.f32 %v4341_v27, %v4165_v52  ;;  %v1583_v60 = vrot.slane %v1556_v19, 1  ;;  %v355_v59 = vld [vmem:[%s4005_s11 + $0x48] sm:$0xff]  ;;  %v451_v46 = vpop.permute.xlu2 %450 }
  0xab   : > { %v4508_v36 = vpack.c.bf16 %v1151_v11, %v1150_v7  ;;  %1289 = vmatpush.bf16.msra.mxu3 %v3108_v8  ;;  %v3192_v39 = vor.u32 %v3629_v25, %v3191_v35  ;;  %v4519_v43 = vrot.slane %v1557_v23, 1  ;;  %v1752_v9 = vmul.f32 %v4467_v53, %v4163_v51  ;;  %v3185_v35 = vld [vmem:[%s5532_s6 + $0x248] sm:$0xf0]  ;;  %v3095_v25 = vld [vmem:[%s5532_s6 + $0x1b0] sm:$0xf] }
  0xac   : > { %v1753_v13 = vmul.f32 %v4455_v37, %v4165_v52  ;;  %v953_v28 = vpack.c.bf16 %v945_v54, %v4465_v3  ;;  %v954_v7 = vpack.c.bf16 %v947_v14, %v946_v22  ;;  %1504 = vmatpush.bf16.msra.mxu1 %v3196_v24  ;;  %1260 = vmatpush.bf16.msra.mxu2 %v3104_v29 }
  0xad   : > { %v4528_v27 = vsel %vm980_vm2, %v2157_v4, %v4476_v18  ;;  %1475 = vmatpush.bf16.msra.mxu0 %v3192_v39  ;;  %v4536_v8 = vsel %vm980_vm2, %v1583_v60, %v4519_v43  ;;  %v386_v3 = vadd.f32 %v4035_v34, %v371_v2  ;;  %v528_v4 = vpack.c.bf16 %v521_v55, %v520_v5 }
  0xae   : > { %v4539_v54 = vpack.c.bf16 %v1753_v13, %v1752_v9  ;;  %v370_v24 = vmul.f32 %v4017_v26, %v355_v59  ;;  %v981_v55 = vrot.slane %v953_v28, 1  ;;  %v4555_v5 = vrot.slane %v954_v7, 1  ;;  %v3626_v26 = vld [vmem:[%s5532_s6 + $0x244] sm:$0xf]  ;;  %v3183_v7 = vld [vmem:[%s5532_s6 + $0x240] sm:$0xf] }
  0xaf   : > { %v503_v48 = vpop.permute.xlu1 %502  ;;  %v4581_v9 = vmul.f32 %v4274_v56, %v4163_v51 }
  0xb0   : > { %v1754_v11 = vmul.f32 %v503_v48, %v4153_v44  ;;  %v910_v19 = vpop.permute.xlu0 %909  ;;  %v524_v15 = vmul.f32 %v503_v48, %v4163_v51  ;;  %v1152_v16 = vmul.f32 %v503_v48, %v4165_v52  ;;  %v3188_v48 = vor.u32 %v3626_v26, %v3185_v35 }
  0xb1   : > { %v929_v14 = vrot.slane %v910_v19, 6 }
  0xb2   : > { %v4541_v22 = vpack.c.bf16 %v525_v1, %v524_v15  ;;  %v4544_v47 = vpack.c.bf16 %v4368_v57, %v1152_v16  ;;  %v4547_v30 = vpack.c.bf16 %v4353_v42, %v1754_v11  ;;  %v3608_v42 = vld [vmem:[%s5532_s6 + $0x1b4] sm:$0xf]  ;;  %v3609_v1 = vld [vmem:[%s5532_s6 + $0x1b4] sm:$0xf0]  ;;  %v3627_v11 = vld [vmem:[%s5532_s6 + $0x244] sm:$0xf0]  ;;  %v523_v16 = vmul.f32 %v4455_v37, %v4236_v31  ;;  %1505 = vmatpush.bf16.msra.mxu1 %v3188_v48 }
  0xb3   : > { %v930_v23 = vsel %vm919_vm1, %v927_v41, %v929_v14  ;;  %v4566_v41 = vmul.f32 %v451_v46, %v386_v3  ;;  %v3100_v57 = vor.u32 %v3608_v42, %v3097_v33  ;;  %v3096_v28 = vor.u32 %v3609_v1, %v3095_v25  ;;  %v3087_v42 = vld [vmem:[%s5532_s6 + $0x1a0] sm:$0xf]  ;;  %v3175_v25 = vld [vmem:[%s5532_s6 + $0x230] sm:$0xf]  ;;  %v3625_v1 = vld [vmem:[%s5532_s6 + $0x234] sm:$0xf0] }
  0xb4   : > { %v1552_v2 = vmul.f32 %v930_v23, %v4153_v44  ;;  %v2126_v29 = vmul.f32 %v930_v23, %v4155_v45  ;;  %837 = vmatmul.bf16.vlgmr.msrb.gmra.mxu2 %v528_v4  ;;  %v3184_v59 = vor.u32 %v3627_v11, %v3183_v7  ;;  %v949_v56 = vmul.f32 %v930_v23, %v4165_v52  ;;  %v3606_v23 = vld [vmem:[%s5532_s6 + $0x1a4] sm:$0xf] }
  0xb5   : > { %866 = vmatmul.bf16.vlgmr.msrb.gmra.mxu3 %v528_v4  ;;  %1261 = vmatpush.bf16.msra.mxu2 %v3096_v28  ;;  %v1934_v4 = vpack.c.bf16 %v4566_v41, %v4566_v41  ;;  %v983_v46 = vsel %vm980_vm2, %v981_v55, %v4555_v5  ;;  %v3177_v55 = vld [vmem:[%s5532_s6 + $0x238] sm:$0xf0]  ;;  %v526_v7 = vmul.f32 %v4398_v38, %v4153_v44 }
  0xb6   : > { %v1558_v60 = vpack.c.bf16 %v1552_v2, %v4290_v61  ;;  %v2132_v39 = vpack.c.bf16 %v2126_v29, %v4294_v0  ;;  %v385_v0 = vadd.f32 %v4035_v34, %v370_v24  ;;  %1290 = vmatpush.bf16.msra.mxu3 %v3100_v57  ;;  %v522_v34 = vmul.f32 %v4467_v53, %v4248_v40  ;;  %v3089_v40 = vld [vmem:[%s5532_s6 + $0x1a8] sm:$0xf0]  ;;  %v3624_v53 = vld [vmem:[%s5532_s6 + $0x234] sm:$0xf] }
  0xb7   : > { %v918_v13 = vpop.permute.xlu1 %917  ;;  %1476 = vmatpush.bf16.msra.mxu0 %v3184_v59  ;;  %v955_v33 = vpack.c.bf16 %v949_v56, %v4581_v9  ;;  %v3092_v26 = vor.u32 %v3606_v23, %v3089_v40  ;;  %v3180_v57 = vor.u32 %v3624_v53, %v3177_v55  ;;  %v1756_v9 = vmul.f32 %v4398_v38, %v4189_v62  ;;  %v3604_v55 = vld [vmem:[%s5532_s6 + $0x194] sm:$0xf] }
  0xb8   : > { %v4589_v19 = vrot.slane %v918_v13, 6  ;;  %v914_v61 = vpop.permute.xlu0 %913  ;;  %v1586_v51 = vrot.slane %v1558_v60, 1  ;;  %v4595_v3 = vrot.slane %v2132_v39, 1  ;;  %v3176_v39 = vor.u32 %v3625_v1, %v3175_v25 }
  0xb9   : > { %v931_v15 = vrot.slane %v914_v61, 6  ;;  %1506 = vmatpush.bf16.msra.mxu1 %v3180_v57  ;;  %v529_v59 = vpack.c.bf16 %v523_v16, %v522_v34  ;;  %v1381_v56 = vshrl.u32 %v4333_v21, 16  ;;  %v4661_v40 = vrot.slane %v955_v33, 1  ;;  %v3169_v33 = vld [vmem:[%s5532_s6 + $0x228] sm:$0xf0] }
  0xba   : > { %v4605_v52 = vsel %vm980_vm2, %v4519_v43, %v1586_v51  ;;  %1082 = vmatmul.bf16.vlgmr.msrb.gmra.mxu0 %v983_v46  ;;  %1111 = vmatmul.bf16.vlgmr.msrb.gmra.mxu1 %v983_v46  ;;  %v4622_v43 = vsel %vm980_vm2, %v4476_v18, %v4595_v3  ;;  %v3607_v18 = vld [vmem:[%s5532_s6 + $0x1a4] sm:$0xf0]  ;;  %v2129_v48 = vmul.f32 %v4589_v19, %v4566_v41  ;;  %v4657_v46 = vshll.u32 %v1934_v4, 16 }
  0xbb   : > { %v932_v31 = vsel %vm919_vm1, %v929_v14, %v931_v15  ;;  %v934_v37 = vsel %vm919_vm1, %v931_v15, %v4589_v19  ;;  %v3088_v35 = vor.u32 %v3607_v18, %v3087_v42  ;;  %1291 = vmatpush.bf16.msra.mxu3 %v3092_v26  ;;  %1477 = vmatpush.bf16.msra.mxu0 %v3176_v39  ;;  %v3605_v26 = vld [vmem:[%s5532_s6 + $0x194] sm:$0xf0]  ;;  %v3167_v39 = vld [vmem:[%s5532_s6 + $0x220] sm:$0xf] }
  0xbc   : > { %v4625_v14 = vmul.f32 %v932_v31, %v4153_v44  ;;  %v4628_v24 = vmul.f32 %v934_v37, %v4155_v45  ;;  %v1553_v2 = vmul.f32 %v932_v31, %v4155_v45  ;;  %v1554_v29 = vmul.f32 %v934_v37, %v4189_v62 }
  0xbd   : > { %1262 = vmatpush.bf16.msra.mxu2 %v3088_v35  ;;  %v2127_v53 = vmul.f32 %v932_v31, %v4189_v62  ;;  %v2134_v38 = vpack.c.bf16 %v2129_v48, %v2129_v48  ;;  %v1383_v57 = vor.u32 %v1381_v56, %v4424_v12  ;;  %v1963_v12 = vrot.slane %v4657_v46, 1 }
  0xbe   : > { %v956_v60 = vpack.c.bf16 %v4628_v24, %v4625_v14  ;;  %v1559_v13 = vpack.c.bf16 %v1554_v29, %v1553_v2  ;;  %v3289_v14 = vld [vmem:[%s5532_s6 + $0x2f8] sm:$0xf0]  ;;  %v3619_v24 = vld [vmem:[%s5532_s6 + $0x204] sm:$0xf0] }
  0xbf   : > { %v446_v28 = vpop.permute.xlu1 %445 }
  0xc0   : > { %v462_v11 = vmul.f32 %v446_v28, %v385_v0  ;;  %v518_v61 = vpop.permute.xlu0 %517  ;;  %v1588_v15 = vrot.slane %v1559_v13, 1  ;;  %v3623_v13 = vld [vmem:[%s5532_s6 + $0x224] sm:$0xf0] }
  0xc1   : > { %v527_v41 = vmul.f32 %v518_v61, %v4155_v45  ;;  %v1155_v23 = vmul.f32 %v518_v61, %v4189_v62  ;;  %v3168_v28 = vor.u32 %v3623_v13, %v3167_v39  ;;  %v3649_v39 = vld [vmem:[%s5532_s6 + $0x2f4] sm:$0xf0] }
  0xc2   : > { %v1757_v2 = vmul.f32 %v518_v61, %v462_v11  ;;  %v1335_v44 = vpack.c.bf16 %v462_v11, %v462_v11  ;;  %v4670_v21 = vsel %vm980_vm2, %v1586_v51, %v1588_v15  ;;  %v1555_v4 = vmul.f32 %v4589_v19, %v462_v11  ;;  %v3622_v51 = vld [vmem:[%s5532_s6 + $0x224] sm:$0xf] }
  0xc3   : > { %v4664_v0 = vpack.c.bf16 %v527_v41, %v526_v7  ;;  %v4667_v16 = vpack.c.bf16 %v1155_v23, %v4411_v6  ;;  %v1933_v29 = vpack.c.bf16 %v462_v11, %v4189_v62  ;;  %v2128_v31 = vmul.f32 %v934_v37, %v462_v11  ;;  %v3081_v6 = vld [vmem:[%s5532_s6 + $0x198] sm:$0xf0]  ;;  %v3079_v37 = vld [vmem:[%s5532_s6 + $0x190] sm:$0xf]  ;;  %1478 = vmatpush.bf16.msra.mxu0 %v3168_v28  ;;  %v3281_v28 = vld [vmem:[%s5532_s6 + $0x2e8] sm:$0xf0] }
  0xc4   : > { %v4673_v45 = vpack.c.bf16 %v1757_v2, %v1756_v9  ;;  %842 = vmatmul.bf16.gmra.mxu2 %v529_v59  ;;  %v1385_v34 = vshll.u32 %v1335_v44, 16  ;;  %v1560_v42 = vpack.c.bf16 %v1555_v4, %v1555_v4  ;;  %v3084_v18 = vor.u32 %v3604_v55, %v3081_v6  ;;  %v3620_v44 = vld [vmem:[%s5532_s6 + $0x214] sm:$0xf]  ;;  %v3071_v4 = vld [vmem:[%s5532_s6 + $0x180] sm:$0xf] }
  0xc5   : > { %871 = vmatmul.bf16.gmra.mxu3 %v529_v59  ;;  %v2133_v35 = vpack.c.bf16 %v2128_v31, %v2127_v53  ;;  %v3172_v25 = vor.u32 %v3622_v51, %v3169_v33  ;;  %v3080_v1 = vor.u32 %v3605_v26, %v3079_v37  ;;  %v1953_v7 = vshll.u32 %v1933_v29, 16  ;;  %v3159_v51 = vld [vmem:[%s5532_s6 + $0x210] sm:$0xf]  ;;  %v3618_v37 = vld [vmem:[%s5532_s6 + $0x204] sm:$0xf] }
  0xc6   : > { %v1387_v48 = vrot.slane %v1385_v34, 1  ;;  %v1590_v9 = vrot.slane %v1560_v42, 1  ;;  %1292 = vmatpush.bf16.msra.mxu3 %v3084_v18  ;;  %v2164_v61 = vrot.slane %v2134_v38, 1  ;;  %v985_v59 = vsel %vm980_vm2, %v4555_v5, %v4661_v40  ;;  %v3602_v5 = vld [vmem:[%s5532_s6 + $0x184] sm:$0xf] }
  0xc7   : > { %v2162_v11 = vrot.slane %v2133_v35, 1  ;;  %1507 = vmatpush.bf16.msra.mxu1 %v3172_v25  ;;  %1263 = vmatpush.bf16.msra.mxu2 %v3080_v1  ;;  %v1955_v23 = vrot.slane %v1953_v7, 1  ;;  %v1957_v2 = vshrl.u32 %v1933_v29, 16  ;;  %v3161_v38 = vld [vmem:[%s5532_s6 + $0x218] sm:$0xf0] }
  0xc8   : > { %v4706_v56 = vsel %vm570_vm0, %v1383_v57, %v1387_v48  ;;  %v4709_v41 = vsel %vm980_vm2, %v1588_v15, %v1590_v9  ;;  %v3073_v15 = vld [vmem:[%s5532_s6 + $0x188] sm:$0xf0]  ;;  %v3603_v34 = vld [vmem:[%s5532_s6 + $0x184] sm:$0xf0]  ;;  %v3164_v55 = vor.u32 %v3620_v44, %v3161_v38  ;;  %v3621_v42 = vld [vmem:[%s5532_s6 + $0x214] sm:$0xf0] }
  0xc9   : > { %v4713_v53 = vsel %vm980_vm2, %v4595_v3, %v2162_v11  ;;  %v4716_v46 = vsel %vm980_vm2, %v2162_v11, %v2164_v61  ;;  %v3076_v3 = vor.u32 %v3602_v5, %v3073_v15  ;;  %v4738_v29 = vsel %vm570_vm0, %v4380_v10, %v1955_v23  ;;  %v3153_v26 = vld [vmem:[%s5532_s6 + $0x208] sm:$0xf0]  ;;  %v3648_v57 = vld [vmem:[%s5532_s6 + $0x2f4] sm:$0xf]  ;;  %v3287_v1 = vld [vmem:[%s5532_s6 + $0x2f0] sm:$0xf] }
  0xca   : > { %1087 = vmatmul.bf16.gmra.mxu0 %v985_v59  ;;  %1116 = vmatmul.bf16.gmra.mxu1 %v985_v59  ;;  %v1959_v31 = vor.u32 %v1957_v2, %v1955_v23  ;;  %v3072_v6 = vor.u32 %v3603_v34, %v3071_v4  ;;  %v3160_v18 = vor.u32 %v3621_v42, %v3159_v51  ;;  %v986_v10 = vrot.slane %v956_v60, 1  ;;  %v3646_v9 = vld [vmem:[%s5532_s6 + $0x2e4] sm:$0xf]  ;;  %v3664_v7 = vld [vmem:[%s5532_s6 + $0x374] sm:$0xf] }
  0xcb   : > { %1293 = vmatpush.bf16.msra.mxu3 %v3076_v3  ;;  %1508 = vmatpush.bf16.msra.mxu1 %v3164_v55  ;;  %v3156_v35 = vor.u32 %v3618_v37, %v3153_v26  ;;  %v3292_v60 = vor.u32 %v3648_v57, %v3289_v14  ;;  %v3288_v13 = vor.u32 %v3649_v39, %v3287_v1  ;;  %v3647_v59 = vld [vmem:[%s5532_s6 + $0x2e4] sm:$0xf0]  ;;  %v3367_v5 = vld [vmem:[%s5532_s6 + $0x370] sm:$0xf]  ;;  %v3644_v3 = vld [vmem:[%s5532_s6 + $0x2d4] sm:$0xf] }
  0xcc   : > { %v4747_v33 = vsel %vm570_vm0, %v1959_v31, %v1963_v12  ;;  %1264 = vmatpush.bf16.msra.mxu2 %v3072_v6  ;;  %1479 = vmatpush.bf16.msra.mxu0 %v3160_v18  ;;  %v987_v48 = vsel %vm980_vm2, %v4661_v40, %v986_v10  ;;  %v952_v11 = vmul.f32 %v4589_v19, %v4189_v62  ;;  %v3369_v40 = vld [vmem:[%s5532_s6 + $0x378] sm:$0xf0]  ;;  %v3279_v12 = vld [vmem:[%s5532_s6 + $0x2e0] sm:$0xf]  ;;  %v3665_v62 = vld [vmem:[%s5532_s6 + $0x374] sm:$0xf0] }
  0xcd   : > { %v3284_v61 = vor.u32 %v3646_v9, %v3281_v28  ;;  %v3372_v23 = vor.u32 %v3664_v7, %v3369_v40  ;;  %v3280_v2 = vor.u32 %v3647_v59, %v3279_v12  ;;  %v3368_v19 = vor.u32 %v3665_v62, %v3367_v5  ;;  %v3273_v38 = vld [vmem:[%s5532_s6 + $0x2d8] sm:$0xf0]  ;;  %v3662_v4 = vld [vmem:[%s5532_s6 + $0x364] sm:$0xf]  ;;  %v3361_v31 = vld [vmem:[%s5532_s6 + $0x368] sm:$0xf0] }
  0xce   : > { %v957_v15 = vpack.c.bf16 %v952_v11, %v952_v11  ;;  %v3276_v34 = vor.u32 %v3644_v3, %v3273_v38  ;;  %v3645_v55 = vld [vmem:[%s5532_s6 + $0x2d4] sm:$0xf0]  ;;  %v3364_v6 = vor.u32 %v3662_v4, %v3361_v31  ;;  %v3359_v42 = vld [vmem:[%s5532_s6 + $0x360] sm:$0xf]  ;;  %v3663_v18 = vld [vmem:[%s5532_s6 + $0x364] sm:$0xf0] }
  0xcf   : > { %1509 = vmatpush.bf16.msra.mxu1 %v3156_v35  ;;  %1705 = vmatpush.bf16.msrb.mxu3 %v3292_v60  ;;  %v3360_v37 = vor.u32 %v3663_v18, %v3359_v42  ;;  %v3642_v57 = vld [vmem:[%s5532_s6 + $0x2c4] sm:$0xf]  ;;  %v3265_v35 = vld [vmem:[%s5532_s6 + $0x2c8] sm:$0xf0]  ;;  %v3660_v14 = vld [vmem:[%s5532_s6 + $0x354] sm:$0xf] }
  0xd0   : > { %1676 = vmatpush.bf16.msrb.mxu2 %v3288_v13  ;;  %v988_v44 = vrot.slane %v957_v15, 1  ;;  %v3643_v60 = vld [vmem:[%s5532_s6 + $0x2c4] sm:$0xf0]  ;;  %v3351_v39 = vld [vmem:[%s5532_s6 + $0x350] sm:$0xf] }
  0xd1   : > { %v3661_v13 = vld [vmem:[%s5532_s6 + $0x354] sm:$0xf0]  ;;  %v3640_v9 = vld [vmem:[%s5532_s6 + $0x2b4] sm:$0xf]  ;;  %v3257_v28 = vld [vmem:[%s5532_s6 + $0x2b8] sm:$0xf0] }
  0xd2   : > { %v989_v26 = vsel %vm980_vm2, %v986_v10, %v988_v44  ;;  %v3353_v10 = vld [vmem:[%s5532_s6 + $0x358] sm:$0xf0]  ;;  %v3658_v7 = vld [vmem:[%s5532_s6 + $0x344] sm:$0xf]  ;;  %v3260_v11 = vor.u32 %v3640_v9, %v3257_v28  ;;  %v3641_v40 = vld [vmem:[%s5532_s6 + $0x2b4] sm:$0xf0] }
  0xd3   : > { %1706 = vmatpush.bf16.msrb.mxu3 %v3284_v61  ;;  %1888 = vmatpush.bf16.msrb.mxu1 %v3372_v23  ;;  %v3345_v61 = vld [vmem:[%s5532_s6 + $0x348] sm:$0xf0]  ;;  %v3343_v23 = vld [vmem:[%s5532_s6 + $0x340] sm:$0xf]  ;;  %v3638_v62 = vld [vmem:[%s5532_s6 + $0x2a4] sm:$0xf] }
  0xd4   : > { %847 = vmatmul.bf16.gmra.mxu2 %v4541_v22  ;;  %v3348_v12 = vor.u32 %v3658_v7, %v3345_v61  ;;  %v3656_v15 = vld [vmem:[%s5532_s6 + $0x334] sm:$0xf]  ;;  %v3337_v3 = vld [vmem:[%s5532_s6 + $0x338] sm:$0xf0]  ;;  %v3639_v38 = vld [vmem:[%s5532_s6 + $0x2a4] sm:$0xf0] }
  0xd5   : > { %876 = vmatmul.bf16.gmra.mxu3 %v4541_v22  ;;  %v3151_v22 = vld [vmem:[%s5532_s6 + $0x200] sm:$0xf]  ;;  %1677 = vmatpush.bf16.msrb.mxu2 %v3280_v2  ;;  %v3659_v2 = vld [vmem:[%s5532_s6 + $0x344] sm:$0xf0]  ;;  %v3340_v4 = vor.u32 %v3656_v15, %v3337_v3  ;;  %v3335_v31 = vld [vmem:[%s5532_s6 + $0x330] sm:$0xf] }
  0xd6   : > { %v3152_v25 = vor.u32 %v3619_v24, %v3151_v22  ;;  %v3268_v22 = vor.u32 %v3642_v57, %v3265_v35  ;;  %v3263_v24 = vld [vmem:[%s5532_s6 + $0x2c0] sm:$0xf]  ;;  %v3344_v5 = vor.u32 %v3659_v2, %v3343_v23  ;;  %v3654_v42 = vld [vmem:[%s5532_s6 + $0x324] sm:$0xf]  ;;  %v3319_v28 = vld [vmem:[%s5532_s6 + $0x310] sm:$0xf] }
  0xd7   : > { %1707 = vmatpush.bf16.msrb.mxu3 %v3276_v34  ;;  %1889 = vmatpush.bf16.msrb.mxu1 %v3364_v6  ;;  %v3264_v1 = vor.u32 %v3643_v60, %v3263_v24  ;;  %v3636_v6 = vld [vmem:[%s5532_s6 + $0x294] sm:$0xf]  ;;  %v3634_v24 = vld [vmem:[%s5532_s6 + $0x284] sm:$0xf]  ;;  %v3233_v60 = vld [vmem:[%s5532_s6 + $0x288] sm:$0xf0] }
  0xd8   : > { %1480 = vmatpush.bf16.msra.mxu0 %v3152_v25  ;;  %v3356_v25 = vor.u32 %v3660_v14, %v3353_v10  ;;  %v3327_v14 = vld [vmem:[%s5532_s6 + $0x320] sm:$0xf]  ;;  %v3653_v7 = vld [vmem:[%s5532_s6 + $0x314] sm:$0xf0]  ;;  %v3650_v61 = vld [vmem:[%s5532_s6 + $0x304] sm:$0xf] }
  0xd9   : > { %v3651_v23 = vld [vmem:[%s5532_s6 + $0x304] sm:$0xf0]  ;;  %v3447_v15 = vld [vmem:[%s5532_s6 + $0x3f0] sm:$0xf] }
  0xda   : > { %1092 = vmatmul.bf16.gmra.mxu0 %v987_v48  ;;  %1121 = vmatmul.bf16.gmra.mxu1 %v987_v48  ;;  %v3352_v48 = vor.u32 %v3661_v13, %v3351_v39  ;;  %v3321_v39 = vld [vmem:[%s5532_s6 + $0x318] sm:$0xf0]  ;;  %v3635_v13 = vld [vmem:[%s5532_s6 + $0x284] sm:$0xf0] }
  0xdb   : > { %1708 = vmatpush.bf16.msrb.mxu3 %v3268_v22  ;;  %1890 = vmatpush.bf16.msrb.mxu1 %v3356_v25  ;;  %v3655_v22 = vld [vmem:[%s5532_s6 + $0x324] sm:$0xf0]  ;;  %v3652_v25 = vld [vmem:[%s5532_s6 + $0x314] sm:$0xf] }
  0xdc   : > { %1859 = vmatpush.bf16.msrb.mxu0 %v3368_v19  ;;  %v3249_v19 = vld [vmem:[%s5532_s6 + $0x2a8] sm:$0xf0]  ;;  %v3328_v10 = vor.u32 %v3655_v22, %v3327_v14  ;;  %v3676_v22 = vld [vmem:[%s5532_s6 + $0x3d4] sm:$0xf] }
  0xdd   : > { %v3252_v44 = vor.u32 %v3638_v62, %v3249_v19 }
  0xdf   : > { %1709 = vmatpush.bf16.msrb.mxu3 %v3260_v11  ;;  %1891 = vmatpush.bf16.msrb.mxu1 %v3348_v12  ;;  %v3320_v11 = vor.u32 %v3653_v7, %v3319_v28 }
  0xe0   : > { %1860 = vmatpush.bf16.msrb.mxu0 %v3360_v37  ;;  %v3329_v37 = vld [vmem:[%s5532_s6 + $0x328] sm:$0xf0] }
  0xe1   : > { %v3332_v57 = vor.u32 %v3654_v42, %v3329_v37  ;;  %v3697_v37 = vld [vmem:[%s5532_s6 + $0x474] sm:$0xf0] }
  0xe3   : > { %1710 = vmatpush.bf16.msrb.mxu3 %v3252_v44  ;;  %1892 = vmatpush.bf16.msrb.mxu1 %v3340_v4  ;;  %v3681_v44 = vld [vmem:[%s5532_s6 + $0x3f4] sm:$0xf0]  ;;  %v3678_v4 = vld [vmem:[%s5532_s6 + $0x3e4] sm:$0xf] }
  0xe4   : > { %852 = vmatmul.bf16.gmra.mxu2 %v4664_v0  ;;  %1861 = vmatpush.bf16.msrb.mxu0 %v3352_v48  ;;  %v3324_v48 = vor.u32 %v3652_v25, %v3321_v39  ;;  %v3521_v25 = vld [vmem:[%s5532_s6 + $0x468] sm:$0xf0] }
  0xe5   : > { %881 = vmatmul.bf16.gmra.mxu3 %v4664_v0  ;;  %v3271_v0 = vld [vmem:[%s5532_s6 + $0x2d0] sm:$0xf] }
  0xe6   : > { %v3272_v51 = vor.u32 %v3645_v55, %v3271_v0  ;;  %v3657_v0 = vld [vmem:[%s5532_s6 + $0x334] sm:$0xf0] }
  0xe7   : > { %v3336_v55 = vor.u32 %v3657_v0, %v3335_v31  ;;  %1893 = vmatpush.bf16.msrb.mxu1 %v3332_v57  ;;  %v3696_v31 = vld [vmem:[%s5532_s6 + $0x474] sm:$0xf] }
  0xe8   : > { %1678 = vmatpush.bf16.msrb.mxu2 %v3272_v51  ;;  %1862 = vmatpush.bf16.msrb.mxu0 %v3344_v5  ;;  %v3241_v51 = vld [vmem:[%s5532_s6 + $0x298] sm:$0xf0] }
  0xe9   : > { %v3244_v18 = vor.u32 %v3636_v6, %v3241_v51  ;;  %v3679_v6 = vld [vmem:[%s5532_s6 + $0x3e4] sm:$0xf0] }
  0xea   : > { %1097 = vmatmul.bf16.gmra.mxu0 %v989_v26  ;;  %1126 = vmatmul.bf16.gmra.mxu1 %v989_v26  ;;  %v3637_v26 = vld [vmem:[%s5532_s6 + $0x294] sm:$0xf0] }
  0xeb   : > { %1711 = vmatpush.bf16.msrb.mxu3 %v3244_v18  ;;  %1894 = vmatpush.bf16.msrb.mxu1 %v3324_v48  ;;  %v3527_v18 = vld [vmem:[%s5532_s6 + $0x470] sm:$0xf]  ;;  %v3519_v48 = vld [vmem:[%s5532_s6 + $0x460] sm:$0xf] }
  0xec   : > { %1679 = vmatpush.bf16.msrb.mxu2 %v3264_v1  ;;  %1863 = vmatpush.bf16.msrb.mxu0 %v3336_v55  ;;  %v3236_v1 = vor.u32 %v3634_v24, %v3233_v60  ;;  %v3529_v55 = vld [vmem:[%s5532_s6 + $0x478] sm:$0xf0]  ;;  %v3528_v57 = vor.u32 %v3697_v37, %v3527_v18  ;;  %v3694_v24 = vld [vmem:[%s5532_s6 + $0x464] sm:$0xf]  ;;  %v3673_v18 = vld [vmem:[%s5532_s6 + $0x3b4] sm:$0xf0] }
  0xed   : > { %v3532_v51 = vor.u32 %v3696_v31, %v3529_v55  ;;  %v3672_v55 = vld [vmem:[%s5532_s6 + $0x3b4] sm:$0xf] }
  0xef   : > { %1712 = vmatpush.bf16.msrb.mxu3 %v3236_v1  ;;  %v3677_v1 = vld [vmem:[%s5532_s6 + $0x3d4] sm:$0xf0] }
  0xf0   : > { %1864 = vmatpush.bf16.msrb.mxu0 %v3328_v10  ;;  %v3433_v10 = vld [vmem:[%s5532_s6 + $0x3d8] sm:$0xf0] }
  0xf1   : > { %v3436_v60 = vor.u32 %v3676_v22, %v3433_v10  ;;  %v3503_v10 = vld [vmem:[%s5532_s6 + $0x440] sm:$0xf] }
  0xf4   : > { %1265 = vmatmul.bf16.vlgmr.msra.gmra.mxu2 %v4359_v49  ;;  %1865 = vmatpush.bf16.msrb.mxu0 %v3320_v11 }
  0xf5   : > { %1294 = vmatmul.bf16.vlgmr.msra.gmra.mxu3 %v4359_v49  ;;  %v3255_v49 = vld [vmem:[%s5532_s6 + $0x2b0] sm:$0xf] }
  0xf6   : > { %v3256_v59 = vor.u32 %v3641_v40, %v3255_v49  ;;  %v3313_v49 = vld [vmem:[%s5532_s6 + $0x308] sm:$0xf0]  ;;  %v3680_v40 = vld [vmem:[%s5532_s6 + $0x3f4] sm:$0xf] }
  0xf7   : > { %v3316_v12 = vor.u32 %v3650_v61, %v3313_v49  ;;  %v3674_v49 = vld [vmem:[%s5532_s6 + $0x3c4] sm:$0xf] }
  0xf8   : > { %1680 = vmatpush.bf16.msrb.mxu2 %v3256_v59  ;;  %v3449_v59 = vld [vmem:[%s5532_s6 + $0x3f8] sm:$0xf0] }
  0xf9   : > { %v3452_v62 = vor.u32 %v3680_v40, %v3449_v59  ;;  %1895 = vmatpush.bf16.msrb.mxu1 %v3316_v12  ;;  %v3425_v40 = vld [vmem:[%s5532_s6 + $0x3c8] sm:$0xf0]  ;;  %v3692_v12 = vld [vmem:[%s5532_s6 + $0x454] sm:$0xf] }
  0xfa   : > { %1481 = vmatmul.bf16.vlgmr.msra.gmra.mxu0 %v4439_v20  ;;  %1510 = vmatmul.bf16.vlgmr.msra.gmra.mxu1 %v4439_v20  ;;  %v3247_v20 = vld [vmem:[%s5532_s6 + $0x2a0] sm:$0xf]  ;;  %v3428_v59 = vor.u32 %v3674_v49, %v3425_v40  ;;  %v3497_v40 = vld [vmem:[%s5532_s6 + $0x438] sm:$0xf0] }
  0xfb   : > { %v3248_v34 = vor.u32 %v3639_v38, %v3247_v20  ;;  %v3448_v38 = vor.u32 %v3681_v44, %v3447_v15  ;;  %2076 = vmatpush.bf16.msra.mxu3 %v3452_v62  ;;  %v3511_v15 = vld [vmem:[%s5532_s6 + $0x450] sm:$0xf]  ;;  %v3693_v44 = vld [vmem:[%s5532_s6 + $0x454] sm:$0xf0] }
  0xfd   : > { %1681 = vmatpush.bf16.msrb.mxu2 %v3248_v34  ;;  %v3441_v34 = vld [vmem:[%s5532_s6 + $0x3e8] sm:$0xf0]  ;;  %2279 = vmatpush.bf16.msra.mxu1 %v3532_v51 }
  0xfe   : > { %v3444_v0 = vor.u32 %v3678_v4, %v3441_v34  ;;  %v3512_v4 = vor.u32 %v3693_v44, %v3511_v15 }
 0x100   : > { %2077 = vmatpush.bf16.msra.mxu3 %v3444_v0 }
 0x104   : > { %1270 = vmatmul.bf16.gmra.mxu2 %v4508_v36  ;;  %2078 = vmatpush.bf16.msra.mxu3 %v3436_v60 }
 0x105   : > { %1299 = vmatmul.bf16.gmra.mxu3 %v4508_v36  ;;  %v3239_v36 = vld [vmem:[%s5532_s6 + $0x290] sm:$0xf] }
 0x106   : > { %v3240_v35 = vor.u32 %v3637_v26, %v3239_v36 }
 0x108   : > { %1682 = vmatpush.bf16.msrb.mxu2 %v3240_v35  ;;  %2079 = vmatpush.bf16.msra.mxu3 %v3428_v59 }
 0x10a   : > { %1486 = vmatmul.bf16.gmra.mxu0 %v4401_v63  ;;  %1515 = vmatmul.bf16.gmra.mxu1 %v4401_v63  ;;  %v3231_v63 = vld [vmem:[%s5532_s6 + $0x280] sm:$0xf] }
 0x10b   : > { %v3232_v9 = vor.u32 %v3635_v13, %v3231_v63  ;;  %v3524_v63 = vor.u32 %v3694_v24, %v3521_v25  ;;  %v3691_v24 = vld [vmem:[%s5532_s6 + $0x444] sm:$0xf0] }
 0x10d   : > { %1683 = vmatpush.bf16.msrb.mxu2 %v3232_v9  ;;  %v3695_v9 = vld [vmem:[%s5532_s6 + $0x464] sm:$0xf0]  ;;  %2280 = vmatpush.bf16.msra.mxu1 %v3524_v63 }
 0x10e   : > { %v3520_v11 = vor.u32 %v3695_v9, %v3519_v48 }
 0x111   : > { %2047 = vmatpush.bf16.msra.mxu2 %v3448_v38 }
 0x114   : > { %1275 = vmatmul.bf16.gmra.mxu2 %v4544_v47 }
 0x115   : > { %1304 = vmatmul.bf16.gmra.mxu3 %v4544_v47  ;;  %v3311_v47 = vld [vmem:[%s5532_s6 + $0x300] sm:$0xf] }
 0x116   : > { %v3312_v19 = vor.u32 %v3651_v23, %v3311_v47  ;;  %v3513_v47 = vld [vmem:[%s5532_s6 + $0x458] sm:$0xf0]  ;;  %v3675_v23 = vld [vmem:[%s5532_s6 + $0x3c4] sm:$0xf0] }
 0x117   : > { %v4981_v2 = vpop.f32.mrf.mxu2  ;;  %v4983_v5 = vpop.f32.mrf.mxu3  ;;  %v3516_v62 = vor.u32 %v3692_v12, %v3513_v47  ;;  %v3671_v12 = vld [vmem:[%s5532_s6 + $0x3a4] sm:$0xf0] }
 0x118   : > { %v4991_v3 = vpop.f32.mrf.mxu0  ;;  %v4993_v20 = vpop.f32.mrf.mxu1  ;;  %1866 = vmatpush.bf16.msrb.mxu0 %v3312_v19 }
 0x119   : > { %2281 = vmatpush.bf16.msra.mxu1 %v3516_v62 }
 0x11a   : > { %1491 = vmatmul.bf16.gmra.mxu0 %v4453_v32  ;;  %1520 = vmatmul.bf16.gmra.mxu1 %v4453_v32  ;;  %v3439_v32 = vld [vmem:[%s5532_s6 + $0x3e0] sm:$0xf] }
 0x11b   : > { %v3440_v42 = vor.u32 %v3679_v6, %v3439_v32  ;;  %v3417_v32 = vld [vmem:[%s5532_s6 + $0x3b8] sm:$0xf0]  ;;  %v3690_v6 = vld [vmem:[%s5532_s6 + $0x444] sm:$0xf] }
 0x11c   : > { %2250 = vmatpush.bf16.msra.mxu0 %v3528_v57  ;;  %v3420_v51 = vor.u32 %v3672_v55, %v3417_v32 }
 0x11d   : > { %2048 = vmatpush.bf16.msra.mxu2 %v3440_v42  ;;  %v3505_v42 = vld [vmem:[%s5532_s6 + $0x448] sm:$0xf0] }
 0x11e   : > { %v3508_v57 = vor.u32 %v3690_v6, %v3505_v42  ;;  %2080 = vmatpush.bf16.msra.mxu3 %v3420_v51  ;;  %v3401_v42 = vld [vmem:[%s5532_s6 + $0x398] sm:$0xf0] }
 0x11f   : > { %v5021_v36 = vpop.f32.mrf.mxu2  ;;  %v5023_v26 = vpop.f32.mrf.mxu3 }
 0x120   : > { %v5025_v35 = vpop.f32.mrf.mxu0  ;;  %v5027_v14 = vpop.f32.mrf.mxu1  ;;  %2251 = vmatpush.bf16.msra.mxu0 %v3520_v11  ;;  %2282 = vmatpush.bf16.msra.mxu1 %v3508_v57  ;;  %v3409_v11 = vld [vmem:[%s5532_s6 + $0x3a8] sm:$0xf0] }
 0x124   : > { %1280 = vmatmul.bf16.gmra.mxu2 %v4667_v16  ;;  %2252 = vmatpush.bf16.msra.mxu0 %v3512_v4 }
 0x125   : > { %1309 = vmatmul.bf16.gmra.mxu3 %v4667_v16  ;;  %v3431_v16 = vld [vmem:[%s5532_s6 + $0x3d0] sm:$0xf] }
 0x126   : > { %v3432_v13 = vor.u32 %v3677_v1, %v3431_v16  ;;  %v3504_v1 = vor.u32 %v3691_v24, %v3503_v10  ;;  %v3487_v24 = vld [vmem:[%s5532_s6 + $0x420] sm:$0xf] }
 0x127   : > { %v5049_v39 = vpop.f32.mrf.mxu2 }
 0x128   : > { %v5057_v28 = vpop.f32.mrf.mxu0  ;;  %v5059_v7 = vpop.f32.mrf.mxu1  ;;  %2049 = vmatpush.bf16.msra.mxu2 %v3432_v13  ;;  %2253 = vmatpush.bf16.msra.mxu0 %v3504_v1 }
 0x129   : > { %v5061_v61 = vpop.f32.mrf.mxu3 }
 0x12a   : > { %1496 = vmatmul.bf16.gmra.mxu0 %v4706_v56  ;;  %1525 = vmatmul.bf16.gmra.mxu1 %v4706_v56  ;;  %v3423_v56 = vld [vmem:[%s5532_s6 + $0x3c0] sm:$0xf] }
 0x12b   : > { %v3424_v19 = vor.u32 %v3675_v23, %v3423_v56  ;;  %v3495_v56 = vld [vmem:[%s5532_s6 + $0x430] sm:$0xf]  ;;  %v3689_v23 = vld [vmem:[%s5532_s6 + $0x434] sm:$0xf0] }
 0x12d   : > { %2050 = vmatpush.bf16.msra.mxu2 %v3424_v19  ;;  %v3496_v19 = vor.u32 %v3689_v23, %v3495_v56  ;;  %v3479_v56 = vld [vmem:[%s5532_s6 + $0x410] sm:$0xf]  ;;  %v3685_v23 = vld [vmem:[%s5532_s6 + $0x414] sm:$0xf0] }
 0x12f   : > { %v5089_v38 = vpop.f32.mrf.mxu2  ;;  %2254 = vmatpush.bf16.msra.mxu0 %v3496_v19  ;;  %v3480_v19 = vor.u32 %v3685_v23, %v3479_v56 }
 0x130   : > { %v5091_v34 = vpop.f32.mrf.mxu0  ;;  %v5093_v31 = vpop.f32.mrf.mxu1 }
 0x131   : > { %v5095_v0 = vpop.f32.mrf.mxu3 }
 0x134   : > { %1684 = vmatmul.bf16.vlgmr.msrb.gmra.mxu2 %v4536_v8 }
 0x135   : > { %1713 = vmatmul.bf16.vlgmr.msrb.gmra.mxu3 %v4536_v8  ;;  %v3415_v8 = vld [vmem:[%s5532_s6 + $0x3b0] sm:$0xf] }
 0x136   : > { %v3416_v22 = vor.u32 %v3673_v18, %v3415_v8  ;;  %v3489_v18 = vld [vmem:[%s5532_s6 + $0x428] sm:$0xf0] }
 0x137   : > { %v838_v37 = vpop.f32.mrf.mxu2 }
 0x138   : > { %v839_v60 = vadd.f32 %v838_v37, %v4991_v3  ;;  %v1083_v25 = vpop.f32.mrf.mxu0  ;;  %v1112_v16 = vpop.f32.mrf.mxu1  ;;  %2051 = vmatpush.bf16.msra.mxu2 %v3416_v22  ;;  %v3670_v3 = vld [vmem:[%s5532_s6 + $0x3a4] sm:$0xf]  ;;  %v3669_v37 = vld [vmem:[%s5532_s6 + $0x394] sm:$0xf0] }
 0x139   : > { %v867_v63 = vpop.f32.mrf.mxu3  ;;  %v3412_v49 = vor.u32 %v3670_v3, %v3409_v11 }
 0x13a   : > { %v868_v13 = vadd.f32 %v867_v63, %v4993_v20  ;;  %v5125_v48 = vadd.f32 %v1083_v25, %v839_v60  ;;  %1867 = vmatmul.bf16.vlgmr.msrb.gmra.mxu0 %v4361_v50  ;;  %1896 = vmatmul.bf16.vlgmr.msrb.gmra.mxu1 %v4361_v50  ;;  %v3688_v20 = vld [vmem:[%s5532_s6 + $0x434] sm:$0xf]  ;;  %v3407_v50 = vld [vmem:[%s5532_s6 + $0x3a0] sm:$0xf]  ;;  %v3687_v60 = vld [vmem:[%s5532_s6 + $0x424] sm:$0xf0] }
 0x13b   : > { %v3500_v59 = vor.u32 %v3688_v20, %v3497_v40  ;;  %v3408_v47 = vor.u32 %v3671_v12, %v3407_v50  ;;  %2081 = vmatpush.bf16.msra.mxu3 %v3412_v49  ;;  %v3488_v63 = vor.u32 %v3687_v60, %v3487_v24  ;;  %v3393_v49 = vld [vmem:[%s5532_s6 + $0x388] sm:$0xf0]  ;;  %v3481_v50 = vld [vmem:[%s5532_s6 + $0x418] sm:$0xf0]  ;;  %v3667_v12 = vld [vmem:[%s5532_s6 + $0x384] sm:$0xf0] }
 0x13c   : > { %v5129_v9 = vadd.f32 %v1112_v16, %v868_v13 }
 0x13d   : > { %2283 = vmatpush.bf16.msra.mxu1 %v3500_v59  ;;  %2052 = vmatpush.bf16.msra.mxu2 %v3408_v47 }
 0x13e   : > { %2255 = vmatpush.bf16.msra.mxu0 %v3488_v63 }
 0x13f   : > { %v840_v62 = vpop.f32.mrf.mxu2 }
 0x140   : > { %v841_v15 = vadd.f32 %v840_v62, %v5025_v35  ;;  %v1085_v44 = vpop.f32.mrf.mxu0  ;;  %v1114_v4 = vpop.f32.mrf.mxu1  ;;  %v3668_v35 = vld [vmem:[%s5532_s6 + $0x394] sm:$0xf] }
 0x141   : > { %v869_v55 = vpop.f32.mrf.mxu3  ;;  %v3404_v8 = vor.u32 %v3668_v35, %v3401_v42 }
 0x142   : > { %v870_v32 = vadd.f32 %v869_v55, %v5027_v14  ;;  %v5157_v6 = vadd.f32 %v1085_v44, %v841_v15  ;;  %v3686_v14 = vld [vmem:[%s5532_s6 + $0x424] sm:$0xf]  ;;  %2256 = vmatpush.bf16.msra.mxu0 %v3480_v19 }
 0x143   : > { %v3492_v22 = vor.u32 %v3686_v14, %v3489_v18  ;;  %2082 = vmatpush.bf16.msra.mxu3 %v3404_v8  ;;  %v3473_v14 = vld [vmem:[%s5532_s6 + $0x408] sm:$0xf0]  ;;  %v3683_v18 = vld [vmem:[%s5532_s6 + $0x404] sm:$0xf0] }
 0x144   : > { %v5159_v51 = vadd.f32 %v1114_v4, %v870_v32  ;;  %1689 = vmatmul.bf16.gmra.mxu2 %v4605_v52 }
 0x145   : > { %1718 = vmatmul.bf16.gmra.mxu3 %v4605_v52  ;;  %v3399_v52 = vld [vmem:[%s5532_s6 + $0x390] sm:$0xf]  ;;  %2284 = vmatpush.bf16.msra.mxu1 %v3492_v22 }
 0x146   : > { %v3400_v10 = vor.u32 %v3669_v37, %v3399_v52 }
 0x147   : > { %v843_v57 = vpop.f32.mrf.mxu2 }
 0x148   : > { %v844_v25 = vadd.f32 %v843_v57, %v5057_v28  ;;  %v1088_v16 = vpop.f32.mrf.mxu0  ;;  %v1117_v1 = vpop.f32.mrf.mxu1  ;;  %2053 = vmatpush.bf16.msra.mxu2 %v3400_v10  ;;  %v3666_v28 = vld [vmem:[%s5532_s6 + $0x384] sm:$0xf] }
 0x149   : > { %v872_v13 = vpop.f32.mrf.mxu3  ;;  %v3396_v40 = vor.u32 %v3666_v28, %v3393_v49 }
 0x14a   : > { %v873_v3 = vadd.f32 %v872_v13, %v5059_v7  ;;  %v5189_v11 = vadd.f32 %v1088_v16, %v844_v25  ;;  %1872 = vmatmul.bf16.gmra.mxu0 %v4539_v54  ;;  %1901 = vmatmul.bf16.gmra.mxu1 %v4539_v54  ;;  %v3684_v7 = vld [vmem:[%s5532_s6 + $0x414] sm:$0xf]  ;;  %v3391_v54 = vld [vmem:[%s5532_s6 + $0x380] sm:$0xf] }
 0x14b   : > { %v3484_v59 = vor.u32 %v3684_v7, %v3481_v50  ;;  %v3392_v47 = vor.u32 %v3667_v12, %v3391_v54  ;;  %2083 = vmatpush.bf16.msra.mxu3 %v3396_v40 }
 0x14c   : > { %v5193_v20 = vadd.f32 %v1117_v1, %v873_v3 }
 0x14d   : > { %2285 = vmatpush.bf16.msra.mxu1 %v3484_v59  ;;  %2054 = vmatpush.bf16.msra.mxu2 %v3392_v47 }
 0x14f   : > { %v845_v62 = vpop.f32.mrf.mxu2 }
 0x150   : > { %v846_v15 = vadd.f32 %v845_v62, %v5091_v34  ;;  %v1090_v44 = vpop.f32.mrf.mxu0  ;;  %v1119_v4 = vpop.f32.mrf.mxu1  ;;  %v3682_v34 = vld [vmem:[%s5532_s6 + $0x404] sm:$0xf] }
 0x151   : > { %v874_v55 = vpop.f32.mrf.mxu3  ;;  %v3476_v8 = vor.u32 %v3682_v34, %v3473_v14 }
 0x152   : > { %v875_v32 = vadd.f32 %v874_v55, %v5093_v31  ;;  %v5221_v35 = vadd.f32 %v1090_v44, %v846_v15  ;;  %v3471_v31 = vld [vmem:[%s5532_s6 + $0x400] sm:$0xf] }
 0x153   : > { %v3472_v37 = vor.u32 %v3683_v18, %v3471_v31  ;;  %2286 = vmatpush.bf16.msra.mxu1 %v3476_v8 }
 0x154   : > { %v5223_v42 = vadd.f32 %v1119_v4, %v875_v32  ;;  %1694 = vmatmul.bf16.gmra.mxu2 %v4670_v21 }
 0x155   : > { %1723 = vmatmul.bf16.gmra.mxu3 %v4670_v21  ;;  %2257 = vmatpush.bf16.msra.mxu0 %v3472_v37 }
 0x157   : > { %v848_v52 = vpop.f32.mrf.mxu2 }
 0x158   : > { %v849_v21 = vadd.f32 %v848_v52, %v4981_v2  ;;  %v1093_v57 = vpop.f32.mrf.mxu0  ;;  %v1122_v22 = vpop.f32.mrf.mxu1 }
 0x159   : > { %v877_v10 = vpop.f32.mrf.mxu3 }
 0x15a   : > { %v878_v24 = vadd.f32 %v877_v10, %v4983_v5  ;;  %v5241_v60 = vadd.f32 %v1093_v57, %v849_v21  ;;  %1877 = vmatmul.bf16.gmra.mxu0 %v4547_v30  ;;  %1906 = vmatmul.bf16.gmra.mxu1 %v4547_v30 }
 0x15c   : > { %v5245_v25 = vadd.f32 %v1122_v22, %v878_v24 }
 0x15f   : > { %v850_v16 = vpop.f32.mrf.mxu2 }
 0x160   : > { %v851_v1 = vadd.f32 %v850_v16, %v5021_v36  ;;  %v1095_v63 = vpop.f32.mrf.mxu0  ;;  %v1124_v2 = vpop.f32.mrf.mxu1 }
 0x161   : > { %v879_v13 = vpop.f32.mrf.mxu3 }
 0x162   : > { %v880_v3 = vadd.f32 %v879_v13, %v5023_v26  ;;  %v5249_v28 = vadd.f32 %v1095_v63, %v851_v1 }
 0x164   : > { %v5251_v49 = vadd.f32 %v1124_v2, %v880_v3  ;;  %1699 = vmatmul.bf16.gmra.mxu2 %v4709_v41 }
 0x165   : > { %1728 = vmatmul.bf16.gmra.mxu3 %v4709_v41 }
 0x167   : > { %v853_v5 = vpop.f32.mrf.mxu2 }
 0x168   : > { %v854_v30 = vadd.f32 %v853_v5, %v5049_v39  ;;  %v1098_v7 = vpop.f32.mrf.mxu0  ;;  %v1127_v40 = vpop.f32.mrf.mxu1 }
 0x169   : > { %v882_v50 = vpop.f32.mrf.mxu3 }
 0x16a   : > { %v883_v36 = vadd.f32 %v882_v50, %v5061_v61  ;;  %v5257_v54 = vadd.f32 %v1098_v7, %v854_v30  ;;  %1882 = vmatmul.bf16.gmra.mxu0 %v4673_v45  ;;  %1911 = vmatmul.bf16.gmra.mxu1 %v4673_v45 }
 0x16c   : > { %v5261_v26 = vadd.f32 %v1127_v40, %v883_v36 }
 0x16f   : > { %v855_v12 = vpop.f32.mrf.mxu2 }
 0x170   : > { %v856_v59 = vadd.f32 %v855_v12, %v5089_v38  ;;  %v1100_v41 = vpop.f32.mrf.mxu0  ;;  %v1129_v47 = vpop.f32.mrf.mxu1 }
 0x171   : > { %v884_v56 = vpop.f32.mrf.mxu3 }
 0x172   : > { %v885_v39 = vadd.f32 %v884_v56, %v5095_v0  ;;  %v5265_v23 = vadd.f32 %v1100_v41, %v856_v59 }
 0x174   : > { %v5267_v62 = vadd.f32 %v1129_v47, %v885_v39  ;;  %2055 = vmatmul.bf16.vlgmr.msra.gmra.mxu2 %v4474_v17 }
 0x175   : > { %2084 = vmatmul.bf16.vlgmr.msra.gmra.mxu3 %v4474_v17 }
 0x177   : > { %v1266_v61 = vpop.f32.mrf.mxu2 }
 0x178   : > { %v1315_v45 = vadd.f32 %v1266_v61, %v5125_v48  ;;  %v1482_v19 = vpop.f32.mrf.mxu0  ;;  %v1511_v15 = vpop.f32.mrf.mxu1 }
 0x179   : > { %v1295_v44 = vpop.f32.mrf.mxu3 }
 0x17a   : > { %v1316_v38 = vadd.f32 %v1295_v44, %v5129_v9  ;;  %v5273_v4 = vadd.f32 %v1482_v19, %v1315_v45  ;;  %2258 = vmatmul.bf16.vlgmr.msra.gmra.mxu0 %v4528_v27  ;;  %2287 = vmatmul.bf16.vlgmr.msra.gmra.mxu1 %v4528_v27 }
 0x17c   : > { %v5277_v0 = vadd.f32 %v1511_v15, %v1316_v38 }
 0x17f   : > { %v1268_v55 = vpop.f32.mrf.mxu2 }
 0x180   : > { %v1317_v32 = vadd.f32 %v1268_v55, %v5157_v6  ;;  %v1484_v17 = vpop.f32.mrf.mxu0  ;;  %v1513_v34 = vpop.f32.mrf.mxu1 }
 0x181   : > { %v1297_v14 = vpop.f32.mrf.mxu3 }
 0x182   : > { %v1318_v48 = vadd.f32 %v1297_v14, %v5159_v51  ;;  %v5281_v31 = vadd.f32 %v1484_v17, %v1317_v32 }
 0x184   : > { %v5283_v8 = vadd.f32 %v1513_v34, %v1318_v48  ;;  %2060 = vmatmul.bf16.gmra.mxu2 %v4278_v58 }
 0x185   : > { %2089 = vmatmul.bf16.gmra.mxu3 %v4278_v58 }
 0x187   : > { %v1271_v9 = vpop.f32.mrf.mxu2 }
 0x188   : > { %v1319_v27 = vadd.f32 %v1271_v9, %v5189_v11  ;;  %v1487_v18 = vpop.f32.mrf.mxu0  ;;  %v1516_v52 = vpop.f32.mrf.mxu1 }
 0x189   : > { %v1300_v37 = vpop.f32.mrf.mxu3 }
 0x18a   : > { %v1320_v6 = vadd.f32 %v1300_v37, %v5193_v20  ;;  %v5289_v21 = vadd.f32 %v1487_v18, %v1319_v27  ;;  %2263 = vmatmul.bf16.gmra.mxu0 %v4622_v43  ;;  %2292 = vmatmul.bf16.gmra.mxu1 %v4622_v43 }
 0x18c   : > { %v5293_v51 = vadd.f32 %v1516_v52, %v1320_v6 }
 0x18f   : > { %v1273_v57 = vpop.f32.mrf.mxu2 }
 0x190   : > { %v1321_v22 = vadd.f32 %v1273_v57, %v5221_v35  ;;  %v1489_v58 = vpop.f32.mrf.mxu0  ;;  %v1518_v10 = vpop.f32.mrf.mxu1 }
 0x191   : > { %v1302_v24 = vpop.f32.mrf.mxu3 }
 0x192   : > { %v1322_v11 = vadd.f32 %v1302_v24, %v5223_v42  ;;  %v5297_v16 = vadd.f32 %v1489_v58, %v1321_v22 }
 0x194   : > { %v5299_v1 = vadd.f32 %v1518_v10, %v1322_v11  ;;  %2065 = vmatmul.bf16.gmra.mxu2 %v4738_v29 }
 0x195   : > { %2094 = vmatmul.bf16.gmra.mxu3 %v4738_v29 }
 0x197   : > { %v1276_v20 = vpop.f32.mrf.mxu2 }
 0x198   : > { %v1323_v43 = vadd.f32 %v1276_v20, %v5241_v60  ;;  %v1492_v63 = vpop.f32.mrf.mxu0  ;;  %v1521_v2 = vpop.f32.mrf.mxu1 }
 0x199   : > { %v1305_v13 = vpop.f32.mrf.mxu3 }
 0x19a   : > { %v1324_v35 = vadd.f32 %v1305_v13, %v5245_v25  ;;  %v1539_v3 = vadd.f32 %v1492_v63, %v1323_v43  ;;  %2268 = vmatmul.bf16.gmra.mxu0 %v4713_v53  ;;  %2297 = vmatmul.bf16.gmra.mxu1 %v4713_v53 }
 0x19c   : > { %v1540_v42 = vadd.f32 %v1521_v2, %v1324_v35 }
 0x19f   : > { %v1278_v5 = vpop.f32.mrf.mxu2 }
 0x1a0   : > { %v1325_v30 = vadd.f32 %v1278_v5, %v5249_v28  ;;  %v1494_v7 = vpop.f32.mrf.mxu0  ;;  %v1523_v40 = vpop.f32.mrf.mxu1 }
 0x1a1   : > { %v1307_v29 = vpop.f32.mrf.mxu3 }
 0x1a2   : > { %v1326_v50 = vadd.f32 %v1307_v29, %v5251_v49  ;;  %v1541_v60 = vadd.f32 %v1494_v7, %v1325_v30 }
 0x1a4   : > { %v1542_v36 = vadd.f32 %v1523_v40, %v1326_v50  ;;  %2070 = vmatmul.bf16.gmra.mxu2 %v4747_v33 }
 0x1a5   : > { %2099 = vmatmul.bf16.gmra.mxu3 %v4747_v33 }
 0x1a7   : > { %v1281_v25 = vpop.f32.mrf.mxu2 }
 0x1a8   : > { %v1327_v12 = vadd.f32 %v1281_v25, %v5257_v54  ;;  %v1497_v59 = vpop.f32.mrf.mxu0  ;;  %v1526_v53 = vpop.f32.mrf.mxu1 }
 0x1a9   : > { %v1310_v41 = vpop.f32.mrf.mxu3 }
 0x1aa   : > { %v1328_v47 = vadd.f32 %v1310_v41, %v5261_v26  ;;  %v1543_v28 = vadd.f32 %v1497_v59, %v1327_v12  ;;  %2273 = vmatmul.bf16.gmra.mxu0 %v4716_v46  ;;  %2302 = vmatmul.bf16.gmra.mxu1 %v4716_v46 }
 0x1ac   : > { %v1544_v49 = vadd.f32 %v1526_v53, %v1328_v47 }
 0x1af   : > { %v1283_v56 = vpop.f32.mrf.mxu2 }
 0x1b0   : > { %v1329_v39 = vadd.f32 %v1283_v56, %v5265_v23  ;;  %v1499_v61 = vpop.f32.mrf.mxu0  ;;  %v1528_v45 = vpop.f32.mrf.mxu1 }
 0x1b1   : > { %v1312_v33 = vpop.f32.mrf.mxu3 }
 0x1b2   : > { %v1330_v19 = vadd.f32 %v1312_v33, %v5267_v62  ;;  %v5317_v54 = vadd.f32 %v1499_v61, %v1329_v39 }
 0x1b4   : > { %v5319_v15 = vadd.f32 %v1528_v45, %v1330_v19 }
 0x1b7   : > { %v1685_v44 = vpop.f32.mrf.mxu2 }
 0x1b8   : > { %v1734_v26 = vadd.f32 %v1685_v44, %v5273_v4  ;;  %v1868_v38 = vpop.f32.mrf.mxu0  ;;  %v1897_v55 = vpop.f32.mrf.mxu1 }
 0x1b9   : > { %v1714_v32 = vpop.f32.mrf.mxu3 }
 0x1ba   : > { %v1735_v46 = vadd.f32 %v1714_v32, %v5277_v0  ;;  %v1917_v17 = vadd.f32 %v1868_v38, %v1734_v26 }
 0x1bc   : > { %v1918_v34 = vadd.f32 %v1897_v55, %v1735_v46 }
 0x1bf   : > { %v1687_v23 = vpop.f32.mrf.mxu2 }
 0x1c0   : > { %v1736_v14 = vadd.f32 %v1687_v23, %v5281_v31  ;;  %v1870_v48 = vpop.f32.mrf.mxu0  ;;  %v1899_v9 = vpop.f32.mrf.mxu1 }
 0x1c1   : > { %v1716_v62 = vpop.f32.mrf.mxu3 }
 0x1c2   : > { %v1737_v27 = vadd.f32 %v1716_v62, %v5283_v8  ;;  %v1919_v18 = vadd.f32 %v1870_v48, %v1736_v14 }
 0x1c4   : > { %v1920_v52 = vadd.f32 %v1899_v9, %v1737_v27 }
 0x1c7   : > { %v1690_v37 = vpop.f32.mrf.mxu2 }
 0x1c8   : > { %v1738_v4 = vadd.f32 %v1690_v37, %v5289_v21  ;;  %v1873_v6 = vpop.f32.mrf.mxu0  ;;  %v1902_v57 = vpop.f32.mrf.mxu1 }
 0x1c9   : > { %v1719_v22 = vpop.f32.mrf.mxu3 }
 0x1ca   : > { %v1739_v0 = vadd.f32 %v1719_v22, %v5293_v51  ;;  %v5327_v58 = vadd.f32 %v1873_v6, %v1738_v4 }
 0x1cc   : > { %v5329_v10 = vadd.f32 %v1902_v57, %v1739_v0 }
 0x1cf   : > { %v1692_v31 = vpop.f32.mrf.mxu2 }
 0x1d0   : > { %v5331_v24 = vpop.f32.mrf.mxu0  ;;  %v5333_v11 = vpop.f32.mrf.mxu1 }
 0x1d1   : > { %v1721_v8 = vpop.f32.mrf.mxu3 }
 0x1d7   : > { %v1695_v20 = vpop.f32.mrf.mxu2 }
 0x1d8   : > { %v1742_v43 = vadd.f32 %v1695_v20, %v1539_v3  ;;  %v1878_v63 = vpop.f32.mrf.mxu0  ;;  %v1907_v2 = vpop.f32.mrf.mxu1 }
 0x1d9   : > { %v1724_v21 = vpop.f32.mrf.mxu3 }
 0x1da   : > { %v1743_v13 = vadd.f32 %v1724_v21, %v1540_v42  ;;  %v5335_v35 = vadd.f32 %v1878_v63, %v1742_v43  ;;  %v1740_v43 = vadd.f32 %v1692_v31, %v5297_v16 }
 0x1dc   : > { %v5337_v5 = vadd.f32 %v1907_v2, %v1743_v13  ;;  %v1923_v16 = vadd.f32 %v5331_v24, %v1740_v43 }
 0x1df   : > { %v1697_v51 = vpop.f32.mrf.mxu2 }
 0x1e0   : > { %v1744_v30 = vadd.f32 %v1697_v51, %v1541_v60  ;;  %v1880_v7 = vpop.f32.mrf.mxu0  ;;  %v1909_v40 = vpop.f32.mrf.mxu1 }
 0x1e1   : > { %v1726_v29 = vpop.f32.mrf.mxu3 }
 0x1e2   : > { %v1745_v50 = vadd.f32 %v1726_v29, %v1542_v36  ;;  %v5339_v25 = vadd.f32 %v1880_v7, %v1744_v30  ;;  %v1741_v30 = vadd.f32 %v1721_v8, %v5299_v1 }
 0x1e4   : > { %v5341_v12 = vadd.f32 %v1909_v40, %v1745_v50 }
 0x1e7   : > { %v1700_v59 = vpop.f32.mrf.mxu2 }
 0x1e8   : > { %v1746_v3 = vadd.f32 %v1700_v59, %v1543_v28  ;;  %v1883_v53 = vpop.f32.mrf.mxu0  ;;  %v1912_v41 = vpop.f32.mrf.mxu1  ;;  %v1924_v59 = vadd.f32 %v5333_v11, %v1741_v30 }
 0x1e9   : > { %v1729_v47 = vpop.f32.mrf.mxu3 }
 0x1ea   : > { %v1747_v42 = vadd.f32 %v1729_v47, %v1544_v49  ;;  %v5343_v56 = vadd.f32 %v1883_v53, %v1746_v3  ;;  %v2324_v49 = vld [vmem:[%s5533_s7] sm:$0x3] }
 0x1eb   : > { %v5356_v32 = vperm.slane %v2324_v49, 0  ;;  %v5358_v14 = vperm.slane %v2324_v49, 1 }
 0x1ec   : > { %v5345_v39 = vadd.f32 %v1912_v41, %v1747_v42 }
 0x1ef   : > { %v1702_v61 = vpop.f32.mrf.mxu2 }
 0x1f0   : > { %v5347_v60 = vpop.f32.mrf.mxu0  ;;  %v5349_v45 = vpop.f32.mrf.mxu1  ;;  %v5371_v3 = vadd.f32 %v1702_v61, %v5317_v54 }
 0x1f1   : > { %v5351_v36 = vpop.f32.mrf.mxu3 }
 0x1f7   : > { %v2056_v33 = vpop.f32.mrf.mxu2 }
 0x1f8   : > { %v2259_v19 = vpop.f32.mrf.mxu0  ;;  %v2288_v44 = vpop.f32.mrf.mxu1  ;;  %v2105_v28 = vadd.f32 %v2056_v33, %v1917_v17 }
 0x1f9   : > { %v2085_v26 = vpop.f32.mrf.mxu3 }
 0x1fa   : > { %v2106_v38 = vadd.f32 %v2085_v26, %v1918_v34  ;;  %v2308_v55 = vadd.f32 %v2259_v19, %v2105_v28 }
 0x1fc   : > { %v2309_v23 = vadd.f32 %v2288_v44, %v2106_v38  ;;  %v2330_v37 = vadd.f32 %v5356_v32, %v2308_v55 }
 0x1fe   : > { %v2331_v6 = vadd.f32 %v5358_v14, %v2309_v23  ;;  %v2346_v22 = vmax.f32 %v2330_v37, 0.0 }
 0x1ff   : > { %v2058_v46 = vpop.f32.mrf.mxu2 }
 0x200   : > { %v2107_v48 = vadd.f32 %v2058_v46, %v1919_v18  ;;  %v2261_v9 = vpop.f32.mrf.mxu0  ;;  %v2290_v62 = vpop.f32.mrf.mxu1  ;;  %v2347_v18 = vmax.f32 %v2331_v6, 0.0 }
 0x201   : > { %v2087_v27 = vpop.f32.mrf.mxu3 }
 0x202   : > { %v2108_v4 = vadd.f32 %v2087_v27, %v1920_v52  ;;  %v2310_v17 = vadd.f32 %v2261_v9, %v2107_v48 }
 0x204   : > { %v2332_v57 = vadd.f32 %v5356_v32, %v2310_v17  ;;  %v2311_v34 = vadd.f32 %v2290_v62, %v2108_v4 }
 0x206   : > { %v2348_v0 = vmax.f32 %v2332_v57, 0.0  ;;  %v2333_v20 = vadd.f32 %v5358_v14, %v2311_v34 }
 0x207   : > { %v2061_v63 = vpop.f32.mrf.mxu2 }
 0x208   : > { %v2362_v2 = vmax.f32 %v2346_v22, %v2348_v0  ;;  %v2349_v21 = vmax.f32 %v2333_v20, 0.0  ;;  %v2109_v13 = vadd.f32 %v2061_v63, %v5327_v58  ;;  %v2264_v51 = vpop.f32.mrf.mxu0  ;;  %v2293_v52 = vpop.f32.mrf.mxu1 }
 0x209   : > { %v2090_v7 = vpop.f32.mrf.mxu3 }
 0x20a   : > { %v2363_v40 = vmax.f32 %v2347_v18, %v2349_v21  ;;  %v2110_v29 = vadd.f32 %v2090_v7, %v5329_v10  ;;  %v2312_v50 = vadd.f32 %v2264_v51, %v2109_v13 }
 0x20c   : > { %v2378_v31 = vrot.slane %v2363_v40, 6  ;;  %v5374_v58 = vadd.f32 %v5356_v32, %v2312_v50  ;;  %v2313_v1 = vadd.f32 %v2293_v52, %v2110_v29 }
 0x20e   : > { %v2382_v8 = vsel %vm919_vm1, %v2362_v2, %v2378_v31  ;;  %v2384_v10 = vsel %vm2383_vm3, %v2362_v2, %v2378_v31  ;;  %v2387_v53 = vsel %vm2386_vm4, %v2362_v2, %v2378_v31  ;;  %v2390_v41 = vsel %vm2389_vm5, %v2378_v31, %v2362_v2 }
 0x20f   : > { %v2385_v47 = vrot.slane %v2384_v10, 2  ;;  %v2388_v24 = vrot.slane %v2387_v53, 4  ;;  %v2391_v42 = vrot.slane %v2390_v41, 6  ;;  %v3533_v33 = vrot.slane %v2382_v8, 9  ;;  %v2063_v11 = vpop.f32.mrf.mxu2 }
 0x210   : > { %v2111_v54 = vadd.f32 %v2063_v11, %v1923_v16  ;;  %v2266_v61 = vpop.f32.mrf.mxu0  ;;  %v2295_v19 = vpop.f32.mrf.mxu1  ;;  %v2350_v55 = vmax.f32 %v5374_v58, 0.0  ;;  %v2335_v46 = vadd.f32 %v5358_v14, %v2313_v1 }
 0x211   : > { %v3534_v44 = vrot.slane %v2385_v47, 9  ;;  %v3535_v26 = vrot.slane %v2388_v24, 9  ;;  %v3536_v28 = vrot.slane %v2391_v42, 9  ;;  %v2477_v49 = vmax.f32 %v2382_v8, %v3533_v33  ;;  %v2092_v38 = vpop.f32.mrf.mxu3 }
 0x212   : > { %v2112_v23 = vadd.f32 %v2092_v38, %v1924_v59  ;;  %v2314_v48 = vadd.f32 %v2266_v61, %v2111_v54  ;;  %v1749_v61 = vadd.f32 %v5351_v36, %v5319_v15  ;;  %v5410_v15 = vadd.f32 %v5347_v60, %v5371_v3 }
 0x213   : > { %v2478_v9 = vmax.f32 %v2385_v47, %v3534_v44  ;;  %v2479_v62 = vmax.f32 %v2388_v24, %v3535_v26  ;;  %v2480_v27 = vmax.f32 %v2391_v42, %v3536_v28  ;;  %v2509_v37 = vperm.slane %v2477_v49, 0 }
 0x214   : > { %v2510_v4 = vperm.slane %v2477_v49, 2  ;;  %v2612_v17 = vmul.f32 %v2477_v49, %v2477_v49  ;;  %v2336_v6 = vadd.f32 %v5356_v32, %v2314_v48  ;;  %v2315_v57 = vadd.f32 %v2295_v19, %v2112_v23 }
 0x215   : > { %v2511_v34 = vperm.slane %v2478_v9, 0  ;;  %v2512_v22 = vperm.slane %v2478_v9, 2  ;;  %v2513_v0 = vperm.slane %v2479_v62, 0  ;;  %v2514_v20 = vperm.slane %v2479_v62, 2 }
 0x216   : > { %v2515_v43 = vperm.slane %v2480_v27, 0  ;;  %v2516_v63 = vperm.slane %v2480_v27, 2  ;;  %v2613_v18 = vmul.f32 %v2478_v9, %v2478_v9  ;;  %v2614_v2 = vmul.f32 %v2479_v62, %v2479_v62 }
 0x217   : > { %v2542_v21 = vsel %vm2541_vm6, %v2511_v34, %v2509_v37  ;;  %v2555_v13 = vsel %vm2541_vm6, %v2512_v22, %v2510_v4  ;;  %v2615_v51 = vmul.f32 %v2480_v27, %v2480_v27  ;;  %v2644_v52 = vperm.slane %v2612_v17, 0  ;;  %v2066_v30 = vpop.f32.mrf.mxu2 }
 0x218   : > { %v2544_v7 = vsel %vm2543_vm7, %v2513_v0, %v2542_v21  ;;  %v2556_v40 = vsel %vm2543_vm7, %v2514_v20, %v2555_v13  ;;  %v2645_v29 = vperm.slane %v2612_v17, 2  ;;  %v2646_v50 = vperm.slane %v2613_v18, 0  ;;  %v2269_v16 = vpop.f32.mrf.mxu0  ;;  %v2298_v31 = vpop.f32.mrf.mxu1 }
 0x219   : > { %v5388_v59 = vsel %vm2545_vm8, %v2515_v43, %v2544_v7  ;;  %v5391_v58 = vsel %vm2545_vm8, %v2516_v63, %v2556_v40  ;;  %v2647_v1 = vperm.slane %v2613_v18, 2  ;;  %v2648_v8 = vperm.slane %v2614_v2, 0  ;;  %v2095_v10 = vpop.f32.mrf.mxu3 }
 0x21a   : > { %v2649_v53 = vperm.slane %v2614_v2, 2  ;;  %v2650_v41 = vperm.slane %v2615_v51, 0  ;;  %v2651_v47 = vperm.slane %v2615_v51, 2  ;;  %v2676_v24 = vsel %vm2541_vm6, %v2646_v50, %v2644_v52 }
 0x21b   : > { %v2677_v42 = vsel %vm2543_vm7, %v2648_v8, %v2676_v24  ;;  %v2683_v33 = vsel %vm2541_vm6, %v2647_v1, %v2645_v29  ;;  %v2352_v11 = vmax.f32 %v2336_v6, 0.0  ;;  %v2337_v54 = vadd.f32 %v5358_v14, %v2315_v57 }
 0x21c   : > { %v5400_v19 = vsel %vm2545_vm8, %v2650_v41, %v2677_v42  ;;  %v2684_v44 = vsel %vm2543_vm7, %v2649_v53, %v2683_v33  ;;  %v2113_v26 = vadd.f32 %v2066_v30, %v5335_v35  ;;  %v2351_v49 = vmax.f32 %v2335_v46, 0.0 }
 0x21d   : > { %v5405_v28 = vsel %vm2545_vm8, %v2651_v47, %v2684_v44  ;;  %v2364_v38 = vmax.f32 %v2350_v55, %v2352_v11  ;;  %v2353_v23 = vmax.f32 %v2337_v54, 0.0  ;;  %v2114_v48 = vadd.f32 %v2095_v10, %v5337_v5 }
 0x21e   : > { %v2316_v9 = vadd.f32 %v2269_v16, %v2113_v26  ;;  %v5414_v35 = vadd.f32 %v5349_v45, %v1749_v61 }
 0x21f   : > { %v2365_v62 = vmax.f32 %v2351_v49, %v2353_v23  ;;  %v2068_v27 = vpop.f32.mrf.mxu2  ;;  %v2317_v46 = vadd.f32 %v2298_v31, %v2114_v48 }
 0x220   : > { %v2115_v36 = vadd.f32 %v2068_v27, %v5339_v25  ;;  %v2271_v37 = vpop.f32.mrf.mxu0  ;;  %v2338_v5 = vadd.f32 %v5356_v32, %v2316_v9  ;;  %v2300_v57 = vpop.f32.mrf.mxu1 }
 0x221   : > { %v2379_v4 = vrot.slane %v2365_v62, 6  ;;  %v2097_v55 = vpop.f32.mrf.mxu3  ;;  %v2339_v51 = vadd.f32 %v5358_v14, %v2317_v46 }
 0x222   : > { %v2116_v17 = vadd.f32 %v2097_v55, %v5341_v12  ;;  %v2318_v6 = vadd.f32 %v2271_v37, %v2115_v36  ;;  %v2354_v13 = vmax.f32 %v2338_v5, 0.0 }
 0x223   : > { %v2392_v60 = vsel %vm919_vm1, %v2364_v38, %v2379_v4  ;;  %v2393_v25 = vsel %vm2383_vm3, %v2364_v38, %v2379_v4  ;;  %v2395_v3 = vsel %vm2386_vm4, %v2364_v38, %v2379_v4  ;;  %v2397_v45 = vsel %vm2389_vm5, %v2379_v4, %v2364_v38 }
 0x224   : > { %v2394_v34 = vrot.slane %v2393_v25, 2  ;;  %v2396_v22 = vrot.slane %v2395_v3, 4  ;;  %v2398_v0 = vrot.slane %v2397_v45, 6  ;;  %v3537_v20 = vrot.slane %v2392_v60, 9 }
 0x225   : > { %v2340_v43 = vadd.f32 %v5356_v32, %v2318_v6  ;;  %v2319_v12 = vadd.f32 %v2300_v57, %v2116_v17  ;;  %v2355_v17 = vmax.f32 %v2339_v51, 0.0 }
 0x226   : > { %v3538_v63 = vrot.slane %v2394_v34, 9  ;;  %v3539_v18 = vrot.slane %v2396_v22, 9  ;;  %v3540_v2 = vrot.slane %v2398_v0, 9  ;;  %v2481_v21 = vmax.f32 %v2392_v60, %v3537_v20 }
 0x227   : > { %v2356_v52 = vmax.f32 %v2340_v43, 0.0  ;;  %v2341_v30 = vadd.f32 %v5358_v14, %v2319_v12  ;;  %v2071_v7 = vpop.f32.mrf.mxu2 }
 0x228   : > { %v2482_v40 = vmax.f32 %v2394_v34, %v3538_v63  ;;  %v2483_v29 = vmax.f32 %v2396_v22, %v3539_v18  ;;  %v2484_v50 = vmax.f32 %v2398_v0, %v3540_v2  ;;  %v2517_v16 = vperm.slane %v2481_v21, 0  ;;  %v2274_v41 = vpop.f32.mrf.mxu0  ;;  %v2303_v48 = vpop.f32.mrf.mxu1 }
 0x229   : > { %v2518_v31 = vperm.slane %v2481_v21, 2  ;;  %v2616_v1 = vmul.f32 %v2481_v21, %v2481_v21  ;;  %v2366_v8 = vmax.f32 %v2354_v13, %v2356_v52  ;;  %v2357_v10 = vmax.f32 %v2341_v30, 0.0  ;;  %v2100_v53 = vpop.f32.mrf.mxu3 }
 0x22a   : > { %v2519_v47 = vperm.slane %v2482_v40, 0  ;;  %v2520_v24 = vperm.slane %v2482_v40, 2  ;;  %v2521_v42 = vperm.slane %v2483_v29, 0  ;;  %v2522_v33 = vperm.slane %v2483_v29, 2 }
 0x22b   : > { %v2523_v11 = vperm.slane %v2484_v50, 0  ;;  %v2524_v54 = vperm.slane %v2484_v50, 2  ;;  %v2548_v61 = vsel %vm2547_vm9, %v2517_v16, %v5388_v59  ;;  %v2558_v44 = vsel %vm2547_vm9, %v2518_v31, %v5391_v58 }
 0x22c   : > { %v2550_v26 = vsel %vm2549_vm10, %v2519_v47, %v2548_v61  ;;  %v2559_v49 = vsel %vm2549_vm10, %v2520_v24, %v2558_v44  ;;  %v2617_v38 = vmul.f32 %v2482_v40, %v2482_v40  ;;  %v2618_v23 = vmul.f32 %v2483_v29, %v2483_v29 }
 0x22d   : > { %v2552_v9 = vsel %vm2551_vm11, %v2521_v42, %v2550_v26  ;;  %v2560_v59 = vsel %vm2551_vm11, %v2522_v33, %v2559_v49  ;;  %v2619_v62 = vmul.f32 %v2484_v50, %v2484_v50  ;;  %v2652_v58 = vperm.slane %v2616_v1, 0 }
 0x22e   : > { %v5440_v27 = vsel %vm2553_vm12, %v2523_v11, %v2552_v9  ;;  %v5443_v36 = vsel %vm2553_vm12, %v2524_v54, %v2560_v59  ;;  %v2653_v37 = vperm.slane %v2616_v1, 2  ;;  %v2654_v4 = vperm.slane %v2617_v38, 0 }
 0x22f   : > { %2580 = vst [vmem:[%s5433_s18] sm:$0xff] %v5440_v27  ;;  %v2655_v55 = vperm.slane %v2617_v38, 2  ;;  %v2656_v5 = vperm.slane %v2618_v23, 0  ;;  %v2657_v46 = vperm.slane %v2618_v23, 2  ;;  %v2073_v6 = vpop.f32.mrf.mxu2  ;;  %v2658_v57 = vperm.slane %v2619_v62, 0 }
 0x230   : > { %2582 = vst.msk [vmem:[%s5433_s18 + $0x8] sm:$0xff] %vm2581_vm13, %v5443_v36  ;;  %v2659_v60 = vperm.slane %v2619_v62, 2  ;;  %v2679_v25 = vsel %vm2547_vm9, %v2652_v58, %v5400_v19  ;;  %v2686_v3 = vsel %vm2547_vm9, %v2653_v37, %v5405_v28  ;;  %v2367_v22 = vmax.f32 %v2355_v17, %v2357_v10  ;;  %v2276_v13 = vpop.f32.mrf.mxu0  ;;  %v2305_v31 = vpop.f32.mrf.mxu1 }
 0x231   : > { %v2680_v45 = vsel %vm2549_vm10, %v2654_v4, %v2679_v25  ;;  %v2687_v34 = vsel %vm2549_vm10, %v2655_v55, %v2686_v3  ;;  %v2117_v0 = vadd.f32 %v2071_v7, %v5343_v56  ;;  %v2102_v20 = vpop.f32.mrf.mxu3  ;;  %v2118_v63 = vadd.f32 %v2100_v53, %v5345_v39 }
 0x232   : > { %v2681_v43 = vsel %vm2551_vm11, %v2656_v5, %v2680_v45  ;;  %v2688_v12 = vsel %vm2551_vm11, %v2657_v46, %v2687_v34  ;;  %v2119_v18 = vadd.f32 %v2073_v6, %v5410_v15  ;;  %v2380_v2 = vrot.slane %v2367_v22, 6 }
 0x233   : > { %v5462_v19 = vsel %vm2553_vm12, %v2658_v57, %v2681_v43  ;;  %v5465_v28 = vsel %vm2553_vm12, %v2659_v60, %v2688_v12  ;;  %v2320_v21 = vadd.f32 %v2274_v41, %v2117_v0  ;;  %v2321_v51 = vadd.f32 %v2303_v48, %v2118_v63 }
 0x234   : > { %v2120_v56 = vadd.f32 %v2102_v20, %v5414_v35  ;;  %v2322_v52 = vadd.f32 %v2276_v13, %v2119_v18  ;;  %v2399_v30 = vsel %vm919_vm1, %v2366_v8, %v2380_v2  ;;  %v2400_v7 = vsel %vm2383_vm3, %v2366_v8, %v2380_v2 }
 0x235   : > { %v2402_v39 = vsel %vm2386_vm4, %v2366_v8, %v2380_v2  ;;  %v2404_v15 = vsel %vm2389_vm5, %v2380_v2, %v2366_v8  ;;  %v2401_v40 = vrot.slane %v2400_v7, 2  ;;  %v3541_v16 = vrot.slane %v2399_v30, 9 }
 0x236   : > { %v2403_v29 = vrot.slane %v2402_v39, 4  ;;  %v2405_v50 = vrot.slane %v2404_v15, 6  ;;  %v2342_v1 = vadd.f32 %v5356_v32, %v2320_v21  ;;  %v2343_v10 = vadd.f32 %v5358_v14, %v2321_v51 }
 0x237   : > { %v2344_v35 = vadd.f32 %v5356_v32, %v2322_v52  ;;  %v2323_v53 = vadd.f32 %v2305_v31, %v2120_v56  ;;  %v3542_v41 = vrot.slane %v2401_v40, 9  ;;  %v2485_v42 = vmax.f32 %v2399_v30, %v3541_v16 }
 0x238   : > { %v3543_v47 = vrot.slane %v2403_v29, 9  ;;  %v3544_v24 = vrot.slane %v2405_v50, 9  ;;  %v2358_v33 = vmax.f32 %v2342_v1, 0.0  ;;  %v2359_v11 = vmax.f32 %v2343_v10, 0.0 }
 0x239   : > { %v2360_v54 = vmax.f32 %v2344_v35, 0.0  ;;  %v2345_v8 = vadd.f32 %v5358_v14, %v2323_v53  ;;  %v2486_v61 = vmax.f32 %v2401_v40, %v3542_v41  ;;  %v2525_v49 = vperm.slane %v2485_v42, 0 }
 0x23a   : > { %v2487_v44 = vmax.f32 %v2403_v29, %v3543_v47  ;;  %v2488_v26 = vmax.f32 %v2405_v50, %v3544_v24  ;;  %v2526_v38 = vperm.slane %v2485_v42, 2  ;;  %v2620_v23 = vmul.f32 %v2485_v42, %v2485_v42 }
 0x23b   : > { %v2368_v48 = vmax.f32 %v2358_v33, %v2360_v54  ;;  %v2361_v9 = vmax.f32 %v2345_v8, 0.0  ;;  %v2527_v59 = vperm.slane %v2486_v61, 0  ;;  %v2528_v32 = vperm.slane %v2486_v61, 2 }
 0x23c   : > { %v2529_v62 = vperm.slane %v2487_v44, 0  ;;  %v2530_v58 = vperm.slane %v2487_v44, 2  ;;  %v2531_v37 = vperm.slane %v2488_v26, 0  ;;  %v2532_v4 = vperm.slane %v2488_v26, 2 }
 0x23d   : > { %v2621_v55 = vmul.f32 %v2486_v61, %v2486_v61  ;;  %v2622_v5 = vmul.f32 %v2487_v44, %v2487_v44  ;;  %v2562_v46 = vsel %vm2541_vm6, %v2527_v59, %v2525_v49  ;;  %v2569_v14 = vsel %vm2541_vm6, %v2528_v32, %v2526_v38 }
 0x23e   : > { %v2623_v17 = vmul.f32 %v2488_v26, %v2488_v26  ;;  %v2660_v6 = vperm.slane %v2620_v23, 0  ;;  %v2563_v57 = vsel %vm2543_vm7, %v2529_v62, %v2562_v46  ;;  %v2570_v60 = vsel %vm2543_vm7, %v2530_v58, %v2569_v14 }
 0x23f   : > { %v2661_v25 = vperm.slane %v2620_v23, 2  ;;  %v2662_v3 = vperm.slane %v2621_v55, 0  ;;  %v2564_v45 = vsel %vm2545_vm8, %v2531_v37, %v2563_v57  ;;  %v2571_v34 = vsel %vm2545_vm8, %v2532_v4, %v2570_v60 }
 0x240   : > { %v2663_v22 = vperm.slane %v2621_v55, 2  ;;  %v2664_v0 = vperm.slane %v2622_v5, 0  ;;  %v2665_v20 = vperm.slane %v2622_v5, 2  ;;  %v2666_v43 = vperm.slane %v2623_v17, 0 }
 0x241   : > { %v2690_v12 = vsel %vm2541_vm6, %v2662_v3, %v2660_v6  ;;  %v2667_v63 = vperm.slane %v2623_v17, 2  ;;  %v2369_v21 = vmax.f32 %v2359_v11, %v2361_v9  ;;  %v2592_v42 = vsel %vm2581_vm13, %v5443_v36, 0.0 }
 0x242   : > { %v2691_v18 = vsel %vm2543_vm7, %v2664_v0, %v2690_v12  ;;  %v2697_v2 = vsel %vm2541_vm6, %v2663_v22, %v2661_v25 }
 0x243   : > { %v2692_v13 = vsel %vm2545_vm8, %v2666_v43, %v2691_v18  ;;  %v2698_v51 = vsel %vm2543_vm7, %v2665_v20, %v2697_v2  ;;  %v2381_v52 = vrot.slane %v2369_v21, 6 }
 0x244   : > { %v2699_v56 = vsel %vm2545_vm8, %v2667_v63, %v2698_v51 }
 0x245   : > { %v2406_v30 = vsel %vm919_vm1, %v2368_v48, %v2381_v52  ;;  %v2407_v7 = vsel %vm2383_vm3, %v2368_v48, %v2381_v52  ;;  %v2409_v39 = vsel %vm2386_vm4, %v2368_v48, %v2381_v52  ;;  %v2411_v15 = vsel %vm2389_vm5, %v2381_v52, %v2368_v48 }
 0x246   : > { %v2408_v40 = vrot.slane %v2407_v7, 2  ;;  %v2410_v29 = vrot.slane %v2409_v39, 4  ;;  %v2412_v50 = vrot.slane %v2411_v15, 6  ;;  %v3545_v16 = vrot.slane %v2406_v30, 9 }
 0x248   : > { %v3546_v31 = vrot.slane %v2408_v40, 9  ;;  %v3547_v1 = vrot.slane %v2410_v29, 9  ;;  %v3548_v10 = vrot.slane %v2412_v50, 9  ;;  %v2489_v35 = vmax.f32 %v2406_v30, %v3545_v16 }
 0x24a   : > { %v2490_v53 = vmax.f32 %v2408_v40, %v3546_v31  ;;  %v2491_v41 = vmax.f32 %v2410_v29, %v3547_v1  ;;  %v2492_v47 = vmax.f32 %v2412_v50, %v3548_v10  ;;  %v2533_v24 = vperm.slane %v2489_v35, 0 }
 0x24b   : > { %v2534_v33 = vperm.slane %v2489_v35, 2  ;;  %v2624_v11 = vmul.f32 %v2489_v35, %v2489_v35  ;;  %v2607_v10 = vlaneseq }
 0x24c   : > { %v2535_v54 = vperm.slane %v2490_v53, 0  ;;  %v2536_v8 = vperm.slane %v2490_v53, 2  ;;  %v2537_v61 = vperm.slane %v2491_v41, 0  ;;  %v2538_v44 = vperm.slane %v2491_v41, 2 }
 0x24d   : > { %v2539_v26 = vperm.slane %v2492_v47, 0  ;;  %v2540_v49 = vperm.slane %v2492_v47, 2  ;;  %v2565_v38 = vsel %vm2547_vm9, %v2533_v24, %v2564_v45  ;;  %v2572_v23 = vsel %vm2547_vm9, %v2534_v33, %v2571_v34 }
 0x24e   : > { %v2566_v48 = vsel %vm2549_vm10, %v2535_v54, %v2565_v38  ;;  %v2573_v9 = vsel %vm2549_vm10, %v2536_v8, %v2572_v23  ;;  %v2625_v59 = vmul.f32 %v2490_v53, %v2490_v53  ;;  %v2626_v36 = vmul.f32 %v2491_v41, %v2491_v41 }
 0x24f   : > { %v2567_v32 = vsel %vm2551_vm11, %v2537_v61, %v2566_v48  ;;  %v2574_v62 = vsel %vm2551_vm11, %v2538_v44, %v2573_v9  ;;  %v2627_v58 = vmul.f32 %v2492_v47, %v2492_v47  ;;  %v2668_v37 = vperm.slane %v2624_v11, 0 }
 0x250   : > { %v2568_v4 = vsel %vm2553_vm12, %v2539_v26, %v2567_v32  ;;  %v2575_v55 = vsel %vm2553_vm12, %v2540_v49, %v2574_v62  ;;  %v2669_v5 = vperm.slane %v2624_v11, 2  ;;  %v2670_v46 = vperm.slane %v2625_v59, 0 }
 0x251   : > { %2583 = vst [vmem:[%s5433_s18 + $0x10] sm:$0xff] %v2568_v4  ;;  %v2585_v14 = vadd.f32 %v2568_v4, %v5440_v27  ;;  %v2593_v17 = vsel %vm2581_vm13, %v2575_v55, 0.0  ;;  %v2671_v6 = vperm.slane %v2625_v59, 2  ;;  %v2672_v57 = vperm.slane %v2626_v36, 0 }
 0x252   : > { %2584 = vst.msk [vmem:[%s5433_s18 + $0x18] sm:$0xff] %vm2581_vm13, %v2575_v55  ;;  %v2594_v60 = vadd.f32 %v2593_v17, %v2592_v42  ;;  %v2673_v25 = vperm.slane %v2626_v36, 2  ;;  %v2674_v45 = vperm.slane %v2627_v58, 0  ;;  %v2693_v34 = vsel %vm2547_vm9, %v2668_v37, %v2692_v13 }
 0x253   : > { %v2586_v3 = vrot.slane %v2585_v14, 4  ;;  %v2700_v22 = vsel %vm2547_vm9, %v2669_v5, %v2699_v56  ;;  %v2675_v20 = vperm.slane %v2627_v58, 2  ;;  %v2694_v43 = vsel %vm2549_vm10, %v2670_v46, %v2693_v34 }
 0x254   : > { %v2595_v0 = vrot.slane %v2594_v60, 4  ;;  %v2701_v27 = vsel %vm2549_vm10, %v2671_v6, %v2700_v22  ;;  %v2695_v63 = vsel %vm2551_vm11, %v2672_v57, %v2694_v43  ;;  %v2715_v13 = vsel %vm2581_vm13, %v5465_v28, 0.0 }
 0x255   : > { %v2587_v12 = vadd.f32 %v2586_v3, %v2585_v14  ;;  %v2702_v18 = vsel %vm2551_vm11, %v2673_v25, %v2701_v27  ;;  %v2696_v21 = vsel %vm2553_vm12, %v2674_v45, %v2695_v63  ;;  %vm2609_vm15 = vcmp.lt.s32.totalorder %v2607_v10, 192 }
 0x256   : > { %v2596_v2 = vadd.f32 %v2595_v0, %v2594_v60  ;;  %v2703_v51 = vsel %vm2553_vm12, %v2675_v20, %v2702_v18  ;;  %v2708_v52 = vadd.f32 %v2696_v21, %v5462_v19 }
 0x257   : > { %v2588_v56 = vrot.slane %v2587_v12, 2  ;;  %v2716_v30 = vsel %vm2581_vm13, %v2703_v51, 0.0 }
 0x258   : > { %v2597_v7 = vrot.slane %v2596_v2, 2  ;;  %v2717_v39 = vadd.f32 %v2716_v30, %v2715_v13  ;;  %v2709_v40 = vrot.slane %v2708_v52, 4 }
 0x259   : > { %v2589_v15 = vadd.f32 %v2588_v56, %v2587_v12 }
 0x25a   : > { %v2598_v29 = vadd.f32 %v2597_v7, %v2596_v2  ;;  %v2718_v50 = vrot.slane %v2717_v39, 4  ;;  %v2710_v16 = vadd.f32 %v2709_v40, %v2708_v52 }
 0x25b   : > { %v2590_v31 = vrot.slane %v2589_v15, 1 }
 0x25c   : > { %v2599_v1 = vrot.slane %v2598_v29, 1  ;;  %v2719_v35 = vadd.f32 %v2718_v50, %v2717_v39  ;;  %v2711_v53 = vrot.slane %v2710_v16, 2 }
 0x25d   : > { %v2591_v19 = vadd.f32 %v2590_v31, %v2589_v15 }
 0x25e   : > { %v2600_v41 = vadd.f32 %v2599_v1, %v2598_v29  ;;  %v2720_v28 = vrot.slane %v2719_v35, 2  ;;  %v2712_v47 = vadd.f32 %v2711_v53, %v2710_v16 }
 0x260   : > { %v2603_v24 = vrot.slane %v2600_v41, 7  ;;  %v2721_v42 = vadd.f32 %v2720_v28, %v2719_v35  ;;  %v2713_v11 = vrot.slane %v2712_v47, 1 }
 0x262   : > { %v2605_v33 = vsel %vm2604_vm14, %v2591_v19, %v2603_v24  ;;  %v2722_v54 = vrot.slane %v2721_v42, 1  ;;  %v2714_v61 = vadd.f32 %v2713_v11, %v2712_v47 }
 0x263   : > { %2611 = vst.msk [vmem:[%s345_s21] ss:$2 sm:$0x3] %vm2609_vm15, %v2605_v33 }
 0x264   : > { %v2723_v8 = vadd.f32 %v2722_v54, %v2721_v42 }
 0x266   : > { %v2726_v44 = vrot.slane %v2723_v8, 7 }
 0x268   : > { %v2727_v26 = vsel %vm2604_vm14, %v2714_v61, %v2726_v44 }
 0x269   : > { %3549 = vst.msk [vmem:[%s345_s21 + $0x1] ss:$2 sm:$0x3] %vm2609_vm15, %v2727_v26 }
 0x26a PF: > { %s20_s30 = sadd.s32 1, %s3735_s30  }
 0x26b   : > { %p17_p4 = scmp.ge.s32.totalorder %s20_s30, 4  }
 0x26d   :  { %19 = sbr.rel (!%p17_p4) target bundleno = 1 (0x1), region = 103 }

// kernel: vae_encoder_forward.9
= control target key start
LH: loop header
LB: loop body
LE: loop exit
PB: predicated region body
PF: predicated region fallthrough
CT: control target
= control target key end

     0   :  { %s608_s18 = smov 0   ;;  %s686_s0 = inlined_call_operand.vmem [shape: f32[2,16,256], index: 0, kind: input, shape index: {}]   ;;  %s687_s1 = inlined_call_operand.vmem [shape: f32[1,256], index: 1, kind: input, shape index: {}]   ;;  %s688_s2 = inlined_call_operand.vmem [shape: f32[1,256], index: 2, kind: input, shape index: {}]   ;;  %s689_s3 = inlined_call_operand.vmem [shape: bf16[256,128], index: 3, kind: input, shape index: {}]   ;;  %s690_s4 = inlined_call_operand.vmem [shape: f32[1,128], index: 4, kind: input, shape index: {}]   ;;  %s691_s5 = inlined_call_operand.vmem [shape: f32[2,16,128], index: 5, kind: output, shape index: {}]  }
   0x1 LB: > { %s468_s19 = sadd.s32 4294967295, %s576_s18   ;;  %p472_p0 = scmp.ge.s32.totalorder %s576_s18, 1  ;;  %s576_s18 = sphi %s608_s18, %s15_s18  }
   0x2   : > { %p187_p1 = scmp.lt.s32.totalorder %s576_s18, 3 }
   0x4   : > { %p188_p2 = pnand %p472_p0, %p187_p1 }
   0x5   : > { %p215_p3 = scmp.lt.s32.totalorder (!%p188_p2), %s468_s19, 1 }
   0x6   : > { %191 = sbr.rel (%p188_p2) target bundleno = 182 (0xb6), region = 40 }
   0xb   : > { %v552_v0 = vld [vmem:[%s689_s3 + $0x38] sm:$0xff]  ;;  %v551_v2 = vld [vmem:[%s689_s3 + $0x30] sm:$0xff]  ;;  %v550_v4 = vld [vmem:[%s689_s3 + $0x28] sm:$0xff]  ;;  %s693_s19 = smov (!%p215_p3, %s468_s19), 1 }
   0xc   : > { %v560_v1 = vld [vmem:[%s689_s3 + $0x78] sm:$0xff]  ;;  %383 = vmatpush.bf16.msra.mxu0 %v552_v0  ;;  %v559_v3 = vld [vmem:[%s689_s3 + $0x70] sm:$0xff]  ;;  %v558_v5 = vld [vmem:[%s689_s3 + $0x68] sm:$0xff]  ;;  %s543_s11 = sshll.u32 %s693_s19, 5  ;;  %s544_s14 = sshll.u32 %s693_s19, 4 }
   0xd   : > { %397 = vmatpush.bf16.msra.mxu1 %v560_v1  ;;  %v549_v6 = vld [vmem:[%s689_s3 + $0x20] sm:$0xff]  ;;  %v548_v8 = vld [vmem:[%s689_s3 + $0x18] sm:$0xff]  ;;  %s219_s20 = scalar_lea.vmem %s686_s0, %s543_s11  ;;  %v547_v11 = vld [vmem:[%s689_s3 + $0x10] sm:$0xff]  ;;  %s224_s17 = scalar_lea.vmem %s691_s5, %s544_s14 }
   0xe   : > { %v557_v7 = vld [vmem:[%s689_s3 + $0x60] sm:$0xff]  ;;  %v556_v9 = vld [vmem:[%s689_s3 + $0x58] sm:$0xff]  ;;  %v555_v12 = vld [vmem:[%s689_s3 + $0x50] sm:$0xff] }
   0xf   : > { %v229_v10 = vld [vmem:[%s687_s1] sm:$0x3]  ;;  %v227_v17 = vld [vmem:[%s219_s20 + $0x10] sm:$0xff]  ;;  %v226_v18 = vld [vmem:[%s219_s20 + $0x8] sm:$0xff] }
  0x10   : > { %384 = vmatpush.bf16.msra.mxu0 %v551_v2  ;;  %v225_v13 = vld [vmem:[%s219_s20] sm:$0xff]  ;;  %v231_v14 = vperm.slane %v229_v10, 0  ;;  %v232_v16 = vperm.slane %v229_v10, 1  ;;  %v228_v19 = vld [vmem:[%s219_s20 + $0x18] sm:$0xff]  ;;  %v546_v26 = vld [vmem:[%s689_s3 + $0x8] sm:$0xff] }
  0x11   : > { %398 = vmatpush.bf16.msra.mxu1 %v559_v3  ;;  %v239_v15 = vld [vmem:[%s688_s2] sm:$0x3]  ;;  %v554_v27 = vld [vmem:[%s689_s3 + $0x48] sm:$0xff] }
  0x12   : > { %v241_v20 = vperm.slane %v239_v15, 0  ;;  %v242_v21 = vperm.slane %v239_v15, 1  ;;  %v235_v22 = vmul.f32 %v231_v14, %v225_v13  ;;  %v237_v23 = vmul.f32 %v231_v14, %v227_v17  ;;  %v545_v32 = vld [vmem:[%s689_s3] sm:$0xff] }
  0x13   : > { %v236_v24 = vmul.f32 %v232_v16, %v226_v18  ;;  %v238_v25 = vmul.f32 %v232_v16, %v228_v19  ;;  %v553_v33 = vld [vmem:[%s689_s3 + $0x40] sm:$0xff] }
  0x14   : > { %385 = vmatpush.bf16.msra.mxu0 %v550_v4  ;;  %v245_v28 = vadd.f32 %v241_v20, %v235_v22  ;;  %v247_v29 = vadd.f32 %v241_v20, %v237_v23  ;;  %v569_v36 = vld [vmem:[%s690_s4] ss:$0 sm:$0xff] }
  0x15   : > { %399 = vmatpush.bf16.msra.mxu1 %v558_v5  ;;  %v246_v30 = vadd.f32 %v242_v21, %v236_v24  ;;  %v248_v31 = vadd.f32 %v242_v21, %v238_v25 }
  0x16   : > { %v249_v34 = vpack.c.bf16 %v247_v29, %v245_v28 }
  0x17   : > { %v250_v35 = vpack.c.bf16 %v248_v31, %v246_v30 }
  0x18   : > { %386 = vmatpush.bf16.msra.mxu0 %v549_v6 }
  0x19   : > { %400 = vmatpush.bf16.msra.mxu1 %v557_v7 }
  0x1c   : > { %387 = vmatpush.bf16.msra.mxu0 %v548_v8 }
  0x1d   : > { %401 = vmatpush.bf16.msra.mxu1 %v556_v9 }
  0x20   : > { %388 = vmatpush.bf16.msra.mxu0 %v547_v11 }
  0x21   : > { %402 = vmatpush.bf16.msra.mxu1 %v555_v12 }
  0x24   : > { %389 = vmatpush.bf16.msra.mxu0 %v546_v26 }
  0x25   : > { %403 = vmatpush.bf16.msra.mxu1 %v554_v27 }
  0x28   : > { %390 = vmatpush.bf16.msra.mxu0 %v545_v32 }
  0x29   : > { %404 = vmatpush.bf16.msra.mxu1 %v553_v33 }
  0x2b   : > { %391 = vmatmul.bf16.vlgmr.msra.gmra.mxu0 %v249_v34 }
  0x2c   : > { %405 = vmatmul.bf16.vlgmr.msra.gmra.mxu1 %v250_v35 }
  0xa8   : > { %v392_v37 = vpop.f32.mrf.mxu0 }
  0xa9   : > { %v406_v38 = vpop.f32.mrf.mxu1  ;;  %v393_v39 = vadd.f32 %v569_v36, %v392_v37 }
  0xab   : > { %v407_v40 = vadd.f32 %v406_v38, %v393_v39 }
  0xad   : > { %411 = vst [vmem:[%s224_s17] sm:$0xff] %v407_v40 }
  0xb0   : > { %v394_v41 = vpop.f32.mrf.mxu0 }
  0xb1   : > { %v395_v42 = vadd.f32 %v569_v36, %v394_v41  ;;  %v408_v43 = vpop.f32.mrf.mxu1 }
  0xb3   : > { %v409_v44 = vadd.f32 %v408_v43, %v395_v42 }
  0xb5   : > { %412 = vst [vmem:[%s224_s17 + $0x8] sm:$0xff] %v409_v44 }
  0xb6 PF: > { %s15_s18 = sadd.s32 1, %s576_s18  }
  0xb7   : > { %p12_p4 = scmp.ge.s32.totalorder %s15_s18, 4  }
  0xb9   :  { %14 = sbr.rel (!%p12_p4) target bundleno = 1 (0x1), region = 70 }

// kernel: vae_encoder_forward.8
= control target key start
LH: loop header
LB: loop body
LE: loop exit
PB: predicated region body
PF: predicated region fallthrough
CT: control target
= control target key end

     0   :  { %s4034_s30 = smov 0   ;;  %s5954_s0 = inlined_call_operand.vmem [shape: f32[2,32,192], index: 0, kind: input, shape index: {}]   ;;  %s5955_s1 = inlined_call_operand.vmem [shape: f32[1,192], index: 1, kind: input, shape index: {}]   ;;  %s5956_s2 = inlined_call_operand.vmem [shape: f32[1,192], index: 2, kind: input, shape index: {}]   ;;  %s5957_s3 = inlined_call_operand.vmem [shape: f32[32,1], index: 3, kind: input, shape index: {}]   ;;  %s5958_s4 = inlined_call_operand.vmem [shape: f32[16,1], index: 4, kind: input, shape index: {}]   ;;  %s5959_s5 = inlined_call_operand.vmem [shape: f32[16,1], index: 5, kind: input, shape index: {}]   ;;  %s5960_s6 = inlined_call_operand.vmem [shape: bf16[9,192,256], index: 6, kind: input, shape index: {}]   ;;  %s5961_s7 = inlined_call_operand.vmem [shape: f32[1,256], index: 7, kind: input, shape index: {}]   ;;  %s5962_s8 = inlined_call_operand.vmem [shape: f32[2,16,256], index: 8, kind: output, shape index: {0}]   ;;  %s5963_s9 = inlined_call_operand.vmem [shape: f32[2,2,256], index: 9, kind: output, shape index: {1}]  }
   0x1 LB: > { %s2656_s10 = sadd.s32 4294967295, %s3981_s30   ;;  %p2660_p0 = scmp.ge.s32.totalorder %s3981_s30, 1  ;;  %s3981_s30 = sphi %s4034_s30, %s20_s30  }
   0x2   : > { %p290_p1 = scmp.lt.s32.totalorder %s3981_s30, 3 }
   0x4   : > { %p291_p2 = pnand %p2660_p0, %p290_p1 }
   0x6   : > { %294 = sbr.rel (%p291_p2) target bundleno = 493 (0x1ed), region = 52 }
   0xb   : > { %v385_v0 = vld [vmem:[%s5957_s3 + $0x10] sm:$0xff]  ;;  %v383_v1 = vld [vmem:[%s5957_s3] sm:$0xff]  ;;  %v3983_v2 = vmov 0   ;;  %v416_v3 = vld [vmem:[%s5958_s4 + $0x8] sm:$0xff]  ;;  %p331_p3 = scmp.lt.s32.totalorder %s2656_s10, 1  ;;  %vm1164_vm0 = vcmask 1045504  }
   0xc   : > { %3973 = vset.pattern.permute.xlu1 %v3983_v2  ;;  %3972 = vset.pattern.permute.xlu0 %v3983_v2  ;;  %v2749_v4 = vld [vmem:[%s5960_s6 + $0x130] sm:$0xf]  ;;  %v3786_v5 = vld [vmem:[%s5960_s6 + $0x134] sm:$0xf0]  ;;  %v2741_v7 = vld [vmem:[%s5960_s6 + $0x120] sm:$0xf] }
   0xd   : > { %399 = vperm.xlu1 %3973, %v385_v0   ;;  %389 = vperm.xlu0 %3972, %v383_v1   ;;  %v2750_v6 = vor.u32 %v3786_v5, %v2749_v4  ;;  %v3784_v8 = vld [vmem:[%s5960_s6 + $0x124] sm:$0xf0]  ;;  %v3785_v9 = vld [vmem:[%s5960_s6 + $0x134] sm:$0xf]  ;;  %v2751_v10 = vld [vmem:[%s5960_s6 + $0x138] sm:$0xf0] }
   0xe   : > { %3974 = vset.pattern.permute.xlu2 %v3983_v2  ;;  %v415_v11 = vld [vmem:[%s5958_s4] sm:$0xff]  ;;  %v384_v12 = vld [vmem:[%s5957_s3 + $0x8] sm:$0xff]  ;;  %v2754_v13 = vor.u32 %v3785_v9, %v2751_v10  ;;  %v2781_v14 = vld [vmem:[%s5960_s6 + $0x170] sm:$0xf]  ;;  %v2742_v16 = vor.u32 %v3784_v8, %v2741_v7  ;;  %s6013_s10 = smov (!%p331_p3, %s2656_s10), 1  ;;  %vm634_vm2 = vcmask 523264  }
   0xf   : > { %426 = vperm.xlu2 %3974, %v416_v3   ;;  %638 = vmatpush.bf16.msra.mxu0 %v2750_v6  ;;  %v417_v15 = vld [vmem:[%s5959_s5] sm:$0xff]  ;;  %v3794_v17 = vld [vmem:[%s5960_s6 + $0x174] sm:$0xf0]  ;;  %v2743_v19 = vld [vmem:[%s5960_s6 + $0x128] sm:$0xf0]  ;;  %s3744_s28 = sshll.u32 %s6013_s10, 6 }
  0x10   : > { %v3783_v18 = vld [vmem:[%s5960_s6 + $0x124] sm:$0xf]  ;;  %v2733_v20 = vld [vmem:[%s5960_s6 + $0x110] sm:$0xf]  ;;  %v3782_v21 = vld [vmem:[%s5960_s6 + $0x114] sm:$0xf0]  ;;  %666 = vmatpush.bf16.msra.mxu2 %v2754_v13  ;;  %v2782_v22 = vor.u32 %v3794_v17, %v2781_v14  ;;  %s4322_s24 = scalar_lea.vmem %s5954_s0, %s3744_s28 }
  0x11   : > { %v2746_v23 = vor.u32 %v3783_v18, %v2743_v19  ;;  %v2773_v24 = vld [vmem:[%s5960_s6 + $0x160] sm:$0xf]  ;;  %v3792_v25 = vld [vmem:[%s5960_s6 + $0x164] sm:$0xf0]  ;;  %v3781_v26 = vld [vmem:[%s5960_s6 + $0x114] sm:$0xf]  ;;  %v2734_v28 = vor.u32 %v3782_v21, %v2733_v20 }
  0x12   : > { %v2735_v27 = vld [vmem:[%s5960_s6 + $0x118] sm:$0xf0]  ;;  %v2725_v29 = vld [vmem:[%s5960_s6 + $0x100] sm:$0xf]  ;;  %656 = vmatpush.bf16.msra.mxu1 %v2782_v22  ;;  %v2774_v30 = vor.u32 %v3792_v25, %v2773_v24  ;;  %v3780_v31 = vld [vmem:[%s5960_s6 + $0x104] sm:$0xf0] }
  0x13   : > { %639 = vmatpush.bf16.msra.mxu0 %v2742_v16  ;;  %v2738_v32 = vor.u32 %v3781_v26, %v2735_v27  ;;  %v2765_v33 = vld [vmem:[%s5960_s6 + $0x150] sm:$0xf]  ;;  %v3790_v34 = vld [vmem:[%s5960_s6 + $0x154] sm:$0xf0]  ;;  %v3779_v35 = vld [vmem:[%s5960_s6 + $0x104] sm:$0xf]  ;;  %v2726_v39 = vor.u32 %v3780_v31, %v2725_v29 }
  0x14   : > { %667 = vmatpush.bf16.msra.mxu2 %v2746_v23  ;;  %v2727_v36 = vld [vmem:[%s5960_s6 + $0x108] sm:$0xf0]  ;;  %v386_v37 = vld [vmem:[%s5957_s3 + $0x18] sm:$0xff]  ;;  %v2766_v40 = vor.u32 %v3790_v34, %v2765_v33  ;;  %v2717_v41 = vld [vmem:[%s5960_s6 + $0xf0] sm:$0xf]  ;;  %vm881_vm3 = vcmask 1041408  }
  0x15   : > { %421 = vperm.xlu1 %3973, %v415_v11   ;;  %394 = vperm.xlu0 %3972, %v384_v12   ;;  %v418_v38 = vld [vmem:[%s5959_s5 + $0x8] sm:$0xff]  ;;  %v3778_v42 = vld [vmem:[%s5960_s6 + $0xf4] sm:$0xf0]  ;;  %v2730_v43 = vor.u32 %v3779_v35, %v2727_v36  ;;  %v2709_v45 = vld [vmem:[%s5960_s6 + $0xe0] sm:$0xf]  ;;  %vm1118_vm4 = vcmask 1043456  }
  0x16   : > { %657 = vmatpush.bf16.msra.mxu1 %v2774_v30  ;;  %v2718_v44 = vor.u32 %v3778_v42, %v2717_v41  ;;  %v3776_v46 = vld [vmem:[%s5960_s6 + $0xe4] sm:$0xf0]  ;;  %v2701_v48 = vld [vmem:[%s5960_s6 + $0xd0] sm:$0xf]  ;;  %v3774_v49 = vld [vmem:[%s5960_s6 + $0xd4] sm:$0xf0] }
  0x17   : > { %875 = vperm.xlu2 %3974, %v417_v15   ;;  %640 = vmatpush.bf16.msra.mxu0 %v2734_v28  ;;  %v2710_v47 = vor.u32 %v3776_v46, %v2709_v45  ;;  %v2702_v50 = vor.u32 %v3774_v49, %v2701_v48  ;;  %v2693_v51 = vld [vmem:[%s5960_s6 + $0xc0] sm:$0xf]  ;;  %v3772_v52 = vld [vmem:[%s5960_s6 + $0xc4] sm:$0xf0]  ;;  %v3777_v56 = vld [vmem:[%s5960_s6 + $0xf4] sm:$0xf] }
  0x18   : > { %668 = vmatpush.bf16.msra.mxu2 %v2738_v32  ;;  %v2757_v53 = vld [vmem:[%s5960_s6 + $0x140] sm:$0xf]  ;;  %v2694_v54 = vor.u32 %v3772_v52, %v2693_v51  ;;  %v3788_v55 = vld [vmem:[%s5960_s6 + $0x144] sm:$0xf0]  ;;  %v2719_v57 = vld [vmem:[%s5960_s6 + $0xf8] sm:$0xf0] }
  0x19   : > { %v2758_v58 = vor.u32 %v3788_v55, %v2757_v53  ;;  %v2722_v59 = vor.u32 %v3777_v56, %v2719_v57  ;;  %v3793_v60 = vld [vmem:[%s5960_s6 + $0x174] sm:$0xf]  ;;  %v2783_v61 = vld [vmem:[%s5960_s6 + $0x178] sm:$0xf0]  ;;  %v2847_v62 = vld [vmem:[%s5960_s6 + $0x70] sm:$0xf] }
  0x1a   : > { %658 = vmatpush.bf16.msra.mxu1 %v2766_v40  ;;  %v2786_v63 = vor.u32 %v3793_v60, %v2783_v61  ;;  %v3762_v0 = vld [vmem:[%s5960_s6 + $0x74] sm:$0xf0]  ;;  %v3761_v1 = vld [vmem:[%s5960_s6 + $0x74] sm:$0xf]  ;;  %v2849_v2 = vld [vmem:[%s5960_s6 + $0x78] sm:$0xf0] }
  0x1b   : > { %641 = vmatpush.bf16.msra.mxu0 %v2726_v39  ;;  %v2848_v3 = vor.u32 %v3762_v0, %v2847_v62  ;;  %v2852_v4 = vor.u32 %v3761_v1, %v2849_v2  ;;  %v3775_v5 = vld [vmem:[%s5960_s6 + $0xe4] sm:$0xf]  ;;  %v2711_v6 = vld [vmem:[%s5960_s6 + $0xe8] sm:$0xf0]  ;;  %v2839_v10 = vld [vmem:[%s5960_s6 + $0x60] sm:$0xf] }
  0x1c   : > { %669 = vmatpush.bf16.msra.mxu2 %v2730_v43  ;;  %v3791_v7 = vld [vmem:[%s5960_s6 + $0x164] sm:$0xf]  ;;  %684 = vmatpush.bf16.msra.mxu3 %v2786_v63  ;;  %v2714_v8 = vor.u32 %v3775_v5, %v2711_v6  ;;  %v2775_v9 = vld [vmem:[%s5960_s6 + $0x168] sm:$0xf0]  ;;  %v3760_v11 = vld [vmem:[%s5960_s6 + $0x64] sm:$0xf0] }
  0x1d   : > { %404 = vperm.xlu1 %3973, %v386_v37   ;;  %879 = vperm.xlu0 %3972, %v418_v38   ;;  %v2778_v12 = vor.u32 %v3791_v7, %v2775_v9  ;;  %v2840_v13 = vor.u32 %v3760_v11, %v2839_v10  ;;  %v3759_v14 = vld [vmem:[%s5960_s6 + $0x64] sm:$0xf]  ;;  %v2841_v15 = vld [vmem:[%s5960_s6 + $0x68] sm:$0xf0]  ;;  %v3773_v17 = vld [vmem:[%s5960_s6 + $0xd4] sm:$0xf] }
  0x1e   : > { %659 = vmatpush.bf16.msra.mxu1 %v2758_v58  ;;  %v2844_v16 = vor.u32 %v3759_v14, %v2841_v15  ;;  %v2703_v18 = vld [vmem:[%s5960_s6 + $0xd8] sm:$0xf0]  ;;  %v3789_v19 = vld [vmem:[%s5960_s6 + $0x154] sm:$0xf]  ;;  %v2831_v23 = vld [vmem:[%s5960_s6 + $0x50] sm:$0xf] }
  0x1f   : > { %642 = vmatpush.bf16.msra.mxu0 %v2718_v44  ;;  %v2706_v20 = vor.u32 %v3773_v17, %v2703_v18  ;;  %v2767_v21 = vld [vmem:[%s5960_s6 + $0x158] sm:$0xf0]  ;;  %v3758_v24 = vld [vmem:[%s5960_s6 + $0x54] sm:$0xf0]  ;;  %v3757_v25 = vld [vmem:[%s5960_s6 + $0x54] sm:$0xf] }
  0x20   : > { %670 = vmatpush.bf16.msra.mxu2 %v2722_v59  ;;  %685 = vmatpush.bf16.msra.mxu3 %v2778_v12  ;;  %v2770_v22 = vor.u32 %v3789_v19, %v2767_v21  ;;  %v2832_v26 = vor.u32 %v3758_v24, %v2831_v23  ;;  %v2833_v27 = vld [vmem:[%s5960_s6 + $0x58] sm:$0xf0]  ;;  %v3771_v28 = vld [vmem:[%s5960_s6 + $0xc4] sm:$0xf]  ;;  %v2695_v29 = vld [vmem:[%s5960_s6 + $0xc8] sm:$0xf0] }
  0x21   : > { %v2836_v30 = vor.u32 %v3757_v25, %v2833_v27  ;;  %v2698_v31 = vor.u32 %v3771_v28, %v2695_v29  ;;  %v3787_v32 = vld [vmem:[%s5960_s6 + $0x144] sm:$0xf]  ;;  %v2759_v33 = vld [vmem:[%s5960_s6 + $0x148] sm:$0xf0]  ;;  %v2823_v34 = vld [vmem:[%s5960_s6 + $0x40] sm:$0xf] }
  0x22   : > { %817 = vmatpush.bf16.msrb.mxu1 %v2848_v3  ;;  %v2762_v35 = vor.u32 %v3787_v32, %v2759_v33  ;;  %v3756_v36 = vld [vmem:[%s5960_s6 + $0x44] sm:$0xf0]  ;;  %v3755_v37 = vld [vmem:[%s5960_s6 + $0x44] sm:$0xf]  ;;  %v2825_v38 = vld [vmem:[%s5960_s6 + $0x48] sm:$0xf0] }
  0x23   : > { %643 = vmatpush.bf16.msra.mxu0 %v2710_v47  ;;  %v2824_v39 = vor.u32 %v3756_v36, %v2823_v34  ;;  %v2828_v40 = vor.u32 %v3755_v37, %v2825_v38  ;;  %v2879_v41 = vld [vmem:[%s5960_s6 + $0xb0] sm:$0xf]  ;;  %v3770_v42 = vld [vmem:[%s5960_s6 + $0xb4] sm:$0xf0]  ;;  %v3769_v43 = vld [vmem:[%s5960_s6 + $0xb4] sm:$0xf] }
  0x24   : > { %671 = vmatpush.bf16.msra.mxu2 %v2714_v8  ;;  %686 = vmatpush.bf16.msra.mxu3 %v2770_v22  ;;  %v355_v44 = vld [vmem:[%s5955_s1] sm:$0x3]  ;;  %v2880_v45 = vor.u32 %v3770_v42, %v2879_v41  ;;  %v2881_v46 = vld [vmem:[%s5960_s6 + $0xb8] sm:$0xf0]  ;;  %v2815_v48 = vld [vmem:[%s5960_s6 + $0x30] sm:$0xf] }
  0x25   : > { %v2884_v47 = vor.u32 %v3769_v43, %v2881_v46  ;;  %v3754_v49 = vld [vmem:[%s5960_s6 + $0x34] sm:$0xf0]  ;;  %v369_v51 = vld [vmem:[%s5956_s2] sm:$0x3]  ;;  %v2817_v53 = vld [vmem:[%s5960_s6 + $0x38] sm:$0xf0] }
  0x26   : > { %818 = vmatpush.bf16.msrb.mxu1 %v2840_v13  ;;  %v2816_v52 = vor.u32 %v3754_v49, %v2815_v48  ;;  %v3768_v55 = vld [vmem:[%s5960_s6 + $0xa4] sm:$0xf0]  ;;  %v3767_v57 = vld [vmem:[%s5960_s6 + $0xa4] sm:$0xf]  ;;  %v2873_v58 = vld [vmem:[%s5960_s6 + $0xa8] sm:$0xf0] }
  0x27   : > { %644 = vmatpush.bf16.msra.mxu0 %v2702_v50  ;;  %v3753_v50 = vld [vmem:[%s5960_s6 + $0x34] sm:$0xf]  ;;  %v2807_v59 = vld [vmem:[%s5960_s6 + $0x20] sm:$0xf]  ;;  %v2876_v61 = vor.u32 %v3767_v57, %v2873_v58  ;;  %v3752_v62 = vld [vmem:[%s5960_s6 + $0x24] sm:$0xf0] }
  0x28   : > { %672 = vmatpush.bf16.msra.mxu2 %v2706_v20  ;;  %687 = vmatpush.bf16.msra.mxu3 %v2762_v35  ;;  %v2820_v56 = vor.u32 %v3753_v50, %v2817_v53  ;;  %v3751_v63 = vld [vmem:[%s5960_s6 + $0x24] sm:$0xf]  ;;  %v2809_v0 = vld [vmem:[%s5960_s6 + $0x28] sm:$0xf0]  ;;  %v357_v1 = vperm.slane %v355_v44, 0  ;;  %v2808_v5 = vor.u32 %v3752_v62, %v2807_v59  ;;  %v353_v9 = vld [vmem:[%s4322_s24 + $0x30] sm:$0xff] }
  0x29   : > { %v2863_v2 = vld [vmem:[%s5960_s6 + $0x90] sm:$0xf]  ;;  %v3766_v3 = vld [vmem:[%s5960_s6 + $0x94] sm:$0xf0]  ;;  %v3765_v7 = vld [vmem:[%s5960_s6 + $0x94] sm:$0xf]  ;;  %v2812_v11 = vor.u32 %v3751_v63, %v2809_v0 }
  0x2a   : > { %819 = vmatpush.bf16.msrb.mxu1 %v2832_v26  ;;  %v2864_v6 = vor.u32 %v3766_v3, %v2863_v2  ;;  %v2865_v8 = vld [vmem:[%s5960_s6 + $0x98] sm:$0xf0]  ;;  %v371_v10 = vperm.slane %v369_v51, 0  ;;  %v367_v14 = vmul.f32 %v357_v1, %v353_v9  ;;  %v372_v15 = vperm.slane %v369_v51, 1  ;;  %v2799_v19 = vld [vmem:[%s5960_s6 + $0x10] sm:$0xf] }
  0x2b   : > { %645 = vmatpush.bf16.msra.mxu0 %v2694_v54  ;;  %v2871_v54 = vld [vmem:[%s5960_s6 + $0xa0] sm:$0xf]  ;;  %v2868_v12 = vor.u32 %v3765_v7, %v2865_v8  ;;  %v354_v13 = vld [vmem:[%s4322_s24 + $0x38] sm:$0xff]  ;;  %v3749_v21 = vld [vmem:[%s5960_s6 + $0x14] sm:$0xf]  ;;  %vm1629_vm6 = vcmask 1044480  }
  0x2c   : > { %673 = vmatpush.bf16.msra.mxu2 %v2698_v31  ;;  %835 = vmatpush.bf16.msrb.mxu3 %v2880_v45  ;;  %v2872_v60 = vor.u32 %v3768_v55, %v2871_v54  ;;  %v4338_v17 = vadd.f32 %v371_v10, %v367_v14  ;;  %v3750_v20 = vld [vmem:[%s5960_s6 + $0x14] sm:$0xf0]  ;;  %v2801_v23 = vld [vmem:[%s5960_s6 + $0x18] sm:$0xf0]  ;;  %v2855_v24 = vld [vmem:[%s5960_s6 + $0x80] sm:$0xf] }
  0x2d   : > { %v2800_v22 = vor.u32 %v3750_v20, %v2799_v19  ;;  %v2804_v25 = vor.u32 %v3749_v21, %v2801_v23  ;;  %v3764_v26 = vld [vmem:[%s5960_s6 + $0x84] sm:$0xf0]  ;;  %v3763_v27 = vld [vmem:[%s5960_s6 + $0x84] sm:$0xf]  ;;  %v2857_v29 = vld [vmem:[%s5960_s6 + $0x88] sm:$0xf0] }
  0x2e   : > { %820 = vmatpush.bf16.msrb.mxu1 %v2824_v39  ;;  %v2856_v28 = vor.u32 %v3764_v26, %v2855_v24  ;;  %v2791_v31 = vld [vmem:[%s5960_s6] sm:$0xf]  ;;  %v3748_v32 = vld [vmem:[%s5960_s6 + $0x4] sm:$0xf0]  ;;  %v3747_v33 = vld [vmem:[%s5960_s6 + $0x4] sm:$0xf] }
  0x2f   : > { %845 = vmatpush.bf16.msrb.mxu0 %v2852_v4  ;;  %v358_v4 = vperm.slane %v355_v44, 1  ;;  %v2792_v34 = vor.u32 %v3748_v32, %v2791_v31  ;;  %v2793_v35 = vld [vmem:[%s5960_s6 + $0x8] sm:$0xf0]  ;;  %v351_v37 = vld [vmem:[%s4322_s24 + $0x20] sm:$0xff]  ;;  %v349_v41 = vld [vmem:[%s4322_s24 + $0x10] sm:$0xff]  ;;  %vm927_vm7 = vcmask 1046528  }
  0x30   : > { %863 = vmatpush.bf16.msrb.mxu2 %v2884_v47  ;;  %836 = vmatpush.bf16.msrb.mxu3 %v2872_v60  ;;  %v2796_v36 = vor.u32 %v3747_v33, %v2793_v35  ;;  %v352_v38 = vld [vmem:[%s4322_s24 + $0x28] sm:$0xff]  ;;  %v347_v39 = vld [vmem:[%s4322_s24] sm:$0xff]  ;;  %v350_v42 = vld [vmem:[%s4322_s24 + $0x18] sm:$0xff]  ;;  %v365_v43 = vmul.f32 %v357_v1, %v351_v37  ;;  %v363_v49 = vmul.f32 %v357_v1, %v349_v41  ;;  %vm488_vm1 = vsmask.f32 7424  ;;  %s3745_s11 = sshll.u32 %s6013_s10, 5 }
  0x31   : > { %v366_v44 = vmul.f32 %v358_v4, %v352_v38  ;;  %v361_v47 = vmul.f32 %v357_v1, %v347_v39  ;;  %v364_v50 = vmul.f32 %v358_v4, %v350_v42  ;;  %v4435_v19 = vld [vmem:[%s5960_s6 + $0x1f0] sm:$0xf]  ;;  %v3809_v20 = vld [vmem:[%s5960_s6 + $0x1f4] sm:$0xf]  ;;  %v2971_v21 = vld [vmem:[%s5960_s6 + $0x1f8] sm:$0xf0]  ;;  %s340_s13 = scalar_lea.vmem %s5962_s8, %s3745_s11 }
  0x32   : > { %821 = vmatpush.bf16.msrb.mxu1 %v2816_v52  ;;  %v379_v51 = vadd.f32 %v371_v10, %v365_v43  ;;  %v377_v55 = vadd.f32 %v371_v10, %v363_v49  ;;  %v2974_v33 = vor.u32 %v3809_v20, %v2971_v21  ;;  %v4472_v35 = vld [vmem:[%s5960_s6 + $0x1e4] sm:$0xf]  ;;  %v4494_v41 = vld [vmem:[%s5960_s6 + $0x1e0] sm:$0xf]  ;;  %v4499_v42 = vld [vmem:[%s5960_s6 + $0x1e4] sm:$0xf0] }
  0x33   : > { %846 = vmatpush.bf16.msrb.mxu0 %v2844_v16  ;;  %v368_v16 = vmul.f32 %v358_v4, %v354_v13  ;;  %v380_v52 = vadd.f32 %v372_v15, %v366_v44  ;;  %v375_v53 = vadd.f32 %v371_v10, %v361_v47  ;;  %v4504_v43 = vld [vmem:[%s5960_s6 + $0x220] sm:$0xf]  ;;  %v4509_v44 = vld [vmem:[%s5960_s6 + $0x224] sm:$0xf0]  ;;  %v4519_v47 = vld [vmem:[%s5960_s6 + $0x228] sm:$0xf0] }
  0x34   : > { %864 = vmatpush.bf16.msrb.mxu2 %v2876_v61  ;;  %837 = vmatpush.bf16.msrb.mxu3 %v2864_v6  ;;  %v4571_v20 = vld [vmem:[%s5960_s6 + $0x1c0] sm:$0xf]  ;;  %v4576_v21 = vld [vmem:[%s5960_s6 + $0x1c4] sm:$0xf0]  ;;  %vm1380_vm5 = vsmask.f32 5376 }
  0x35   : > { %v4340_v18 = vadd.f32 %v372_v15, %v368_v16  ;;  %s3746_s14 = sshll.u32 %s6013_s10, 2  ;;  %vm2535_vm8 = vcmask 1040384  }
  0x36   : > { %822 = vmatpush.bf16.msrb.mxu1 %v2808_v5  ;;  %s345_s17 = scalar_lea.vmem %s5963_s9, %s3746_s14 }
  0x37   : > { %847 = vmatpush.bf16.msrb.mxu0 %v2836_v30  ;;  %v2860_v30 = vor.u32 %v3763_v27, %v2857_v29  ;;  %v3818_v29 = vld [vmem:[%s5960_s6 + $0x234] sm:$0xf0] }
  0x38   : > { %865 = vmatpush.bf16.msrb.mxu2 %v2868_v12  ;;  %838 = vmatpush.bf16.msrb.mxu3 %v2856_v28  ;;  %v3001_v28 = vld [vmem:[%s5960_s6 + $0x230] sm:$0xf] }
  0x3a   : > { %823 = vmatpush.bf16.msrb.mxu1 %v2800_v22 }
  0x3b   : > { %848 = vmatpush.bf16.msrb.mxu0 %v2828_v40  ;;  %v348_v40 = vld [vmem:[%s4322_s24 + $0x8] sm:$0xff] }
  0x3c   : > { %866 = vmatpush.bf16.msrb.mxu2 %v2860_v30  ;;  %v362_v48 = vmul.f32 %v358_v4, %v348_v40  ;;  %v3817_v30 = vld [vmem:[%s5960_s6 + $0x234] sm:$0xf] }
  0x3e   : > { %824 = vmatpush.bf16.msrb.mxu1 %v2792_v34  ;;  %v376_v54 = vadd.f32 %v372_v15, %v362_v48  ;;  %v3003_v34 = vld [vmem:[%s5960_s6 + $0x238] sm:$0xf0] }
  0x3f   : > { %849 = vmatpush.bf16.msrb.mxu0 %v2820_v56  ;;  %v378_v56 = vadd.f32 %v372_v15, %v364_v50 }
  0x43   : > { %850 = vmatpush.bf16.msrb.mxu0 %v2812_v11 }
  0x47   : > { %851 = vmatpush.bf16.msrb.mxu0 %v2804_v25  ;;  %v3810_v25 = vld [vmem:[%s5960_s6 + $0x1f4] sm:$0xf0] }
  0x48   : > { %v2970_v50 = vor.u32 %v3810_v25, %v4435_v19  ;;  %v3006_v19 = vor.u32 %v3817_v30, %v3003_v34  ;;  %v4618_v34 = vld [vmem:[%s5960_s6 + $0x208] sm:$0xf0] }
  0x4b   : > { %852 = vmatpush.bf16.msrb.mxu0 %v2796_v36  ;;  %v4477_v36 = vld [vmem:[%s5960_s6 + $0x1e8] sm:$0xf0] }
  0x69   : > { %v4384_v46 = vpop.permute.xlu2 %426 }
  0x6a   : > { %v4419_v8 = vrot.slane %v4384_v46, 4 }
  0x6c   : > { %5978 = vst [vmem:[#allocation4_spill] sm:$0xff] %v4419_v8 }
  0x71   : > { %v4398_v1 = vpop.permute.xlu2 %875 }
  0x72   : > { %v1584_v9 = vrot.slane %v4398_v1, 2  ;;  %v4589_v25 = vrot.slane %v4398_v1, 6  ;;  %v2966_v1 = vor.u32 %v4472_v35, %v4477_v36  ;;  %v4629_v35 = vld [vmem:[%s5960_s6 + $0x1b0] sm:$0xf]  ;;  %v4634_v36 = vld [vmem:[%s5960_s6 + $0x1b4] sm:$0xf0] }
  0x7f   : > { %v390_v45 = vpop.permute.xlu0 %389  ;;  %v400_v57 = vpop.permute.xlu1 %399 }
  0x80   : > { %v4386_v58 = vmul.f32 %v400_v57, %v379_v51  ;;  %v4388_v59 = vmul.f32 %v400_v57, %v380_v52  ;;  %v4390_v61 = vmul.f32 %v390_v45, %v375_v53  ;;  %v4392_v62 = vmul.f32 %v390_v45, %v376_v54  ;;  %v4514_v45 = vld [vmem:[%s5960_s6 + $0x224] sm:$0xf]  ;;  %v4527_v52 = vld [vmem:[%s5960_s6 + $0x1d0] sm:$0xf]  ;;  %v4532_v53 = vld [vmem:[%s5960_s6 + $0x1d4] sm:$0xf0] }
  0x81   : > { %v3002_v51 = vor.u32 %v3818_v29, %v3001_v28  ;;  %v4537_v54 = vld [vmem:[%s5960_s6 + $0x1d4] sm:$0xf]  ;;  %v4552_v57 = vld [vmem:[%s5960_s6 + $0x214] sm:$0xf0]  ;;  %v4601_v28 = vld [vmem:[%s5960_s6 + $0x204] sm:$0xf0] }
  0x82   : > { %5976 = vst [vmem:[#allocation2_spill] sm:$0xff] %v4390_v61  ;;  %v4406_v3 = vpack.c.bf16 %v4386_v58, %v4386_v58  ;;  %v4414_v5 = vpack.c.bf16 %v4388_v59, %v4388_v59  ;;  %v4480_v37 = vmul.f32 %v1584_v9, %v4390_v61  ;;  %v4483_v38 = vmul.f32 %v1584_v9, %v4392_v62 }
  0x83   : > { %5977 = vst [vmem:[#allocation3_spill] sm:$0xff] %v4392_v62 }
  0x84   : > { %v497_v11 = vshll.u32 %v4406_v3, 16  ;;  %v509_v13 = vshll.u32 %v4414_v5, 16 }
  0x86   : > { %v499_v23 = vrot.slane %v497_v11, 1  ;;  %v511_v24 = vrot.slane %v509_v13, 1  ;;  %v4603_v29 = vrot.slane %v497_v11, 3  ;;  %v4605_v30 = vrot.slane %v509_v13, 3 }
  0x87   : > { %v395_v60 = vpop.permute.xlu0 %394  ;;  %v4462_v31 = vpop.permute.xlu1 %421  ;;  %v2962_v11 = vor.u32 %v4499_v42, %v4494_v41  ;;  %v2994_v13 = vor.u32 %v4509_v44, %v4504_v43  ;;  %v4639_v41 = vld [vmem:[%s5960_s6 + $0x1b4] sm:$0xf]  ;;  %v2954_v42 = vor.u32 %v4532_v53, %v4527_v52  ;;  %v4676_v53 = vld [vmem:[%s5960_s6 + $0x2b8] sm:$0xf0] }
  0x88   : > { %v4394_v63 = vmul.f32 %v395_v60, %v377_v55  ;;  %v4396_v0 = vmul.f32 %v395_v60, %v378_v56  ;;  %v4542_v55 = vld [vmem:[%s5960_s6 + $0x1d8] sm:$0xf0]  ;;  %v4547_v56 = vld [vmem:[%s5960_s6 + $0x210] sm:$0xf]  ;;  %v4557_v60 = vld [vmem:[%s5960_s6 + $0x214] sm:$0xf] }
  0x89   : > { %5979 = vst [vmem:[#allocation5_spill] sm:$0xff] %v4603_v29  ;;  %v2958_v43 = vor.u32 %v4537_v54, %v4542_v55  ;;  %v2986_v44 = vor.u32 %v4552_v57, %v4547_v56  ;;  %v4671_v52 = vld [vmem:[%s5960_s6 + $0x2b4] sm:$0xf]  ;;  %v4681_v54 = vld [vmem:[%s5960_s6 + $0x1a0] sm:$0xf]  ;;  %v4685_v55 = vmul.f32 %v4589_v25, %v4390_v61  ;;  %v4689_v56 = vmul.f32 %v4589_v25, %v4392_v62 }
  0x8a   : > { %v4402_v2 = vpack.c.bf16 %v4394_v63, %v4390_v61  ;;  %v4410_v4 = vpack.c.bf16 %v4396_v0, %v4392_v62 }
  0x8c   : > { %v5964_v6 = vshll.u32 %v4402_v2, 16  ;;  %v5965_v7 = vshll.u32 %v4410_v4, 16  ;;  %v5967_v15 = vshrl.u32 %v4402_v2, 16  ;;  %v5966_v16 = vshrl.u32 %v4410_v4, 16 }
  0x8e   : > { %v494_v10 = vrot.slane %v5964_v6, 1  ;;  %v506_v12 = vrot.slane %v5965_v7, 1  ;;  %v429_v6 = vmul.f32 %v4462_v31, %v4390_v61  ;;  %v4757_v7 = vld [vmem:[%s5960_s6 + $0x2a8] sm:$0xf0] }
  0x8f   : > { %v4428_v14 = vpop.permute.xlu0 %879 }
  0x90   : > { %v4444_v22 = vrot.slane %v4428_v14, 2  ;;  %v495_v26 = vor.u32 %v494_v10, %v5967_v15  ;;  %v507_v27 = vor.u32 %v506_v12, %v5966_v16  ;;  %v4719_v10 = vrot.slane %v4428_v14, 6  ;;  %v4752_v14 = vld [vmem:[%s5960_s6 + $0x2a4] sm:$0xf] }
  0x91   : > { %v1823_v16 = vmul.f32 %v4384_v46, %v4388_v59  ;;  %v1820_v15 = vmul.f32 %v4462_v31, %v4394_v63 }
  0x92   : > { %v1586_v32 = vsel %vm1164_vm0, %v1584_v9, %v4444_v22  ;;  %v500_v48 = vsel %vm488_vm1, %v495_v26, %v499_v23  ;;  %v512_v49 = vsel %vm488_vm1, %v507_v27, %v511_v24  ;;  %v4562_v9 = vld [vmem:[%s5960_s6 + $0x218] sm:$0xf0]  ;;  %v4581_v23 = vld [vmem:[%s5960_s6 + $0x1c4] sm:$0xf]  ;;  %v4586_v24 = vld [vmem:[%s5960_s6 + $0x1c8] sm:$0xf0]  ;;  %v432_v26 = vmul.f32 %v4384_v46, %v4396_v0 }
  0x93   : > { %v4486_v39 = vmul.f32 %v1586_v32, %v4394_v63  ;;  %v4489_v40 = vmul.f32 %v1586_v32, %v4396_v0  ;;  %646 = vmatmul.bf16.vlgmr.msra.gmra.mxu0 %v500_v48  ;;  %2787 = vmatmul.msk.bf16.vlgmr.msra.gmra.mxu1 %vm634_vm2, %v512_v49  ;;  %v4596_v27 = vld [vmem:[%s5960_s6 + $0x200] sm:$0xf]  ;;  %v4613_v32 = vld [vmem:[%s5960_s6 + $0x204] sm:$0xf]  ;;  %v884_v61 = vsel %vm881_vm3, %v4589_v25, %v4719_v10 }
  0x94   : > { %674 = vmatmul.bf16.vlgmr.msra.gmra.mxu2 %v500_v48  ;;  %2788 = vmatmul.msk.bf16.vlgmr.msra.gmra.mxu3 %vm634_vm2, %v512_v49  ;;  %v4657_v48 = vld [vmem:[%s5960_s6 + $0x2b0] sm:$0xf]  ;;  %v4662_v49 = vld [vmem:[%s5960_s6 + $0x2b4] sm:$0xf0]  ;;  %v2978_v57 = vor.u32 %v4601_v28, %v4596_v27  ;;  %v4714_v27 = vmul.f32 %v4419_v8, %v4386_v58  ;;  %v430_v28 = vmul.f32 %v4462_v31, %v4392_v62 }
  0x95   : > { %1086 = vmatpush.bf16.msra.mxu2 %v2974_v33  ;;  %1058 = vmatpush.bf16.msra.mxu3 %v2970_v50  ;;  %v2998_v33 = vor.u32 %v4514_v45, %v4519_v47  ;;  %v2990_v45 = vor.u32 %v4557_v60, %v4562_v9  ;;  %v4652_v47 = vld [vmem:[%s5960_s6 + $0x1b8] sm:$0xf0]  ;;  %v431_v9 = vmul.f32 %v4384_v46, %v4394_v63  ;;  %v4747_v60 = vld [vmem:[%s5960_s6 + $0x2a4] sm:$0xf0] }
  0x96   : > { %1076 = vmatpush.bf16.msra.mxu1 %v3002_v51  ;;  %1104 = vmatpush.bf16.msra.mxu0 %v3006_v19  ;;  %v2950_v51 = vor.u32 %v4581_v23, %v4586_v24  ;;  %v4700_v19 = vld [vmem:[%s5960_s6 + $0x1a4] sm:$0xf0]  ;;  %v4705_v23 = vld [vmem:[%s5960_s6 + $0x1a4] sm:$0xf]  ;;  %v4710_v24 = vld [vmem:[%s5960_s6 + $0x1a8] sm:$0xf0] }
  0x97   : > { %5980 = vst [vmem:[#allocation6_spill] sm:$0xff] %v4714_v27  ;;  %v433_v50 = vpack.c.bf16 %v431_v9, %v429_v6  ;;  %v4769_v27 = vrot.slane %v4462_v31, 4  ;;  %v4780_v6 = vld [vmem:[%s5960_s6 + $0x190] sm:$0xf] }
  0x99   : > { %1087 = vmatpush.bf16.msra.mxu2 %v2966_v1  ;;  %v405_v1 = vpop.permute.xlu1 %404  ;;  %1059 = vmatpush.bf16.msra.mxu3 %v2962_v11  ;;  %v4736_v11 = vld [vmem:[%s5960_s6 + $0x2a0] sm:$0xf]  ;;  %5981 = vst [vmem:[#allocation7_spill] sm:$0xff] %v4769_v27  ;;  %v5986_v27 = vshrl.u32 %v4410_v4, 16 }
  0x9a   : > { %1077 = vmatpush.bf16.msra.mxu1 %v2994_v13  ;;  %1105 = vmatpush.bf16.msra.mxu0 %v2998_v33  ;;  %v1595_v13 = vmul.f32 %v4444_v22, %v4388_v59  ;;  %v1821_v33 = vmul.f32 %v4462_v31, %v4396_v0  ;;  %v4762_v12 = vmul.f32 %v405_v1, %v4338_v17 }
  0x9b   : > { %v4772_v62 = vmul.f32 %v405_v1, %v4340_v18  ;;  %v434_v17 = vpack.c.bf16 %v432_v26, %v430_v28  ;;  %v4793_v26 = vld [vmem:[%s5960_s6 + $0x194] sm:$0xf0]  ;;  %v4810_v1 = vld [vmem:[%s5960_s6 + $0x290] sm:$0xf]  ;;  %v1594_v18 = vmul.f32 %v4444_v22, %v4386_v58  ;;  %v1390_v8 = vrot.slane %v5986_v27, 2 }
  0x9c   : > { %v1599_v28 = vpack.c.bf16 %v1595_v13, %v1595_v13  ;;  %v4821_v13 = vpack.c.bf16 %v4386_v58, %v4394_v63  ;;  %v2036_v31 = vpack.c.bf16 %v4762_v12, %v4762_v12  ;;  %v2922_v29 = vor.u32 %v4793_v26, %v4780_v6 }
  0x9d   : > { %1088 = vmatpush.bf16.msra.mxu2 %v2958_v43  ;;  %1060 = vmatpush.bf16.msra.mxu3 %v2954_v42  ;;  %v5982_v43 = vshrl.u32 %v4402_v2, 16  ;;  %v4798_v42 = vld [vmem:[%s5960_s6 + $0x194] sm:$0xf] }
  0x9e   : > { %1078 = vmatpush.bf16.msra.mxu1 %v2986_v44  ;;  %1106 = vmatpush.bf16.msra.mxu0 %v2990_v45  ;;  %v4800_v44 = vpack.c.bf16 %v1823_v16, %v1821_v33  ;;  %v4805_v45 = vld [vmem:[%s5960_s6 + $0x198] sm:$0xf0]  ;;  %v1822_v16 = vmul.f32 %v4384_v46, %v4386_v58  ;;  %5984 = vst [vmem:[#allocation9_spill] sm:$0xff] %v4821_v13 }
  0x9f   : > { %v4784_v9 = vrot.slane %v5982_v43, 2  ;;  %v4815_v43 = vld [vmem:[%s5960_s6 + $0x294] sm:$0xf0]  ;;  %v4825_v33 = vpack.c.bf16 %v4388_v59, %v4396_v0  ;;  %v4836_v46 = vmul.f32 %v884_v61, %v4388_v59  ;;  %v5988_v13 = vor.u32 %v4613_v32, %v4618_v34 }
  0xa0   : > { %5983 = vst [vmem:[#allocation8_spill] sm:$0xff] %v4800_v44  ;;  %v4833_v44 = vmul.f32 %v4589_v25, %v4396_v0  ;;  %v4845_v22 = vpack.c.bf16 %v1822_v16, %v1820_v15  ;;  %v2926_v27 = vor.u32 %v4798_v42, %v4805_v45  ;;  %v4862_v15 = vmul.f32 %v4589_v25, %v4394_v63 }
  0xa1   : > { %5985 = vst [vmem:[#allocation10_spill] sm:$0xff] %v4825_v33  ;;  %1089 = vmatpush.bf16.msra.mxu2 %v2950_v51  ;;  %v5987_v33 = vor.u32 %v4576_v21, %v4571_v20  ;;  %v4849_v51 = vmul.f32 %v4719_v10, %v4772_v62  ;;  %v3076_v20 = vor.u32 %v4815_v43, %v4810_v1  ;;  %v1634_v16 = vrot.slane %v1599_v28, 3 }
  0xa2   : > { %1079 = vmatpush.bf16.msra.mxu1 %v2978_v57  ;;  %1107 = vmatpush.bf16.msra.mxu0 %v5988_v13  ;;  %v2037_v57 = vpack.c.bf16 %v4772_v62, %v4772_v62  ;;  %v5989_v32 = vpack.c.bf16 %v4489_v40, %v4483_v38  ;;  %v4870_v13 = vmul.f32 %v884_v61, %v4386_v58  ;;  %v5990_v62 = vshll.u32 %v4410_v4, 16 }
  0xa3   : > { %1061 = vmatpush.bf16.msra.mxu3 %v5987_v33  ;;  %825 = vmatmul.bf16.vlgmr.msrb.gmra.mxu1 %v433_v50  ;;  %v4872_v33 = vshll.u32 %v2036_v31, 16  ;;  %v1598_v21 = vpack.c.bf16 %v1594_v18, %v1594_v18  ;;  %v4877_v25 = vmul.f32 %v884_v61, %v4394_v63  ;;  %v5991_v40 = vor.u32 %v4634_v36, %v4629_v35  ;;  %v4890_v18 = vld [vmem:[%s5960_s6 + $0x294] sm:$0xf] }
  0xa4   : > { %v1633_v34 = vrot.slane %v5989_v32, 3  ;;  %853 = vmatmul.bf16.vlgmr.msrb.gmra.mxu0 %v433_v50  ;;  %2885 = vmatmul.msk.bf16.vlgmr.msrb.gmra.mxu3 %vm634_vm2, %v434_v17  ;;  %v1391_v38 = vrot.slane %v5990_v62, 3  ;;  %v5992_v50 = vor.u32 %v4639_v41, %v4652_v47  ;;  %v4899_v4 = vmul.f32 %v4719_v10, %v4386_v58  ;;  %v4917_v58 = vld [vmem:[%s5960_s6 + $0x180] sm:$0xf] }
  0xa5   : > { %2886 = vmatmul.msk.bf16.vlgmr.msrb.gmra.mxu2 %vm634_vm2, %v434_v17  ;;  %v4895_v17 = vld [vmem:[%s5960_s6 + $0x298] sm:$0xf0]  ;;  %v4902_v35 = vmul.f32 %v884_v61, %v4396_v0  ;;  %v5993_v36 = vshrl.u32 %v4414_v5, 16  ;;  %v5994_v47 = vshll.u32 %v4402_v2, 16  ;;  %v5995_v28 = vor.u32 %v4662_v49, %v4657_v48  ;;  %v4923_v2 = vld [vmem:[%s5960_s6 + $0x184] sm:$0xf0] }
  0xa6   : > { %1090 = vmatpush.bf16.msra.mxu2 %v5992_v50  ;;  %v5996_v32 = vor.u32 %v4671_v52, %v4676_v53  ;;  %v1392_v61 = vor.u32 %v1391_v38, %v1390_v8  ;;  %v1384_v5 = vshrl.u32 %v4406_v3, 16  ;;  %v4928_v48 = vld [vmem:[%s5960_s6 + $0x184] sm:$0xf]  ;;  %v4933_v49 = vld [vmem:[%s5960_s6 + $0x188] sm:$0xf0]  ;;  %v893_v3 = vmul.f32 %v4719_v10, %v4388_v59 }
  0xa7   : > { %1062 = vmatpush.bf16.msra.mxu3 %v5991_v40  ;;  %v1395_v41 = vrot.slane %v5993_v36, 2  ;;  %v1382_v31 = vrot.slane %v5994_v47, 3  ;;  %1295 = vmatpush.bf16.msrb.mxu1 %v5995_v28  ;;  %v4940_v53 = vsel %vm1629_vm6, %v1633_v34, %v1634_v16  ;;  %v4942_v62 = vshll.u32 %v2037_v57, 16  ;;  %v4947_v40 = vld [vmem:[%s5960_s6 + $0x280] sm:$0xf] }
  0xa8   : > { %1323 = vmatpush.bf16.msrb.mxu0 %v5996_v32  ;;  %v1631_v38 = vrot.slane %v1598_v21, 3  ;;  %v4952_v50 = vld [vmem:[%s5960_s6 + $0x284] sm:$0xf0]  ;;  %v5997_v21 = vor.u32 %v4700_v19, %v4681_v54  ;;  %v5998_v57 = vor.u32 %v4705_v23, %v4710_v24  ;;  %v3080_v34 = vor.u32 %v4890_v18, %v4895_v17  ;;  %v3827_v16 = vld [vmem:[%s5960_s6 + $0x284] sm:$0xf] }
  0xa9   : > { %v1397_v8 = vor.u32 %v4605_v30, %v1395_v41  ;;  %v1383_v52 = vor.u32 %v1382_v31, %v4784_v9  ;;  %v4956_v30 = vmul.f32 %v4719_v10, %v4762_v12  ;;  %v2277_v9 = vpack.c.bf16 %v4870_v13, %v4862_v15  ;;  %v3069_v10 = vld [vmem:[%s5960_s6 + $0x288] sm:$0xf0]  ;;  %v3123_v18 = vld [vmem:[%s5960_s6 + $0x2f0] sm:$0xf]  ;;  %v3841_v47 = vld [vmem:[%s5960_s6 + $0x2f4] sm:$0xf] }
  0xaa   : > { %1091 = vmatpush.bf16.msra.mxu2 %v5998_v57  ;;  %v894_v12 = vpack.c.bf16 %v4877_v25, %v4685_v55  ;;  %v1386_v19 = vrot.slane %v1384_v5, 2  ;;  %v5999_v23 = vor.u32 %v4747_v60, %v4736_v11  ;;  %v6000_v24 = vor.u32 %v4752_v14, %v4757_v7  ;;  %v3842_v55 = vld [vmem:[%s5960_s6 + $0x2f4] sm:$0xf0]  ;;  %v5016_v28 = vld [vmem:[%s5960_s6 + $0x270] sm:$0xf]  ;;  %v6004_v43 = vld [vmem:[#allocation10_spill] sm:$0xff] }
  0xab   : > { %1063 = vmatpush.bf16.msra.mxu3 %v5997_v21  ;;  %v4977_v54 = vsel %vm1380_vm5, %v1392_v61, %v1397_v8  ;;  %v896_v25 = vpack.c.bf16 %v4899_v4, %v4899_v4  ;;  %v895_v17 = vpack.c.bf16 %v4902_v35, %v4689_v56  ;;  %v6001_v60 = vpack.c.bf16 %v4486_v39, %v4480_v37  ;;  %v6002_v7 = vld [vmem:[#allocation9_spill] sm:$0xff]  ;;  %v6005_v57 = vld [vmem:[#allocation4_spill] sm:$0xff]  ;;  %v3835_v13 = vld [vmem:[%s5960_s6 + $0x2c4] sm:$0xf] }
  0xac   : > { %1296 = vmatpush.bf16.msrb.mxu1 %v5999_v23  ;;  %1324 = vmatpush.bf16.msrb.mxu0 %v6000_v24  ;;  %v2066_v14 = vshll.u32 %v6002_v7, 16  ;;  %v2073_v36 = vrot.slane %v4872_v33, 1  ;;  %v2914_v41 = vor.u32 %v4923_v2, %v4917_v58  ;;  %v3125_v4 = vld [vmem:[%s5960_s6 + $0x2f8] sm:$0xf0]  ;;  %v897_v56 = vpack.c.bf16 %v893_v3, %v893_v3  ;;  %v5021_v32 = vld [vmem:[%s5960_s6 + $0x274] sm:$0xf0] }
  0xad   : > { %v1630_v11 = vrot.slane %v6001_v60, 3  ;;  %v6003_v35 = vld [vmem:[#allocation5_spill] sm:$0xff]  ;;  %v2918_v37 = vor.u32 %v4928_v48, %v4933_v49  ;;  %v3068_v39 = vor.u32 %v4952_v50, %v4947_v40  ;;  %v3072_v33 = vor.u32 %v3827_v16, %v3069_v10  ;;  %v5026_v58 = vld [vmem:[%s5960_s6 + $0x274] sm:$0xf]  ;;  %v5043_v48 = vld [vmem:[%s5960_s6 + $0x2e0] sm:$0xf] }
  0xae   : > { %v1388_v31 = vor.u32 %v6003_v35, %v1386_v19  ;;  %1092 = vmatpush.bf16.msra.mxu2 %v2926_v27  ;;  %v3124_v5 = vor.u32 %v3842_v55, %v3123_v18  ;;  %v3061_v2 = vld [vmem:[%s5960_s6 + $0x278] sm:$0xf0]  ;;  %v2064_v6 = vshrl.u32 %v6002_v7, 16  ;;  %v3128_v26 = vor.u32 %v3841_v47, %v3125_v4  ;;  %v3840_v3 = vld [vmem:[%s5960_s6 + $0x2e4] sm:$0xf0]  ;;  %v6008_v47 = vld [vmem:[#allocation2_spill] sm:$0xff] }
  0xaf   : > { %v5029_v61 = vsel %vm1629_vm6, %v1630_v11, %v1631_v38  ;;  %1064 = vmatpush.bf16.msra.mxu3 %v2922_v29  ;;  %v2068_v29 = vrot.slane %v2066_v14, 1  ;;  %v928_v42 = vrot.slane %v894_v12, 1  ;;  %v929_v45 = vrot.slane %v896_v25, 1  ;;  %v3117_v38 = vld [vmem:[%s5960_s6 + $0x2e8] sm:$0xf0] }
  0xb0   : > { %v5046_v49 = vsel %vm1380_vm5, %v1383_v52, %v1388_v31  ;;  %1297 = vmatpush.bf16.msrb.mxu1 %v3076_v20  ;;  %1325 = vmatpush.bf16.msrb.mxu0 %v3080_v34  ;;  %v931_v27 = vrot.slane %v895_v17, 1  ;;  %v932_v8 = vrot.slane %v897_v56, 1  ;;  %v3839_v52 = vld [vmem:[%s5960_s6 + $0x2e4] sm:$0xf]  ;;  %v2078_v20 = vshll.u32 %v6004_v43, 16  ;;  %v6006_v34 = vld [vmem:[#allocation7_spill] sm:$0xff] }
  0xb1   : > { %v2069_v1 = vor.u32 %v2068_v29, %v2064_v6  ;;  %v2280_v40 = vpack.c.bf16 %v4849_v51, %v4849_v51  ;;  %v2085_v50 = vrot.slane %v4942_v62, 1  ;;  %v3060_v21 = vor.u32 %v5021_v32, %v5016_v28  ;;  %v3051_v51 = vld [vmem:[%s5960_s6 + $0x260] sm:$0xf]  ;;  %v3824_v55 = vld [vmem:[%s5960_s6 + $0x264] sm:$0xf0] }
  0xb2   : > { %v1121_v16 = vsel %vm1118_vm4, %v6006_v34, %v6005_v57  ;;  %v5072_v10 = vmul.f32 %v6005_v57, %v4388_v59  ;;  %1093 = vmatpush.bf16.msra.mxu2 %v2918_v37  ;;  %v3064_v12 = vor.u32 %v5026_v58, %v3061_v2  ;;  %v3116_v19 = vor.u32 %v3840_v3, %v5043_v48  ;;  %v3823_v25 = vld [vmem:[%s5960_s6 + $0x264] sm:$0xf]  ;;  %v3053_v17 = vld [vmem:[%s5960_s6 + $0x268] sm:$0xf0]  ;;  %v3107_v60 = vld [vmem:[%s5960_s6 + $0x2d0] sm:$0xf] }
  0xb3   : > { %1065 = vmatpush.bf16.msra.mxu3 %v2914_v41  ;;  %v5080_v62 = vsel %vm488_vm1, %v2069_v1, %v2073_v36  ;;  %v6007_v23 = vpack.c.bf16 %v4836_v46, %v4833_v44  ;;  %v930_v59 = vsel %vm927_vm7, %v928_v42, %v929_v45  ;;  %v3120_v18 = vor.u32 %v3839_v52, %v3117_v38  ;;  %v3838_v36 = vld [vmem:[%s5960_s6 + $0x2d4] sm:$0xf0]  ;;  %v3109_v41 = vld [vmem:[%s5960_s6 + $0x2d8] sm:$0xf0]  ;;  %v3043_v37 = vld [vmem:[%s5960_s6 + $0x250] sm:$0xf] }
  0xb4   : > { %1298 = vmatpush.bf16.msrb.mxu1 %v3068_v39  ;;  %1326 = vmatpush.bf16.msrb.mxu0 %v3072_v33  ;;  %v2279_v44 = vpack.c.bf16 %v4956_v30, %v4956_v30  ;;  %v933_v46 = vsel %vm927_vm7, %v931_v27, %v932_v8  ;;  %v2076_v11 = vshrl.u32 %v6004_v43, 16  ;;  %v2080_v7 = vrot.slane %v2078_v20, 1  ;;  %v3837_v30 = vld [vmem:[%s5960_s6 + $0x2d4] sm:$0xf]  ;;  %v6009_v32 = vld [vmem:[#allocation3_spill] sm:$0xff]  ;;  %v6010_v38 = vld [vmem:[#allocation6_spill] sm:$0xff] }
  0xb5   : > { %v2313_v24 = vrot.slane %v6007_v23, 1  ;;  %v2314_v14 = vrot.slane %v2280_v40, 1  ;;  %3007 = vmatmul.msk.bf16.vlgmr.msra.gmra.mxu1 %vm634_vm2, %v933_v46  ;;  %v1125_v4 = vmul.f32 %v6006_v34, %v6008_v47  ;;  %v1127_v56 = vmul.f32 %v1121_v16, %v4394_v63  ;;  %1094 = vmatmul.bf16.vlgmr.msra.gmra.mxu2 %v930_v59  ;;  %v3822_v63 = vld [vmem:[%s5960_s6 + $0x254] sm:$0xf0]  ;;  %v3045_v29 = vld [vmem:[%s5960_s6 + $0x258] sm:$0xf0] }
  0xb6   : > { %1341 = vmatpush.bf16.msrb.mxu2 %v3128_v26  ;;  %1066 = vmatmul.bf16.vlgmr.msra.gmra.mxu3 %v930_v59  ;;  %v5116_v35 = vmul.f32 %v1121_v16, %v4396_v0  ;;  %v3052_v31 = vor.u32 %v3824_v55, %v3051_v51  ;;  %v2081_v39 = vor.u32 %v2080_v7, %v2076_v11  ;;  %v3821_v0 = vld [vmem:[%s5960_s6 + $0x254] sm:$0xf]  ;;  %v2311_v2 = vrot.slane %v2279_v44, 1  ;;  %v3099_v26 = vld [vmem:[%s5960_s6 + $0x2c0] sm:$0xf] }
  0xb7   : > { %1313 = vmatpush.bf16.msrb.mxu3 %v3124_v5  ;;  %3008 = vmatmul.msk.bf16.vlgmr.msra.gmra.mxu0 %vm634_vm2, %v933_v46  ;;  %v5123_v33 = vsel %vm927_vm7, %v2313_v24, %v2314_v14  ;;  %v3056_v28 = vor.u32 %v3823_v25, %v3053_v17  ;;  %v1126_v58 = vmul.f32 %v6006_v34, %v6009_v32  ;;  %v2310_v5 = vrot.slane %v2277_v9, 1  ;;  %v3836_v42 = vld [vmem:[%s5960_s6 + $0x2c4] sm:$0xf0]  ;;  %v3101_v9 = vld [vmem:[%s5960_s6 + $0x2c8] sm:$0xf0] }
  0xb8   : > { %1299 = vmatpush.bf16.msrb.mxu1 %v3060_v21  ;;  %1327 = vmatpush.bf16.msrb.mxu0 %v3064_v12  ;;  %v3108_v48 = vor.u32 %v3838_v36, %v3107_v60  ;;  %v3112_v6 = vor.u32 %v3837_v30, %v3109_v41  ;;  %v5146_v15 = vsel %vm488_vm1, %v2081_v39, %v2085_v50  ;;  %v3213_v45 = vld [vmem:[%s5960_s6 + $0x370] sm:$0xf]  ;;  %v3858_v3 = vld [vmem:[%s5960_s6 + $0x374] sm:$0xf0]  ;;  %v3857_v8 = vld [vmem:[%s5960_s6 + $0x374] sm:$0xf] }
  0xb9   : > { %v5158_v27 = vsel %vm927_vm7, %v2310_v5, %v2311_v2  ;;  %v3215_v52 = vld [vmem:[%s5960_s6 + $0x378] sm:$0xf0]  ;;  %v1133_v1 = vpack.c.bf16 %v6010_v38, %v6010_v38  ;;  %v1134_v43 = vpack.c.bf16 %v5072_v10, %v5072_v10  ;;  %v3044_v20 = vor.u32 %v3822_v63, %v3043_v37  ;;  %v3035_v50 = vld [vmem:[%s5960_s6 + $0x240] sm:$0xf]  ;;  %v3820_v21 = vld [vmem:[%s5960_s6 + $0x244] sm:$0xf0] }
  0xba   : > { %1342 = vmatpush.bf16.msrb.mxu2 %v3120_v18  ;;  %v3048_v40 = vor.u32 %v3821_v0, %v3045_v29  ;;  %v3819_v57 = vld [vmem:[%s5960_s6 + $0x244] sm:$0xf]  ;;  %v1131_v34 = vpack.c.bf16 %v1127_v56, %v1125_v4  ;;  %v3100_v16 = vor.u32 %v3836_v42, %v3099_v26  ;;  %v3104_v10 = vor.u32 %v3835_v13, %v3101_v9  ;;  %v3037_v12 = vld [vmem:[%s5960_s6 + $0x248] sm:$0xf0]  ;;  %v3866_v51 = vld [vmem:[%s5960_s6 + $0x3b4] sm:$0xf0] }
  0xbb   : > { %1314 = vmatpush.bf16.msrb.mxu3 %v3116_v19  ;;  %v3245_v19 = vld [vmem:[%s5960_s6 + $0x3b0] sm:$0xf]  ;;  %v1132_v23 = vpack.c.bf16 %v5116_v35, %v1126_v58  ;;  %v3214_v24 = vor.u32 %v3858_v3, %v3213_v45  ;;  %v3218_v59 = vor.u32 %v3857_v8, %v3215_v52  ;;  %v3865_v18 = vld [vmem:[%s5960_s6 + $0x3b4] sm:$0xf]  ;;  %v3247_v55 = vld [vmem:[%s5960_s6 + $0x3b8] sm:$0xf0]  ;;  %v3036_v60 = vor.u32 %v3820_v21, %v3035_v50 }
  0xbc   : > { %1300 = vmatpush.bf16.msrb.mxu1 %v3052_v31  ;;  %1328 = vmatpush.bf16.msrb.mxu0 %v3056_v28  ;;  %v3205_v25 = vld [vmem:[%s5960_s6 + $0x360] sm:$0xf]  ;;  %v3856_v17 = vld [vmem:[%s5960_s6 + $0x364] sm:$0xf0]  ;;  %v3855_v44 = vld [vmem:[%s5960_s6 + $0x364] sm:$0xf]  ;;  %v3040_v11 = vor.u32 %v3819_v57, %v3037_v12  ;;  %v3246_v36 = vor.u32 %v3866_v51, %v3245_v19  ;;  %v3250_v30 = vor.u32 %v3865_v18, %v3247_v55 }
  0xbd   : > { %v3207_v46 = vld [vmem:[%s5960_s6 + $0x368] sm:$0xf0]  ;;  %v1165_v7 = vrot.slane %v1131_v34, 2  ;;  %v1166_v14 = vrot.slane %v1133_v1, 2  ;;  %v1168_v41 = vrot.slane %v1132_v23, 2  ;;  %v1169_v47 = vrot.slane %v1134_v43, 2 }
  0xbe   : > { %1343 = vmatpush.bf16.msrb.mxu2 %v3112_v6  ;;  %v3237_v4 = vld [vmem:[%s5960_s6 + $0x3a0] sm:$0xf]  ;;  %v3864_v56 = vld [vmem:[%s5960_s6 + $0x3a4] sm:$0xf0]  ;;  %v3206_v35 = vor.u32 %v3856_v17, %v3205_v25  ;;  %v3210_v31 = vor.u32 %v3855_v44, %v3207_v46  ;;  %v3863_v37 = vld [vmem:[%s5960_s6 + $0x3a4] sm:$0xf] }
  0xbf   : > { %1315 = vmatpush.bf16.msrb.mxu3 %v3108_v48  ;;  %v3239_v39 = vld [vmem:[%s5960_s6 + $0x3a8] sm:$0xf0]  ;;  %v3197_v28 = vld [vmem:[%s5960_s6 + $0x350] sm:$0xf]  ;;  %v3854_v63 = vld [vmem:[%s5960_s6 + $0x354] sm:$0xf0]  ;;  %v1167_v58 = vsel %vm1164_vm0, %v1165_v7, %v1166_v14  ;;  %v3238_v5 = vor.u32 %v3864_v56, %v3237_v4  ;;  %v1170_v29 = vsel %vm1164_vm0, %v1168_v41, %v1169_v47 }
  0xc0   : > { %1301 = vmatpush.bf16.msrb.mxu1 %v3044_v20  ;;  %1329 = vmatpush.bf16.msrb.mxu0 %v3048_v40  ;;  %v3853_v0 = vld [vmem:[%s5960_s6 + $0x354] sm:$0xf]  ;;  %v3199_v32 = vld [vmem:[%s5960_s6 + $0x358] sm:$0xf0]  ;;  %v3242_v2 = vor.u32 %v3863_v37, %v3239_v39  ;;  %v3229_v48 = vld [vmem:[%s5960_s6 + $0x390] sm:$0xf]  ;;  %v3198_v26 = vor.u32 %v3854_v63, %v3197_v28 }
  0xc1   : > { %v3862_v6 = vld [vmem:[%s5960_s6 + $0x394] sm:$0xf0]  ;;  %v3202_v42 = vor.u32 %v3853_v0, %v3199_v32  ;;  %v3861_v13 = vld [vmem:[%s5960_s6 + $0x394] sm:$0xf]  ;;  %v3231_v9 = vld [vmem:[%s5960_s6 + $0x398] sm:$0xf0] }
  0xc2   : > { %1344 = vmatpush.bf16.msrb.mxu2 %v3104_v10  ;;  %v3189_v45 = vld [vmem:[%s5960_s6 + $0x340] sm:$0xf]  ;;  %v3852_v3 = vld [vmem:[%s5960_s6 + $0x344] sm:$0xf0]  ;;  %v3851_v8 = vld [vmem:[%s5960_s6 + $0x344] sm:$0xf]  ;;  %v3230_v38 = vor.u32 %v3862_v6, %v3229_v48  ;;  %v3234_v1 = vor.u32 %v3861_v13, %v3231_v9 }
  0xc3   : > { %1316 = vmatpush.bf16.msrb.mxu3 %v3100_v16  ;;  %v3191_v52 = vld [vmem:[%s5960_s6 + $0x348] sm:$0xf0]  ;;  %v3221_v43 = vld [vmem:[%s5960_s6 + $0x380] sm:$0xf]  ;;  %v3860_v20 = vld [vmem:[%s5960_s6 + $0x384] sm:$0xf0]  ;;  %v3190_v50 = vor.u32 %v3852_v3, %v3189_v45 }
  0xc4   : > { %1302 = vmatpush.bf16.msrb.mxu1 %v3036_v60  ;;  %1330 = vmatpush.bf16.msrb.mxu0 %v3040_v11  ;;  %v3859_v40 = vld [vmem:[%s5960_s6 + $0x384] sm:$0xf]  ;;  %v3194_v21 = vor.u32 %v3851_v8, %v3191_v52  ;;  %v3223_v57 = vld [vmem:[%s5960_s6 + $0x388] sm:$0xf0]  ;;  %v3181_v34 = vld [vmem:[%s5960_s6 + $0x330] sm:$0xf] }
  0xc5   : > { %3130 = vmatmul.msk.bf16.vlgmr.msrb.gmra.mxu2 %vm634_vm2, %v1170_v29  ;;  %v3850_v16 = vld [vmem:[%s5960_s6 + $0x334] sm:$0xf0]  ;;  %v3849_v10 = vld [vmem:[%s5960_s6 + $0x334] sm:$0xf]  ;;  %v3183_v12 = vld [vmem:[%s5960_s6 + $0x338] sm:$0xf0]  ;;  %v3226_v18 = vor.u32 %v3859_v40, %v3223_v57 }
  0xc6   : > { %1551 = vmatpush.bf16.msra.mxu2 %v3218_v59  ;;  %3129 = vmatmul.msk.bf16.vlgmr.msrb.gmra.mxu3 %vm634_vm2, %v1170_v29  ;;  %v3335_v19 = vld [vmem:[%s5960_s6 + $0x430] sm:$0xf]  ;;  %v3882_v51 = vld [vmem:[%s5960_s6 + $0x434] sm:$0xf0]  ;;  %v3881_v23 = vld [vmem:[%s5960_s6 + $0x434] sm:$0xf]  ;;  %v3222_v59 = vor.u32 %v3860_v20, %v3221_v43  ;;  %v3182_v55 = vor.u32 %v3850_v16, %v3181_v34  ;;  %v3186_v25 = vor.u32 %v3849_v10, %v3183_v12 }
  0xc7   : > { %1523 = vmatpush.bf16.msra.mxu3 %v3214_v24  ;;  %1303 = vmatmul.bf16.vlgmr.msrb.gmra.mxu1 %v1167_v58  ;;  %v3337_v24 = vld [vmem:[%s5960_s6 + $0x438] sm:$0xf0]  ;;  %v3173_v17 = vld [vmem:[%s5960_s6 + $0x320] sm:$0xf]  ;;  %v3848_v44 = vld [vmem:[%s5960_s6 + $0x324] sm:$0xf0]  ;;  %v3336_v46 = vor.u32 %v3882_v51, %v3335_v19 }
  0xc8   : > { %1541 = vmatpush.bf16.msra.mxu1 %v3246_v36  ;;  %1569 = vmatpush.bf16.msra.mxu0 %v3250_v30  ;;  %v3340_v60 = vor.u32 %v3881_v23, %v3337_v24  ;;  %v3847_v11 = vld [vmem:[%s5960_s6 + $0x324] sm:$0xf]  ;;  %v3175_v7 = vld [vmem:[%s5960_s6 + $0x328] sm:$0xf0]  ;;  %v3327_v14 = vld [vmem:[%s5960_s6 + $0x420] sm:$0xf]  ;;  %v3174_v47 = vor.u32 %v3848_v44, %v3173_v17 }
  0xc9   : > { %1331 = vmatmul.bf16.vlgmr.msrb.gmra.mxu0 %v1167_v58  ;;  %v3880_v36 = vld [vmem:[%s5960_s6 + $0x424] sm:$0xf0]  ;;  %v3879_v30 = vld [vmem:[%s5960_s6 + $0x424] sm:$0xf]  ;;  %v3329_v41 = vld [vmem:[%s5960_s6 + $0x428] sm:$0xf0]  ;;  %v3178_v4 = vor.u32 %v3847_v11, %v3175_v7 }
  0xca   : > { %1552 = vmatpush.bf16.msra.mxu2 %v3210_v31  ;;  %v3165_v56 = vld [vmem:[%s5960_s6 + $0x310] sm:$0xf]  ;;  %v3328_v31 = vor.u32 %v3880_v36, %v3327_v14  ;;  %v3332_v37 = vor.u32 %v3879_v30, %v3329_v41  ;;  %v3845_v39 = vld [vmem:[%s5960_s6 + $0x314] sm:$0xf]  ;;  %v3167_v28 = vld [vmem:[%s5960_s6 + $0x318] sm:$0xf0] }
  0xcb   : > { %1524 = vmatpush.bf16.msra.mxu3 %v3206_v35  ;;  %v3846_v35 = vld [vmem:[%s5960_s6 + $0x314] sm:$0xf0]  ;;  %v3319_v63 = vld [vmem:[%s5960_s6 + $0x410] sm:$0xf]  ;;  %v3877_v32 = vld [vmem:[%s5960_s6 + $0x414] sm:$0xf] }
  0xcc   : > { %1542 = vmatpush.bf16.msra.mxu1 %v3238_v5  ;;  %1570 = vmatpush.bf16.msra.mxu0 %v3242_v2  ;;  %v3878_v0 = vld [vmem:[%s5960_s6 + $0x414] sm:$0xf0]  ;;  %v3321_v58 = vld [vmem:[%s5960_s6 + $0x418] sm:$0xf0]  ;;  %v3166_v5 = vor.u32 %v3846_v35, %v3165_v56  ;;  %v3170_v2 = vor.u32 %v3845_v39, %v3167_v28  ;;  %v3157_v48 = vld [vmem:[%s5960_s6 + $0x300] sm:$0xf] }
  0xcd   : > { %v3844_v6 = vld [vmem:[%s5960_s6 + $0x304] sm:$0xf0]  ;;  %v3843_v29 = vld [vmem:[%s5960_s6 + $0x304] sm:$0xf]  ;;  %v3159_v13 = vld [vmem:[%s5960_s6 + $0x308] sm:$0xf0] }
  0xce   : > { %1553 = vmatpush.bf16.msra.mxu2 %v3202_v42  ;;  %v3324_v42 = vor.u32 %v3877_v32, %v3321_v58  ;;  %v3311_v9 = vld [vmem:[%s5960_s6 + $0x400] sm:$0xf]  ;;  %v3876_v45 = vld [vmem:[%s5960_s6 + $0x404] sm:$0xf0]  ;;  %v3875_v3 = vld [vmem:[%s5960_s6 + $0x404] sm:$0xf]  ;;  %v3158_v43 = vor.u32 %v3844_v6, %v3157_v48  ;;  %v3162_v20 = vor.u32 %v3843_v29, %v3159_v13 }
  0xcf   : > { %1525 = vmatpush.bf16.msra.mxu3 %v3198_v26  ;;  %v3320_v26 = vor.u32 %v3878_v0, %v3319_v63  ;;  %v3313_v8 = vld [vmem:[%s5960_s6 + $0x408] sm:$0xf0]  ;;  %v3367_v52 = vld [vmem:[%s5960_s6 + $0x470] sm:$0xf]  ;;  %v3312_v40 = vor.u32 %v3876_v45, %v3311_v9  ;;  %v3874_v57 = vld [vmem:[%s5960_s6 + $0x3f4] sm:$0xf0] }
  0xd0   : > { %1543 = vmatpush.bf16.msra.mxu1 %v3230_v38  ;;  %1571 = vmatpush.bf16.msra.mxu0 %v3234_v1  ;;  %v3890_v38 = vld [vmem:[%s5960_s6 + $0x474] sm:$0xf0]  ;;  %v3369_v1 = vld [vmem:[%s5960_s6 + $0x478] sm:$0xf0]  ;;  %v3873_v10 = vld [vmem:[%s5960_s6 + $0x3f4] sm:$0xf] }
  0xd1   : > { %v3368_v34 = vor.u32 %v3890_v38, %v3367_v52  ;;  %v3305_v12 = vld [vmem:[%s5960_s6 + $0x3f8] sm:$0xf0]  ;;  %v3359_v19 = vld [vmem:[%s5960_s6 + $0x460] sm:$0xf]  ;;  %v3888_v51 = vld [vmem:[%s5960_s6 + $0x464] sm:$0xf0] }
  0xd2   : > { %1554 = vmatpush.bf16.msra.mxu2 %v3194_v21  ;;  %v3303_v21 = vld [vmem:[%s5960_s6 + $0x3f0] sm:$0xf]  ;;  %v3887_v23 = vld [vmem:[%s5960_s6 + $0x464] sm:$0xf]  ;;  %v3361_v24 = vld [vmem:[%s5960_s6 + $0x468] sm:$0xf0]  ;;  %v3360_v17 = vor.u32 %v3888_v51, %v3359_v19 }
  0xd3   : > { %1526 = vmatpush.bf16.msra.mxu3 %v3190_v50  ;;  %v3316_v50 = vor.u32 %v3875_v3, %v3313_v8  ;;  %v3364_v44 = vor.u32 %v3887_v23, %v3361_v24  ;;  %v3351_v11 = vld [vmem:[%s5960_s6 + $0x450] sm:$0xf]  ;;  %v3886_v7 = vld [vmem:[%s5960_s6 + $0x454] sm:$0xf0]  ;;  %v3885_v14 = vld [vmem:[%s5960_s6 + $0x454] sm:$0xf] }
  0xd4   : > { %1544 = vmatpush.bf16.msra.mxu1 %v3222_v59  ;;  %1572 = vmatpush.bf16.msra.mxu0 %v3226_v18  ;;  %v3304_v59 = vor.u32 %v3874_v57, %v3303_v21  ;;  %v3308_v18 = vor.u32 %v3873_v10, %v3305_v12  ;;  %v3353_v36 = vld [vmem:[%s5960_s6 + $0x458] sm:$0xf0]  ;;  %v3352_v56 = vor.u32 %v3886_v7, %v3351_v11  ;;  %v3884_v39 = vld [vmem:[%s5960_s6 + $0x444] sm:$0xf0]  ;;  %v3883_v28 = vld [vmem:[%s5960_s6 + $0x444] sm:$0xf] }
  0xd5   : > { %v3356_v35 = vor.u32 %v3885_v14, %v3353_v36  ;;  %v3345_v63 = vld [vmem:[%s5960_s6 + $0x448] sm:$0xf0]  ;;  %v3457_v0 = vld [vmem:[%s5960_s6 + $0x4f0] sm:$0xf]  ;;  %v3906_v32 = vld [vmem:[%s5960_s6 + $0x4f4] sm:$0xf0] }
  0xd6   : > { %1555 = vmatpush.bf16.msra.mxu2 %v3186_v25  ;;  %v3872_v25 = vld [vmem:[%s5960_s6 + $0x3e4] sm:$0xf0]  ;;  %v3905_v58 = vld [vmem:[%s5960_s6 + $0x4f4] sm:$0xf]  ;;  %v3279_v6 = vld [vmem:[%s5960_s6 + $0x3c0] sm:$0xf]  ;;  %v3348_v13 = vor.u32 %v3883_v28, %v3345_v63  ;;  %v3458_v8 = vor.u32 %v3906_v32, %v3457_v0 }
  0xd7   : > { %1527 = vmatpush.bf16.msra.mxu3 %v3182_v55  ;;  %3251 = vmatmul.msk.bf16.vlgmr.msra.gmra.mxu1 %vm634_vm2, %v4977_v54  ;;  %v3295_v55 = vld [vmem:[%s5960_s6 + $0x3e0] sm:$0xf]  ;;  %v3868_v29 = vld [vmem:[%s5960_s6 + $0x3c4] sm:$0xf0]  ;;  %v3281_v9 = vld [vmem:[%s5960_s6 + $0x3c8] sm:$0xf0] }
  0xd8   : > { %1760 = vmatpush.bf16.msrb.mxu1 %v3336_v46  ;;  %1788 = vmatpush.bf16.msrb.mxu0 %v3340_v60  ;;  %v3871_v46 = vld [vmem:[%s5960_s6 + $0x3e4] sm:$0xf]  ;;  %v3297_v60 = vld [vmem:[%s5960_s6 + $0x3e8] sm:$0xf0]  ;;  %v3296_v30 = vor.u32 %v3872_v25, %v3295_v55  ;;  %v3489_v45 = vld [vmem:[%s5960_s6 + $0x530] sm:$0xf] }
  0xd9   : > { %3252 = vmatmul.msk.bf16.vlgmr.msra.gmra.mxu0 %vm634_vm2, %v4977_v54  ;;  %v3889_v54 = vld [vmem:[%s5960_s6 + $0x474] sm:$0xf]  ;;  %v3300_v41 = vor.u32 %v3871_v46, %v3297_v60  ;;  %v3914_v3 = vld [vmem:[%s5960_s6 + $0x534] sm:$0xf0]  ;;  %v3912_v10 = vld [vmem:[%s5960_s6 + $0x524] sm:$0xf0] }
  0xda   : > { %1556 = vmatpush.bf16.msra.mxu2 %v3178_v4  ;;  %v3372_v16 = vor.u32 %v3889_v54, %v3369_v1  ;;  %v3869_v4 = vld [vmem:[%s5960_s6 + $0x3d4] sm:$0xf]  ;;  %v3491_v54 = vld [vmem:[%s5960_s6 + $0x538] sm:$0xf0]  ;;  %v3449_v1 = vld [vmem:[%s5960_s6 + $0x4e0] sm:$0xf]  ;;  %v3490_v57 = vor.u32 %v3914_v3, %v3489_v45 }
  0xdb   : > { %1528 = vmatpush.bf16.msra.mxu3 %v3174_v47  ;;  %v3870_v47 = vld [vmem:[%s5960_s6 + $0x3d4] sm:$0xf0]  ;;  %v3913_v38 = vld [vmem:[%s5960_s6 + $0x534] sm:$0xf]  ;;  %v3911_v51 = vld [vmem:[%s5960_s6 + $0x524] sm:$0xf] }
  0xdc   : > { %1761 = vmatpush.bf16.msrb.mxu1 %v3328_v31  ;;  %1789 = vmatpush.bf16.msrb.mxu0 %v3332_v37  ;;  %v3289_v31 = vld [vmem:[%s5960_s6 + $0x3d8] sm:$0xf0]  ;;  %v3343_v37 = vld [vmem:[%s5960_s6 + $0x440] sm:$0xf]  ;;  %v3483_v23 = vld [vmem:[%s5960_s6 + $0x528] sm:$0xf0] }
  0xdd   : > { %v3292_v48 = vor.u32 %v3869_v4, %v3289_v31  ;;  %v3441_v24 = vld [vmem:[%s5960_s6 + $0x4d0] sm:$0xf]  ;;  %v3443_v55 = vld [vmem:[%s5960_s6 + $0x4d8] sm:$0xf0]  ;;  %v3910_v46 = vld [vmem:[%s5960_s6 + $0x514] sm:$0xf0] }
  0xde   : > { %1557 = vmatpush.bf16.msra.mxu2 %v3170_v2  ;;  %v3909_v7 = vld [vmem:[%s5960_s6 + $0x514] sm:$0xf]  ;;  %v3475_v14 = vld [vmem:[%s5960_s6 + $0x518] sm:$0xf0]  ;;  %v3433_v36 = vld [vmem:[%s5960_s6 + $0x4c0] sm:$0xf] }
  0xdf   : > { %1529 = vmatpush.bf16.msra.mxu3 %v3166_v5  ;;  %v3459_v5 = vld [vmem:[%s5960_s6 + $0x4f8] sm:$0xf0]  ;;  %v3478_v4 = vor.u32 %v3909_v7, %v3475_v14  ;;  %v3907_v31 = vld [vmem:[%s5960_s6 + $0x504] sm:$0xf]  ;;  %v3898_v28 = vld [vmem:[%s5960_s6 + $0x4b4] sm:$0xf0] }
  0xe0   : > { %1762 = vmatpush.bf16.msrb.mxu1 %v3320_v26  ;;  %1790 = vmatpush.bf16.msrb.mxu0 %v3324_v42  ;;  %v3867_v26 = vld [vmem:[%s5960_s6 + $0x3c4] sm:$0xf]  ;;  %v3344_v42 = vor.u32 %v3884_v39, %v3343_v37  ;;  %v3462_v52 = vor.u32 %v3905_v58, %v3459_v5  ;;  %v3467_v37 = vld [vmem:[%s5960_s6 + $0x508] sm:$0xf0]  ;;  %v3425_v39 = vld [vmem:[%s5960_s6 + $0x4b0] sm:$0xf] }
  0xe1   : > { %v3284_v21 = vor.u32 %v3867_v26, %v3281_v9  ;;  %v3897_v63 = vld [vmem:[%s5960_s6 + $0x4b4] sm:$0xf]  ;;  %v3427_v0 = vld [vmem:[%s5960_s6 + $0x4b8] sm:$0xf0]  ;;  %v3579_v32 = vld [vmem:[%s5960_s6 + $0x5b0] sm:$0xf] }
  0xe2   : > { %1558 = vmatpush.bf16.msra.mxu2 %v3162_v20  ;;  %v3903_v20 = vld [vmem:[%s5960_s6 + $0x4e4] sm:$0xf]  ;;  %v3930_v58 = vld [vmem:[%s5960_s6 + $0x5b4] sm:$0xf0]  ;;  %v3929_v5 = vld [vmem:[%s5960_s6 + $0x5b4] sm:$0xf]  ;;  %v3430_v26 = vor.u32 %v3897_v63, %v3427_v0 }
  0xe3   : > { %1530 = vmatpush.bf16.msra.mxu3 %v3158_v43  ;;  %v3904_v43 = vld [vmem:[%s5960_s6 + $0x4e4] sm:$0xf0]  ;;  %v3580_v9 = vor.u32 %v3930_v58, %v3579_v32  ;;  %v3895_v3 = vld [vmem:[%s5960_s6 + $0x4a4] sm:$0xf]  ;;  %v3557_v14 = vld [vmem:[%s5960_s6 + $0x588] sm:$0xf0] }
  0xe4   : > { %1763 = vmatpush.bf16.msrb.mxu1 %v3312_v40  ;;  %1791 = vmatpush.bf16.msrb.mxu0 %v3316_v50  ;;  %v3451_v40 = vld [vmem:[%s5960_s6 + $0x4e8] sm:$0xf0]  ;;  %v3280_v50 = vor.u32 %v3868_v29, %v3279_v6  ;;  %v3450_v12 = vor.u32 %v3904_v43, %v3449_v1  ;;  %v3470_v6 = vor.u32 %v3907_v31, %v3467_v37  ;;  %v3923_v7 = vld [vmem:[%s5960_s6 + $0x584] sm:$0xf]  ;;  %v3547_v31 = vld [vmem:[%s5960_s6 + $0x570] sm:$0xf] }
  0xe5   : > { %1559 = vmatmul.bf16.vlgmr.msra.gmra.mxu2 %v5046_v49  ;;  %v3454_v19 = vor.u32 %v3903_v20, %v3451_v40  ;;  %v3426_v29 = vor.u32 %v3898_v28, %v3425_v39  ;;  %v3573_v1 = vld [vmem:[%s5960_s6 + $0x5a8] sm:$0xf0]  ;;  %v3409_v40 = vld [vmem:[%s5960_s6 + $0x490] sm:$0xf]  ;;  %v3921_v39 = vld [vmem:[%s5960_s6 + $0x574] sm:$0xf] }
  0xe6   : > { %1806 = vmatpush.bf16.msrb.mxu2 %v3372_v16  ;;  %1531 = vmatmul.bf16.vlgmr.msra.gmra.mxu3 %v5046_v49  ;;  %v3287_v49 = vld [vmem:[%s5960_s6 + $0x3d0] sm:$0xf]  ;;  %v3481_v16 = vld [vmem:[%s5960_s6 + $0x520] sm:$0xf]  ;;  %v3549_v28 = vld [vmem:[%s5960_s6 + $0x578] sm:$0xf0] }
  0xe7   : > { %1778 = vmatpush.bf16.msrb.mxu3 %v3368_v34  ;;  %v3288_v2 = vor.u32 %v3870_v47, %v3287_v49  ;;  %v3494_v34 = vor.u32 %v3913_v38, %v3491_v54  ;;  %v3482_v25 = vor.u32 %v3912_v10, %v3481_v16  ;;  %v3435_v49 = vld [vmem:[%s5960_s6 + $0x4c8] sm:$0xf0]  ;;  %v3928_v38 = vld [vmem:[%s5960_s6 + $0x5a4] sm:$0xf0]  ;;  %v3927_v54 = vld [vmem:[%s5960_s6 + $0x5a4] sm:$0xf] }
  0xe8   : > { %1764 = vmatpush.bf16.msrb.mxu1 %v3304_v59  ;;  %1792 = vmatpush.bf16.msrb.mxu0 %v3308_v18  ;;  %v3902_v59 = vld [vmem:[%s5960_s6 + $0x4d4] sm:$0xf0]  ;;  %v3901_v18 = vld [vmem:[%s5960_s6 + $0x4d4] sm:$0xf]  ;;  %v3411_v16 = vld [vmem:[%s5960_s6 + $0x498] sm:$0xf0] }
  0xe9   : > { %v3442_v60 = vor.u32 %v3902_v59, %v3441_v24  ;;  %v3446_v11 = vor.u32 %v3901_v18, %v3443_v55  ;;  %v3563_v10 = vld [vmem:[%s5960_s6 + $0x590] sm:$0xf]  ;;  %v3401_v59 = vld [vmem:[%s5960_s6 + $0x480] sm:$0xf]  ;;  %v3892_v18 = vld [vmem:[%s5960_s6 + $0x484] sm:$0xf0] }
  0xea   : > { %1807 = vmatpush.bf16.msrb.mxu2 %v3364_v44  ;;  %v3473_v44 = vld [vmem:[%s5960_s6 + $0x510] sm:$0xf]  ;;  %v3891_v55 = vld [vmem:[%s5960_s6 + $0x484] sm:$0xf]  ;;  %v3603_v63 = vld [vmem:[%s5960_s6 + $0x5e0] sm:$0xf] }
  0xeb   : > { %1779 = vmatpush.bf16.msrb.mxu3 %v3360_v17  ;;  %v3486_v17 = vor.u32 %v3911_v51, %v3483_v23  ;;  %v3474_v47 = vor.u32 %v3910_v46, %v3473_v44  ;;  %v3565_v51 = vld [vmem:[%s5960_s6 + $0x598] sm:$0xf0]  ;;  %v3403_v44 = vld [vmem:[%s5960_s6 + $0x488] sm:$0xf0]  ;;  %v3555_v46 = vld [vmem:[%s5960_s6 + $0x580] sm:$0xf] }
  0xec   : > { %1765 = vmatpush.bf16.msrb.mxu1 %v3296_v30  ;;  %1793 = vmatpush.bf16.msrb.mxu0 %v3300_v41  ;;  %v3900_v30 = vld [vmem:[%s5960_s6 + $0x4c4] sm:$0xf0]  ;;  %v3899_v41 = vld [vmem:[%s5960_s6 + $0x4c4] sm:$0xf]  ;;  %v3605_v58 = vld [vmem:[%s5960_s6 + $0x5e8] sm:$0xf0] }
  0xed   : > { %v3936_v0 = vld [vmem:[%s5960_s6 + $0x5e4] sm:$0xf0]  ;;  %v3935_v32 = vld [vmem:[%s5960_s6 + $0x5e4] sm:$0xf] }
  0xee   : > { %1808 = vmatpush.bf16.msrb.mxu2 %v3356_v35  ;;  %v3908_v35 = vld [vmem:[%s5960_s6 + $0x504] sm:$0xf0] }
  0xef   : > { %1780 = vmatpush.bf16.msrb.mxu3 %v3352_v56  ;;  %v3465_v56 = vld [vmem:[%s5960_s6 + $0x500] sm:$0xf] }
  0xf0   : > { %1766 = vmatpush.bf16.msrb.mxu1 %v3288_v2  ;;  %1794 = vmatpush.bf16.msrb.mxu0 %v3292_v48  ;;  %v3581_v2 = vld [vmem:[%s5960_s6 + $0x5b8] sm:$0xf0]  ;;  %v3466_v48 = vor.u32 %v3908_v35, %v3465_v56  ;;  %v3560_v35 = vor.u32 %v3923_v7, %v3557_v14  ;;  %v3733_v7 = vld [vmem:[%s5960_s6 + $0x6b0] sm:$0xf] }
  0xf1   : > { %v3584_v45 = vor.u32 %v3929_v5, %v3581_v2  ;;  %v3552_v2 = vor.u32 %v3921_v39, %v3549_v28  ;;  %v3725_v39 = vld [vmem:[%s5960_s6 + $0x6a0] sm:$0xf] }
  0xf2   : > { %1809 = vmatpush.bf16.msrb.mxu2 %v3348_v13  ;;  %v3896_v13 = vld [vmem:[%s5960_s6 + $0x4a4] sm:$0xf0] }
  0xf3   : > { %1781 = vmatpush.bf16.msrb.mxu3 %v3344_v42  ;;  %v3417_v42 = vld [vmem:[%s5960_s6 + $0x4a0] sm:$0xf] }
  0xf4   : > { %1767 = vmatpush.bf16.msrb.mxu1 %v3280_v50  ;;  %1795 = vmatpush.bf16.msrb.mxu0 %v3284_v21  ;;  %v3418_v43 = vor.u32 %v3896_v13, %v3417_v42  ;;  %v3894_v50 = vld [vmem:[%s5960_s6 + $0x494] sm:$0xf0]  ;;  %v3919_v42 = vld [vmem:[%s5960_s6 + $0x564] sm:$0xf]  ;;  %v3541_v13 = vld [vmem:[%s5960_s6 + $0x568] sm:$0xf0] }
  0xf5   : > { %3374 = vmatmul.msk.bf16.vlgmr.msrb.gmra.mxu2 %vm634_vm2, %v4940_v53  ;;  %v3410_v23 = vor.u32 %v3894_v50, %v3409_v40  ;;  %v3533_v40 = vld [vmem:[%s5960_s6 + $0x558] sm:$0xf0]  ;;  %v3587_v50 = vld [vmem:[%s5960_s6 + $0x5c0] sm:$0xf] }
  0xf6   : > { %2002 = vmatpush.bf16.msra.mxu2 %v3462_v52  ;;  %3373 = vmatmul.msk.bf16.vlgmr.msrb.gmra.mxu3 %vm634_vm2, %v4940_v53  ;;  %v3438_v53 = vor.u32 %v3899_v41, %v3435_v49  ;;  %v3571_v52 = vld [vmem:[%s5960_s6 + $0x5a0] sm:$0xf]  ;;  %v3937_v41 = vld [vmem:[%s5960_s6 + $0x5f4] sm:$0xf]  ;;  %v3613_v49 = vld [vmem:[%s5960_s6 + $0x5f8] sm:$0xf0] }
  0xf7   : > { %1974 = vmatpush.bf16.msra.mxu3 %v3458_v8  ;;  %1768 = vmatmul.bf16.vlgmr.msrb.gmra.mxu1 %v5029_v61  ;;  %v3419_v8 = vld [vmem:[%s5960_s6 + $0x4a8] sm:$0xf0]  ;;  %v3572_v21 = vor.u32 %v3928_v38, %v3571_v52  ;;  %v3616_v37 = vor.u32 %v3937_v41, %v3613_v49  ;;  %v3544_v38 = vor.u32 %v3919_v42, %v3541_v13  ;;  %v3961_v41 = vld [vmem:[%s5960_s6 + $0x6b4] sm:$0xf]  ;;  %v3735_v49 = vld [vmem:[%s5960_s6 + $0x6b8] sm:$0xf0] }
  0xf8   : > { %1992 = vmatpush.bf16.msra.mxu1 %v3490_v57  ;;  %2020 = vmatpush.bf16.msra.mxu0 %v3494_v34  ;;  %v3422_v20 = vor.u32 %v3895_v3, %v3419_v8  ;;  %v3576_v57 = vor.u32 %v3927_v54, %v3573_v1  ;;  %v3893_v34 = vld [vmem:[%s5960_s6 + $0x494] sm:$0xf]  ;;  %v3597_v8 = vld [vmem:[%s5960_s6 + $0x5d8] sm:$0xf0]  ;;  %v3918_v54 = vld [vmem:[%s5960_s6 + $0x554] sm:$0xf0] }
  0xf9   : > { %1796 = vmatmul.bf16.vlgmr.msrb.gmra.mxu0 %v5029_v61  ;;  %v3434_v61 = vor.u32 %v3900_v30, %v3433_v36  ;;  %v3414_v24 = vor.u32 %v3893_v34, %v3411_v16  ;;  %v3611_v36 = vld [vmem:[%s5960_s6 + $0x5f0] sm:$0xf]  ;;  %v3938_v30 = vld [vmem:[%s5960_s6 + $0x5f4] sm:$0xf0]  ;;  %v3933_v3 = vld [vmem:[%s5960_s6 + $0x5d4] sm:$0xf] }
  0xfa   : > { %2003 = vmatpush.bf16.msra.mxu2 %v3454_v19  ;;  %v3925_v19 = vld [vmem:[%s5960_s6 + $0x594] sm:$0xf]  ;;  %v3589_v34 = vld [vmem:[%s5960_s6 + $0x5c8] sm:$0xf0]  ;;  %v3701_v16 = vld [vmem:[%s5960_s6 + $0x670] sm:$0xf] }
  0xfb   : > { %1975 = vmatpush.bf16.msra.mxu3 %v3450_v12  ;;  %v3926_v12 = vld [vmem:[%s5960_s6 + $0x594] sm:$0xf0]  ;;  %v3917_v1 = vld [vmem:[%s5960_s6 + $0x554] sm:$0xf] }
  0xfc   : > { %1993 = vmatpush.bf16.msra.mxu1 %v3482_v25  ;;  %2021 = vmatpush.bf16.msra.mxu0 %v3486_v17  ;;  %v3564_v25 = vor.u32 %v3926_v12, %v3563_v10  ;;  %v3568_v17 = vor.u32 %v3925_v19, %v3565_v51  ;;  %v3954_v12 = vld [vmem:[%s5960_s6 + $0x674] sm:$0xf0]  ;;  %v3953_v19 = vld [vmem:[%s5960_s6 + $0x674] sm:$0xf]  ;;  %v3703_v51 = vld [vmem:[%s5960_s6 + $0x678] sm:$0xf0] }
  0xfd   : > { %v3702_v14 = vor.u32 %v3954_v12, %v3701_v16  ;;  %v3956_v16 = vld [vmem:[%s5960_s6 + $0x684] sm:$0xf0] }
  0xfe   : > { %2004 = vmatpush.bf16.msra.mxu2 %v3446_v11  ;;  %v6011_v11 = vld [vmem:[#allocation8_spill] sm:$0xff] }
  0xff   : > { %1976 = vmatpush.bf16.msra.mxu3 %v3442_v60  ;;  %v3924_v60 = vld [vmem:[%s5960_s6 + $0x584] sm:$0xf0] }
 0x100   : > { %1994 = vmatpush.bf16.msra.mxu1 %v3474_v47  ;;  %2022 = vmatpush.bf16.msra.mxu0 %v3478_v4  ;;  %v3402_v47 = vor.u32 %v3892_v18, %v3401_v59  ;;  %v3406_v4 = vor.u32 %v3891_v55, %v3403_v44  ;;  %v3556_v56 = vor.u32 %v3924_v60, %v3555_v46  ;;  %v3523_v18 = vld [vmem:[%s5960_s6 + $0x540] sm:$0xf]  ;;  %v3916_v55 = vld [vmem:[%s5960_s6 + $0x544] sm:$0xf0]  ;;  %v3525_v60 = vld [vmem:[%s5960_s6 + $0x548] sm:$0xf0] }
 0x102   : > { %2005 = vmatpush.bf16.msra.mxu2 %v3438_v53  ;;  %v3612_v53 = vor.u32 %v3938_v30, %v3611_v36  ;;  %v3706_v36 = vor.u32 %v3953_v19, %v3703_v51  ;;  %v3962_v30 = vld [vmem:[%s5960_s6 + $0x6b4] sm:$0xf0]  ;;  %v3955_v19 = vld [vmem:[%s5960_s6 + $0x684] sm:$0xf]  ;;  %v3711_v51 = vld [vmem:[%s5960_s6 + $0x688] sm:$0xf0] }
 0x103   : > { %1977 = vmatpush.bf16.msra.mxu3 %v3434_v61  ;;  %v3922_v61 = vld [vmem:[%s5960_s6 + $0x574] sm:$0xf0] }
 0x104   : > { %1995 = vmatpush.bf16.msra.mxu1 %v3466_v48  ;;  %2023 = vmatpush.bf16.msra.mxu0 %v3470_v6  ;;  %v3548_v5 = vor.u32 %v3922_v61, %v3547_v31  ;;  %v3539_v48 = vld [vmem:[%s5960_s6 + $0x560] sm:$0xf]  ;;  %v3920_v6 = vld [vmem:[%s5960_s6 + $0x564] sm:$0xf0]  ;;  %v3734_v61 = vor.u32 %v3962_v30, %v3733_v7  ;;  %v3714_v7 = vor.u32 %v3955_v19, %v3711_v51 }
 0x105   : > { %v3540_v52 = vor.u32 %v3920_v6, %v3539_v48  ;;  %v3950_v6 = vld [vmem:[%s5960_s6 + $0x654] sm:$0xf0]  ;;  %v3661_v30 = vld [vmem:[%s5960_s6 + $0x620] sm:$0xf] }
 0x106   : > { %2006 = vmatpush.bf16.msra.mxu2 %v3430_v26  ;;  %v3608_v26 = vor.u32 %v3935_v32, %v3605_v58  ;;  %v3960_v32 = vld [vmem:[%s5960_s6 + $0x6a4] sm:$0xf0]  ;;  %v3959_v58 = vld [vmem:[%s5960_s6 + $0x6a4] sm:$0xf] }
 0x107   : > { %1978 = vmatpush.bf16.msra.mxu3 %v3426_v29  ;;  %3495 = vmatmul.msk.bf16.vlgmr.msra.gmra.mxu1 %vm634_vm2, %v6011_v11  ;;  %v3604_v29 = vor.u32 %v3936_v0, %v3603_v63 }
 0x108   : > { %2211 = vmatpush.bf16.msrb.mxu1 %v3580_v9  ;;  %2239 = vmatpush.bf16.msrb.mxu0 %v3584_v45  ;;  %v3595_v9 = vld [vmem:[%s5960_s6 + $0x5d0] sm:$0xf]  ;;  %v3934_v45 = vld [vmem:[%s5960_s6 + $0x5d4] sm:$0xf0] }
 0x109   : > { %3496 = vmatmul.msk.bf16.vlgmr.msra.gmra.mxu0 %vm634_vm2, %v6011_v11  ;;  %v3693_v11 = vld [vmem:[%s5960_s6 + $0x660] sm:$0xf] }
 0x10a   : > { %2007 = vmatpush.bf16.msra.mxu2 %v3422_v20  ;;  %v3600_v20 = vor.u32 %v3933_v3, %v3597_v8  ;;  %v3677_v8 = vld [vmem:[%s5960_s6 + $0x640] sm:$0xf] }
 0x10b   : > { %1979 = vmatpush.bf16.msra.mxu3 %v3418_v43  ;;  %v3596_v43 = vor.u32 %v3934_v45, %v3595_v9  ;;  %v3726_v45 = vor.u32 %v3960_v32, %v3725_v39 }
 0x10c   : > { %2212 = vmatpush.bf16.msrb.mxu1 %v3572_v21  ;;  %2240 = vmatpush.bf16.msrb.mxu0 %v3576_v57  ;;  %v3932_v21 = vld [vmem:[%s5960_s6 + $0x5c4] sm:$0xf0]  ;;  %v3931_v57 = vld [vmem:[%s5960_s6 + $0x5c4] sm:$0xf] }
 0x10d   : > { %v3588_v44 = vor.u32 %v3932_v21, %v3587_v50  ;;  %v3592_v46 = vor.u32 %v3931_v57, %v3589_v34  ;;  %v3679_v50 = vld [vmem:[%s5960_s6 + $0x648] sm:$0xf0]  ;;  %v3709_v34 = vld [vmem:[%s5960_s6 + $0x680] sm:$0xf] }
 0x10e   : > { %2008 = vmatpush.bf16.msra.mxu2 %v3414_v24  ;;  %v3536_v24 = vor.u32 %v3917_v1, %v3533_v40  ;;  %v3957_v1 = vld [vmem:[%s5960_s6 + $0x694] sm:$0xf]  ;;  %v3947_v40 = vld [vmem:[%s5960_s6 + $0x644] sm:$0xf] }
 0x10f   : > { %1980 = vmatpush.bf16.msra.mxu3 %v3410_v23  ;;  %v3682_v12 = vor.u32 %v3947_v40, %v3679_v50 }
 0x110   : > { %2213 = vmatpush.bf16.msrb.mxu1 %v3564_v25  ;;  %2241 = vmatpush.bf16.msrb.mxu0 %v3568_v17  ;;  %v647_v10 = vpop.f32.mrf.mxu0  ;;  %v661_v59 = vpop.f32.mrf.mxu1  ;;  %v3915_v25 = vld [vmem:[%s5960_s6 + $0x544] sm:$0xf] }
 0x111   : > { %v5781_v17 = vadd.f32 %v661_v59, %v647_v10  ;;  %v3528_v31 = vor.u32 %v3915_v25, %v3525_v60  ;;  %v3945_v59 = vld [vmem:[%s5960_s6 + $0x634] sm:$0xf] }
 0x112   : > { %2009 = vmatpush.bf16.msra.mxu2 %v3406_v4  ;;  %v3951_v4 = vld [vmem:[%s5960_s6 + $0x664] sm:$0xf] }
 0x113   : > { %1981 = vmatpush.bf16.msra.mxu3 %v3402_v47  ;;  %v3952_v47 = vld [vmem:[%s5960_s6 + $0x664] sm:$0xf0] }
 0x114   : > { %2214 = vmatpush.bf16.msrb.mxu1 %v3556_v56  ;;  %2242 = vmatpush.bf16.msrb.mxu0 %v3560_v35  ;;  %v3695_v56 = vld [vmem:[%s5960_s6 + $0x668] sm:$0xf0]  ;;  %v3524_v35 = vor.u32 %v3916_v55, %v3523_v18  ;;  %v3694_v28 = vor.u32 %v3952_v47, %v3693_v11  ;;  %v3671_v18 = vld [vmem:[%s5960_s6 + $0x638] sm:$0xf0] }
 0x115   : > { %2010 = vmatmul.bf16.vlgmr.msra.gmra.mxu2 %v4845_v22  ;;  %v3698_v63 = vor.u32 %v3951_v4, %v3695_v56  ;;  %v3653_v56 = vld [vmem:[%s5960_s6 + $0x610] sm:$0xf] }
 0x116   : > { %2257 = vmatpush.bf16.msrb.mxu2 %v3616_v37  ;;  %1982 = vmatmul.bf16.vlgmr.msra.gmra.mxu3 %v4845_v22  ;;  %v3531_v22 = vld [vmem:[%s5960_s6 + $0x550] sm:$0xf] }
 0x117   : > { %2229 = vmatpush.bf16.msrb.mxu3 %v3612_v53  ;;  %v3532_v23 = vor.u32 %v3918_v54, %v3531_v22  ;;  %v3738_v53 = vor.u32 %v3961_v41, %v3735_v49  ;;  %v3685_v37 = vld [vmem:[%s5960_s6 + $0x650] sm:$0xf]  ;;  %v675_v0 = vpop.f32.mrf.mxu2  ;;  %v3958_v54 = vld [vmem:[%s5960_s6 + $0x694] sm:$0xf0]  ;;  %v3944_v41 = vld [vmem:[%s5960_s6 + $0x624] sm:$0xf0] }
 0x118   : > { %2215 = vmatpush.bf16.msrb.mxu1 %v3548_v5  ;;  %2243 = vmatpush.bf16.msrb.mxu0 %v3552_v2  ;;  %v3727_v5 = vld [vmem:[%s5960_s6 + $0x6a8] sm:$0xf0]  ;;  %v689_v2 = vpop.f32.mrf.mxu3  ;;  %v649_v48 = vpop.f32.mrf.mxu0  ;;  %v3943_v49 = vld [vmem:[%s5960_s6 + $0x624] sm:$0xf]  ;;  %v3662_v47 = vor.u32 %v3944_v41, %v3661_v30 }
 0x119   : > { %v690_v42 = vadd.f32 %v689_v2, %v675_v0  ;;  %v663_v13 = vpop.f32.mrf.mxu1  ;;  %v3730_v3 = vor.u32 %v3959_v58, %v3727_v5 }
 0x11a   : > { %2258 = vmatpush.bf16.msrb.mxu2 %v3608_v26  ;;  %v3687_v26 = vld [vmem:[%s5960_s6 + $0x658] sm:$0xf0]  ;;  %v5834_v9 = vadd.f32 %v663_v13, %v649_v48  ;;  %v3645_v48 = vld [vmem:[%s5960_s6 + $0x600] sm:$0xf] }
 0x11b   : > { %2230 = vmatpush.bf16.msrb.mxu3 %v3604_v29  ;;  %v3949_v29 = vld [vmem:[%s5960_s6 + $0x654] sm:$0xf] }
 0x11c   : > { %2216 = vmatpush.bf16.msrb.mxu1 %v3540_v52  ;;  %2244 = vmatpush.bf16.msrb.mxu0 %v3544_v38  ;;  %v3717_v52 = vld [vmem:[%s5960_s6 + $0x690] sm:$0xf]  ;;  %v3686_v38 = vor.u32 %v3950_v6, %v3685_v37  ;;  %v3690_v22 = vor.u32 %v3949_v29, %v3687_v26  ;;  %v3655_v37 = vld [vmem:[%s5960_s6 + $0x618] sm:$0xf0]  ;;  %v3940_v6 = vld [vmem:[%s5960_s6 + $0x604] sm:$0xf0] }
 0x11d   : > { %v3718_v21 = vor.u32 %v3958_v54, %v3717_v52  ;;  %v3939_v29 = vld [vmem:[%s5960_s6 + $0x604] sm:$0xf]  ;;  %v3647_v26 = vld [vmem:[%s5960_s6 + $0x608] sm:$0xf0] }
 0x11e   : > { %2259 = vmatpush.bf16.msrb.mxu2 %v3600_v20  ;;  %v3948_v20 = vld [vmem:[%s5960_s6 + $0x644] sm:$0xf0]  ;;  %v3650_v13 = vor.u32 %v3939_v29, %v3647_v26 }
 0x11f   : > { %2231 = vmatpush.bf16.msrb.mxu3 %v3596_v43  ;;  %v3719_v43 = vld [vmem:[%s5960_s6 + $0x698] sm:$0xf0]  ;;  %v3678_v10 = vor.u32 %v3948_v20, %v3677_v8 }
 0x120   : > { %2217 = vmatpush.bf16.msrb.mxu1 %v3532_v23  ;;  %2245 = vmatpush.bf16.msrb.mxu0 %v3536_v24  ;;  %v3722_v57 = vor.u32 %v3957_v1, %v3719_v43  ;;  %v691_v23 = vpop.f32.mrf.mxu3  ;;  %v3946_v24 = vld [vmem:[%s5960_s6 + $0x634] sm:$0xf0] }
 0x121   : > { %v826_v25 = vpop.f32.mrf.mxu1 }
 0x122   : > { %2260 = vmatpush.bf16.msrb.mxu2 %v3592_v46  ;;  %v3710_v46 = vor.u32 %v3956_v16, %v3709_v34  ;;  %v827_v60 = vadd.f32 %v826_v25, %v5781_v17  ;;  %v3663_v17 = vld [vmem:[%s5960_s6 + $0x628] sm:$0xf0] }
 0x123   : > { %2232 = vmatpush.bf16.msrb.mxu3 %v3588_v44  ;;  %v854_v44 = vpop.f32.mrf.mxu0  ;;  %v3666_v4 = vor.u32 %v3943_v49, %v3663_v17 }
 0x124   : > { %2218 = vmatpush.bf16.msrb.mxu1 %v3524_v35  ;;  %2246 = vmatpush.bf16.msrb.mxu0 %v3528_v31  ;;  %v855_v11 = vadd.f32 %v854_v44, %v690_v42  ;;  %v3646_v42 = vor.u32 %v3940_v6, %v3645_v48 }
 0x125   : > { %3618 = vmatmul.msk.bf16.vlgmr.msrb.gmra.mxu2 %vm634_vm2, %v5146_v15 }
 0x126   : > { %2468 = vmatpush.bf16.msra.mxu2 %v3706_v36  ;;  %3617 = vmatmul.msk.bf16.vlgmr.msrb.gmra.mxu3 %vm634_vm2, %v5146_v15  ;;  %v3669_v15 = vld [vmem:[%s5960_s6 + $0x630] sm:$0xf]  ;;  %v3674_v36 = vor.u32 %v3945_v59, %v3671_v18 }
 0x127   : > { %2440 = vmatpush.bf16.msra.mxu3 %v3702_v14  ;;  %2219 = vmatmul.bf16.vlgmr.msrb.gmra.mxu1 %v5080_v62  ;;  %v3670_v14 = vor.u32 %v3946_v24, %v3669_v15 }
 0x128   : > { %2458 = vmatpush.bf16.msra.mxu1 %v3734_v61  ;;  %2486 = vmatpush.bf16.msra.mxu0 %v3738_v53  ;;  %v840_v35 = vpop.f32.mrf.mxu3  ;;  %v3942_v61 = vld [vmem:[%s5960_s6 + $0x614] sm:$0xf0]  ;;  %v3941_v53 = vld [vmem:[%s5960_s6 + $0x614] sm:$0xf] }
 0x129   : > { %2247 = vmatmul.bf16.vlgmr.msrb.gmra.mxu0 %v5080_v62  ;;  %v677_v62 = vpop.f32.mrf.mxu2  ;;  %v841_v39 = vadd.f32 %v840_v35, %v827_v60  ;;  %v3654_v5 = vor.u32 %v3942_v61, %v3653_v56  ;;  %v3658_v2 = vor.u32 %v3941_v53, %v3655_v37 }
 0x12a   : > { %2469 = vmatpush.bf16.msra.mxu2 %v3698_v63  ;;  %v692_v55 = vadd.f32 %v691_v23, %v677_v62  ;;  %v828_v63 = vpop.f32.mrf.mxu1 }
 0x12b   : > { %2441 = vmatpush.bf16.msra.mxu3 %v3694_v28  ;;  %v856_v0 = vpop.f32.mrf.mxu0  ;;  %v829_v32 = vadd.f32 %v828_v63, %v5834_v9 }
 0x12c   : > { %2459 = vmatpush.bf16.msra.mxu1 %v3726_v45  ;;  %2487 = vmatpush.bf16.msra.mxu0 %v3730_v3  ;;  %v857_v58 = vadd.f32 %v856_v0, %v692_v55 }
 0x12e   : > { %2470 = vmatpush.bf16.msra.mxu2 %v3690_v22 }
 0x12f   : > { %2442 = vmatpush.bf16.msra.mxu3 %v3686_v38 }
 0x130   : > { %2460 = vmatpush.bf16.msra.mxu1 %v3718_v21  ;;  %2488 = vmatpush.bf16.msra.mxu0 %v3722_v57  ;;  %v842_v9 = vpop.f32.mrf.mxu3 }
 0x131   : > { %v868_v31 = vpop.f32.mrf.mxu2  ;;  %v843_v3 = vadd.f32 %v842_v9, %v829_v32 }
 0x132   : > { %2471 = vmatpush.bf16.msra.mxu2 %v3682_v12  ;;  %v869_v28 = vadd.f32 %v868_v31, %v855_v11  ;;  %v1081_v52 = vpop.f32.mrf.mxu1 }
 0x133   : > { %2443 = vmatpush.bf16.msra.mxu3 %v3678_v10 }
 0x134   : > { %2461 = vmatpush.bf16.msra.mxu1 %v3710_v46  ;;  %2489 = vmatpush.bf16.msra.mxu0 %v3714_v7  ;;  %v1109_v38 = vpop.f32.mrf.mxu0 }
 0x136   : > { %2472 = vmatpush.bf16.msra.mxu2 %v3674_v36 }
 0x137   : > { %2444 = vmatpush.bf16.msra.mxu3 %v3670_v14  ;;  %3739 = vmatmul.msk.bf16.vlgmr.msra.gmra.mxu1 %vm634_vm2, %v5123_v33 }
 0x139   : > { %3740 = vmatmul.msk.bf16.vlgmr.msra.gmra.mxu0 %vm634_vm2, %v5123_v33  ;;  %v870_v45 = vpop.f32.mrf.mxu2  ;;  %v1067_v22 = vpop.f32.mrf.mxu3 }
 0x13a   : > { %2473 = vmatpush.bf16.msra.mxu2 %v3666_v4  ;;  %v871_v8 = vadd.f32 %v870_v45, %v857_v58  ;;  %v1082_v54 = vadd.f32 %v1081_v52, %v1067_v22  ;;  %v1083_v40 = vpop.f32.mrf.mxu1 }
 0x13b   : > { %2445 = vmatpush.bf16.msra.mxu3 %v3662_v47 }
 0x13c   : > { %v1114_v43 = vadd.f32 %v1082_v54, %v841_v39  ;;  %v1111_v50 = vpop.f32.mrf.mxu0 }
 0x13e   : > { %2474 = vmatpush.bf16.msra.mxu2 %v3658_v2 }
 0x13f   : > { %2446 = vmatpush.bf16.msra.mxu3 %v3654_v5 }
 0x141   : > { %v1095_v1 = vpop.f32.mrf.mxu2  ;;  %v1069_v21 = vpop.f32.mrf.mxu3 }
 0x142   : > { %2475 = vmatpush.bf16.msra.mxu2 %v3650_v13  ;;  %v1110_v33 = vadd.f32 %v1109_v38, %v1095_v1  ;;  %v1084_v57 = vadd.f32 %v1083_v40, %v1069_v21 }
 0x143   : > { %2447 = vmatpush.bf16.msra.mxu3 %v3646_v42 }
 0x144   : > { %v1115_v20 = vadd.f32 %v1110_v33, %v869_v28  ;;  %v1116_v10 = vadd.f32 %v1084_v57, %v843_v3  ;;  %v1304_v62 = vpop.f32.mrf.mxu1 }
 0x145   : > { %2476 = vmatmul.bf16.vlgmr.msra.gmra.mxu2 %v5158_v27 }
 0x146   : > { %2448 = vmatmul.bf16.vlgmr.msra.gmra.mxu3 %v5158_v27  ;;  %v1332_v15 = vpop.f32.mrf.mxu0 }
 0x149   : > { %v1097_v34 = vpop.f32.mrf.mxu2  ;;  %v1318_v19 = vpop.f32.mrf.mxu3 }
 0x14a   : > { %v1112_v16 = vadd.f32 %v1111_v50, %v1097_v34  ;;  %v1319_v51 = vadd.f32 %v1318_v19, %v1304_v62 }
 0x14c   : > { %v1117_v12 = vadd.f32 %v1112_v16, %v871_v8  ;;  %v1351_v24 = vadd.f32 %v1319_v51, %v1114_v43  ;;  %v1306_v18 = vpop.f32.mrf.mxu1 }
 0x14e   : > { %v1334_v25 = vpop.f32.mrf.mxu0 }
 0x151   : > { %v1346_v23 = vpop.f32.mrf.mxu2  ;;  %v1320_v55 = vpop.f32.mrf.mxu3 }
 0x152   : > { %v1347_v27 = vadd.f32 %v1346_v23, %v1332_v15  ;;  %v1321_v44 = vadd.f32 %v1320_v55, %v1306_v18 }
 0x154   : > { %v1352_v59 = vadd.f32 %v1347_v27, %v1115_v20  ;;  %v5934_v11 = vadd.f32 %v1321_v44, %v1116_v10  ;;  %v1546_v14 = vpop.f32.mrf.mxu1  ;;  %v2500_v10 = vld [vmem:[%s5961_s7] sm:$0x3] }
 0x156   : > { %v1574_v36 = vpop.f32.mrf.mxu0 }
 0x159   : > { %v1348_v46 = vpop.f32.mrf.mxu2 }
 0x15a   : > { %v1349_v60 = vadd.f32 %v1348_v46, %v1334_v25  ;;  %v2503_v46 = vperm.slane %v2500_v10, 1 }
 0x15c   : > { %v5936_v7 = vadd.f32 %v1349_v60, %v1117_v12  ;;  %v1548_v49 = vpop.f32.mrf.mxu1 }
 0x15e   : > { %v1576_v17 = vpop.f32.mrf.mxu0 }
 0x168   : > { %v1560_v41 = vpop.f32.mrf.mxu2 }
 0x169   : > { %v1532_v30 = vpop.f32.mrf.mxu3  ;;  %v1575_v8 = vadd.f32 %v1574_v36, %v1560_v41 }
 0x16a   : > { %v1547_v3 = vadd.f32 %v1546_v14, %v1532_v30 }
 0x16b   : > { %v1580_v43 = vadd.f32 %v1575_v8, %v1352_v59  ;;  %v2502_v59 = vperm.slane %v2500_v10, 0 }
 0x16c   : > { %v1579_v1 = vadd.f32 %v1547_v3, %v1351_v24 }
 0x170   : > { %v1562_v4 = vpop.f32.mrf.mxu2 }
 0x171   : > { %v1534_v47 = vpop.f32.mrf.mxu3  ;;  %v1577_v62 = vadd.f32 %v1576_v17, %v1562_v4 }
 0x172   : > { %v1549_v12 = vadd.f32 %v1548_v49, %v1534_v47 }
 0x173   : > { %v1582_v14 = vadd.f32 %v1577_v62, %v5936_v7 }
 0x174   : > { %v1769_v56 = vpop.f32.mrf.mxu1  ;;  %v1581_v60 = vadd.f32 %v1549_v12, %v5934_v11 }
 0x176   : > { %v1797_v35 = vpop.f32.mrf.mxu0 }
 0x178   : > { %v1811_v61 = vpop.f32.mrf.mxu2 }
 0x179   : > { %v1783_v31 = vpop.f32.mrf.mxu3  ;;  %v1812_v54 = vadd.f32 %v1811_v61, %v1797_v35 }
 0x17a   : > { %v1784_v52 = vadd.f32 %v1783_v31, %v1769_v56 }
 0x17b   : > { %v1817_v21 = vadd.f32 %v1812_v54, %v1580_v43 }
 0x17c   : > { %v1771_v53 = vpop.f32.mrf.mxu1  ;;  %v1816_v40 = vadd.f32 %v1784_v52, %v1579_v1 }
 0x17e   : > { %v1799_v37 = vpop.f32.mrf.mxu0 }
 0x180   : > { %v1813_v28 = vpop.f32.mrf.mxu2 }
 0x181   : > { %v1785_v39 = vpop.f32.mrf.mxu3  ;;  %v1814_v23 = vadd.f32 %v1813_v28, %v1799_v37 }
 0x182   : > { %v1786_v51 = vadd.f32 %v1785_v39, %v1771_v53 }
 0x183   : > { %v1819_v47 = vadd.f32 %v1814_v23, %v1582_v14 }
 0x184   : > { %v1997_v63 = vpop.f32.mrf.mxu1  ;;  %v1818_v17 = vadd.f32 %v1786_v51, %v1581_v60 }
 0x186   : > { %v2025_v0 = vpop.f32.mrf.mxu0 }
 0x18c   : > { %v1999_v5 = vpop.f32.mrf.mxu1 }
 0x18e   : > { %v2027_v2 = vpop.f32.mrf.mxu0 }
 0x198   : > { %v2011_v58 = vpop.f32.mrf.mxu2 }
 0x199   : > { %v1983_v32 = vpop.f32.mrf.mxu3  ;;  %v2026_v20 = vadd.f32 %v2025_v0, %v2011_v58 }
 0x19a   : > { %v1998_v33 = vadd.f32 %v1997_v63, %v1983_v32 }
 0x19b   : > { %v2031_v19 = vadd.f32 %v2026_v20, %v1817_v21 }
 0x19c   : > { %v2030_v15 = vadd.f32 %v1998_v33, %v1816_v40 }
 0x1a0   : > { %v2013_v6 = vpop.f32.mrf.mxu2 }
 0x1a1   : > { %v1985_v48 = vpop.f32.mrf.mxu3  ;;  %v2028_v30 = vadd.f32 %v2027_v2, %v2013_v6 }
 0x1a2   : > { %v2000_v36 = vadd.f32 %v1999_v5, %v1985_v48 }
 0x1a3   : > { %v2033_v53 = vadd.f32 %v2028_v30, %v1819_v47 }
 0x1a4   : > { %v2220_v29 = vpop.f32.mrf.mxu1  ;;  %v2032_v61 = vadd.f32 %v2000_v36, %v1818_v17 }
 0x1a6   : > { %v2248_v26 = vpop.f32.mrf.mxu0 }
 0x1a8   : > { %v2262_v13 = vpop.f32.mrf.mxu2 }
 0x1a9   : > { %v2234_v42 = vpop.f32.mrf.mxu3  ;;  %v2263_v57 = vadd.f32 %v2262_v13, %v2248_v26 }
 0x1aa   : > { %v2235_v50 = vadd.f32 %v2234_v42, %v2220_v29 }
 0x1ab   : > { %v2268_v55 = vadd.f32 %v2263_v57, %v2031_v19 }
 0x1ac   : > { %v2222_v9 = vpop.f32.mrf.mxu1  ;;  %v2267_v27 = vadd.f32 %v2235_v50, %v2030_v15  ;;  %v2538_v15 = vlaneseq }
 0x1ae   : > { %v2250_v45 = vpop.f32.mrf.mxu0  ;;  %vm2540_vm9 = vcmp.lt.s32.totalorder %v2538_v15, 256 }
 0x1b0   : > { %v2264_v22 = vpop.f32.mrf.mxu2 }
 0x1b1   : > { %v2236_v38 = vpop.f32.mrf.mxu3  ;;  %v2265_v56 = vadd.f32 %v2264_v22, %v2250_v45 }
 0x1b2   : > { %v2237_v4 = vadd.f32 %v2236_v38, %v2222_v9 }
 0x1b3   : > { %v2270_v32 = vadd.f32 %v2265_v56, %v2033_v53 }
 0x1b4   : > { %v2463_v34 = vpop.f32.mrf.mxu1  ;;  %v2269_v0 = vadd.f32 %v2237_v4, %v2032_v61 }
 0x1b6   : > { %v2491_v16 = vpop.f32.mrf.mxu0 }
 0x1bc   : > { %v2465_v11 = vpop.f32.mrf.mxu1 }
 0x1be   : > { %v2493_v37 = vpop.f32.mrf.mxu0 }
 0x1c8   : > { %v2477_v18 = vpop.f32.mrf.mxu2 }
 0x1c9   : > { %v2449_v24 = vpop.f32.mrf.mxu3  ;;  %v2492_v44 = vadd.f32 %v2491_v16, %v2477_v18 }
 0x1ca   : > { %v2464_v25 = vadd.f32 %v2463_v34, %v2449_v24 }
 0x1cb   : > { %v2497_v49 = vadd.f32 %v2492_v44, %v2268_v55 }
 0x1cc   : > { %v2496_v41 = vadd.f32 %v2464_v25, %v2267_v27 }
 0x1cd   : > { %v2507_v31 = vadd.f32 %v2503_v46, %v2497_v49 }
 0x1ce   : > { %v2506_v35 = vadd.f32 %v2502_v59, %v2496_v41 }
 0x1cf   : > { %v2511_v39 = vmax.f32 %v2507_v31, 0.0 }
 0x1d0   : > { %v2510_v7 = vmax.f32 %v2506_v35, 0.0  ;;  %v2479_v63 = vpop.f32.mrf.mxu2 }
 0x1d1   : > { %v2451_v28 = vpop.f32.mrf.mxu3  ;;  %v2494_v5 = vadd.f32 %v2493_v37, %v2479_v63  ;;  %2515 = vst [vmem:[%s340_s13 + $0x8] sm:$0xff] %v2511_v39  ;;  %v2544_v9 = vmul.f32 %v2511_v39, %v2511_v39 }
 0x1d2   : > { %2514 = vst [vmem:[%s340_s13] sm:$0xff] %v2510_v7  ;;  %v2466_v58 = vadd.f32 %v2465_v11, %v2451_v28  ;;  %v2543_v13 = vmul.f32 %v2510_v7, %v2510_v7 }
 0x1d3   : > { %v2499_v48 = vadd.f32 %v2494_v5, %v2270_v32 }
 0x1d4   : > { %v2498_v2 = vadd.f32 %v2466_v58, %v2269_v0 }
 0x1d5   : > { %v2509_v29 = vadd.f32 %v2503_v46, %v2499_v48 }
 0x1d6   : > { %v2508_v6 = vadd.f32 %v2502_v59, %v2498_v2 }
 0x1d7   : > { %v2513_v42 = vmax.f32 %v2509_v29, 0.0 }
 0x1d8   : > { %v2512_v26 = vmax.f32 %v2508_v6, 0.0 }
 0x1d9   : > { %v2525_v8 = vadd.f32 %v2513_v42, %v2511_v39  ;;  %v2546_v52 = vmul.f32 %v2513_v42, %v2513_v42  ;;  %2517 = vst [vmem:[%s340_s13 + $0x18] sm:$0xff] %v2513_v42 }
 0x1da   : > { %2516 = vst [vmem:[%s340_s13 + $0x10] sm:$0xff] %v2512_v26  ;;  %v2518_v45 = vadd.f32 %v2512_v26, %v2510_v7  ;;  %v2545_v3 = vmul.f32 %v2512_v26, %v2512_v26 }
 0x1db   : > { %v2526_v54 = vrot.slane %v2525_v8, 4  ;;  %v2554_v1 = vadd.f32 %v2546_v52, %v2544_v9 }
 0x1dc   : > { %v2519_v38 = vrot.slane %v2518_v45, 4  ;;  %v2547_v22 = vadd.f32 %v2545_v3, %v2543_v13 }
 0x1dd   : > { %v2527_v20 = vadd.f32 %v2526_v54, %v2525_v8  ;;  %v2555_v40 = vrot.slane %v2554_v1, 4 }
 0x1de   : > { %v2520_v33 = vadd.f32 %v2519_v38, %v2518_v45  ;;  %v2548_v43 = vrot.slane %v2547_v22, 4 }
 0x1df   : > { %v2528_v57 = vrot.slane %v2527_v20, 2  ;;  %v2556_v34 = vadd.f32 %v2555_v40, %v2554_v1 }
 0x1e0   : > { %v2521_v50 = vrot.slane %v2520_v33, 2  ;;  %v2549_v21 = vadd.f32 %v2548_v43, %v2547_v22 }
 0x1e1   : > { %v2529_v12 = vadd.f32 %v2528_v57, %v2527_v20  ;;  %v2557_v62 = vrot.slane %v2556_v34, 2 }
 0x1e2   : > { %v2522_v16 = vadd.f32 %v2521_v50, %v2520_v33  ;;  %v2550_v10 = vrot.slane %v2549_v21, 2 }
 0x1e3   : > { %v2530_v23 = vrot.slane %v2529_v12, 1  ;;  %v2558_v27 = vadd.f32 %v2557_v62, %v2556_v34 }
 0x1e4   : > { %v2523_v19 = vrot.slane %v2522_v16, 1  ;;  %v2551_v51 = vadd.f32 %v2550_v10, %v2549_v21 }
 0x1e5   : > { %v2531_v59 = vadd.f32 %v2530_v23, %v2529_v12  ;;  %v2559_v18 = vrot.slane %v2558_v27, 1 }
 0x1e6   : > { %v2552_v24 = vrot.slane %v2551_v51, 1  ;;  %v2524_v55 = vadd.f32 %v2523_v19, %v2522_v16 }
 0x1e7   : > { %v2534_v25 = vrot.slane %v2531_v59, 7  ;;  %v2560_v44 = vadd.f32 %v2559_v18, %v2558_v27 }
 0x1e8   : > { %v2553_v46 = vadd.f32 %v2552_v24, %v2551_v51 }
 0x1e9   : > { %v2536_v60 = vsel %vm2535_vm8, %v2524_v55, %v2534_v25  ;;  %v2563_v14 = vrot.slane %v2560_v44, 7 }
 0x1ea   : > { %2542 = vst.msk [vmem:[%s345_s17] ss:$2 sm:$0x3] %vm2540_vm9, %v2536_v60 }
 0x1eb   : > { %v2564_v36 = vsel %vm2535_vm8, %v2553_v46, %v2563_v14 }
 0x1ec   : > { %3741 = vst.msk [vmem:[%s345_s17 + $0x1] ss:$2 sm:$0x3] %vm2540_vm9, %v2564_v36 }
 0x1ed PF: > { %s20_s30 = sadd.s32 1, %s3981_s30  }
 0x1ee   : > { %p17_p4 = scmp.ge.s32.totalorder %s20_s30, 4  }
 0x1f0   :  { %19 = sbr.rel (!%p17_p4) target bundleno = 1 (0x1), region = 103 }

</bundles_post_ra>
